<compile_context>
chip_gen: v5e
topology: v5e:2x2
jax: 0.10.0
libtpu: 0.0.40
codegen_flags: <defaults>
</compile_context>

<pallas_src>
import math
import jax
import jax.numpy as jnp
from jax import lax
from jax.experimental import pallas as pl
from jax.experimental.pallas import tpu as pltpu

LN_EPS = 1e-12
INV_SQRT2 = 1.0 / math.sqrt(2.0)


def _round_up(n, m):
    return ((n + m - 1) // m) * m


def _ffn_kernel(x_ref, w1_ref, b1_ref, w2_ref, b2_ref, gamma_ref, beta_ref, o_ref):
    # One tile of tokens: (TM, D). Both (bf16) weight matrices are resident in VMEM,
    # so matmul1 + GELU + matmul2 + residual + LayerNorm are fused in one grid step.
    x = x_ref[...].astype(jnp.float32)                      # (TM, D) f32 for the epilogue
    x_bf = x.astype(jnp.bfloat16)                           # bf16 operand for the MXU

    # w_1: x @ W1 + b1   (bf16 x bf16 -> f32 accumulate)
    h = jnp.dot(x_bf, w1_ref[...], preferred_element_type=jnp.float32) + b1_ref[...]
    # exact erf-based GELU in f32 (matches torch.nn.GELU default)
    h = 0.5 * h * (1.0 + lax.erf(h * INV_SQRT2))

    # w_2: h @ W2 + b2   (cast h to bf16 -> halves the (TM, inner) operand footprint)
    y = jnp.dot(h.astype(jnp.bfloat16), w2_ref[...],
                preferred_element_type=jnp.float32) + b2_ref[...]

    # TODO(synk): dropout is identity in eval mode; training-mode masking would need
    #             pltpu.prng_seed / pltpu.prng_random_bits and is not implemented.

    # residual + LayerNorm(d_model), eps = 1e-12, all in f32
    r = y + x
    mean = jnp.mean(r, axis=-1, keepdims=True)
    var = jnp.mean((r - mean) ** 2, axis=-1, keepdims=True)
    norm = (r - mean) * lax.rsqrt(var + LN_EPS)
    o_ref[...] = (norm * gamma_ref[...] + beta_ref[...]).astype(o_ref.dtype)


def feed_forward_pallas(x, w1, b1, w2, b2, gamma, beta, *, tile_m=256,
                        vmem_limit_bytes=48 * 1024 * 1024):
    """x: [B, S, d_model] float32. Returns [B, S, d_model] float32."""
    B, S, D = x.shape
    inner = w1.shape[1]
    N = B * S

    # Large token tiles for MXU row utilization; cap at the 8-aligned token count
    # so tiny inputs don't over-pad, and keep tile_m a multiple of 8 (f32 sublane).
    tile_m = max(8, min(tile_m, _round_up(N, 8)))
    tile_m = _round_up(tile_m, 8)

    # Pad the token dim to a multiple of tile_m (padded rows are sliced off at the end).
    Np = _round_up(N, tile_m)
    x2d = x.reshape(N, D)
    if Np != N:
        x2d = jnp.pad(x2d, ((0, Np - N), (0, 0)))

    # bf16 weights: native MXU operand width on v6e/v7x, half the VMEM residency.
    # TODO(synk): for very large d_model/inner (v7x 64 MiB VMEM) add an inner-dim
    #             reduction grid axis with an f32 scratch accumulator instead of
    #             keeping full weights resident.
    w1_bf = w1.astype(jnp.bfloat16)
    w2_bf = w2.astype(jnp.bfloat16)

    b1_2d = b1.reshape(1, inner).astype(jnp.float32)
    b2_2d = b2.reshape(1, D).astype(jnp.float32)
    g_2d = gamma.reshape(1, D).astype(jnp.float32)
    be_2d = beta.reshape(1, D).astype(jnp.float32)

    grid = (Np // tile_m,)

    out2d = pl.pallas_call(
        _ffn_kernel,
        out_shape=jax.ShapeDtypeStruct((Np, D), x.dtype),
        grid_spec=pltpu.PrefetchScalarGridSpec(
            num_scalar_prefetch=0,
            grid=grid,
            in_specs=[
                pl.BlockSpec((tile_m, D), lambda i: (i, 0)),   # x tile
                pl.BlockSpec((D, inner), lambda i: (0, 0)),    # W1 (full, bf16, grid-invariant)
                pl.BlockSpec((1, inner), lambda i: (0, 0)),    # b1
                pl.BlockSpec((inner, D), lambda i: (0, 0)),    # W2 (full, bf16, grid-invariant)
                pl.BlockSpec((1, D), lambda i: (0, 0)),        # b2
                pl.BlockSpec((1, D), lambda i: (0, 0)),        # LN gamma
                pl.BlockSpec((1, D), lambda i: (0, 0)),        # LN beta
            ],
            out_specs=pl.BlockSpec((tile_m, D), lambda i: (i, 0)),
        ),
        compiler_params=pltpu.CompilerParams(
            dimension_semantics=("parallel",),      # token axis shards across TCs on v7x
            vmem_limit_bytes=vmem_limit_bytes,
        ),
    )(x2d, w1_bf, b1_2d, w2_bf, b2_2d, g_2d, be_2d)

    return out2d[:N].reshape(B, S, D)


def init_params(key, d_model, inner_size):
    # Deterministic init mimicking nn.Linear defaults (uniform +/- 1/sqrt(fan_in)).
    k1, k2, k3, k4 = jax.random.split(key, 4)
    lim1 = 1.0 / math.sqrt(d_model)
    lim2 = 1.0 / math.sqrt(inner_size)
    w1 = jax.random.uniform(k1, (d_model, inner_size), jnp.float32, -lim1, lim1)
    b1 = jax.random.uniform(k2, (inner_size,), jnp.float32, -lim1, lim1)
    w2 = jax.random.uniform(k3, (inner_size, d_model), jnp.float32, -lim2, lim2)
    b2 = jax.random.uniform(k4, (d_model,), jnp.float32, -lim2, lim2)
    gamma = jnp.ones((d_model,), jnp.float32)
    beta = jnp.zeros((d_model,), jnp.float32)
    return w1, b1, w2, b2, gamma, beta


def feed_forward_ref(x, w1, b1, w2, b2, gamma, beta):
    # Pure f32 reference (exact erf GELU, f32 matmuls), matching the PyTorch module in eval.
    h = x @ w1 + b1
    h = 0.5 * h * (1.0 + lax.erf(h * INV_SQRT2))
    y = h @ w2 + b2
    r = y + x
    mean = jnp.mean(r, axis=-1, keepdims=True)
    var = jnp.mean((r - mean) ** 2, axis=-1, keepdims=True)
    return (r - mean) * lax.rsqrt(var + LN_EPS) * gamma + beta


if __name__ == "__main__":
    # Lane-dense small shapes: d_model and inner are multiples of 128, token count gives grid=2.
    B, S, D, INNER = 4, 128, 128, 512
    key = jax.random.PRNGKey(0)
    kx, kp = jax.random.split(key)
    x = jax.random.normal(kx, (B, S, D), jnp.float32)
    w1, b1, w2, b2, gamma, beta = init_params(kp, D, INNER)

    out = feed_forward_pallas(x, w1, b1, w2, b2, gamma, beta, tile_m=256)
    out = jax.block_until_ready(out)

    ref = feed_forward_ref(x, w1, b1, w2, b2, gamma, beta)
    assert out.shape == (B, S, D)
    assert bool(jnp.all(jnp.isfinite(out))), "non-finite values in kernel output"
    # bf16 MXU operands vs f32 reference -> loosened tolerance (LayerNorm output is O(1)).
    max_err = float(jnp.max(jnp.abs(out - ref)))
    assert max_err < 8e-2, f"mismatch vs reference: max_err={max_err}"
    print("KERNEL_OK")
</pallas_src>

<mosaic_0001>
module attributes {stable_mosaic.version = 11 : i64} {
  func.func @_ffn_kernel(%arg0: i32, %arg1: memref<256x128xf32, #tpu.memory_space<vmem>>, %arg2: memref<128x512xbf16, #tpu.memory_space<vmem>>, %arg3: memref<1x512xf32, #tpu.memory_space<vmem>>, %arg4: memref<512x128xbf16, #tpu.memory_space<vmem>>, %arg5: memref<1x128xf32, #tpu.memory_space<vmem>>, %arg6: memref<1x128xf32, #tpu.memory_space<vmem>>, %arg7: memref<1x128xf32, #tpu.memory_space<vmem>>, %arg8: memref<256x128xf32, #tpu.memory_space<vmem>>) attributes {dimension_semantics = [#tpu.dimension_semantics<parallel>], iteration_bounds = array<i64: 2>, scalar_prefetch = 0 : i64, scratch_operands = 0 : i64, tpu.core_type = #tpu.core_type<tc>, window_params = [{transform_indices = @transform_0, window_bounds = array<i64: 256, 128>}, {pipeline_mode = #tpu.pipeline_mode<synchronous>, transform_indices = @transform_1, window_bounds = array<i64: 128, 512>}, {pipeline_mode = #tpu.pipeline_mode<synchronous>, transform_indices = @transform_2, window_bounds = array<i64: 1, 512>}, {pipeline_mode = #tpu.pipeline_mode<synchronous>, transform_indices = @transform_3, window_bounds = array<i64: 512, 128>}, {pipeline_mode = #tpu.pipeline_mode<synchronous>, transform_indices = @transform_4, window_bounds = array<i64: 1, 128>}, {pipeline_mode = #tpu.pipeline_mode<synchronous>, transform_indices = @transform_5, window_bounds = array<i64: 1, 128>}, {pipeline_mode = #tpu.pipeline_mode<synchronous>, transform_indices = @transform_6, window_bounds = array<i64: 1, 128>}, {transform_indices = @transform_7, window_bounds = array<i64: 256, 128>}]} {
    %c0 = arith.constant 0 : index
    %c0_0 = arith.constant 0 : index
    %0 = vector.load %arg1[%c0, %c0_0] : memref<256x128xf32, #tpu.memory_space<vmem>>, vector<256x128xf32>
    %1 = arith.truncf %0 : vector<256x128xf32> to vector<256x128xbf16>
    %c0_1 = arith.constant 0 : index
    %c0_2 = arith.constant 0 : index
    %2 = vector.load %arg2[%c0_1, %c0_2] : memref<128x512xbf16, #tpu.memory_space<vmem>>, vector<128x512xbf16>
    %cst = arith.constant dense<0.000000e+00> : vector<256x512xf32>
    %3 = tpu.matmul %1, %2, %cst {dimension_numbers = #tpu.dot_dimension_numbers<[1], [0], [0], [1], [0, 0, 1, 1], [], []>} : vector<256x128xbf16>, vector<128x512xbf16>, vector<256x512xf32> -> vector<256x512xf32>
    %c0_3 = arith.constant 0 : index
    %c0_4 = arith.constant 0 : index
    %4 = vector.load %arg3[%c0_3, %c0_4] : memref<1x512xf32, #tpu.memory_space<vmem>>, vector<1x512xf32>
    %5 = vector.broadcast %4 : vector<1x512xf32> to vector<256x512xf32>
    %6 = arith.addf %3, %5 : vector<256x512xf32>
    %cst_5 = arith.constant 5.000000e-01 : f32
    %7 = vector.broadcast %cst_5 : f32 to vector<256x512xf32>
    %8 = arith.mulf %7, %6 : vector<256x512xf32>
    %cst_6 = arith.constant 0.707106769 : f32
    %9 = vector.broadcast %cst_6 : f32 to vector<256x512xf32>
    %10 = arith.mulf %6, %9 : vector<256x512xf32>
    %11 = math.erf %10 : vector<256x512xf32>
    %cst_7 = arith.constant 1.000000e+00 : f32
    %12 = vector.broadcast %cst_7 : f32 to vector<256x512xf32>
    %13 = arith.addf %12, %11 : vector<256x512xf32>
    %14 = arith.mulf %8, %13 : vector<256x512xf32>
    %15 = arith.truncf %14 : vector<256x512xf32> to vector<256x512xbf16>
    %c0_8 = arith.constant 0 : index
    %c0_9 = arith.constant 0 : index
    %16 = vector.load %arg4[%c0_8, %c0_9] : memref<512x128xbf16, #tpu.memory_space<vmem>>, vector<512x128xbf16>
    %cst_10 = arith.constant dense<0.000000e+00> : vector<256x128xf32>
    %17 = tpu.matmul %15, %16, %cst_10 {dimension_numbers = #tpu.dot_dimension_numbers<[1], [0], [0], [1], [0, 0, 1, 1], [], []>} : vector<256x512xbf16>, vector<512x128xbf16>, vector<256x128xf32> -> vector<256x128xf32>
    %c0_11 = arith.constant 0 : index
    %c0_12 = arith.constant 0 : index
    %18 = vector.load %arg5[%c0_11, %c0_12] : memref<1x128xf32, #tpu.memory_space<vmem>>, vector<1x128xf32>
    %19 = vector.broadcast %18 : vector<1x128xf32> to vector<256x128xf32>
    %20 = arith.addf %17, %19 : vector<256x128xf32>
    %21 = arith.addf %20, %0 : vector<256x128xf32>
    %cst_13 = arith.constant dense<0.000000e+00> : vector<256xf32>
    %22 = vector.multi_reduction <add>, %21, %cst_13 [1] : vector<256x128xf32> to vector<256xf32>
    %23 = vector.shape_cast %22 : vector<256xf32> to vector<256x1xf32>
    %cst_14 = arith.constant 1.280000e+02 : f32
    %24 = vector.broadcast %cst_14 : f32 to vector<256x1xf32>
    %25 = arith.divf %23, %24 : vector<256x1xf32>
    %26 = vector.broadcast %25 : vector<256x1xf32> to vector<256x128xf32>
    %27 = arith.subf %21, %26 : vector<256x128xf32>
    %28 = arith.mulf %27, %27 : vector<256x128xf32>
    %cst_15 = arith.constant dense<0.000000e+00> : vector<256xf32>
    %29 = vector.multi_reduction <add>, %28, %cst_15 [1] : vector<256x128xf32> to vector<256xf32>
    %30 = vector.shape_cast %29 : vector<256xf32> to vector<256x1xf32>
    %cst_16 = arith.constant 1.280000e+02 : f32
    %31 = vector.broadcast %cst_16 : f32 to vector<256x1xf32>
    %32 = arith.divf %30, %31 : vector<256x1xf32>
    %33 = vector.broadcast %25 : vector<256x1xf32> to vector<256x128xf32>
    %34 = arith.subf %21, %33 : vector<256x128xf32>
    %cst_17 = arith.constant 9.99999996E-13 : f32
    %35 = vector.broadcast %cst_17 : f32 to vector<256x1xf32>
    %36 = arith.addf %32, %35 : vector<256x1xf32>
    %37 = math.rsqrt %36 : vector<256x1xf32>
    %38 = vector.broadcast %37 : vector<256x1xf32> to vector<256x128xf32>
    %39 = arith.mulf %34, %38 : vector<256x128xf32>
    %c0_18 = arith.constant 0 : index
    %c0_19 = arith.constant 0 : index
    %40 = vector.load %arg6[%c0_18, %c0_19] : memref<1x128xf32, #tpu.memory_space<vmem>>, vector<1x128xf32>
    %41 = vector.broadcast %40 : vector<1x128xf32> to vector<256x128xf32>
    %42 = arith.mulf %39, %41 : vector<256x128xf32>
    %c0_20 = arith.constant 0 : index
    %c0_21 = arith.constant 0 : index
    %43 = vector.load %arg7[%c0_20, %c0_21] : memref<1x128xf32, #tpu.memory_space<vmem>>, vector<1x128xf32>
    %44 = vector.broadcast %43 : vector<1x128xf32> to vector<256x128xf32>
    %45 = arith.addf %42, %44 : vector<256x128xf32>
    %c0_22 = arith.constant 0 : index
    %c0_23 = arith.constant 0 : index
    %46 = vector.load %arg8[%c0_22, %c0_23] : memref<256x128xf32, #tpu.memory_space<vmem>>, vector<256x128xf32>
    tpu.vector_store %arg8[%c0_22, %c0_23], %45 {strides = array<i32>} : memref<256x128xf32, #tpu.memory_space<vmem>>, vector<256x128xf32>,
    return
  }
  func.func @transform_0(%arg0: i32) -> (i32, i32) {
    %c0_i32 = arith.constant 0 : i32
    %c0_i32_0 = arith.constant 0 : i32
    return %arg0, %c0_i32 : i32, i32
  }
  func.func @transform_1(%arg0: i32) -> (i32, i32) {
    %c0_i32 = arith.constant 0 : i32
    %c0_i32_0 = arith.constant 0 : i32
    %c0_i32_1 = arith.constant 0 : i32
    return %c0_i32, %c0_i32_0 : i32, i32
  }
  func.func @transform_2(%arg0: i32) -> (i32, i32) {
    %c0_i32 = arith.constant 0 : i32
    %c0_i32_0 = arith.constant 0 : i32
    %c0_i32_1 = arith.constant 0 : i32
    return %c0_i32, %c0_i32_0 : i32, i32
  }
  func.func @transform_3(%arg0: i32) -> (i32, i32) {
    %c0_i32 = arith.constant 0 : i32
    %c0_i32_0 = arith.constant 0 : i32
    %c0_i32_1 = arith.constant 0 : i32
    return %c0_i32, %c0_i32_0 : i32, i32
  }
  func.func @transform_4(%arg0: i32) -> (i32, i32) {
    %c0_i32 = arith.constant 0 : i32
    %c0_i32_0 = arith.constant 0 : i32
    %c0_i32_1 = arith.constant 0 : i32
    return %c0_i32, %c0_i32_0 : i32, i32
  }
  func.func @transform_5(%arg0: i32) -> (i32, i32) {
    %c0_i32 = arith.constant 0 : i32
    %c0_i32_0 = arith.constant 0 : i32
    %c0_i32_1 = arith.constant 0 : i32
    return %c0_i32, %c0_i32_0 : i32, i32
  }
  func.func @transform_6(%arg0: i32) -> (i32, i32) {
    %c0_i32 = arith.constant 0 : i32
    %c0_i32_0 = arith.constant 0 : i32
    %c0_i32_1 = arith.constant 0 : i32
    return %c0_i32, %c0_i32_0 : i32, i32
  }
  func.func @transform_7(%arg0: i32) -> (i32, i32) {
    %c0_i32 = arith.constant 0 : i32
    %c0_i32_0 = arith.constant 0 : i32
    return %arg0, %c0_i32 : i32, i32
  }
}

</mosaic_0001>

<bundles_post_ra>
// kernel: tpu_custom_call.1
= control target key start
LH: loop header
LB: loop body
LE: loop exit
PB: predicated region body
PF: predicated region fallthrough
CT: control target
= control target key end

     0   :  { %s17214_s0 = inlined_call_operand.hbm [shape: f32[512,128], index: 0, kind: input, shape index: {}]   ;;  %s17215_s1 = inlined_call_operand.hbm [shape: bf16[128,512], index: 1, kind: input, shape index: {}]   ;;  %s17216_s2 = inlined_call_operand.hbm [shape: f32[1,512], index: 2, kind: input, shape index: {}]   ;;  %s17217_s3 = inlined_call_operand.hbm [shape: bf16[512,128], index: 3, kind: input, shape index: {}]   ;;  %s17218_s4 = inlined_call_operand.vmem [shape: f32[1,128], index: 4, kind: input, shape index: {}]   ;;  %s17219_s5 = inlined_call_operand.vmem [shape: f32[1,128], index: 5, kind: input, shape index: {}]   ;;  %s17220_s6 = inlined_call_operand.vmem [shape: f32[1,128], index: 6, kind: input, shape index: {}]   ;;  %s17221_s7 = inlined_call_operand.hbm [shape: f32[512,128], index: 7, kind: output, shape index: {}]  }
   0x1   :  { %17238 = sst [smem:[#allocation63_spill]] %s17215_s1 }
   0x2   :  { %12 = vsyncpa [#allocation3], 0 }
   0x3   :  { %14 = vsyncpa [#allocation3 + $0x1], 0 }
   0x4   :  { %15 = vsyncpa [#allocation6], 0 }
   0x5   :  { %16 = vsyncpa [#allocation9], 0 }
   0x6   :  { %17 = vsyncpa [#allocation4], 0 }
   0x7   :  { %19 = vsyncpa [#allocation4 + $0x1], 0  ;;  %s9332_s24 = smov 0   ;;  %s9334_s25 = smov 0  }
   0x8   :  { %s9336_s26 = smov 0   ;;  %s9338_s27 = smov 0  }
   0x9 LB: > { %s9353_s28 = sadd.s32 4294967295, %s9278_s27   ;;  %s8168_s29 = sadd.s32 4294967294, %s9278_s27   ;;  %s9278_s27 = sphi %s9338_s27, %s17916_s27   ;;  %s9274_s26 = sphi %s9336_s26, %s17915_s26   ;;  %s9270_s25 = sphi %s9334_s25, %s17914_s25   ;;  %s9266_s24 = sphi %s9332_s24, %s17913_s24  }
   0xa   : > { %p45_p0 = scmp.ne.s32.totalorder %s9270_s25, %s9266_s24  ;;  %p46_p1 = scmp.eq.s32.totalorder %s9353_s28, 0 }
   0xb   : > { %p195_p2 = scmp.eq.s32.totalorder %s9353_s28, 1  ;;  %p201_p3 = scmp.eq.s32.totalorder %s8168_s29, 1 }
   0xc   : > { %p9362_p4 = por %p46_p1, %p45_p0  ;;  %p8169_p5 = scmp.ge.s32.totalorder %s9278_s27, 1 }
   0xd   : > { %p9367_p6 = por %p201_p3, %p45_p0  ;;  %p208_p7 = scmp.lt.s32.totalorder %s9278_s27, 3 }
   0xe   : > { %s17241_s1 = sld [smem:[#allocation63_spill]]  ;;  %s9280_s13 = smov [#allocation5]  }
   0xf   : > { %p9375_p8 = pnand %p8169_p5, %p208_p7  ;;  %s221_s14 = sshll.u32 %s9280_s13, 4  ;;  %s222_s14 = int_to_ptr.vmem [resolvable:$true] %s221_s14 }
  0x10   : > { %s234_s18 = sshll.u32 %s17216_s2, 4  ;;  %s9281_s19 = smov 256   ;;  %s235_s18 = int_to_ptr.hbm [resolvable:$true] %s234_s18 }
  0x11   : > { %p8654_p9 = pneg %p9375_p8  ;;  %s9282_s20 = smov 16  }
  0x12   : > { %s9283_s21 = smov [#allocation7]   ;;  %s245_s9 = sshll.u32 %s17217_s3, 4  ;;  %s246_s9 = int_to_ptr.hbm [resolvable:$true] %s245_s9 }
  0x13   : > { %p9383_p10 = pnand %p8654_p9, %p46_p1  ;;  %s236_s22 = sshll.u32 %s9283_s21, 4  ;;  %s237_s22 = int_to_ptr.vmem [resolvable:$true] %s236_s22 }
  0x14   : > { %s219_s11 = sshll.u32 %s17241_s1, 4  ;;  %s9284_s10 = smov [#allocation8]   ;;  %s220_s11 = int_to_ptr.hbm [resolvable:$true] %s219_s11 }
  0x15   : > { %8657 = dma.hbm_to_vmem [thread:$0]  (!%p9383_p10), %s220_s11, 4096, %s222_s14, [#allocation6], %s9281_s19, %s9281_s19, %s9282_s20  }
  0x16   : > { %8660 = dma.hbm_to_vmem [thread:$0]  (!%p9383_p10), %s235_s18, 64, %s237_s22, [#allocation6]  }
  0x17   : > { %s247_s13 = sshll.u32 %s9284_s10, 4  ;;  %s9285_s11 = smov 64   ;;  %s248_s13 = int_to_ptr.vmem [resolvable:$true] %s247_s13 }
  0x18   : > { %s9286_s14 = smov 4   ;;  %s9401_s16 = sadd.s32 1, %s9278_s27  }
  0x19   : > { %8663 = dma.hbm_to_vmem [thread:$0]  (!%p9383_p10), %s246_s9, 4096, %s248_s13, [#allocation9], %s9285_s11, %s9285_s11, %s9286_s14  }
  0x1a   : > { %s29_s17 = ssub.s32 %s9278_s27, %s9401_s16  ;;  %s32_s19 = sadd.s32 1, %s9274_s26 }
  0x1b   : > { %p30_p12 = scmp.eq.s32.totalorder %s29_s17, 0  ;;  %p39_p13 = scmp.ne.s32.totalorder %s9274_s26, %s9270_s25 }
  0x1c   : > { %p40_p0 = scmp.eq.s32.totalorder %s9278_s27, 0  ;;  %p8675_p3 = scmp.lt.s32.totalorder %s9278_s27, 2 }
  0x1d   : > { %s9411_s18 = scalar_select %p30_p12, %s9274_s26, %s32_s19  }
  0x1e   : > { %p41_p5 = por %p40_p0, %p39_p13  ;;  %p9415_p7 = por %p195_p2, %p39_p13 }
  0x1f   : > { %s270_s15 = sand.u32 1, %s9274_s26   ;;  %s8572_s21 = sshll.u32 %s9278_s27, 8 }
  0x20   : > { %s8174_s22 = sshll.u32 %s270_s15, 8  ;;  %s279_s9 = scalar_lea.hbm %s17214_s0, %s8572_s21 }
  0x21   : > { %s280_s10 = sshll.u32 %s279_s9, 4  ;;  %s274_s13 = scalar_lea.vmem [#allocation2], %s8174_s22  ;;  %s281_s10 = int_to_ptr.hbm [resolvable:$true] %s280_s10 }
  0x22   : > { %s282_s11 = sshll.u32 %s274_s13, 4  ;;  %p9426_p9 = pnand %p8675_p3, %p41_p5  ;;  %s283_s11 = int_to_ptr.vmem [resolvable:$true] %s282_s11 }
  0x23   : > { %s271_s17 = scalar_lea.sflag [#allocation3], %s270_s15  ;;  %s9174_s19 = sshra.s32 %s281_s10, 4  ;;  %s9175_s19 = int_to_ptr.hbm [resolvable:$true] %s9174_s19 }
  0x24   : > { %s9176_s1 = scalar_lea.hbm %s9175_s19, 256  ;;  %p9178_p10 = pneg %p9426_p9 }
  0x25   : > { %p9177_p2 = scmp.ne.s32.totalorder %s9175_s19, %s9176_s1  ;;  %s9181_s23 = scalar_lea.hbm %s17214_s0, 512 }
  0x26   : > { %p9182_p0 = scmp.lt.s32.totalorder %s9175_s19, %s17214_s0  ;;  %p9183_p3 = scmp.lt.s32.totalorder %s9181_s23, %s9176_s1 }
  0x27   : > { %p9179_p12 = pnand %p9178_p10, %p9177_p2 }
  0x28   : > { %p9184_p5 = por %p9183_p3, %p9182_p0 }
  0x29   : > { %p9180_p13 = pneg %p9179_p12 }
  0x2b   : > { %p9185_p11 = pnand %p9184_p5, %p9180_p13 }
  0x2d   : > { %9188 = shalt.err (!%p9185_p11)
}
  0x2e   : > { %s9287_s15 = smov 128   ;;  %s9288_s13 = smov 8  }
  0x2f   : > { %8667 = dma.hbm_to_vmem [thread:$0]  (!%p9426_p9), %s281_s10, 4096, %s283_s11, %s271_s17, %s9287_s15, %s9287_s15, %s9288_s13  }
  0x30   : > { %294 = sbr.rel (%p9375_p8) target bundleno = 2059 (0x80b), region = 48 }
  0x35   : > { %s9443_s21 = sand.u32 1, %s9270_s25  }
  0x36   : > { %s8178_s19 = sshll.u32 %s9443_s21, 8  ;;  %s297_s1 = scalar_lea.sflag [#allocation3], %s9443_s21 }
  0x37   : > { %s9449_s22 = scalar_lea.vmem [#allocation2], %s8178_s19 }
  0x38   : > { %9249 = dma.done.wait (%p9362_p4), %s297_s1, 4096  }
  0x39   : > { %9251 = vsyncadd (%p9362_p4), %s297_s1, 4294963200 }
  0x3a   : > { %9253 = dma.done.wait (%p46_p1), [#allocation6], 4160  }
  0x3b   : > { %9255 = vsyncadd (%p46_p1), [#allocation6], 4294963136 }
  0x3c   : > { %9257 = dma.done.wait (%p46_p1), [#allocation9], 4096  }
  0x3d   : > { %9259 = vsyncadd (%p46_p1), [#allocation9], 4294963200  ;;  %v8297_v0 = vld [vmem:[#allocation5 + $0xe0] sm:$0xf]  ;;  %v8603_v1 = vld [vmem:[#allocation5 + $0xec] sm:$0xf0] }
  0x3e   : > { %v8601_v2 = vld [vmem:[#allocation5 + $0xe4] sm:$0xf]  ;;  %v8298_v3 = vor.u32 %v8603_v1, %v8297_v0  ;;  %v8299_v4 = vld [vmem:[#allocation5 + $0xf0] sm:$0xf0]  ;;  %v8305_v5 = vld [vmem:[#allocation5 + $0xe8] sm:$0xf] }
  0x3f   : > { %v8604_v6 = vld [vmem:[#allocation5 + $0xf4] sm:$0xf0]  ;;  %v8302_v7 = vor.u32 %v8601_v2, %v8299_v4  ;;  %v8602_v9 = vld [vmem:[#allocation5 + $0xec] sm:$0xf]  ;;  %v8307_v10 = vld [vmem:[#allocation5 + $0xf8] sm:$0xf0] }
  0x40   : > { %v8306_v8 = vor.u32 %v8604_v6, %v8305_v5  ;;  %v8281_v11 = vld [vmem:[#allocation5 + $0xc0] sm:$0xf]  ;;  %599 = vmatpush.bf16.msra.mxu0 %v8298_v3  ;;  %v8310_v12 = vor.u32 %v8602_v9, %v8307_v10  ;;  %v8599_v13 = vld [vmem:[#allocation5 + $0xcc] sm:$0xf0]  ;;  %v8597_v14 = vld [vmem:[#allocation5 + $0xc4] sm:$0xf] }
  0x41   : > { %v8283_v15 = vld [vmem:[#allocation5 + $0xd0] sm:$0xf0]  ;;  %688 = vmatpush.bf16.msra.mxu1 %v8302_v7  ;;  %v8282_v16 = vor.u32 %v8599_v13, %v8281_v11  ;;  %v8289_v18 = vld [vmem:[#allocation5 + $0xc8] sm:$0xf]  ;;  %v8600_v19 = vld [vmem:[#allocation5 + $0xd4] sm:$0xf0] }
  0x42   : > { %777 = vmatpush.bf16.msra.mxu2 %v8306_v8  ;;  %v8286_v17 = vor.u32 %v8597_v14, %v8283_v15  ;;  %v8598_v20 = vld [vmem:[#allocation5 + $0xcc] sm:$0xf]  ;;  %866 = vmatpush.bf16.msra.mxu3 %v8310_v12  ;;  %v8290_v21 = vor.u32 %v8600_v19, %v8289_v18  ;;  %v8291_v22 = vld [vmem:[#allocation5 + $0xd8] sm:$0xf0]  ;;  %v8265_v23 = vld [vmem:[#allocation5 + $0xa0] sm:$0xf] }
  0x43   : > { %v8595_v24 = vld [vmem:[#allocation5 + $0xac] sm:$0xf0]  ;;  %v8294_v25 = vor.u32 %v8598_v20, %v8291_v22  ;;  %v8593_v26 = vld [vmem:[#allocation5 + $0xa4] sm:$0xf]  ;;  %v8267_v27 = vld [vmem:[#allocation5 + $0xb0] sm:$0xf0] }
  0x44   : > { %v8273_v28 = vld [vmem:[#allocation5 + $0xa8] sm:$0xf]  ;;  %600 = vmatpush.bf16.msra.mxu0 %v8282_v16  ;;  %v8266_v29 = vor.u32 %v8595_v24, %v8265_v23  ;;  %v8596_v30 = vld [vmem:[#allocation5 + $0xb4] sm:$0xf0]  ;;  %v8594_v31 = vld [vmem:[#allocation5 + $0xac] sm:$0xf]  ;;  %v8270_v33 = vor.u32 %v8593_v26, %v8267_v27 }
  0x45   : > { %v8275_v32 = vld [vmem:[#allocation5 + $0xb8] sm:$0xf0]  ;;  %689 = vmatpush.bf16.msra.mxu1 %v8286_v17  ;;  %v8274_v34 = vor.u32 %v8596_v30, %v8273_v28  ;;  %v8249_v35 = vld [vmem:[#allocation5 + $0x80] sm:$0xf]  ;;  %v8591_v36 = vld [vmem:[#allocation5 + $0x8c] sm:$0xf0] }
  0x46   : > { %778 = vmatpush.bf16.msra.mxu2 %v8290_v21  ;;  %v8589_v37 = vld [vmem:[#allocation5 + $0x84] sm:$0xf]  ;;  %867 = vmatpush.bf16.msra.mxu3 %v8294_v25  ;;  %v8278_v38 = vor.u32 %v8594_v31, %v8275_v32  ;;  %v8251_v39 = vld [vmem:[#allocation5 + $0x90] sm:$0xf0]  ;;  %v8257_v40 = vld [vmem:[#allocation5 + $0x88] sm:$0xf]  ;;  %v8250_v44 = vor.u32 %v8591_v36, %v8249_v35 }
  0x47   : > { %v8592_v41 = vld [vmem:[#allocation5 + $0x94] sm:$0xf0]  ;;  %v8590_v42 = vld [vmem:[#allocation5 + $0x8c] sm:$0xf]  ;;  %v8259_v43 = vld [vmem:[#allocation5 + $0x98] sm:$0xf0]  ;;  %v8254_v45 = vor.u32 %v8589_v37, %v8251_v39 }
  0x48   : > { %601 = vmatpush.bf16.msra.mxu0 %v8266_v29  ;;  %v8258_v46 = vor.u32 %v8592_v41, %v8257_v40  ;;  %v8233_v47 = vld [vmem:[#allocation5 + $0x60] sm:$0xf]  ;;  %v8587_v48 = vld [vmem:[#allocation5 + $0x6c] sm:$0xf0]  ;;  %v8585_v49 = vld [vmem:[#allocation5 + $0x64] sm:$0xf]  ;;  %v8262_v50 = vor.u32 %v8590_v42, %v8259_v43 }
  0x49   : > { %690 = vmatpush.bf16.msra.mxu1 %v8270_v33  ;;  %v8235_v51 = vld [vmem:[#allocation5 + $0x70] sm:$0xf0]  ;;  %v8241_v52 = vld [vmem:[#allocation5 + $0x68] sm:$0xf]  ;;  %v8588_v53 = vld [vmem:[#allocation5 + $0x74] sm:$0xf0]  ;;  %v8234_v56 = vor.u32 %v8587_v48, %v8233_v47 }
  0x4a   : > { %779 = vmatpush.bf16.msra.mxu2 %v8274_v34  ;;  %868 = vmatpush.bf16.msra.mxu3 %v8278_v38  ;;  %v8586_v54 = vld [vmem:[#allocation5 + $0x6c] sm:$0xf]  ;;  %v8243_v55 = vld [vmem:[#allocation5 + $0x78] sm:$0xf0]  ;;  %v8238_v57 = vor.u32 %v8585_v49, %v8235_v51  ;;  %v8242_v58 = vor.u32 %v8588_v53, %v8241_v52  ;;  %v8217_v59 = vld [vmem:[#allocation5 + $0x40] sm:$0xf] }
  0x4b   : > { %v8583_v60 = vld [vmem:[#allocation5 + $0x4c] sm:$0xf0]  ;;  %v8581_v61 = vld [vmem:[#allocation5 + $0x44] sm:$0xf]  ;;  %v8246_v62 = vor.u32 %v8586_v54, %v8243_v55  ;;  %v8219_v63 = vld [vmem:[#allocation5 + $0x50] sm:$0xf0] }
  0x4c   : > { %602 = vmatpush.bf16.msra.mxu0 %v8250_v44  ;;  %v8225_v0 = vld [vmem:[#allocation5 + $0x48] sm:$0xf]  ;;  %v8584_v1 = vld [vmem:[#allocation5 + $0x54] sm:$0xf0]  ;;  %v8582_v2 = vld [vmem:[#allocation5 + $0x4c] sm:$0xf]  ;;  %v8218_v4 = vor.u32 %v8583_v60, %v8217_v59  ;;  %v8222_v5 = vor.u32 %v8581_v61, %v8219_v63 }
  0x4d   : > { %691 = vmatpush.bf16.msra.mxu1 %v8254_v45  ;;  %v8227_v3 = vld [vmem:[#allocation5 + $0x58] sm:$0xf0]  ;;  %v8226_v6 = vor.u32 %v8584_v1, %v8225_v0  ;;  %v8201_v7 = vld [vmem:[#allocation5 + $0x20] sm:$0xf]  ;;  %v8579_v8 = vld [vmem:[#allocation5 + $0x2c] sm:$0xf0] }
  0x4e   : > { %780 = vmatpush.bf16.msra.mxu2 %v8258_v46  ;;  %869 = vmatpush.bf16.msra.mxu3 %v8262_v50  ;;  %v8577_v9 = vld [vmem:[#allocation5 + $0x24] sm:$0xf]  ;;  %v8230_v10 = vor.u32 %v8582_v2, %v8227_v3  ;;  %v8203_v11 = vld [vmem:[#allocation5 + $0x30] sm:$0xf0]  ;;  %v8209_v12 = vld [vmem:[#allocation5 + $0x28] sm:$0xf]  ;;  %v8202_v16 = vor.u32 %v8579_v8, %v8201_v7 }
  0x4f   : > { %v8580_v13 = vld [vmem:[#allocation5 + $0x34] sm:$0xf0]  ;;  %v8578_v14 = vld [vmem:[#allocation5 + $0x2c] sm:$0xf]  ;;  %v8211_v15 = vld [vmem:[#allocation5 + $0x38] sm:$0xf0]  ;;  %v8206_v20 = vor.u32 %v8577_v9, %v8203_v11 }
  0x50   : > { %603 = vmatpush.bf16.msra.mxu0 %v8234_v56  ;;  %v8185_v17 = vld [vmem:[#allocation5] sm:$0xf]  ;;  %v8575_v18 = vld [vmem:[#allocation5 + $0xc] sm:$0xf0]  ;;  %v8573_v19 = vld [vmem:[#allocation5 + $0x4] sm:$0xf]  ;;  %v8210_v21 = vor.u32 %v8580_v13, %v8209_v12  ;;  %v8214_v24 = vor.u32 %v8578_v14, %v8211_v15 }
  0x51   : > { %692 = vmatpush.bf16.msra.mxu1 %v8238_v57  ;;  %v8187_v22 = vld [vmem:[#allocation5 + $0x10] sm:$0xf0]  ;;  %v8193_v23 = vld [vmem:[#allocation5 + $0x8] sm:$0xf]  ;;  %v8576_v25 = vld [vmem:[#allocation5 + $0x14] sm:$0xf0]  ;;  %v8186_v28 = vor.u32 %v8575_v18, %v8185_v17 }
  0x52   : > { %781 = vmatpush.bf16.msra.mxu2 %v8242_v58  ;;  %870 = vmatpush.bf16.msra.mxu3 %v8246_v62  ;;  %v8574_v26 = vld [vmem:[#allocation5 + $0xc] sm:$0xf]  ;;  %v8195_v27 = vld [vmem:[#allocation5 + $0x18] sm:$0xf0]  ;;  %v349_v29 = vld [vmem:[%s9449_s22] sm:$0xff]  ;;  %v8190_v31 = vor.u32 %v8573_v19, %v8187_v22  ;;  %v8194_v32 = vor.u32 %v8576_v25, %v8193_v23  ;;  %s16937_s9 = scalar_lea.vmem [#allocation10], %s8178_s19 }
  0x53   : > { %v350_v30 = vld [vmem:[%s9449_s22 + $0x8] sm:$0xff]  ;;  %v8198_v33 = vor.u32 %v8574_v26, %v8195_v27  ;;  %v8628_v34 = vld [vmem:[#allocation8 + $0xb8] sm:$0xff]  ;;  %v8627_v39 = vld [vmem:[#allocation8 + $0xb0] sm:$0xff]  ;;  %s8063_s11 = sshll.u32 %s16937_s9, 4  ;;  %s8051_s14 = scalar_lea.sflag [#allocation4], %s9443_s21  ;;  %s8064_s11 = int_to_ptr.vmem [resolvable:$true] %s8063_s11 }
  0x54   : > { %604 = vmatpush.bf16.msra.mxu0 %v8218_v4  ;;  %v381_v35 = vpack.c.bf16 %v350_v30, %v349_v29  ;;  %v8636_v36 = vld [vmem:[#allocation8 + $0xf8] sm:$0xff]  ;;  %v8611_v40 = vld [vmem:[#allocation8 + $0x30] sm:$0xff]  ;;  %v354_v47 = vld [vmem:[%s9449_s22 + $0x28] sm:$0xff]  ;;  %s9224_s13 = scalar_lea.hbm %s17221_s7, 512 }
  0x55   : > { %693 = vmatpush.bf16.msra.mxu1 %v8222_v5  ;;  %v8612_v37 = vld [vmem:[#allocation8 + $0x38] sm:$0xff]  ;;  %v8635_v41 = vld [vmem:[#allocation8 + $0xf0] sm:$0xff]  ;;  %v8626_v49 = vld [vmem:[#allocation8 + $0xa8] sm:$0xff] }
  0x56   : > { %782 = vmatpush.bf16.msra.mxu2 %v8226_v6  ;;  %871 = vmatpush.bf16.msra.mxu3 %v8230_v10  ;;  %v8620_v38 = vld [vmem:[#allocation8 + $0x78] sm:$0xff]  ;;  %v8619_v42 = vld [vmem:[#allocation8 + $0x70] sm:$0xff]  ;;  %v8610_v50 = vld [vmem:[#allocation8 + $0x28] sm:$0xff] }
  0x57   : > { %v351_v43 = vld [vmem:[%s9449_s22 + $0x10] sm:$0xff]  ;;  %v352_v44 = vld [vmem:[%s9449_s22 + $0x18] sm:$0xff]  ;;  %v353_v46 = vld [vmem:[%s9449_s22 + $0x20] sm:$0xff] }
  0x58   : > { %605 = vmatpush.bf16.msra.mxu0 %v8202_v16  ;;  %v382_v45 = vpack.c.bf16 %v352_v44, %v351_v43  ;;  %v383_v48 = vpack.c.bf16 %v354_v47, %v353_v46  ;;  %v8634_v51 = vld [vmem:[#allocation8 + $0xe8] sm:$0xff]  ;;  %v356_v54 = vld [vmem:[%s9449_s22 + $0x38] sm:$0xff]  ;;  %v357_v56 = vld [vmem:[%s9449_s22 + $0x40] sm:$0xff] }
  0x59   : > { %694 = vmatpush.bf16.msra.mxu1 %v8206_v20  ;;  %v8618_v52 = vld [vmem:[#allocation8 + $0x68] sm:$0xff]  ;;  %v8625_v59 = vld [vmem:[#allocation8 + $0xa0] sm:$0xff]  ;;  %v360_v0 = vld [vmem:[%s9449_s22 + $0x58] sm:$0xff] }
  0x5a   : > { %783 = vmatpush.bf16.msra.mxu2 %v8210_v21  ;;  %872 = vmatpush.bf16.msra.mxu3 %v8214_v24  ;;  %v355_v53 = vld [vmem:[%s9449_s22 + $0x30] sm:$0xff]  ;;  %v358_v57 = vld [vmem:[%s9449_s22 + $0x48] sm:$0xff]  ;;  %v361_v2 = vld [vmem:[%s9449_s22 + $0x60] sm:$0xff] }
  0x5b   : > { %v384_v55 = vpack.c.bf16 %v356_v54, %v355_v53  ;;  %v385_v58 = vpack.c.bf16 %v358_v57, %v357_v56  ;;  %v8609_v60 = vld [vmem:[#allocation8 + $0x20] sm:$0xff]  ;;  %v359_v63 = vld [vmem:[%s9449_s22 + $0x50] sm:$0xff]  ;;  %v364_v6 = vld [vmem:[%s9449_s22 + $0x78] sm:$0xff] }
  0x5c   : > { %606 = vmatpush.bf16.msra.mxu0 %v8186_v28  ;;  %v8633_v61 = vld [vmem:[#allocation8 + $0xe0] sm:$0xff]  ;;  %v386_v1 = vpack.c.bf16 %v360_v0, %v359_v63  ;;  %v363_v5 = vld [vmem:[%s9449_s22 + $0x70] sm:$0xff]  ;;  %v8624_v11 = vld [vmem:[#allocation8 + $0x98] sm:$0xff] }
  0x5d   : > { %695 = vmatpush.bf16.msra.mxu1 %v8190_v31  ;;  %v8617_v62 = vld [vmem:[#allocation8 + $0x60] sm:$0xff]  ;;  %v388_v7 = vpack.c.bf16 %v364_v6, %v363_v5  ;;  %v8608_v12 = vld [vmem:[#allocation8 + $0x18] sm:$0xff]  ;;  %v367_v15 = vld [vmem:[%s9449_s22 + $0x90] sm:$0xff] }
  0x5e   : > { %784 = vmatpush.bf16.msra.mxu2 %v8194_v32  ;;  %873 = vmatpush.bf16.msra.mxu3 %v8198_v33  ;;  %v362_v3 = vld [vmem:[%s9449_s22 + $0x68] sm:$0xff]  ;;  %v365_v8 = vld [vmem:[%s9449_s22 + $0x80] sm:$0xff]  ;;  %v368_v16 = vld [vmem:[%s9449_s22 + $0x98] sm:$0xff] }
  0x5f   : > { %607 = vmatmul.bf16.vlgmr.msra.gmra.mxu0 %v381_v35  ;;  %v387_v4 = vpack.c.bf16 %v362_v3, %v361_v2  ;;  %v366_v9 = vld [vmem:[%s9449_s22 + $0x88] sm:$0xff]  ;;  %v8632_v13 = vld [vmem:[#allocation8 + $0xd8] sm:$0xff]  ;;  %v390_v17 = vpack.c.bf16 %v368_v16, %v367_v15 }
  0x60   : > { %696 = vmatmul.bf16.vlgmr.msra.gmra.mxu1 %v381_v35  ;;  %6911 = vmatpush.bf16.msrb.mxu0 %v8612_v37  ;;  %v389_v10 = vpack.c.bf16 %v366_v9, %v365_v8  ;;  %v8616_v14 = vld [vmem:[#allocation8 + $0x58] sm:$0xff] }
  0x61   : > { %785 = vmatmul.bf16.vlgmr.msra.gmra.mxu2 %v381_v35  ;;  %874 = vmatmul.bf16.vlgmr.msra.gmra.mxu3 %v381_v35  ;;  %v429_v18 = vld [vmem:[#allocation7] sm:$0xf] }
  0x62   : > { %7089 = vmatpush.bf16.msrb.mxu2 %v8628_v34  ;;  %7178 = vmatpush.bf16.msrb.mxu3 %v8636_v36  ;;  %v9483_v19 = vperm.slane %v429_v18, 0  ;;  %v9485_v21 = vperm.slane %v429_v18, 1  ;;  %v9503_v29 = vperm.slane %v429_v18, 2  ;;  %v9512_v34 = vperm.slane %v429_v18, 3 }
  0x63   : > { %7000 = vmatpush.bf16.msrb.mxu1 %v8620_v38 }
  0x64   : > { %6912 = vmatpush.bf16.msrb.mxu0 %v8611_v40 }
  0x66   : > { %7090 = vmatpush.bf16.msrb.mxu2 %v8627_v39  ;;  %7179 = vmatpush.bf16.msrb.mxu3 %v8635_v41 }
  0x67   : > { %7001 = vmatpush.bf16.msrb.mxu1 %v8619_v42 }
  0x68   : > { %6913 = vmatpush.bf16.msrb.mxu0 %v8610_v50 }
  0x6a   : > { %7091 = vmatpush.bf16.msrb.mxu2 %v8626_v49  ;;  %7180 = vmatpush.bf16.msrb.mxu3 %v8634_v51 }
  0x6b   : > { %7002 = vmatpush.bf16.msrb.mxu1 %v8618_v52 }
  0x6c   : > { %6914 = vmatpush.bf16.msrb.mxu0 %v8609_v60 }
  0x6e   : > { %7092 = vmatpush.bf16.msrb.mxu2 %v8625_v59  ;;  %7181 = vmatpush.bf16.msrb.mxu3 %v8633_v61 }
  0x6f   : > { %612 = vmatmul.bf16.gmra.mxu0 %v382_v45  ;;  %7003 = vmatpush.bf16.msrb.mxu1 %v8617_v62 }
  0x70   : > { %701 = vmatmul.bf16.gmra.mxu1 %v382_v45  ;;  %6915 = vmatpush.bf16.msrb.mxu0 %v8608_v12 }
  0x71   : > { %790 = vmatmul.bf16.gmra.mxu2 %v382_v45  ;;  %879 = vmatmul.bf16.gmra.mxu3 %v382_v45 }
  0x72   : > { %7093 = vmatpush.bf16.msrb.mxu2 %v8624_v11  ;;  %7182 = vmatpush.bf16.msrb.mxu3 %v8632_v13 }
  0x73   : > { %7004 = vmatpush.bf16.msrb.mxu1 %v8616_v14 }
  0x7f   : > { %617 = vmatmul.bf16.gmra.mxu0 %v383_v48 }
  0x80   : > { %706 = vmatmul.bf16.gmra.mxu1 %v383_v48 }
  0x81   : > { %795 = vmatmul.bf16.gmra.mxu2 %v383_v48  ;;  %884 = vmatmul.bf16.gmra.mxu3 %v383_v48 }
  0x8f   : > { %622 = vmatmul.bf16.gmra.mxu0 %v384_v55 }
  0x90   : > { %711 = vmatmul.bf16.gmra.mxu1 %v384_v55 }
  0x91   : > { %800 = vmatmul.bf16.gmra.mxu2 %v384_v55  ;;  %889 = vmatmul.bf16.gmra.mxu3 %v384_v55 }
  0x9f   : > { %627 = vmatmul.bf16.gmra.mxu0 %v385_v58 }
  0xa0   : > { %716 = vmatmul.bf16.gmra.mxu1 %v385_v58 }
  0xa1   : > { %805 = vmatmul.bf16.gmra.mxu2 %v385_v58  ;;  %894 = vmatmul.bf16.gmra.mxu3 %v385_v58 }
  0xaf   : > { %632 = vmatmul.bf16.gmra.mxu0 %v386_v1 }
  0xb0   : > { %721 = vmatmul.bf16.gmra.mxu1 %v386_v1 }
  0xb1   : > { %810 = vmatmul.bf16.gmra.mxu2 %v386_v1  ;;  %899 = vmatmul.bf16.gmra.mxu3 %v386_v1 }
  0xbf   : > { %637 = vmatmul.bf16.gmra.mxu0 %v387_v4 }
  0xc0   : > { %726 = vmatmul.bf16.gmra.mxu1 %v387_v4 }
  0xc1   : > { %815 = vmatmul.bf16.gmra.mxu2 %v387_v4  ;;  %904 = vmatmul.bf16.gmra.mxu3 %v387_v4 }
  0xcf   : > { %642 = vmatmul.bf16.gmra.mxu0 %v388_v7 }
  0xd0   : > { %731 = vmatmul.bf16.gmra.mxu1 %v388_v7 }
  0xd1   : > { %820 = vmatmul.bf16.gmra.mxu2 %v388_v7  ;;  %909 = vmatmul.bf16.gmra.mxu3 %v388_v7 }
  0xdc   : > { %v608_v20 = vpop.f32.mrf.mxu0 }
  0xdd   : > { %v697_v22 = vpop.f32.mrf.mxu1  ;;  %v9488_v23 = vadd.f32 %v608_v20, %v9483_v19 }
  0xde   : > { %v9491_v24 = vadd.f32 %v697_v22, %v9485_v21 }
  0xdf   : > { %647 = vmatmul.bf16.gmra.mxu0 %v389_v10  ;;  %v9494_v25 = vmul.f32 0.70710677, %v9488_v23 }
  0xe0   : > { %736 = vmatmul.bf16.gmra.mxu1 %v389_v10  ;;  %v9497_v26 = vmul.f32 0.70710677, %v9491_v24 }
  0xe1   : > { %825 = vmatmul.bf16.gmra.mxu2 %v389_v10  ;;  %914 = vmatmul.bf16.gmra.mxu3 %v389_v10  ;;  %v1211_v27 = vmul.f32 %v9494_v25, %v9494_v25 }
  0xe2   : > { %v1251_v28 = vmul.f32 %v9497_v26, %v9497_v26 }
  0xe3   : > { %v9505_v31 = vmin.f32 %v1211_v27, 16.0 }
  0xe4   : > { %v786_v30 = vpop.f32.mrf.mxu2  ;;  %v9507_v32 = vmin.f32 %v1251_v28, 16.0  ;;  %v875_v36 = vpop.f32.mrf.mxu3 }
  0xe5   : > { %v9510_v33 = vadd.f32 %v786_v30, %v9503_v29  ;;  %v1224_v35 = vmul.f32 3.8918573e-05, %v9505_v31  ;;  %v9520_v39 = vadd.f32 %v875_v36, %v9512_v34  ;;  %v610_v45 = vpop.f32.mrf.mxu0  ;;  %v1213_v51 = vmul.f32 2.1237322e-06, %v9505_v31  ;;  %v699_v13 = vpop.f32.mrf.mxu1 }
  0xe6   : > { %v1264_v37 = vmul.f32 3.8918573e-05, %v9507_v32  ;;  %v9534_v49 = vadd.f32 %v610_v45, %v9483_v19  ;;  %v1253_v57 = vmul.f32 2.1237322e-06, %v9507_v32  ;;  %v9562_v22 = vadd.f32 %v699_v13, %v9485_v21 }
  0xe7   : > { %v9517_v38 = vmul.f32 0.70710677, %v9510_v33  ;;  %v1225_v40 = vadd.f32 0.001143296, %v1224_v35  ;;  %v9525_v43 = vmul.f32 0.70710677, %v9520_v39 }
  0xe8   : > { %v1265_v41 = vadd.f32 0.001143296, %v1264_v37  ;;  %v9541_v55 = vmul.f32 0.70710677, %v9534_v49  ;;  %v1214_v58 = vadd.f32 0.00028619796, %v1213_v51 }
  0xe9   : > { %v1291_v42 = vmul.f32 %v9517_v38, %v9517_v38  ;;  %v1226_v44 = vmul.f32 %v1225_v40, %v9505_v31  ;;  %v1331_v48 = vmul.f32 %v9525_v43, %v9525_v43  ;;  %v1254_v0 = vadd.f32 0.00028619796, %v1253_v57 }
  0xea   : > { %v1266_v46 = vmul.f32 %v1265_v41, %v9507_v32  ;;  %v1371_v62 = vmul.f32 %v9541_v55, %v9541_v55  ;;  %v1215_v1 = vmul.f32 %v1214_v58, %v9505_v31 }
  0xeb   : > { %v9529_v47 = vmin.f32 %v1291_v42, 16.0  ;;  %v1227_v50 = vadd.f32 0.014752088, %v1226_v44  ;;  %v9538_v54 = vmin.f32 %v1331_v48, 16.0  ;;  %v1255_v7 = vmul.f32 %v1254_v0, %v9507_v32 }
  0xec   : > { %v1267_v52 = vadd.f32 0.014752088, %v1266_v46  ;;  %v9551_v5 = vmin.f32 %v1371_v62, 16.0  ;;  %v1216_v8 = vadd.f32 0.0036580483, %v1215_v1  ;;  %v788_v48 = vpop.f32.mrf.mxu2 }
  0xed   : > { %v1304_v53 = vmul.f32 3.8918573e-05, %v9529_v47  ;;  %v1228_v56 = vmul.f32 %v1227_v50, %v9505_v31  ;;  %v1344_v61 = vmul.f32 3.8918573e-05, %v9538_v54  ;;  %v1256_v15 = vadd.f32 0.0036580483, %v1255_v7 }
  0xee   : > { %v1268_v59 = vmul.f32 %v1267_v52, %v9507_v32  ;;  %v1384_v12 = vmul.f32 3.8918573e-05, %v9551_v5  ;;  %v1293_v16 = vmul.f32 2.1237322e-06, %v9529_v47  ;;  %v1333_v41 = vmul.f32 2.1237322e-06, %v9538_v54 }
  0xef   : > { %652 = vmatmul.bf16.gmra.mxu0 %v390_v17  ;;  %v1305_v60 = vadd.f32 0.001143296, %v1304_v53  ;;  %v1229_v63 = vadd.f32 0.112945676, %v1228_v56  ;;  %v1345_v4 = vadd.f32 0.001143296, %v1344_v61  ;;  %v1257_v35 = vmul.f32 %v1256_v15, %v9507_v32 }
  0xf0   : > { %741 = vmatmul.bf16.gmra.mxu1 %v390_v17  ;;  %v1269_v2 = vadd.f32 0.112945676, %v1268_v59  ;;  %v1385_v28 = vadd.f32 0.001143296, %v1384_v12  ;;  %v1294_v36 = vadd.f32 0.00028619796, %v1293_v16 }
  0xf1   : > { %830 = vmatmul.bf16.gmra.mxu2 %v390_v17  ;;  %919 = vmatmul.bf16.gmra.mxu3 %v390_v17  ;;  %v1306_v3 = vmul.f32 %v1305_v60, %v9529_v47  ;;  %v1230_v6 = vmul.f32 %v1229_v63, %v9505_v31  ;;  %v1346_v11 = vmul.f32 %v1345_v4, %v9538_v54  ;;  %v9569_v44 = vmul.f32 0.70710677, %v9562_v22 }
  0xf2   : > { %v1270_v9 = vmul.f32 %v1269_v2, %v9507_v32  ;;  %v1217_v17 = vmul.f32 %v1216_v8, %v9505_v31  ;;  %v1386_v46 = vmul.f32 %v1385_v28, %v9551_v5  ;;  %v1258_v51 = vadd.f32 0.05243302, %v1257_v35 }
  0xf3   : > { %v1307_v10 = vadd.f32 0.014752088, %v1306_v3  ;;  %v1231_v14 = vadd.f32 0.4994258, %v1230_v6  ;;  %v1347_v27 = vadd.f32 0.014752088, %v1346_v11  ;;  %v1295_v52 = vmul.f32 %v1294_v36, %v9529_v47  ;;  %v877_v11 = vpop.f32.mrf.mxu3 }
  0xf4   : > { %v1271_v18 = vadd.f32 0.4994258, %v1270_v9  ;;  %v1218_v37 = vadd.f32 0.05243302, %v1217_v17  ;;  %v1334_v57 = vadd.f32 0.00028619796, %v1333_v41  ;;  %v1411_v59 = vmul.f32 %v9569_v44, %v9569_v44 }
  0xf5   : > { %v1308_v20 = vmul.f32 %v1307_v10, %v9529_v47  ;;  %v1232_v30 = vmul.f32 %v1231_v14, %v9505_v31  ;;  %v1348_v45 = vmul.f32 %v1347_v27, %v9538_v54  ;;  %v9583_v60 = vadd.f32 %v788_v48, %v9503_v29 }
  0xf6   : > { %v1272_v40 = vmul.f32 %v1271_v18, %v9507_v32  ;;  %v1219_v53 = vmul.f32 %v1218_v37, %v9505_v31  ;;  %v1387_v62 = vadd.f32 0.014752088, %v1386_v46  ;;  %v1259_v63 = vmul.f32 %v1258_v51, %v9507_v32 }
  0xf7   : > { %v1309_v42 = vadd.f32 0.112945676, %v1308_v20  ;;  %v9573_v50 = vadd.f32 1.0, %v1232_v30  ;;  %v1349_v61 = vadd.f32 0.112945676, %v1348_v45  ;;  %v1335_v2 = vmul.f32 %v1334_v57, %v9538_v54 }
  0xf8   : > { %v9577_v56 = vadd.f32 1.0, %v1272_v40  ;;  %v1296_v0 = vadd.f32 0.0036580483, %v1295_v52  ;;  %v1220_v1 = vadd.f32 0.18741608, %v1219_v53  ;;  %v9589_v4 = vmin.f32 %v1411_v59, 16.0 }
  0xf9   : > { %v1310_v58 = vmul.f32 %v1309_v42, %v9529_v47  ;;  %8727 = vrcp.f32 %v9573_v50  ;;  %v9592_v6 = vmul.f32 0.70710677, %v9583_v60  ;;  %v1350_v7 = vmul.f32 %v1349_v61, %v9538_v54  ;;  %v369_v59 = vld [vmem:[%s9449_s22 + $0xa0] sm:$0xff]  ;;  %v370_v61 = vld [vmem:[%s9449_s22 + $0xa8] sm:$0xff] }
  0xfa   : > { %8729 = vrcp.f32 %v9577_v56  ;;  %v1388_v8 = vmul.f32 %v1387_v62, %v9551_v5  ;;  %v1260_v9 = vadd.f32 0.18741608, %v1259_v63  ;;  %v1297_v10 = vmul.f32 %v1296_v0, %v9529_v47 }
  0xfb   : > { %v1311_v3 = vadd.f32 0.4994258, %v1310_v58  ;;  %v1221_v12 = vmul.f32 %v1220_v1, %v9505_v31  ;;  %v1336_v13 = vadd.f32 0.0036580483, %v1335_v2  ;;  %v1424_v16 = vmul.f32 3.8918573e-05, %v9589_v4 }
  0xfc   : > { %v1451_v17 = vmul.f32 %v9592_v6, %v9592_v6  ;;  %v1351_v20 = vadd.f32 0.4994258, %v1350_v7  ;;  %v1389_v27 = vadd.f32 0.112945676, %v1388_v8  ;;  %v9607_v28 = vadd.f32 %v877_v11, %v9512_v34  ;;  %v613_v11 = vpop.f32.mrf.mxu0 }
  0xfd   : > { %v1312_v15 = vmul.f32 %v1311_v3, %v9529_v47  ;;  %v9610_v30 = vmul.f32 0.5, %v9488_v23  ;;  %v9613_v31 = vmul.f32 0.5, %v9491_v24  ;;  %v1261_v35 = vmul.f32 %v1260_v9, %v9507_v32 }
  0xfe   : > { %v1298_v36 = vadd.f32 0.05243302, %v1297_v10  ;;  %v1222_v37 = vadd.f32 1.1283791, %v1221_v12  ;;  %v9619_v41 = vmul.f32 0.5, %v9510_v33  ;;  %v1337_v42 = vmul.f32 %v1336_v13, %v9538_v54 }
  0xff   : > { %v9598_v14 = vpop.eup %8727  ;;  %v9624_v45 = vadd.f32 1.0, %v1312_v15  ;;  %v1425_v24 = vadd.f32 0.001143296, %v1424_v16  ;;  %v9626_v46 = vmin.f32 %v1451_v17, 16.0  ;;  %v9629_v32 = vmul.f32 0.5, %v9520_v39 }
 0x100   : > { %v9604_v18 = vpop.eup %8729  ;;  %v1235_v40 = vmul.f32 %v9598_v14, %v9573_v50  ;;  %v1352_v48 = vmul.f32 %v1351_v20, %v9538_v54  ;;  %v1390_v51 = vmul.f32 %v1389_v27, %v9551_v5  ;;  %v9634_v33 = vmul.f32 0.70710677, %v9607_v28 }
 0x101   : > { %v1275_v23 = vmul.f32 %v9604_v18, %v9577_v56  ;;  %v1262_v52 = vadd.f32 1.1283791, %v1261_v35  ;;  %v1299_v53 = vmul.f32 %v1298_v36, %v9529_v47  ;;  %v9638_v57 = vmul.f32 0.5, %v9534_v49 }
 0x102   : > { %v9641_v58 = vmul.f32 0.5, %v9562_v22  ;;  %v9646_v39 = vmul.f32 %v1222_v37, %v9494_v25  ;;  %v1236_v62 = vsub.f32 1.0, %v1235_v40  ;;  %v1338_v63 = vadd.f32 0.05243302, %v1337_v42 }
 0x103   : > { %v1373_v0 = vmul.f32 2.1237322e-06, %v9551_v5  ;;  %v1276_v1 = vsub.f32 1.0, %v1275_v23  ;;  %8731 = vrcp.f32 %v9624_v45  ;;  %v1426_v2 = vmul.f32 %v1425_v24, %v9589_v4 }
 0x104   : > { %v1464_v49 = vmul.f32 3.8918573e-05, %v9626_v46  ;;  %v9652_v3 = vadd.f32 1.0, %v1352_v48  ;;  %v1391_v22 = vadd.f32 0.4994258, %v1390_v51  ;;  %v1491_v7 = vmul.f32 %v9634_v33, %v9634_v33 }
 0x105   : > { %v391_v8 = vpack.c.bf16 %v370_v61, %v369_v59  ;;  %vm1239_vm0 = vweird.f32 %v9573_v50  ;;  %v1243_v25 = vand.u32 2147483647, %v9573_v50  ;;  %v1245_v9 = vand.u32 2147483648, %v9573_v50 }
 0x106   : > { %v1300_v10 = vadd.f32 0.18741608, %v1299_v53  ;;  %v1237_v12 = vmul.f32 %v9598_v14, %v1236_v62  ;;  %v9661_v13 = vmul.f32 %v1262_v52, %v9497_v26  ;;  %v1339_v15 = vmul.f32 %v1338_v63, %v9538_v54 }
 0x107   : > { %v1374_v16 = vadd.f32 0.00028619796, %v1373_v0  ;;  %657 = vmatmul.bf16.gmra.mxu0 %v391_v8  ;;  %746 = vmatmul.bf16.gmra.mxu1 %v391_v8  ;;  %v1277_v17 = vmul.f32 %v9604_v18, %v1276_v1  ;;  %vm1279_vm1 = vweird.f32 %v9577_v56  ;;  %v1427_v20 = vadd.f32 0.014752088, %v1426_v2 }
 0x108   : > { %v1465_v27 = vadd.f32 0.001143296, %v1464_v49  ;;  %835 = vmatmul.bf16.gmra.mxu2 %v391_v8  ;;  %924 = vmatmul.bf16.gmra.mxu3 %v391_v8  ;;  %8733 = vrcp.f32 %v9652_v3  ;;  %v1392_v35 = vmul.f32 %v1391_v22, %v9551_v5  ;;  %v9668_v36 = vmin.f32 %v1491_v7, 16.0 }
 0x109   : > { %v9671_v26 = vadd.f32 %v613_v11, %v9483_v19  ;;  %v9673_v37 = vpop.eup %8731  ;;  %vm1240_vm2 = vweird.f32 %v9598_v14  ;;  %v1283_v40 = vand.u32 2147483647, %v9577_v56  ;;  %v1285_v42 = vand.u32 2147483648, %v9577_v56 }
 0x10a   : > { %v1301_v23 = vmul.f32 %v1300_v10, %v9529_v47  ;;  %v1238_v24 = vadd.f32 %v9598_v14, %v1237_v12  ;;  %vm1280_vm3 = vweird.f32 %v9604_v18  ;;  %v1340_v48 = vadd.f32 0.18741608, %v1339_v15  ;;  %vm9698_vm4 = vmor %vm1239_vm0, %vm1240_vm2 }
 0x10b   : > { %v1375_v51 = vmul.f32 %v1374_v16, %v9551_v5  ;;  %v1278_v52 = vadd.f32 %v9604_v18, %v1277_v17  ;;  %v1413_v53 = vmul.f32 2.1237322e-06, %v9589_v4  ;;  %v1428_v59 = vmul.f32 %v1427_v20, %v9589_v4  ;;  %vm9719_vm7 = vmor %vm1279_vm1, %vm1280_vm3 }
 0x10c   : > { %v1466_v61 = vmul.f32 %v1465_v27, %v9626_v46  ;;  %v1315_v62 = vmul.f32 %v9673_v37, %v9624_v45  ;;  %v9688_v63 = vadd.f32 1.0, %v1392_v35  ;;  %v1504_v47 = vmul.f32 3.8918573e-05, %v9668_v36 }
 0x10d   : > { %v9692_v0 = vmul.f32 0.70710677, %v9671_v26  ;;  %vm9702_vm5 = vcmp.eq.f32.partialorder %v1243_v25, 8.507059e+37  ;;  %v1246_v49 = vor.u32 1.1754944e-38, %v1245_v9  ;;  %vm9706_vm6 = vcmp.eq.f32.partialorder %v1283_v40, 8.507059e+37 }
 0x10e   : > { %v1302_v7 = vadd.f32 1.1283791, %v1301_v23  ;;  %v9710_v8 = vpop.eup %8733  ;;  %v1242_v50 = vsel %vm9698_vm4, %v9598_v14, %v1238_v24  ;;  %v1286_v9 = vor.u32 1.1754944e-38, %v1285_v42  ;;  %v1341_v10 = vmul.f32 %v1340_v48, %v9538_v54  ;;  %v702_v48 = vpop.f32.mrf.mxu1 }
 0x10f   : > { %v1376_v11 = vadd.f32 0.0036580483, %v1375_v51  ;;  %v1282_v12 = vsel %vm9719_vm7, %v9604_v18, %v1278_v52  ;;  %v1414_v15 = vadd.f32 0.00028619796, %v1413_v53  ;;  %v1429_v16 = vadd.f32 0.112945676, %v1428_v59 }
 0x110   : > { %v1467_v17 = vadd.f32 0.014752088, %v1466_v61  ;;  %v1316_v14 = vsub.f32 1.0, %v1315_v62  ;;  %8735 = vrcp.f32 %v9688_v63  ;;  %v1505_v20 = vadd.f32 0.001143296, %v1504_v47 }
 0x111   : > { %v1531_v56 = vmul.f32 %v9692_v0, %v9692_v0  ;;  %v1247_v27 = vsel %vm9702_vm5, %v1246_v49, %v1242_v50  ;;  %v9733_v54 = vmul.f32 %v1302_v7, %v9517_v38  ;;  %v1355_v35 = vmul.f32 %v9710_v8, %v9652_v3 }
 0x112   : > { %v9738_v18 = vmul.f32 0.5, %v9583_v60  ;;  %v1323_v40 = vand.u32 2147483647, %v9624_v45  ;;  %v1325_v42 = vand.u32 2147483648, %v9624_v45  ;;  %v1342_v23 = vadd.f32 1.1283791, %v1341_v10 }
 0x113   : > { %v1377_v24 = vmul.f32 %v1376_v11, %v9551_v5  ;;  %v1287_v51 = vsel %vm9706_vm6, %v1286_v9, %v1282_v12  ;;  %v1415_v38 = vmul.f32 %v1414_v15, %v9589_v4  ;;  %v1430_v52 = vmul.f32 %v1429_v16, %v9589_v4  ;;  %v791_v12 = vpop.f32.mrf.mxu2 }
 0x114   : > { %v1468_v53 = vmul.f32 %v1467_v17, %v9626_v46  ;;  %v1248_v60 = vmul.f32 %v1247_v27, %v9646_v39  ;;  %v1317_v59 = vmul.f32 %v9673_v37, %v1316_v14  ;;  %v1506_v61 = vmul.f32 %v1505_v20, %v9668_v36 }
 0x115   : > { %v9751_v62 = vmin.f32 %v1531_v56, 16.0  ;;  %vm1319_vm8 = vweird.f32 %v9624_v45  ;;  %v1356_v47 = vsub.f32 1.0, %v1355_v35  ;;  %v1453_v1 = vmul.f32 2.1237322e-06, %v9626_v46 }
 0x116   : > { %v9756_v2 = vadd.f32 %v702_v48, %v9485_v21  ;;  %v9758_v49 = vpop.eup %8735  ;;  %v9761_v22 = vmul.f32 %v1287_v51, %v9661_v13  ;;  %vm1320_vm9 = vweird.f32 %v9673_v37  ;;  %v1326_v39 = vor.u32 1.1754944e-38, %v1325_v42 }
 0x117   : > { %v1378_v7 = vadd.f32 0.05243302, %v1377_v24  ;;  %vm9764_vm10 = vcmp.eq.f32.partialorder %v1323_v40, 8.507059e+37  ;;  %v9769_v25 = vmul.f32 %v1342_v23, %v9525_v43  ;;  %v1416_v9 = vadd.f32 0.0036580483, %v1415_v38  ;;  %vm9789_vm11 = vmor %vm1319_vm8, %vm1320_vm9  ;;  %v8623_v23 = vld [vmem:[#allocation8 + $0x90] sm:$0xff] }
 0x118   : > { %v1431_v10 = vadd.f32 0.4994258, %v1430_v52  ;;  %v1469_v11 = vadd.f32 0.112945676, %v1468_v53  ;;  %v8311_v15 = vclamps-f32 %v1248_v60, 1.0  ;;  %v1318_v16 = vadd.f32 %v9673_v37, %v1317_v59  ;;  %7094 = vmatpush.bf16.msrb.mxu2 %v8623_v23 }
 0x119   : > { %v1507_v13 = vadd.f32 0.014752088, %v1506_v61  ;;  %v1544_v17 = vmul.f32 3.8918573e-05, %v9751_v62  ;;  %v1357_v14 = vmul.f32 %v9710_v8, %v1356_v47  ;;  %v1395_v20 = vmul.f32 %v9758_v49, %v9688_v63 }
 0x11a   : > { %v1454_v56 = vadd.f32 0.00028619796, %v1453_v1  ;;  %v9777_v27 = vmul.f32 0.70710677, %v9756_v2  ;;  %v8312_v43 = vclamps-f32 %v9761_v22, 1.0  ;;  %v1379_v40 = vmul.f32 %v1378_v7, %v9551_v5 }
 0x11b   : > { %v1363_v35 = vand.u32 2147483647, %v9652_v3  ;;  %v9783_v42 = vadd.f32 %v791_v12, %v9503_v29  ;;  %v1365_v24 = vand.u32 2147483648, %v9652_v3  ;;  %v1417_v48 = vmul.f32 %v1416_v9, %v9589_v4 }
 0x11c   : > { %v1432_v51 = vmul.f32 %v1431_v10, %v9589_v4  ;;  %v1470_v38 = vmul.f32 %v1469_v11, %v9626_v46  ;;  %v1322_v52 = vsel %vm9789_vm11, %v9673_v37, %v1318_v16  ;;  %vm1360_vm12 = vweird.f32 %v9710_v8 }
 0x11d   : > { %v1508_v45 = vmul.f32 %v1507_v13, %v9668_v36  ;;  %v1545_v53 = vadd.f32 0.001143296, %v1544_v17  ;;  %v1358_v60 = vadd.f32 %v9710_v8, %v1357_v14  ;;  %v1396_v59 = vsub.f32 1.0, %v1395_v20 }
 0x11e   : > { %v1455_v61 = vmul.f32 %v1454_v56, %v9626_v46  ;;  %v1571_v47 = vmul.f32 %v9777_v27, %v9777_v27  ;;  %vm1359_vm13 = vweird.f32 %v9652_v3  ;;  %v1380_v1 = vadd.f32 0.18741608, %v1379_v40 }
 0x11f   : > { %v1493_v22 = vmul.f32 2.1237322e-06, %v9668_v36  ;;  %v9809_v37 = vmul.f32 0.70710677, %v9783_v42  ;;  %v6331_v7 = vadd.f32 1.0, %v8311_v15  ;;  %v9811_v10 = vadd.f32 1.0, %v1432_v51  ;;  %vm9817_vm14 = vmor %vm1359_vm13, %vm1360_vm12 }
 0x120   : > { %v1418_v9 = vadd.f32 0.05243302, %v1417_v48  ;;  %v1471_v11 = vadd.f32 0.4994258, %v1470_v38  ;;  %v1327_v12 = vsel %vm9764_vm10, %v1326_v39, %v1322_v52  ;;  %vm9821_vm15 = vcmp.eq.f32.partialorder %v1363_v35, 8.507059e+37  ;;  %v8607_v48 = vld [vmem:[#allocation8 + $0x10] sm:$0xff] }
 0x121   : > { %v1509_v13 = vadd.f32 0.112945676, %v1508_v45  ;;  %v1546_v15 = vmul.f32 %v1545_v53, %v9751_v62  ;;  %v1362_v17 = vsel %vm9817_vm14, %v9710_v8, %v1358_v60  ;;  %v1397_v50 = vmul.f32 %v9758_v49, %v1396_v59  ;;  %v8631_v51 = vld [vmem:[#allocation8 + $0xd0] sm:$0xff]  ;;  %6916 = vmatpush.bf16.msrb.mxu0 %v8607_v48 }
 0x122   : > { %v1456_v39 = vadd.f32 0.0036580483, %v1455_v61  ;;  %v9830_v14 = vmin.f32 %v1571_v47, 16.0  ;;  %v1366_v20 = vor.u32 1.1754944e-38, %v1365_v24  ;;  %v1381_v56 = vmul.f32 %v1380_v1, %v9551_v5  ;;  %7183 = vmatpush.bf16.msrb.mxu3 %v8631_v51 }
 0x123   : > { %v1494_v40 = vadd.f32 0.00028619796, %v1493_v22  ;;  %v1611_v35 = vmul.f32 %v9809_v37, %v9809_v37  ;;  %v1328_v38 = vmul.f32 %v1327_v12, %v9733_v54  ;;  %v1419_v52 = vmul.f32 %v1418_v9, %v9589_v4 }
 0x124   : > { %8737 = vrcp.f32 %v9811_v10  ;;  %v1472_v8 = vmul.f32 %v1471_v11, %v9626_v46  ;;  %v1367_v24 = vsel %vm9821_vm15, %v1366_v20, %v1362_v17  ;;  %v1403_v5 = vand.u32 2147483647, %v9688_v63 }
 0x125   : > { %v1510_v45 = vmul.f32 %v1509_v13, %v9668_v36  ;;  %v1547_v53 = vadd.f32 0.014752088, %v1546_v15  ;;  %v1398_v60 = vadd.f32 %v9758_v49, %v1397_v50  ;;  %vm1400_vm0 = vweird.f32 %v9758_v49 }
 0x126   : > { %v1405_v54 = vand.u32 2147483648, %v9688_v63  ;;  %v1584_v59 = vmul.f32 3.8918573e-05, %v9830_v14  ;;  %v6332_v61 = vadd.f32 1.0, %v8312_v43  ;;  %v1457_v47 = vmul.f32 %v1456_v39, %v9626_v46 }
 0x127   : > { %v1495_v1 = vmul.f32 %v1494_v40, %v9668_v36  ;;  %v9849_v22 = vmin.f32 %v1611_v35, 16.0  ;;  %v1368_v9 = vmul.f32 %v1367_v24, %v9769_v25  ;;  %vm1399_vm1 = vweird.f32 %v9688_v63  ;;  %v880_v35 = vpop.f32.mrf.mxu3 }
 0x128   : > { %v1420_v11 = vadd.f32 0.18741608, %v1419_v52  ;;  %v9853_v12 = vadd.f32 1.0, %v1472_v8  ;;  %v8313_v16 = vclamps-f32 %v1328_v38, 1.0  ;;  %v1382_v3 = vadd.f32 1.1283791, %v1381_v56  ;;  %vm9855_vm2 = vmor %vm1399_vm1, %vm1400_vm0 }
 0x129   : > { %v1511_v43 = vadd.f32 0.4994258, %v1510_v45  ;;  %v1548_v15 = vmul.f32 %v1547_v53, %v9751_v62  ;;  %v1402_v25 = vsel %vm9855_vm2, %v9758_v49, %v1398_v60  ;;  %vm1404_vm3 = vcmp.eq.f32.partialorder %v1403_v5, 8.507059e+37 }
 0x12a   : > { %v9860_v17 = vpop.eup %8737  ;;  %v1406_v63 = vor.u32 1.1754944e-38, %v1405_v54  ;;  %v1585_v50 = vadd.f32 0.001143296, %v1584_v59  ;;  %v9866_v39 = vmul.f32 %v6331_v7, %v9610_v30  ;;  %v1458_v20 = vadd.f32 0.05243302, %v1457_v47 }
 0x12b   : > { %v1496_v56 = vadd.f32 0.0036580483, %v1495_v1  ;;  %v1624_v40 = vmul.f32 3.8918573e-05, %v9849_v22  ;;  %v8314_v23 = vclamps-f32 %v1368_v9, 1.0  ;;  %v1421_v48 = vmul.f32 %v1420_v11, %v9589_v4 }
 0x12c   : > { %8739 = vrcp.f32 %v9853_v12  ;;  %v1533_v51 = vmul.f32 2.1237322e-06, %v9751_v62  ;;  %v1407_v38 = vsel %vm1404_vm3, %v1406_v63, %v1402_v25  ;;  %v1435_v49 = vmul.f32 %v9860_v17, %v9811_v10 }
 0x12d   : > { %v1512_v52 = vmul.f32 %v1511_v43, %v9668_v36  ;;  %v1549_v30 = vadd.f32 0.112945676, %v1548_v15  ;;  %v6333_v7 = vadd.f32 1.0, %v8313_v16  ;;  %v1383_v8 = vmul.f32 %v1382_v3, %v9541_v55 }
 0x12e   : > { %v1586_v24 = vmul.f32 %v1585_v50, %v9830_v14  ;;  %v9878_v5 = vadd.f32 %v880_v35, %v9512_v34  ;;  %v9881_v4 = vmul.f32 %v6332_v61, %v9613_v31  ;;  %v1459_v45 = vmul.f32 %v1458_v20, %v9626_v46 }
 0x12f   : > { %v1497_v53 = vmul.f32 %v1496_v56, %v9668_v36  ;;  %v1625_v60 = vadd.f32 0.001143296, %v1624_v40  ;;  %v6334_v54 = vadd.f32 1.0, %v8314_v23  ;;  %v1408_v59 = vmul.f32 %v1407_v38, %v1383_v8 }
 0x130   : > { %17264 = vst [vmem:[#allocation15_spill] sm:$0xff] %v9881_v4  ;;  %v1422_v47 = vadd.f32 1.1283791, %v1421_v48  ;;  %v1534_v1 = vadd.f32 0.00028619796, %v1533_v51  ;;  %v1436_v9 = vsub.f32 1.0, %v1435_v49  ;;  %v1550_v16 = vmul.f32 %v1549_v30, %v9751_v62  ;;  %v704_v30 = vpop.f32.mrf.mxu1 }
 0x131   : > { %v9886_v55 = vmul.f32 0.5, %v9607_v28  ;;  %v9888_v11 = vadd.f32 1.0, %v1512_v52  ;;  %v9894_v31 = vmul.f32 %v6333_v7, %v9619_v41  ;;  %v1573_v61 = vmul.f32 2.1237322e-06, %v9830_v14 }
 0x132   : > { %v9891_v3 = vpop.eup %8739  ;;  %v1587_v13 = vadd.f32 0.014752088, %v1586_v24  ;;  %v9898_v43 = vmul.f32 0.70710677, %v9878_v5  ;;  %v1460_v15 = vadd.f32 0.18741608, %v1459_v45  ;;  %v1626_v63 = vmul.f32 %v1625_v60, %v9849_v22 }
 0x133   : > { %17265 = vst [vmem:[#allocation16_spill] sm:$0xff] %v9894_v31  ;;  %v1498_v25 = vadd.f32 0.05243302, %v1497_v53  ;;  %v9901_v28 = vmul.f32 0.5, %v9671_v26  ;;  %v9905_v50 = vmul.f32 %v6334_v54, %v9629_v32  ;;  %v8315_v20 = vclamps-f32 %v1408_v59, 1.0 }
 0x134   : > { %v9908_v41 = vmul.f32 %v1422_v47, %v9569_v44  ;;  %v1535_v56 = vmul.f32 %v1534_v1, %v9751_v62  ;;  %v1437_v40 = vmul.f32 %v9860_v17, %v1436_v9  ;;  %vm1439_vm4 = vweird.f32 %v9811_v10  ;;  %v615_v44 = vpop.f32.mrf.mxu0 }
 0x135   : > { %17266 = vst [vmem:[#allocation17_spill] sm:$0xff] %v9905_v50  ;;  %v1475_v35 = vmul.f32 %v9891_v3, %v9853_v12  ;;  %v1551_v26 = vadd.f32 0.4994258, %v1550_v16  ;;  %8741 = vrcp.f32 %v9888_v11  ;;  %v1574_v23 = vadd.f32 0.00028619796, %v1573_v61 }
 0x136   : > { %v1588_v32 = vmul.f32 %v1587_v13, %v9830_v14  ;;  %v1651_v48 = vmul.f32 %v9898_v43, %v9898_v43  ;;  %v1443_v51 = vand.u32 2147483647, %v9811_v10  ;;  %v1461_v38 = vmul.f32 %v1460_v15, %v9626_v46  ;;  %v8615_v15 = vld [vmem:[#allocation8 + $0x50] sm:$0xff] }
 0x137   : > { %v1499_v49 = vmul.f32 %v1498_v25, %v9668_v36  ;;  %v1627_v52 = vadd.f32 0.014752088, %v1626_v63  ;;  %v6335_v7 = vadd.f32 1.0, %v8315_v20  ;;  %vm1440_vm5 = vweird.f32 %v9860_v17  ;;  %7005 = vmatpush.bf16.msrb.mxu1 %v8615_v15 }
 0x138   : > { %v1445_v8 = vand.u32 2147483648, %v9811_v10  ;;  %v1536_v24 = vadd.f32 0.0036580483, %v1535_v56  ;;  %v1438_v45 = vadd.f32 %v9860_v17, %v1437_v40  ;;  %v1476_v53 = vsub.f32 1.0, %v1475_v35  ;;  %vm9949_vm7 = vmor %vm1439_vm4, %vm1440_vm5 }
 0x139   : > { %v1552_v60 = vmul.f32 %v1551_v26, %v9751_v62  ;;  %v9927_v54 = vadd.f32 %v615_v44, %v9483_v19  ;;  %v1575_v46 = vmul.f32 %v1574_v23, %v9830_v14  ;;  %v1589_v59 = vadd.f32 0.112945676, %v1588_v32 }
 0x13a   : > { %v9930_v47 = vmin.f32 %v1651_v48, 16.0  ;;  %v9933_v1 = vadd.f32 %v704_v30, %v9485_v21  ;;  %vm9935_vm6 = vcmp.eq.f32.partialorder %v1443_v51, 8.507059e+37  ;;  %v1462_v16 = vadd.f32 1.1283791, %v1461_v38 }
 0x13b   : > { %v1500_v61 = vadd.f32 0.18741608, %v1499_v49  ;;  %v1628_v13 = vmul.f32 %v1627_v52, %v9849_v22  ;;  %v9940_v25 = vpop.eup %8741  ;;  %v9943_v63 = vmul.f32 %v6335_v7, %v9638_v57  ;;  %v1446_v56 = vor.u32 1.1754944e-38, %v1445_v8 }
 0x13c   : > { %v1537_v40 = vmul.f32 %v1536_v24, %v9751_v62  ;;  %v9955_v35 = vmul.f32 0.5, %v9756_v2  ;;  %v1442_v26 = vsel %vm9949_vm7, %v9860_v17, %v1438_v45  ;;  %v1477_v57 = vmul.f32 %v9891_v3, %v1476_v53 }
 0x13d   : > { %v9961_v23 = vadd.f32 1.0, %v1552_v60  ;;  %v9964_v10 = vmul.f32 0.70710677, %v9927_v54  ;;  %v1576_v32 = vadd.f32 0.0036580483, %v1575_v46  ;;  %v1590_v48 = vmul.f32 %v1589_v59, %v9830_v14 }
 0x13e   : > { %v1664_v44 = vmul.f32 3.8918573e-05, %v9930_v47  ;;  %v9969_v2 = vmul.f32 0.70710677, %v9933_v1  ;;  %v1463_v51 = vmul.f32 %v1462_v16, %v9592_v6  ;;  %v1501_v17 = vmul.f32 %v1500_v61, %v9668_v36  ;;  %v793_v36 = vpop.f32.mrf.mxu2 }
 0x13f   : > { %v1515_v38 = vmul.f32 %v9940_v25, %v9888_v11  ;;  %v1629_v49 = vadd.f32 0.112945676, %v1628_v13  ;;  %v1447_v52 = vsel %vm9935_vm6, %v1446_v56, %v1442_v26  ;;  %v1483_v30 = vand.u32 2147483647, %v9853_v12 }
 0x140   : > { %v1485_v7 = vand.u32 2147483648, %v9853_v12  ;;  %v1538_v8 = vadd.f32 0.05243302, %v1537_v40  ;;  %v1478_v24 = vadd.f32 %v9891_v3, %v1477_v57  ;;  %vm1480_vm8 = vweird.f32 %v9891_v3 }
 0x141   : > { %8743 = vrcp.f32 %v9961_v23  ;;  %v1691_v6 = vmul.f32 %v9964_v10, %v9964_v10  ;;  %v1577_v45 = vmul.f32 %v1576_v32, %v9830_v14  ;;  %v1591_v53 = vadd.f32 0.4994258, %v1590_v48 }
 0x142   : > { %v1665_v60 = vadd.f32 0.001143296, %v1664_v44  ;;  %v1731_v46 = vmul.f32 %v9969_v2, %v9969_v2  ;;  %vm1479_vm9 = vweird.f32 %v9853_v12  ;;  %v1502_v59 = vadd.f32 1.1283791, %v1501_v17 }
 0x143   : > { %v1516_v9 = vsub.f32 1.0, %v1515_v38  ;;  %v1630_v16 = vmul.f32 %v1629_v49, %v9849_v22  ;;  %v1448_v61 = vmul.f32 %v1447_v52, %v9908_v41  ;;  %vm9990_vm10 = vmor %vm1479_vm9, %vm1480_vm8  ;;  %vm9994_vm11 = vcmp.eq.f32.partialorder %v1483_v30, 8.507059e+37 }
 0x144   : > { %v1539_v20 = vmul.f32 %v1538_v8, %v9751_v62  ;;  %v10000_v56 = vadd.f32 %v793_v36, %v9503_v29  ;;  %v1482_v12 = vsel %vm9990_vm10, %v9891_v3, %v1478_v24  ;;  %v1486_v40 = vor.u32 1.1754944e-38, %v1485_v7 }
 0x145   : > { %v1613_v41 = vmul.f32 2.1237322e-06, %v9849_v22  ;;  %v10006_v26 = vmin.f32 %v1691_v6, 16.0  ;;  %v1578_v57 = vadd.f32 0.05243302, %v1577_v45  ;;  %v1592_v32 = vmul.f32 %v1591_v53, %v9830_v14 }
 0x146   : > { %v1666_v48 = vmul.f32 %v1665_v60, %v9930_v47  ;;  %v10010_v44 = vmin.f32 %v1731_v46, 16.0  ;;  %v1503_v38 = vmul.f32 %v1502_v59, %v9634_v33  ;;  %v1517_v49 = vmul.f32 %v9940_v25, %v1516_v9 }
 0x147   : > { %v10012_v17 = vpop.eup %8743  ;;  %v10017_v3 = vmul.f32 0.5, %v9783_v42  ;;  %v1631_v52 = vadd.f32 0.4994258, %v1630_v16  ;;  %v8316_v30 = vclamps-f32 %v1448_v61, 1.0  ;;  %vm1519_vm12 = vweird.f32 %v9888_v11 }
 0x148   : > { %v1540_v7 = vadd.f32 0.18741608, %v1539_v20  ;;  %v10021_v8 = vmul.f32 0.70710677, %v10000_v56  ;;  %v1487_v24 = vsel %vm9994_vm11, %v1486_v40, %v1482_v12  ;;  %vm1520_vm13 = vweird.f32 %v9940_v25 }
 0x149   : > { %v1614_v6 = vadd.f32 0.00028619796, %v1613_v41  ;;  %v1704_v33 = vmul.f32 3.8918573e-05, %v10006_v26  ;;  %v1579_v36 = vmul.f32 %v1578_v57, %v9830_v14  ;;  %v10028_v42 = vadd.f32 1.0, %v1592_v32  ;;  %vm10046_vm14 = vmor %vm1519_vm12, %vm1520_vm13 }
 0x14a   : > { %v1667_v45 = vadd.f32 0.014752088, %v1666_v48  ;;  %v1744_v53 = vmul.f32 3.8918573e-05, %v10010_v44  ;;  %v1518_v60 = vadd.f32 %v9940_v25, %v1517_v49  ;;  %v1555_v46 = vmul.f32 %v10012_v17, %v9961_v23 }
 0x14b   : > { %v1632_v59 = vmul.f32 %v1631_v52, %v9849_v22  ;;  %v1653_v9 = vmul.f32 2.1237322e-06, %v9930_v47  ;;  %v1523_v16 = vand.u32 2147483647, %v9888_v11  ;;  %v1525_v61 = vand.u32 2147483648, %v9888_v11 }
 0x14c   : > { %v1541_v13 = vmul.f32 %v1540_v7, %v9751_v62  ;;  %v1771_v15 = vmul.f32 %v10021_v8, %v10021_v8  ;;  %v6336_v20 = vadd.f32 1.0, %v8316_v30  ;;  %v1488_v12 = vmul.f32 %v1487_v24, %v1463_v51 }
 0x14d   : > { %v1615_v40 = vmul.f32 %v1614_v6, %v9849_v22  ;;  %v1705_v41 = vadd.f32 0.001143296, %v1704_v33  ;;  %v1580_v32 = vadd.f32 0.18741608, %v1579_v36  ;;  %8745 = vrcp.f32 %v10028_v42 }
 0x14e   : > { %v1668_v62 = vmul.f32 %v1667_v45, %v9930_v47  ;;  %v1745_v48 = vadd.f32 0.001143296, %v1744_v53  ;;  %v1522_v51 = vsel %vm10046_vm14, %v9940_v25, %v1518_v60  ;;  %v1556_v49 = vsub.f32 1.0, %v1555_v46 }
 0x14f   : > { %v10055_v52 = vadd.f32 1.0, %v1632_v59  ;;  %v1654_v30 = vadd.f32 0.00028619796, %v1653_v9  ;;  %vm1524_vm15 = vcmp.eq.f32.partialorder %v1523_v16, 8.507059e+37  ;;  %v1526_v11 = vor.u32 1.1754944e-38, %v1525_v61 }
 0x150   : > { %v1542_v7 = vadd.f32 1.1283791, %v1541_v13  ;;  %v10057_v24 = vmin.f32 %v1771_v15, 16.0  ;;  %v10060_v6 = vmul.f32 %v6336_v20, %v9641_v58  ;;  %v8317_v33 = vclamps-f32 %v1488_v12, 1.0 }
 0x151   : > { %v1616_v36 = vadd.f32 0.0036580483, %v1615_v40  ;;  %v1706_v45 = vmul.f32 %v1705_v41, %v10006_v26  ;;  %v1527_v53 = vsel %vm1524_vm15, %v1526_v11, %v1522_v51  ;;  %v1581_v57 = vmul.f32 %v1580_v32, %v9830_v14 }
 0x152   : > { %17277 = vst [vmem:[#allocation18_spill] sm:$0xff] %v10060_v6  ;;  %v1669_v25 = vadd.f32 0.112945676, %v1668_v62  ;;  %v1746_v60 = vmul.f32 %v1745_v48, %v10010_v44  ;;  %v1557_v46 = vmul.f32 %v10012_v17, %v1556_v49  ;;  %8747 = vrcp.f32 %v10055_v52 }
 0x153   : > { %v10068_v59 = vmul.f32 0.5, %v9878_v5  ;;  %v1655_v58 = vmul.f32 %v1654_v30, %v9930_v47  ;;  %v10071_v9 = vpop.eup %8745  ;;  %v10074_v16 = vmul.f32 %v1542_v7, %v9692_v0  ;;  %v1563_v61 = vand.u32 2147483647, %v9961_v23  ;;  %v882_v5 = vpop.f32.mrf.mxu3 }
 0x154   : > { %v1565_v14 = vand.u32 2147483648, %v9961_v23  ;;  %v1784_v13 = vmul.f32 3.8918573e-05, %v10057_v24  ;;  %v6337_v15 = vadd.f32 1.0, %v8317_v33  ;;  %v1528_v20 = vmul.f32 %v1527_v53, %v1503_v38 }
 0x155   : > { %vm1560_vm0 = vweird.f32 %v10012_v17  ;;  %v1707_v12 = vadd.f32 0.014752088, %v1706_v45  ;;  %v1582_v40 = vadd.f32 1.1283791, %v1581_v57  ;;  %v1617_v41 = vmul.f32 %v1616_v36, %v9849_v22  ;;  %v618_v57 = vpop.f32.mrf.mxu0 }
 0x156   : > { %v1670_v32 = vmul.f32 %v1669_v25, %v9930_v47  ;;  %v1747_v62 = vadd.f32 0.014752088, %v1746_v60  ;;  %v1558_v0 = vadd.f32 %v10012_v17, %v1557_v46  ;;  %v1595_v48 = vmul.f32 %v10071_v9, %v10028_v42 }
 0x157   : > { %v1656_v51 = vadd.f32 0.0036580483, %v1655_v58  ;;  %v1693_v49 = vmul.f32 2.1237322e-06, %v10006_v26  ;;  %vm1559_vm1 = vweird.f32 %v9961_v23  ;;  %vm10087_vm2 = vcmp.eq.f32.partialorder %v1563_v61, 8.507059e+37  ;;  %v372_v61 = vld [vmem:[%s9449_s22 + $0xb8] sm:$0xff] }
 0x158   : > { %v1785_v30 = vadd.f32 0.001143296, %v1784_v13  ;;  %v10092_v11 = vadd.f32 %v882_v5, %v9512_v34  ;;  %v10094_v7 = vpop.eup %8747  ;;  %v10097_v33 = vmul.f32 %v6337_v15, %v9738_v18  ;;  %v8318_v36 = vclamps-f32 %v1528_v20, 1.0  ;;  %vm10102_vm3 = vmor %vm1559_vm1, %vm1560_vm0  ;;  %v371_v18 = vld [vmem:[%s9449_s22 + $0xb0] sm:$0xff] }
 0x159   : > { %v1566_v45 = vor.u32 1.1754944e-38, %v1565_v14  ;;  %v1708_v53 = vmul.f32 %v1707_v12, %v10006_v26  ;;  %v10107_v25 = vmul.f32 %v1582_v40, %v9777_v27  ;;  %v1618_v60 = vadd.f32 0.05243302, %v1617_v41 }
 0x15a   : > { %17280 = vst [vmem:[#allocation19_spill] sm:$0xff] %v10097_v33  ;;  %v1671_v46 = vadd.f32 0.4994258, %v1670_v32  ;;  %v1748_v58 = vmul.f32 %v1747_v62, %v10010_v44  ;;  %v1562_v14 = vsel %vm10102_vm3, %v10012_v17, %v1558_v0  ;;  %v1596_v13 = vsub.f32 1.0, %v1595_v48 }
 0x15b   : > { %v1657_v15 = vmul.f32 %v1656_v51, %v9930_v47  ;;  %v1694_v20 = vadd.f32 0.00028619796, %v1693_v49  ;;  %v1635_v12 = vmul.f32 %v10094_v7, %v10055_v52  ;;  %v1786_v27 = vmul.f32 %v1785_v30, %v10057_v24 }
 0x15c   : > { %v10120_v5 = vmul.f32 0.70710677, %v10092_v11  ;;  %v10123_v40 = vadd.f32 %v618_v57, %v9483_v19  ;;  %v6338_v41 = vadd.f32 1.0, %v8318_v36  ;;  %vm1599_vm4 = vweird.f32 %v10028_v42 }
 0x15d   : > { %v1709_v32 = vadd.f32 0.112945676, %v1708_v53  ;;  %v392_v17 = vpack.c.bf16 %v372_v61, %v371_v18  ;;  %v1603_v62 = vand.u32 2147483647, %v10028_v42  ;;  %v1619_v0 = vmul.f32 %v1618_v60, %v9849_v22 }
 0x15e   : > { %v1672_v48 = vmul.f32 %v1671_v46, %v9930_v47  ;;  %v1749_v51 = vadd.f32 0.112945676, %v1748_v58  ;;  %v1567_v49 = vsel %vm10087_vm2, %v1566_v45, %v1562_v14  ;;  %v1597_v30 = vmul.f32 %v10071_v9, %v1596_v13 }
 0x15f   : > { %v1658_v23 = vadd.f32 0.05243302, %v1657_v15  ;;  %v1695_v57 = vmul.f32 %v1694_v20, %v10006_v26  ;;  %662 = vmatmul.bf16.gmra.mxu0 %v392_v17  ;;  %751 = vmatmul.bf16.gmra.mxu1 %v392_v17  ;;  %v1636_v36 = vsub.f32 1.0, %v1635_v12  ;;  %v1787_v53 = vadd.f32 0.014752088, %v1786_v27 }
 0x160   : > { %v1811_v18 = vmul.f32 %v10120_v5, %v10120_v5  ;;  %v10136_v60 = vmul.f32 0.70710677, %v10123_v40  ;;  %840 = vmatmul.bf16.gmra.mxu2 %v392_v17  ;;  %929 = vmatmul.bf16.gmra.mxu3 %v392_v17  ;;  %v10139_v38 = vmul.f32 %v6338_v41, %v9886_v55  ;;  %v1605_v45 = vand.u32 2147483648, %v10028_v42 }
 0x161   : > { %v1710_v46 = vmul.f32 %v1709_v32, %v10006_v26  ;;  %v1733_v58 = vmul.f32 2.1237322e-06, %v10010_v44  ;;  %v1568_v61 = vmul.f32 %v1567_v49, %v10074_v16  ;;  %v1620_v14 = vadd.f32 0.18741608, %v1619_v0 }
 0x162   : > { %17283 = vst [vmem:[#allocation20_spill] sm:$0xff] %v10139_v38  ;;  %v10145_v13 = vadd.f32 1.0, %v1672_v48  ;;  %v1750_v15 = vmul.f32 %v1749_v51, %v10010_v44  ;;  %v1598_v20 = vadd.f32 %v10071_v9, %v1597_v30  ;;  %vm1600_vm5 = vweird.f32 %v10071_v9 }
 0x163   : > { %v1659_v55 = vmul.f32 %v1658_v23, %v9930_v47  ;;  %v1696_v12 = vadd.f32 0.0036580483, %v1695_v57  ;;  %v1637_v27 = vmul.f32 %v10094_v7, %v1636_v36  ;;  %v1788_v41 = vmul.f32 %v1787_v53, %v10057_v24  ;;  %vm10163_vm7 = vmor %vm1599_vm4, %vm1600_vm5 }
 0x164   : > { %v10153_v32 = vmin.f32 %v1811_v18, 16.0  ;;  %v1851_v16 = vmul.f32 %v10136_v60, %v10136_v60  ;;  %vm10157_vm6 = vcmp.eq.f32.partialorder %v1603_v62, 8.507059e+37  ;;  %v1606_v0 = vor.u32 1.1754944e-38, %v1605_v45  ;;  %v707_v18 = vpop.f32.mrf.mxu1 }
 0x165   : > { %v1711_v48 = vadd.f32 0.4994258, %v1710_v46  ;;  %v1734_v51 = vadd.f32 0.00028619796, %v1733_v58  ;;  %v8319_v49 = vclamps-f32 %v1568_v61, 1.0  ;;  %v1621_v23 = vmul.f32 %v1620_v14, %v9849_v22 }
 0x166   : > { %8749 = vrcp.f32 %v10145_v13  ;;  %v1751_v57 = vadd.f32 0.4994258, %v1750_v15  ;;  %v1602_v62 = vsel %vm10163_vm7, %v10071_v9, %v1598_v20  ;;  %vm1640_vm8 = vweird.f32 %v10094_v7 }
 0x167   : > { %v1660_v36 = vadd.f32 0.18741608, %v1659_v55  ;;  %v1697_v53 = vmul.f32 %v1696_v12, %v10006_v26  ;;  %v1638_v42 = vadd.f32 %v10094_v7, %v1637_v27  ;;  %v1789_v45 = vadd.f32 0.112945676, %v1788_v41 }
 0x168   : > { %v1824_v46 = vmul.f32 3.8918573e-05, %v10153_v32  ;;  %v10176_v58 = vmin.f32 %v1851_v16, 16.0  ;;  %vm1639_vm9 = vweird.f32 %v10055_v52  ;;  %v1645_v22 = vand.u32 2147483648, %v10055_v52 }
 0x169   : > { %v1712_v61 = vmul.f32 %v1711_v48, %v10006_v26  ;;  %v1735_v9 = vmul.f32 %v1734_v51, %v10010_v44  ;;  %v1607_v14 = vsel %vm10157_vm6, %v1606_v0, %v1602_v62  ;;  %v1643_v15 = vand.u32 2147483647, %v10055_v52  ;;  %vm10191_vm10 = vmor %vm1639_vm9, %vm1640_vm8 }
 0x16a   : > { %v1752_v20 = vmul.f32 %v1751_v57, %v10010_v44  ;;  %v10187_v55 = vadd.f32 %v707_v18, %v9485_v21  ;;  %v6339_v12 = vadd.f32 1.0, %v8319_v49  ;;  %v1622_v27 = vadd.f32 1.1283791, %v1621_v23 }
 0x16b   : > { %v1661_v16 = vmul.f32 %v1660_v36, %v9930_v47  ;;  %v1698_v48 = vadd.f32 0.05243302, %v1697_v53  ;;  %v1642_v52 = vsel %vm10191_vm10, %v10094_v7, %v1638_v42  ;;  %v1790_v0 = vmul.f32 %v1789_v45, %v10057_v24  ;;  %v796_v7 = vpop.f32.mrf.mxu2 }
 0x16c   : > { %v10196_v17 = vpop.eup %8749  ;;  %v1825_v51 = vadd.f32 0.001143296, %v1824_v46  ;;  %v1864_v49 = vmul.f32 3.8918573e-05, %v10176_v58  ;;  %v1608_v30 = vmul.f32 %v1607_v14, %v10107_v25  ;;  %v1646_v23 = vor.u32 1.1754944e-38, %v1645_v22 }
 0x16d   : > { %v10204_v57 = vadd.f32 1.0, %v1712_v61  ;;  %v1736_v62 = vadd.f32 0.0036580483, %v1735_v9  ;;  %vm1644_vm11 = vcmp.eq.f32.partialorder %v1643_v15, 8.507059e+37  ;;  %v10206_v47 = vadd.f32 1.0, %v1752_v20 }
 0x16e   : > { %v1773_v36 = vmul.f32 2.1237322e-06, %v10057_v24  ;;  %v10210_v53 = vmul.f32 0.70710677, %v10187_v55  ;;  %v1623_v18 = vmul.f32 %v1622_v27, %v9809_v37  ;;  %v1647_v42 = vsel %vm1644_vm11, %v1646_v23, %v1642_v52 }
 0x16f   : > { %v1675_v45 = vmul.f32 %v10196_v17, %v10145_v13  ;;  %v1699_v25 = vmul.f32 %v1698_v48, %v10006_v26  ;;  %v1662_v46 = vadd.f32 1.1283791, %v1661_v16  ;;  %v1791_v22 = vadd.f32 0.4994258, %v1790_v0 }
 0x170   : > { %v1826_v61 = vmul.f32 %v1825_v51, %v10153_v32  ;;  %v1865_v9 = vadd.f32 0.001143296, %v1864_v49  ;;  %v8320_v14 = vclamps-f32 %v1608_v30, 1.0  ;;  %8751 = vrcp.f32 %v10204_v57 }
 0x171   : > { %v1737_v15 = vmul.f32 %v1736_v62, %v10010_v44  ;;  %v10220_v20 = vadd.f32 %v796_v7, %v9503_v29  ;;  %v1648_v37 = vmul.f32 %v1647_v42, %v1623_v18  ;;  %8753 = vrcp.f32 %v10206_v47 }
 0x172   : > { %v1774_v27 = vadd.f32 0.00028619796, %v1773_v36  ;;  %v1891_v41 = vmul.f32 %v10210_v53, %v10210_v53  ;;  %v10226_v16 = vmul.f32 %v6339_v12, %v9901_v28  ;;  %v1676_v48 = vsub.f32 1.0, %v1675_v45 }
 0x173   : > { %v10229_v52 = vmul.f32 0.5, %v9927_v54  ;;  %v1700_v0 = vadd.f32 0.18741608, %v1699_v25  ;;  %v10232_v51 = vmul.f32 0.5, %v9933_v1  ;;  %v1792_v49 = vmul.f32 %v1791_v22, %v10057_v24 }
 0x174   : > { %17290 = vst [vmem:[#allocation21_spill] sm:$0xff] %v10226_v16  ;;  %v1827_v30 = vadd.f32 0.014752088, %v1826_v61  ;;  %v1866_v23 = vmul.f32 %v1865_v9, %v10176_v58  ;;  %v6340_v62 = vadd.f32 1.0, %v8320_v14  ;;  %v1738_v36 = vadd.f32 0.05243302, %v1737_v15 }
 0x175   : > { %v10237_v7 = vmul.f32 0.5, %v10000_v56  ;;  %v10240_v28 = vmul.f32 0.70710677, %v10220_v20  ;;  %v8321_v12 = vclamps-f32 %v1648_v37, 1.0  ;;  %v10243_v54 = vmul.f32 %v1662_v46, %v9898_v43 }
 0x176   : > { %v1775_v1 = vmul.f32 %v1774_v27, %v10057_v24  ;;  %v10246_v18 = vmin.f32 %v1891_v41, 16.0  ;;  %v10248_v42 = vpop.eup %8751  ;;  %v1677_v45 = vmul.f32 %v10196_v17, %v1676_v48  ;;  %vm1679_vm12 = vweird.f32 %v10145_v13 }
 0x177   : > { %v1683_v56 = vand.u32 2147483647, %v10145_v13  ;;  %v1701_v25 = vmul.f32 %v1700_v0, %v10006_v26  ;;  %v10254_v22 = vpop.eup %8753  ;;  %v10256_v61 = vadd.f32 1.0, %v1792_v49  ;;  %v1813_v43 = vmul.f32 2.1237322e-06, %v10153_v32 }
 0x178   : > { %v1828_v46 = vmul.f32 %v1827_v30, %v10153_v32  ;;  %v1867_v9 = vadd.f32 0.014752088, %v1866_v23  ;;  %v10261_v14 = vmul.f32 %v6340_v62, %v9955_v35  ;;  %v1685_v15 = vand.u32 2147483648, %v10145_v13 }
 0x179   : > { %v1739_v37 = vmul.f32 %v1738_v36, %v10010_v44  ;;  %v1931_v27 = vmul.f32 %v10240_v28, %v10240_v28  ;;  %v6341_v26 = vadd.f32 1.0, %v8321_v12  ;;  %vm1680_vm13 = vweird.f32 %v10196_v17 }
 0x17a   : > { %17291 = vst [vmem:[#allocation22_spill] sm:$0xff] %v10261_v14  ;;  %v1776_v41 = vadd.f32 0.0036580483, %v1775_v1  ;;  %v1904_v48 = vmul.f32 3.8918573e-05, %v10246_v18  ;;  %v1678_v0 = vadd.f32 %v10196_v17, %v1677_v45  ;;  %v1715_v35 = vmul.f32 %v10248_v42, %v10204_v57  ;;  %vm10289_vm15 = vmor %vm1679_vm12, %vm1680_vm13 }
 0x17b   : > { %v1702_v49 = vadd.f32 1.1283791, %v1701_v25  ;;  %v1755_v30 = vmul.f32 %v10254_v22, %v10206_v47  ;;  %8755 = vrcp.f32 %v10256_v61  ;;  %v1814_v23 = vadd.f32 0.00028619796, %v1813_v43 }
 0x17c   : > { %v1829_v62 = vadd.f32 0.112945676, %v1828_v46  ;;  %v1868_v36 = vmul.f32 %v1867_v9, %v10176_v58  ;;  %vm10276_vm14 = vcmp.eq.f32.partialorder %v1683_v56, 8.507059e+37  ;;  %v1686_v1 = vor.u32 1.1754944e-38, %v1685_v15 }
 0x17d   : > { %v1740_v14 = vadd.f32 0.18741608, %v1739_v37  ;;  %v10280_v45 = vmin.f32 %v1931_v27, 16.0  ;;  %v10283_v25 = vmul.f32 %v6341_v26, %v10017_v3  ;;  %v1725_v56 = vand.u32 2147483648, %v10204_v57  ;;  %v885_v26 = vpop.f32.mrf.mxu3 }
 0x17e   : > { %v1777_v46 = vmul.f32 %v1776_v41, %v10057_v24  ;;  %v1905_v9 = vadd.f32 0.001143296, %v1904_v48  ;;  %v1682_v15 = vsel %vm10289_vm15, %v10196_v17, %v1678_v0  ;;  %v1716_v37 = vsub.f32 1.0, %v1715_v35 }
 0x17f   : > { %17294 = vst [vmem:[#allocation23_spill] sm:$0xff] %v10283_v25  ;;  %v1756_v3 = vsub.f32 1.0, %v1755_v30  ;;  %v1853_v27 = vmul.f32 2.1237322e-06, %v10176_v58  ;;  %v10300_v13 = vmul.f32 %v1702_v49, %v9964_v10  ;;  %v1815_v25 = vmul.f32 %v1814_v23, %v10153_v32 }
 0x180   : > { %v1830_v16 = vmul.f32 %v1829_v62, %v10153_v32  ;;  %v1869_v38 = vadd.f32 0.112945676, %v1868_v36  ;;  %vm1719_vm0 = vweird.f32 %v10204_v57  ;;  %v1723_v41 = vand.u32 2147483647, %v10204_v57 }
 0x181   : > { %v1741_v48 = vmul.f32 %v1740_v14, %v10010_v44  ;;  %v1944_v17 = vmul.f32 3.8918573e-05, %v10280_v45  ;;  %v10308_v0 = vpop.eup %8755  ;;  %v1687_v35 = vsel %vm10276_vm14, %v1686_v1, %v1682_v15  ;;  %v1778_v10 = vadd.f32 0.05243302, %v1777_v46 }
 0x182   : > { %v1906_v49 = vmul.f32 %v1905_v9, %v10246_v18  ;;  %v10314_v30 = vadd.f32 %v885_v26, %v9512_v34  ;;  %v1717_v23 = vmul.f32 %v10248_v42, %v1716_v37  ;;  %v1726_v62 = vor.u32 1.1754944e-38, %v1725_v56 }
 0x183   : > { %v1757_v36 = vmul.f32 %v10254_v22, %v1756_v3  ;;  %v1854_v43 = vadd.f32 0.00028619796, %v1853_v27  ;;  %v10319_v44 = vmul.f32 0.5, %v10092_v11  ;;  %v1816_v14 = vadd.f32 0.0036580483, %v1815_v25 }
 0x184   : > { %v1831_v50 = vadd.f32 0.4994258, %v1830_v16  ;;  %v1870_v12 = vmul.f32 %v1869_v38, %v10176_v58  ;;  %v10323_v1 = vmul.f32 %v1687_v35, %v10243_v54  ;;  %v1742_v46 = vadd.f32 1.1283791, %v1741_v48 }
 0x185   : > { %v1795_v9 = vmul.f32 %v10308_v0, %v10256_v61  ;;  %v1945_v15 = vadd.f32 0.001143296, %v1944_v17  ;;  %vm1720_vm1 = vweird.f32 %v10248_v42  ;;  %vm10328_vm2 = vcmp.eq.f32.partialorder %v1723_v41, 8.507059e+37 }
 0x186   : > { %v1779_v11 = vmul.f32 %v1778_v10, %v10057_v24  ;;  %v1907_v25 = vadd.f32 0.014752088, %v1906_v49  ;;  %v10334_v16 = vmul.f32 0.70710677, %v10314_v30  ;;  %v1718_v38 = vadd.f32 %v10248_v42, %v1717_v23  ;;  %vm10345_vm4 = vmor %vm1719_vm0, %vm1720_vm1 }
 0x187   : > { %v1758_v54 = vadd.f32 %v10254_v22, %v1757_v36  ;;  %vm1760_vm3 = vweird.f32 %v10254_v22  ;;  %v1855_v37 = vmul.f32 %v1854_v43, %v10176_v58  ;;  %v1817_v3 = vmul.f32 %v1816_v14, %v10153_v32 }
 0x188   : > { %v1832_v27 = vmul.f32 %v1831_v50, %v10153_v32  ;;  %v1871_v26 = vadd.f32 0.4994258, %v1870_v12  ;;  %v1893_v41 = vmul.f32 2.1237322e-06, %v10246_v18  ;;  %vm1759_vm5 = vweird.f32 %v10206_v47 }
 0x189   : > { %v1765_v17 = vand.u32 2147483648, %v10206_v47  ;;  %v1796_v35 = vsub.f32 1.0, %v1795_v9  ;;  %v1946_v10 = vmul.f32 %v1945_v15, %v10280_v45  ;;  %vm10352_vm6 = vmor %vm1759_vm5, %vm1760_vm3  ;;  %v1763_v50 = vand.u32 2147483647, %v10206_v47  ;;  %v620_v47 = vpop.f32.mrf.mxu0 }
 0x18a   : > { %v10358_v23 = vmul.f32 0.5, %v10123_v40  ;;  %v1908_v57 = vmul.f32 %v1907_v25, %v10246_v18  ;;  %v1971_v36 = vmul.f32 %v10334_v16, %v10334_v16  ;;  %v8322_v43 = vclamps-f32 %v10323_v1, 1.0 }
 0x18b   : > { %v1722_v14 = vsel %vm10345_vm4, %v10248_v42, %v1718_v38  ;;  %v1762_v12 = vsel %vm10352_vm6, %v10254_v22, %v1758_v54  ;;  %v1856_v9 = vadd.f32 0.0036580483, %v1855_v37  ;;  %v1818_v15 = vadd.f32 0.05243302, %v1817_v3 }
 0x18c   : > { %v10370_v40 = vadd.f32 1.0, %v1832_v27  ;;  %v1872_v25 = vmul.f32 %v1871_v26, %v10176_v58  ;;  %v1894_v33 = vadd.f32 0.00028619796, %v1893_v41  ;;  %v1766_v31 = vor.u32 1.1754944e-38, %v1765_v17 }
 0x18d   : > { %v1780_v6 = vadd.f32 0.18741608, %v1779_v11  ;;  %v1797_v1 = vmul.f32 %v10308_v0, %v1796_v35  ;;  %v1947_v4 = vadd.f32 0.014752088, %v1946_v10  ;;  %vm1764_vm7 = vcmp.eq.f32.partialorder %v1763_v50, 8.507059e+37  ;;  %v709_v35 = vpop.f32.mrf.mxu1 }
 0x18e   : > { %v1909_v48 = vadd.f32 0.112945676, %v1908_v57  ;;  %v10374_v42 = vmin.f32 %v1971_v36, 16.0  ;;  %v10377_v38 = vadd.f32 %v620_v47, %v9483_v19  ;;  %v1727_v22 = vsel %vm10328_vm2, %v1726_v62, %v1722_v14 }
 0x18f   : > { %v1743_v54 = vmul.f32 %v1742_v46, %v9969_v2  ;;  %v1767_v37 = vsel %vm1764_vm7, %v1766_v31, %v1762_v12  ;;  %v1857_v3 = vmul.f32 %v1856_v9, %v10176_v58  ;;  %v1819_v11 = vmul.f32 %v1818_v15, %v10153_v32 }
 0x190   : > { %8757 = vrcp.f32 %v10370_v40  ;;  %v10385_v27 = vadd.f32 1.0, %v1872_v25  ;;  %v1895_v26 = vmul.f32 %v1894_v33, %v10246_v18  ;;  %v1781_v41 = vmul.f32 %v1780_v6, %v10057_v24 }
 0x191   : > { %v1798_v17 = vadd.f32 %v10308_v0, %v1797_v1  ;;  %vm1800_vm8 = vweird.f32 %v10308_v0  ;;  %v1948_v62 = vmul.f32 %v1947_v4, %v10280_v45  ;;  %vm1799_vm9 = vweird.f32 %v10256_v61 }
 0x192   : > { %v1910_v31 = vmul.f32 %v1909_v48, %v10246_v18  ;;  %v1984_v2 = vmul.f32 3.8918573e-05, %v10374_v42  ;;  %v10396_v46 = vmul.f32 0.70710677, %v10377_v38  ;;  %v1728_v56 = vmul.f32 %v1727_v22, %v10300_v13  ;;  %vm10400_vm10 = vmor %vm1799_vm9, %vm1800_vm8 }
 0x193   : > { %v1768_v33 = vmul.f32 %v1767_v37, %v1743_v54  ;;  %v1805_v24 = vand.u32 2147483648, %v10256_v61  ;;  %v1858_v6 = vadd.f32 0.05243302, %v1857_v3  ;;  %v1803_v4 = vand.u32 2147483647, %v10256_v61 }
 0x194   : > { %v1820_v49 = vadd.f32 0.18741608, %v1819_v11  ;;  %8759 = vrcp.f32 %v10385_v27  ;;  %v1896_v50 = vadd.f32 0.0036580483, %v1895_v26  ;;  %v6342_v57 = vadd.f32 1.0, %v8322_v43 }
 0x195   : > { %v1782_v36 = vadd.f32 1.1283791, %v1781_v41  ;;  %v1802_v13 = vsel %vm10400_vm10, %v10308_v0, %v1798_v17  ;;  %v1949_v14 = vadd.f32 0.112945676, %v1948_v62  ;;  %v1911_v9 = vadd.f32 0.4994258, %v1910_v31 }
 0x196   : > { %v10409_v12 = vpop.eup %8757  ;;  %v1985_v47 = vadd.f32 0.001143296, %v1984_v2  ;;  %v2011_v15 = vmul.f32 %v10396_v46, %v10396_v46  ;;  %v10414_v61 = vadd.f32 %v709_v35, %v9485_v21  ;;  %v8323_v25 = vclamps-f32 %v1728_v56, 1.0 }
 0x197   : > { %v8324_v1 = vclamps-f32 %v1768_v33, 1.0  ;;  %v1806_v48 = vor.u32 1.1754944e-38, %v1805_v24  ;;  %v1859_v43 = vmul.f32 %v1858_v6, %v10176_v58  ;;  %vm1804_vm11 = vcmp.eq.f32.partialorder %v1803_v4, 8.507059e+37 }
 0x198   : > { %v1821_v22 = vmul.f32 %v1820_v49, %v10153_v32  ;;  %v1897_v0 = vmul.f32 %v1896_v50, %v10246_v18  ;;  %v1933_v54 = vmul.f32 2.1237322e-06, %v10280_v45  ;;  %v1783_v37 = vmul.f32 %v1782_v36, %v10021_v8 }
 0x199   : > { %v1807_v3 = vsel %vm1804_vm11, %v1806_v48, %v1802_v13  ;;  %v1835_v11 = vmul.f32 %v10409_v12, %v10370_v40  ;;  %v1950_v26 = vmul.f32 %v1949_v14, %v10280_v45  ;;  %v1912_v17 = vmul.f32 %v1911_v9, %v10246_v18 }
 0x19a   : > { %v10424_v41 = vpop.eup %8759  ;;  %v1986_v62 = vmul.f32 %v1985_v47, %v10374_v42  ;;  %v10428_v31 = vmin.f32 %v2011_v15, 16.0  ;;  %v10431_v32 = vmul.f32 0.70710677, %v10414_v61  ;;  %v6343_v2 = vadd.f32 1.0, %v8323_v25 }
 0x19b   : > { %v6344_v56 = vadd.f32 1.0, %v8324_v1  ;;  %v1860_v8 = vadd.f32 0.18741608, %v1859_v43  ;;  %v10434_v33 = vmul.f32 0.5, %v10187_v55  ;;  %v10437_v24 = vmul.f32 %v6342_v57, %v10068_v59 }
 0x19c   : > { %v1822_v6 = vadd.f32 1.1283791, %v1821_v22  ;;  %v1898_v35 = vadd.f32 0.05243302, %v1897_v0  ;;  %v1934_v10 = vadd.f32 0.00028619796, %v1933_v54  ;;  %v1808_v4 = vmul.f32 %v1807_v3, %v1783_v37  ;;  %v798_v22 = vpop.f32.mrf.mxu2  ;;  %v887_v37 = vpop.f32.mrf.mxu3 }
 0x19d   : > { %17305 = vst [vmem:[#allocation24_spill] sm:$0xff] %v10437_v24  ;;  %v1836_v49 = vsub.f32 1.0, %v1835_v11  ;;  %v1875_v50 = vmul.f32 %v10424_v41, %v10385_v27  ;;  %v1951_v36 = vadd.f32 0.4994258, %v1950_v26  ;;  %v10441_v13 = vadd.f32 1.0, %v1912_v17 }
 0x19e   : > { %v1987_v14 = vadd.f32 0.014752088, %v1986_v62  ;;  %v2024_v9 = vmul.f32 3.8918573e-05, %v10428_v31  ;;  %v2051_v55 = vmul.f32 %v10431_v32, %v10431_v32  ;;  %v10447_v59 = vmul.f32 %v6343_v2, %v10229_v52 }
 0x19f   : > { %v10450_v57 = vmul.f32 %v6344_v56, %v10232_v51  ;;  %v1861_v47 = vmul.f32 %v1860_v8, %v10176_v58  ;;  %v10454_v15 = vmul.f32 0.5, %v10220_v20  ;;  %v10457_v25 = vmul.f32 %v1822_v6, %v10120_v5 }
 0x1a0   : > { %v1843_v1 = vand.u32 2147483647, %v10370_v40  ;;  %v1899_v48 = vmul.f32 %v1898_v35, %v10246_v18  ;;  %v1935_v43 = vmul.f32 %v1934_v10, %v10280_v45  ;;  %v8325_v52 = vclamps-f32 %v1808_v4, 1.0 }
 0x1a1   : > { %v1837_v0 = vmul.f32 %v10409_v12, %v1836_v49  ;;  %v1876_v51 = vsub.f32 1.0, %v1875_v50  ;;  %v1952_v54 = vmul.f32 %v1951_v36, %v10280_v45  ;;  %8761 = vrcp.f32 %v10441_v13 }
 0x1a2   : > { %v1988_v58 = vmul.f32 %v1987_v14, %v10374_v42  ;;  %v2025_v20 = vadd.f32 0.001143296, %v2024_v9  ;;  %v10466_v5 = vmin.f32 %v2051_v55, 16.0  ;;  %v1845_v3 = vand.u32 2147483648, %v10370_v40 }
 0x1a3   : > { %v1862_v11 = vadd.f32 1.1283791, %v1861_v47  ;;  %v1973_v26 = vmul.f32 2.1237322e-06, %v10374_v42  ;;  %v10471_v17 = vadd.f32 %v798_v22, %v9503_v29  ;;  %vm1839_vm12 = vweird.f32 %v10370_v40 }
 0x1a4   : > { %vm10474_vm13 = vcmp.eq.f32.partialorder %v1843_v1, 8.507059e+37  ;;  %v1900_v2 = vadd.f32 0.18741608, %v1899_v48  ;;  %v1936_v56 = vadd.f32 0.0036580483, %v1935_v43  ;;  %v1838_v8 = vadd.f32 %v10409_v12, %v1837_v0 }
 0x1a5   : > { %vm1840_vm14 = vweird.f32 %v10409_v12  ;;  %v10480_v6 = vadd.f32 1.0, %v1952_v54  ;;  %v10483_v35 = vadd.f32 %v887_v37, %v9512_v34  ;;  %v1877_v10 = vmul.f32 %v10424_v41, %v1876_v51 }
 0x1a6   : > { %v1989_v4 = vadd.f32 0.112945676, %v1988_v58  ;;  %v2026_v49 = vmul.f32 %v2025_v20, %v10428_v31  ;;  %v2064_v50 = vmul.f32 3.8918573e-05, %v10466_v5  ;;  %v6345_v36 = vadd.f32 1.0, %v8325_v52  ;;  %vm10495_vm15 = vmor %vm1839_vm12, %vm1840_vm14 }
 0x1a7   : > { %v1846_v14 = vor.u32 1.1754944e-38, %v1845_v3  ;;  %v1974_v9 = vadd.f32 0.00028619796, %v1973_v26  ;;  %v10489_v55 = vmul.f32 0.70710677, %v10471_v17  ;;  %v10491_v47 = vpop.eup %8761  ;;  %v1863_v48 = vmul.f32 %v1862_v11, %v10136_v60 }
 0x1a8   : > { %v1883_v43 = vand.u32 2147483647, %v10385_v27  ;;  %v1901_v22 = vmul.f32 %v1900_v2, %v10246_v18  ;;  %v1937_v52 = vmul.f32 %v1936_v56, %v10280_v45  ;;  %v1842_v0 = vsel %vm10495_vm15, %v10409_v12, %v1838_v8 }
 0x1a9   : > { %vm1880_vm0 = vweird.f32 %v10424_v41  ;;  %8763 = vrcp.f32 %v10480_v6  ;;  %v10509_v40 = vmul.f32 0.70710677, %v10483_v35  ;;  %v1878_v51 = vadd.f32 %v10424_v41, %v1877_v10 }
 0x1aa   : > { %v1990_v60 = vmul.f32 %v1989_v4, %v10374_v42  ;;  %v2027_v54 = vadd.f32 0.014752088, %v2026_v49  ;;  %v2065_v58 = vadd.f32 0.001143296, %v2064_v50  ;;  %v1885_v18 = vand.u32 2147483648, %v10385_v27 }
 0x1ab   : > { %v1915_v20 = vmul.f32 %v10491_v47, %v10441_v13  ;;  %v1975_v12 = vmul.f32 %v1974_v9, %v10374_v42  ;;  %v2091_v37 = vmul.f32 %v10489_v55, %v10489_v55  ;;  %v10520_v3 = vmul.f32 %v6345_v36, %v10237_v7 }
 0x1ac   : > { %vm1879_vm1 = vweird.f32 %v10385_v27  ;;  %v1902_v11 = vadd.f32 1.1283791, %v1901_v22  ;;  %v1938_v26 = vadd.f32 0.05243302, %v1937_v52  ;;  %v1847_v2 = vsel %vm10474_vm13, %v1846_v14, %v1842_v0 }
 0x1ad   : > { %17310 = vst [vmem:[#allocation25_spill] sm:$0xff] %v10520_v3  ;;  %vm10527_vm2 = vmor %vm1879_vm1, %vm1880_vm0  ;;  %vm10531_vm3 = vcmp.eq.f32.partialorder %v1883_v43, 8.507059e+37  ;;  %v2013_v7 = vmul.f32 2.1237322e-06, %v10428_v31  ;;  %v2131_v27 = vmul.f32 %v10509_v40, %v10509_v40  ;;  %v1991_v10 = vadd.f32 0.4994258, %v1990_v60 }
 0x1ae   : > { %v1882_v62 = vsel %vm10527_vm2, %v10424_v41, %v1878_v51  ;;  %v2028_v4 = vmul.f32 %v2027_v54, %v10428_v31  ;;  %v2066_v49 = vmul.f32 %v2065_v58, %v10466_v5  ;;  %v1886_v36 = vor.u32 1.1754944e-38, %v1885_v18  ;;  %v623_v58 = vpop.f32.mrf.mxu0  ;;  %v373_v18 = vld [vmem:[%s9449_s22 + $0xc0] sm:$0xff] }
 0x1af   : > { %v10543_v50 = vpop.eup %8763  ;;  %v1916_v14 = vsub.f32 1.0, %v1915_v20  ;;  %v1976_v9 = vadd.f32 0.0036580483, %v1975_v12  ;;  %v10545_v1 = vmin.f32 %v2091_v37, 16.0  ;;  %v10548_v43 = vmul.f32 %v1902_v11, %v10210_v53  ;;  %v374_v53 = vld [vmem:[%s9449_s22 + $0xc8] sm:$0xff] }
 0x1b0   : > { %v1939_v22 = vmul.f32 %v1938_v26, %v10280_v45  ;;  %v10552_v41 = vmul.f32 0.5, %v10314_v30  ;;  %v10555_v52 = vmul.f32 0.5, %v10377_v38  ;;  %v1848_v0 = vmul.f32 %v1847_v2, %v10457_v25 }
 0x1b1   : > { %v1887_v51 = vsel %vm10531_vm3, %v1886_v36, %v1882_v62  ;;  %v2014_v60 = vadd.f32 0.00028619796, %v2013_v7  ;;  %v10560_v54 = vmin.f32 %v2131_v27, 16.0  ;;  %v1955_v20 = vmul.f32 %v10543_v50, %v10480_v6 }
 0x1b2   : > { %v1992_v30 = vmul.f32 %v1991_v10, %v10374_v42  ;;  %v2029_v12 = vadd.f32 0.112945676, %v2028_v4  ;;  %v2067_v37 = vadd.f32 0.014752088, %v2066_v49  ;;  %v1917_v38 = vmul.f32 %v10491_v47, %v1916_v14 }
 0x1b3   : > { %vm1919_vm4 = vweird.f32 %v10441_v13  ;;  %v1977_v25 = vmul.f32 %v1976_v9, %v10374_v42  ;;  %v2104_v11 = vmul.f32 3.8918573e-05, %v10545_v1  ;;  %v1923_v26 = vand.u32 2147483647, %v10441_v13 }
 0x1b4   : > { %v1940_v2 = vadd.f32 0.18741608, %v1939_v22  ;;  %v10573_v56 = vadd.f32 %v623_v58, %v9483_v19  ;;  %v393_v8 = vpack.c.bf16 %v374_v53, %v373_v18  ;;  %v8326_v7 = vclamps-f32 %v1848_v0, 1.0 }
 0x1b5   : > { %v1888_v27 = vmul.f32 %v1887_v51, %v1863_v48  ;;  %v2015_v62 = vmul.f32 %v2014_v60, %v10428_v31  ;;  %v2144_v10 = vmul.f32 3.8918573e-05, %v10560_v54  ;;  %v1956_v4 = vsub.f32 1.0, %v1955_v20 }
 0x1b6   : > { %v10577_v49 = vadd.f32 1.0, %v1992_v30  ;;  %v2030_v36 = vmul.f32 %v2029_v12, %v10428_v31  ;;  %v2068_v14 = vmul.f32 %v2067_v37, %v10466_v5  ;;  %667 = vmatmul.bf16.gmra.mxu0 %v393_v8  ;;  %756 = vmatmul.bf16.gmra.mxu1 %v393_v8  ;;  %v1918_v9 = vadd.f32 %v10491_v47, %v1917_v38 }
 0x1b7   : > { %vm1920_vm5 = vweird.f32 %v10491_v47  ;;  %v1978_v22 = vadd.f32 0.05243302, %v1977_v25  ;;  %v2105_v0 = vadd.f32 0.001143296, %v2104_v11  ;;  %845 = vmatmul.bf16.gmra.mxu2 %v393_v8  ;;  %934 = vmatmul.bf16.gmra.mxu3 %v393_v8  ;;  %v1925_v48 = vand.u32 2147483648, %v10441_v13 }
 0x1b8   : > { %v1941_v51 = vmul.f32 %v1940_v2, %v10280_v45  ;;  %v2053_v60 = vmul.f32 2.1237322e-06, %v10466_v5  ;;  %v10587_v58 = vmul.f32 0.70710677, %v10573_v56  ;;  %v6346_v18 = vadd.f32 1.0, %v8326_v7  ;;  %vm10595_vm7 = vmor %vm1919_vm4, %vm1920_vm5 }
 0x1b9   : > { %vm10589_vm6 = vcmp.eq.f32.partialorder %v1923_v26, 8.507059e+37  ;;  %v2016_v20 = vadd.f32 0.0036580483, %v2015_v62  ;;  %v2145_v30 = vadd.f32 0.001143296, %v2144_v10  ;;  %v1957_v45 = vmul.f32 %v10543_v50, %v1956_v4 }
 0x1ba   : > { %8765 = vrcp.f32 %v10577_v49  ;;  %v2031_v37 = vadd.f32 0.4994258, %v2030_v36  ;;  %v2069_v38 = vadd.f32 0.112945676, %v2068_v14  ;;  %v8327_v25 = vclamps-f32 %v1888_v27, 1.0  ;;  %v712_v36 = vpop.f32.mrf.mxu1 }
 0x1bb   : > { %v1922_v11 = vsel %vm10595_vm7, %v10491_v47, %v1918_v9  ;;  %v1979_v26 = vmul.f32 %v1978_v22, %v10374_v42  ;;  %v2106_v2 = vmul.f32 %v2105_v0, %v10545_v1  ;;  %v1926_v13 = vor.u32 1.1754944e-38, %v1925_v48 }
 0x1bc   : > { %v1942_v8 = vadd.f32 1.1283791, %v1941_v51  ;;  %v2054_v7 = vadd.f32 0.00028619796, %v2053_v60  ;;  %v2171_v62 = vmul.f32 %v10587_v58, %v10587_v58  ;;  %vm1960_vm8 = vweird.f32 %v10543_v50 }
 0x1bd   : > { %v1963_v10 = vand.u32 2147483647, %v10480_v6  ;;  %v2017_v27 = vmul.f32 %v2016_v20, %v10428_v31  ;;  %v2146_v4 = vmul.f32 %v2145_v30, %v10560_v54  ;;  %v1927_v47 = vsel %vm10589_vm6, %v1926_v13, %v1922_v11 }
 0x1be   : > { %v1958_v14 = vadd.f32 %v10543_v50, %v1957_v45  ;;  %v2032_v9 = vmul.f32 %v2031_v37, %v10428_v31  ;;  %v2070_v22 = vmul.f32 %v2069_v38, %v10466_v5  ;;  %v6347_v0 = vadd.f32 1.0, %v8327_v25 }
 0x1bf   : > { %v1965_v48 = vand.u32 2147483648, %v10480_v6  ;;  %v1980_v51 = vadd.f32 0.18741608, %v1979_v26  ;;  %v2107_v60 = vadd.f32 0.014752088, %v2106_v2  ;;  %vm1959_vm9 = vweird.f32 %v10480_v6 }
 0x1c0   : > { %v10618_v12 = vpop.eup %8765  ;;  %v2055_v20 = vmul.f32 %v2054_v7, %v10466_v5  ;;  %v10622_v30 = vmin.f32 %v2171_v62, 16.0  ;;  %v10625_v53 = vadd.f32 %v712_v36, %v9485_v21  ;;  %v1928_v45 = vmul.f32 %v1927_v47, %v10548_v43  ;;  %vm10630_vm10 = vmor %vm1959_vm9, %vm1960_vm8 }
 0x1c1   : > { %vm10634_vm11 = vcmp.eq.f32.partialorder %v1963_v10, 8.507059e+37  ;;  %v2018_v6 = vadd.f32 0.05243302, %v2017_v27  ;;  %v2147_v25 = vadd.f32 0.014752088, %v2146_v4  ;;  %v1962_v11 = vsel %vm10630_vm10, %v10543_v50, %v1958_v14 }
 0x1c2   : > { %v10641_v26 = vadd.f32 1.0, %v2032_v9  ;;  %v2071_v2 = vadd.f32 0.4994258, %v2070_v22  ;;  %v2093_v43 = vmul.f32 2.1237322e-06, %v10545_v1  ;;  %v1966_v13 = vor.u32 1.1754944e-38, %v1965_v48 }
 0x1c3   : > { %v1981_v7 = vmul.f32 %v1980_v51, %v10374_v42  ;;  %v1995_v62 = vmul.f32 %v10618_v12, %v10577_v49  ;;  %v2108_v10 = vmul.f32 %v2107_v60, %v10545_v1  ;;  %v10649_v27 = vmul.f32 %v6346_v18, %v10319_v44 }
 0x1c4   : > { %v2056_v4 = vadd.f32 0.0036580483, %v2055_v20  ;;  %v2184_v36 = vmul.f32 3.8918573e-05, %v10622_v30  ;;  %v10653_v50 = vmul.f32 0.70710677, %v10625_v53  ;;  %v1967_v14 = vsel %vm10634_vm11, %v1966_v13, %v1962_v11 }
 0x1c5   : > { %17323 = vst [vmem:[#allocation26_spill] sm:$0xff] %v10649_v27  ;;  %v8328_v47 = vclamps-f32 %v1928_v45, 1.0  ;;  %v10658_v42 = vmul.f32 0.5, %v10414_v61  ;;  %v2148_v9 = vmul.f32 %v2147_v25, %v10560_v54  ;;  %v2019_v22 = vmul.f32 %v2018_v6, %v10428_v31 }
 0x1c6   : > { %8767 = vrcp.f32 %v10641_v26  ;;  %v2072_v44 = vmul.f32 %v2071_v2, %v10466_v5  ;;  %v2094_v18 = vadd.f32 0.00028619796, %v2093_v43  ;;  %v1943_v48 = vmul.f32 %v1942_v8, %v10240_v28  ;;  %v801_v28 = vpop.f32.mrf.mxu2 }
 0x1c7   : > { %v1982_v51 = vadd.f32 1.1283791, %v1981_v7  ;;  %v1996_v60 = vsub.f32 1.0, %v1995_v62  ;;  %v2109_v20 = vadd.f32 0.112945676, %v2108_v10  ;;  %v10666_v45 = vmul.f32 %v6347_v0, %v10358_v23 }
 0x1c8   : > { %v2057_v61 = vmul.f32 %v2056_v4, %v10466_v5  ;;  %v2185_v37 = vadd.f32 0.001143296, %v2184_v36  ;;  %v2211_v38 = vmul.f32 %v10653_v50, %v10653_v50  ;;  %v1968_v6 = vmul.f32 %v1967_v14, %v1943_v48 }
 0x1c9   : > { %17324 = vst [vmem:[#allocation27_spill] sm:$0xff] %v10666_v45  ;;  %v10672_v25 = vmul.f32 0.5, %v10471_v17  ;;  %v2133_v11 = vmul.f32 2.1237322e-06, %v10560_v54  ;;  %v2149_v2 = vadd.f32 0.112945676, %v2148_v9  ;;  %v2095_v23 = vmul.f32 %v2094_v18, %v10545_v1 }
 0x1ca   : > { %v6348_v8 = vadd.f32 1.0, %v8328_v47  ;;  %v2020_v43 = vadd.f32 0.18741608, %v2019_v22  ;;  %v10675_v13 = vadd.f32 1.0, %v2072_v44  ;;  %v10679_v0 = vmul.f32 %v1982_v51, %v10334_v16 }
 0x1cb   : > { %v1997_v7 = vmul.f32 %v10618_v12, %v1996_v60  ;;  %v2110_v62 = vmul.f32 %v2109_v20, %v10545_v1  ;;  %v10684_v17 = vmul.f32 0.5, %v10483_v35  ;;  %v2058_v4 = vadd.f32 0.05243302, %v2057_v61 }
 0x1cc   : > { %v10686_v10 = vpop.eup %8767  ;;  %v2186_v36 = vmul.f32 %v2185_v37, %v10622_v30  ;;  %v10689_v47 = vmin.f32 %v2211_v38, 16.0  ;;  %v10692_v14 = vadd.f32 %v801_v28, %v9503_v29  ;;  %v8329_v9 = vclamps-f32 %v1968_v6, 1.0 }
 0x1cd   : > { %v2003_v16 = vand.u32 2147483647, %v10577_v49  ;;  %v2134_v22 = vadd.f32 0.00028619796, %v2133_v11  ;;  %v2150_v44 = vmul.f32 %v2149_v2, %v10560_v54  ;;  %v2005_v18 = vand.u32 2147483648, %v10577_v49 }
 0x1ce   : > { %v2021_v35 = vmul.f32 %v2020_v43, %v10428_v31  ;;  %8769 = vrcp.f32 %v10675_v13  ;;  %v2096_v48 = vadd.f32 0.0036580483, %v2095_v23  ;;  %v1998_v51 = vadd.f32 %v10618_v12, %v1997_v7 }
 0x1cf   : > { %vm2000_vm12 = vweird.f32 %v10618_v12  ;;  %v2035_v60 = vmul.f32 %v10686_v10, %v10641_v26  ;;  %v2111_v20 = vadd.f32 0.4994258, %v2110_v62  ;;  %v2059_v61 = vmul.f32 %v2058_v4, %v10466_v5 }
 0x1d0   : > { %v2187_v37 = vadd.f32 0.014752088, %v2186_v36  ;;  %v2224_v38 = vmul.f32 3.8918573e-05, %v10689_v47  ;;  %v10706_v6 = vmul.f32 0.70710677, %v10692_v14  ;;  %vm1999_vm13 = vweird.f32 %v10577_v49 }
 0x1d1   : > { %v6349_v31 = vadd.f32 1.0, %v8329_v9  ;;  %v2135_v11 = vmul.f32 %v2134_v22, %v10560_v54  ;;  %v2151_v2 = vadd.f32 0.4994258, %v2150_v44  ;;  %v10711_v28 = vmul.f32 %v6348_v8, %v10434_v33  ;;  %vm10713_vm14 = vmor %vm1999_vm13, %vm2000_vm12  ;;  %v890_v8 = vpop.f32.mrf.mxu3  ;;  %v8622_v9 = vld [vmem:[#allocation8 + $0x88] sm:$0xff] }
 0x1d2   : > { %vm10717_vm15 = vcmp.eq.f32.partialorder %v2003_v16, 8.507059e+37  ;;  %v2022_v7 = vadd.f32 1.1283791, %v2021_v35  ;;  %v2097_v62 = vmul.f32 %v2096_v48, %v10545_v1  ;;  %v2002_v49 = vsel %vm10713_vm14, %v10618_v12, %v1998_v51  ;;  %v8606_v22 = vld [vmem:[#allocation8 + $0x8] sm:$0xff]  ;;  %7095 = vmatpush.bf16.msrb.mxu2 %v8622_v9 }
 0x1d3   : > { %17325 = vst [vmem:[#allocation28_spill] sm:$0xff] %v10711_v28  ;;  %v2006_v4 = vor.u32 1.1754944e-38, %v2005_v18  ;;  %v2036_v36 = vsub.f32 1.0, %v2035_v60  ;;  %v2112_v33 = vmul.f32 %v2111_v20, %v10545_v1  ;;  %v8630_v44 = vld [vmem:[#allocation8 + $0xc8] sm:$0xff]  ;;  %v2060_v16 = vadd.f32 0.18741608, %v2059_v61  ;;  %6917 = vmatpush.bf16.msrb.mxu0 %v8606_v22  ;;  %v625_v22 = vpop.f32.mrf.mxu0 }
 0x1d4   : > { %v10726_v28 = vpop.eup %8769  ;;  %v2188_v45 = vmul.f32 %v2187_v37, %v10622_v30  ;;  %v2225_v35 = vadd.f32 0.001143296, %v2224_v38  ;;  %v2251_v48 = vmul.f32 %v10706_v6, %v10706_v6  ;;  %v10732_v43 = vmul.f32 %v6349_v31, %v10454_v15  ;;  %7184 = vmatpush.bf16.msrb.mxu3 %v8630_v44 }
 0x1d5   : > { %v2136_v12 = vadd.f32 0.0036580483, %v2135_v11  ;;  %v2152_v18 = vmul.f32 %v2151_v2, %v10560_v54  ;;  %v10736_v51 = vmul.f32 0.5, %v10573_v56  ;;  %v2007_v60 = vsel %vm10717_vm15, %v2006_v4, %v2002_v49 }
 0x1d6   : > { %17330 = vst [vmem:[#allocation29_spill] sm:$0xff] %v10732_v43  ;;  %v10741_v20 = vmul.f32 %v2022_v7, %v10396_v46  ;;  %v2098_v61 = vadd.f32 0.05243302, %v2097_v62  ;;  %v10744_v37 = vadd.f32 %v890_v8, %v9512_v34  ;;  %v2037_v15 = vmul.f32 %v10686_v10, %v2036_v36 }
 0x1d7   : > { %v2075_v38 = vmul.f32 %v10726_v28, %v10675_v13  ;;  %v10749_v56 = vadd.f32 1.0, %v2112_v33  ;;  %v2173_v31 = vmul.f32 2.1237322e-06, %v10622_v30  ;;  %v2061_v11 = vmul.f32 %v2060_v16, %v10466_v5 }
 0x1d8   : > { %v2189_v2 = vadd.f32 0.112945676, %v2188_v45  ;;  %v2226_v46 = vmul.f32 %v2225_v35, %v10689_v47  ;;  %v10754_v23 = vmin.f32 %v2251_v48, 16.0  ;;  %v2043_v7 = vand.u32 2147483647, %v10641_v26 }
 0x1d9   : > { %v2045_v62 = vand.u32 2147483648, %v10641_v26  ;;  %v2137_v49 = vmul.f32 %v2136_v12, %v10560_v54  ;;  %v10759_v4 = vadd.f32 1.0, %v2152_v18  ;;  %v2008_v36 = vmul.f32 %v2007_v60, %v10679_v0 }
 0x1da   : > { %vm2040_vm0 = vweird.f32 %v10686_v10  ;;  %v2099_v33 = vmul.f32 %v2098_v61, %v10545_v1  ;;  %v10765_v5 = vmul.f32 0.70710677, %v10744_v37  ;;  %v2038_v45 = vadd.f32 %v10686_v10, %v2037_v15 }
 0x1db   : > { %v2076_v8 = vsub.f32 1.0, %v2075_v38  ;;  %8771 = vrcp.f32 %v10749_v56  ;;  %v2174_v9 = vadd.f32 0.00028619796, %v2173_v31  ;;  %v2062_v44 = vadd.f32 1.1283791, %v2061_v11 }
 0x1dc   : > { %v2190_v16 = vmul.f32 %v2189_v2, %v10622_v30  ;;  %v2227_v35 = vadd.f32 0.014752088, %v2226_v46  ;;  %v2264_v0 = vmul.f32 3.8918573e-05, %v10754_v23  ;;  %vm2039_vm1 = vweird.f32 %v10641_v26 }
 0x1dd   : > { %vm10772_vm2 = vcmp.eq.f32.partialorder %v2043_v7, 8.507059e+37  ;;  %v2138_v12 = vadd.f32 0.05243302, %v2137_v49  ;;  %8773 = vrcp.f32 %v10759_v4  ;;  %v8330_v18 = vclamps-f32 %v2008_v36, 1.0  ;;  %vm10779_vm3 = vmor %vm2039_vm1, %vm2040_vm0 }
 0x1de   : > { %v2046_v61 = vor.u32 1.1754944e-38, %v2045_v62  ;;  %v2291_v15 = vmul.f32 %v10765_v5, %v10765_v5  ;;  %v10786_v26 = vadd.f32 %v625_v22, %v9483_v19  ;;  %v2042_v38 = vsel %vm10779_vm3, %v10686_v10, %v2038_v45  ;;  %v8614_v45 = vld [vmem:[#allocation8 + $0x48] sm:$0xff] }
 0x1df   : > { %v2077_v31 = vmul.f32 %v10726_v28, %v2076_v8  ;;  %v2100_v11 = vadd.f32 0.18741608, %v2099_v33  ;;  %v2175_v2 = vmul.f32 %v2174_v9, %v10622_v30  ;;  %v2063_v46 = vmul.f32 %v2062_v44, %v10431_v32  ;;  %7006 = vmatpush.bf16.msrb.mxu1 %v8614_v45 }
 0x1e0   : > { %v2191_v7 = vadd.f32 0.4994258, %v2190_v16  ;;  %v2228_v62 = vmul.f32 %v2227_v35, %v10689_v47  ;;  %v2265_v49 = vadd.f32 0.001143296, %v2264_v0  ;;  %vm2079_vm4 = vweird.f32 %v10675_v13 }
 0x1e1   : > { %v10795_v36 = vpop.eup %8771  ;;  %v2083_v22 = vand.u32 2147483647, %v10675_v13  ;;  %v2085_v60 = vand.u32 2147483648, %v10675_v13  ;;  %v2139_v10 = vmul.f32 %v2138_v12, %v10560_v54  ;;  %v6350_v33 = vadd.f32 1.0, %v8330_v18 }
 0x1e2   : > { %v2047_v8 = vsel %vm10772_vm2, %v2046_v61, %v2042_v38  ;;  %v10803_v32 = vmin.f32 %v2291_v15, 16.0  ;;  %v10806_v9 = vmul.f32 0.70710677, %v10786_v26  ;;  %v2078_v16 = vadd.f32 %v10726_v28, %v2077_v31 }
 0x1e3   : > { %v10808_v44 = vpop.eup %8773  ;;  %vm2080_vm5 = vweird.f32 %v10726_v28  ;;  %v2101_v35 = vmul.f32 %v2100_v11, %v10545_v1  ;;  %v2176_v0 = vadd.f32 0.0036580483, %v2175_v2  ;;  %v2115_v12 = vmul.f32 %v10795_v36, %v10749_v56 }
 0x1e4   : > { %v2192_v48 = vmul.f32 %v2191_v7, %v10622_v30  ;;  %v2229_v18 = vadd.f32 0.112945676, %v2228_v62  ;;  %v2266_v61 = vmul.f32 %v2265_v49, %v10754_v23  ;;  %v2048_v15 = vmul.f32 %v2047_v8, %v10741_v20  ;;  %vm10827_vm7 = vmor %vm2079_vm4, %vm2080_vm5 }
 0x1e5   : > { %vm10818_vm6 = vcmp.eq.f32.partialorder %v2083_v22, 8.507059e+37  ;;  %v2086_v31 = vor.u32 1.1754944e-38, %v2085_v60  ;;  %v2140_v43 = vadd.f32 0.18741608, %v2139_v10  ;;  %v10823_v1 = vmul.f32 %v6350_v33, %v10552_v41 }
 0x1e6   : > { %v2155_v2 = vmul.f32 %v10808_v44, %v10759_v4  ;;  %v2304_v20 = vmul.f32 3.8918573e-05, %v10803_v32  ;;  %v2331_v7 = vmul.f32 %v10806_v9, %v10806_v9  ;;  %v2082_v62 = vsel %vm10827_vm7, %v10726_v28, %v2078_v16 }
 0x1e7   : > { %17337 = vst [vmem:[#allocation30_spill] sm:$0xff] %v10823_v1  ;;  %v2102_v41 = vadd.f32 1.1283791, %v2101_v35  ;;  %v2177_v49 = vmul.f32 %v2176_v0, %v10622_v30  ;;  %v10841_v13 = vmul.f32 0.5, %v10625_v53  ;;  %v2116_v22 = vsub.f32 1.0, %v2115_v12 }
 0x1e8   : > { %v10843_v60 = vadd.f32 1.0, %v2192_v48  ;;  %v2230_v10 = vmul.f32 %v2229_v18, %v10689_v47  ;;  %v2267_v45 = vadd.f32 0.014752088, %v2266_v61  ;;  %v8331_v33 = vclamps-f32 %v2048_v15, 1.0 }
 0x1e9   : > { %v2123_v8 = vand.u32 2147483647, %v10749_v56  ;;  %v2125_v1 = vand.u32 2147483648, %v10749_v56  ;;  %v2141_v11 = vmul.f32 %v2140_v43, %v10560_v54  ;;  %v2087_v28 = vsel %vm10818_vm6, %v2086_v31, %v2082_v62 }
 0x1ea   : > { %v2156_v16 = vsub.f32 1.0, %v2155_v2  ;;  %v2305_v35 = vadd.f32 0.001143296, %v2304_v20  ;;  %v10851_v53 = vmin.f32 %v2331_v7, 16.0  ;;  %v10854_v0 = vmul.f32 %v2102_v41, %v10489_v55  ;;  %v714_v2 = vpop.f32.mrf.mxu1 }
 0x1eb   : > { %v2178_v12 = vadd.f32 0.05243302, %v2177_v49  ;;  %v2213_v48 = vmul.f32 2.1237322e-06, %v10689_v47  ;;  %v2253_v18 = vmul.f32 2.1237322e-06, %v10754_v23  ;;  %v2117_v61 = vmul.f32 %v10795_v36, %v2116_v22  ;;  %v803_v49 = vpop.f32.mrf.mxu2 }
 0x1ec   : > { %8775 = vrcp.f32 %v10843_v60  ;;  %v2231_v54 = vadd.f32 0.4994258, %v2230_v10  ;;  %v2268_v43 = vmul.f32 %v2267_v45, %v10754_v23  ;;  %v6351_v15 = vadd.f32 1.0, %v8331_v33 }
 0x1ed   : > { %v2088_v38 = vmul.f32 %v2087_v28, %v2063_v46  ;;  %vm2119_vm8 = vweird.f32 %v10749_v56  ;;  %v2142_v31 = vadd.f32 1.1283791, %v2141_v11  ;;  %vm10862_vm9 = vcmp.eq.f32.partialorder %v2123_v8, 8.507059e+37 }
 0x1ee   : > { %v2126_v20 = vor.u32 1.1754944e-38, %v2125_v1  ;;  %v2157_v7 = vmul.f32 %v10808_v44, %v2156_v16  ;;  %v2306_v62 = vmul.f32 %v2305_v35, %v10803_v32  ;;  %v2344_v41 = vmul.f32 3.8918573e-05, %v10851_v53 }
 0x1ef   : > { %vm2120_vm10 = vweird.f32 %v10795_v36  ;;  %v2179_v46 = vmul.f32 %v2178_v12, %v10622_v30  ;;  %v2214_v22 = vadd.f32 0.00028619796, %v2213_v48  ;;  %v2254_v10 = vadd.f32 0.00028619796, %v2253_v18 }
 0x1f0   : > { %v2118_v45 = vadd.f32 %v10795_v36, %v2117_v61  ;;  %v2232_v33 = vmul.f32 %v2231_v54, %v10689_v47  ;;  %v2269_v8 = vadd.f32 0.112945676, %v2268_v43  ;;  %v10874_v1 = vadd.f32 %v714_v2, %v9485_v21  ;;  %vm10889_vm12 = vmor %vm2119_vm8, %vm2120_vm10 }
 0x1f1   : > { %v8332_v11 = vclamps-f32 %v2088_v38, 1.0  ;;  %v2163_v28 = vand.u32 2147483647, %v10759_v4  ;;  %v2165_v16 = vand.u32 2147483648, %v10759_v4  ;;  %v10879_v35 = vadd.f32 %v803_v49, %v9503_v29 }
 0x1f2   : > { %v10881_v27 = vpop.eup %8775  ;;  %v2158_v12 = vadd.f32 %v10808_v44, %v2157_v7  ;;  %vm2160_vm11 = vweird.f32 %v10808_v44  ;;  %v2307_v48 = vadd.f32 0.014752088, %v2306_v62  ;;  %v2345_v18 = vadd.f32 0.001143296, %v2344_v41 }
 0x1f3   : > { %vm2159_vm13 = vweird.f32 %v10759_v4  ;;  %v2180_v54 = vadd.f32 0.18741608, %v2179_v46  ;;  %v2215_v43 = vmul.f32 %v2214_v22, %v10689_v47  ;;  %v2255_v38 = vmul.f32 %v2254_v10, %v10754_v23 }
 0x1f4   : > { %v2122_v2 = vsel %vm10889_vm12, %v10795_v36, %v2118_v45  ;;  %v10899_v7 = vadd.f32 1.0, %v2232_v33  ;;  %v2270_v62 = vmul.f32 %v2269_v8, %v10754_v23  ;;  %v10903_v56 = vmul.f32 0.70710677, %v10874_v1  ;;  %vm10905_vm14 = vmor %vm2159_vm13, %vm2160_vm11 }
 0x1f5   : > { %vm10909_vm15 = vcmp.eq.f32.partialorder %v2163_v28, 8.507059e+37  ;;  %v2166_v49 = vor.u32 1.1754944e-38, %v2165_v16  ;;  %v2195_v46 = vmul.f32 %v10881_v27, %v10843_v60  ;;  %v10916_v36 = vmul.f32 0.70710677, %v10879_v35 }
 0x1f6   : > { %v6352_v22 = vadd.f32 1.0, %v8332_v11  ;;  %v2162_v10 = vsel %vm10905_vm14, %v10808_v44, %v2158_v12  ;;  %v2308_v45 = vmul.f32 %v2307_v48, %v10803_v32  ;;  %v2346_v33 = vmul.f32 %v2345_v18, %v10851_v53 }
 0x1f7   : > { %v2127_v8 = vsel %vm10862_vm9, %v2126_v20, %v2122_v2  ;;  %v2181_v28 = vmul.f32 %v2180_v54, %v10622_v30  ;;  %v2216_v16 = vadd.f32 0.0036580483, %v2215_v43  ;;  %v2256_v61 = vadd.f32 0.0036580483, %v2255_v38  ;;  %v892_v2 = vpop.f32.mrf.mxu3 }
 0x1f8   : > { %8777 = vrcp.f32 %v10899_v7  ;;  %v2271_v24 = vadd.f32 0.4994258, %v2270_v62  ;;  %v2293_v11 = vmul.f32 2.1237322e-06, %v10803_v32  ;;  %v2371_v41 = vmul.f32 %v10903_v56, %v10903_v56 }
 0x1f9   : > { %v10931_v44 = vmul.f32 %v6351_v15, %v10555_v52  ;;  %v2167_v12 = vsel %vm10909_vm15, %v2166_v49, %v2162_v10  ;;  %v2196_v55 = vsub.f32 1.0, %v2195_v46  ;;  %v2411_v30 = vmul.f32 %v10916_v36, %v10916_v36 }
 0x1fa   : > { %v2128_v20 = vmul.f32 %v2127_v8, %v10854_v0  ;;  %v2143_v48 = vmul.f32 %v2142_v31, %v10509_v40  ;;  %v2309_v18 = vadd.f32 0.112945676, %v2308_v45  ;;  %v2347_v54 = vadd.f32 0.014752088, %v2346_v33 }
 0x1fb   : > { %17348 = vst [vmem:[#allocation31_spill] sm:$0xff] %v10931_v44  ;;  %v10940_v43 = vmul.f32 %v6352_v22, %v10658_v42  ;;  %v2182_v38 = vadd.f32 1.1283791, %v2181_v28  ;;  %v2217_v52 = vmul.f32 %v2216_v16, %v10689_v47  ;;  %v2257_v15 = vmul.f32 %v2256_v61, %v10754_v23 }
 0x1fc   : > { %v2168_v62 = vmul.f32 %v2167_v12, %v2143_v48  ;;  %v2272_v4 = vmul.f32 %v2271_v24, %v10754_v23  ;;  %v2294_v49 = vadd.f32 0.00028619796, %v2293_v11  ;;  %v10945_v46 = vmin.f32 %v2371_v41, 16.0 }
 0x1fd   : > { %17349 = vst [vmem:[#allocation32_spill] sm:$0xff] %v10940_v43  ;;  %v2197_v0 = vmul.f32 %v10881_v27, %v2196_v55  ;;  %v10949_v40 = vmul.f32 0.5, %v10692_v14  ;;  %v10952_v42 = vmul.f32 0.5, %v10744_v37  ;;  %v10954_v31 = vmin.f32 %v2411_v30, 16.0 }
 0x1fe   : > { %v10956_v22 = vpop.eup %8777  ;;  %v8333_v10 = vclamps-f32 %v2128_v20, 1.0  ;;  %v2310_v45 = vmul.f32 %v2309_v18, %v10803_v32  ;;  %v2348_v24 = vmul.f32 %v2347_v54, %v10851_v53  ;;  %v10961_v33 = vadd.f32 %v892_v2, %v9512_v34 }
 0x1ff   : > { %v2183_v8 = vmul.f32 %v2182_v38, %v10587_v58  ;;  %v2205_v14 = vand.u32 2147483648, %v10843_v60  ;;  %v2218_v28 = vadd.f32 0.05243302, %v2217_v52  ;;  %v2258_v16 = vadd.f32 0.05243302, %v2257_v15 }
 0x200   : > { %v8334_v37 = vclamps-f32 %v2168_v62, 1.0  ;;  %v10965_v61 = vadd.f32 1.0, %v2272_v4  ;;  %v2295_v11 = vmul.f32 %v2294_v49, %v10803_v32  ;;  %v2384_v41 = vmul.f32 3.8918573e-05, %v10945_v46 }
 0x201   : > { %v2198_v12 = vadd.f32 %v10881_v27, %v2197_v0  ;;  %vm2200_vm0 = vweird.f32 %v10881_v27  ;;  %v2235_v55 = vmul.f32 %v10956_v22, %v10899_v7  ;;  %v2424_v58 = vmul.f32 3.8918573e-05, %v10954_v31 }
 0x202   : > { %vm2199_vm1 = vweird.f32 %v10843_v60  ;;  %v2311_v30 = vadd.f32 0.4994258, %v2310_v45  ;;  %v2349_v20 = vadd.f32 0.112945676, %v2348_v24  ;;  %v10976_v48 = vmul.f32 0.70710677, %v10961_v33 }
 0x203   : > { %v6353_v18 = vadd.f32 1.0, %v8333_v10  ;;  %v2203_v54 = vand.u32 2147483647, %v10843_v60  ;;  %v2219_v38 = vmul.f32 %v2218_v28, %v10689_v47  ;;  %v2259_v52 = vmul.f32 %v2258_v16, %v10754_v23  ;;  %vm10981_vm2 = vmor %vm2199_vm1, %vm2200_vm0 }
 0x204   : > { %8779 = vrcp.f32 %v10965_v61  ;;  %v2296_v2 = vadd.f32 0.0036580483, %v2295_v11  ;;  %v2333_v62 = vmul.f32 2.1237322e-06, %v10851_v53  ;;  %v2385_v4 = vadd.f32 0.001143296, %v2384_v41 }
 0x205   : > { %v2202_v49 = vsel %vm10981_vm2, %v10881_v27, %v2198_v12  ;;  %v2206_v0 = vor.u32 1.1754944e-38, %v2205_v14  ;;  %v2236_v60 = vsub.f32 1.0, %v2235_v55  ;;  %v2425_v10 = vadd.f32 0.001143296, %v2424_v58 }
 0x206   : > { %v6354_v45 = vadd.f32 1.0, %v8334_v37  ;;  %v2312_v24 = vmul.f32 %v2311_v30, %v10803_v32  ;;  %v2350_v28 = vmul.f32 %v2349_v20, %v10851_v53  ;;  %v2451_v16 = vmul.f32 %v10976_v48, %v10976_v48  ;;  %v628_v20 = vpop.f32.mrf.mxu0 }
 0x207   : > { %v10995_v11 = vmul.f32 %v6353_v18, %v10672_v25  ;;  %vm2204_vm3 = vcmp.eq.f32.partialorder %v2203_v54, 8.507059e+37  ;;  %v2220_v41 = vadd.f32 0.18741608, %v2219_v38  ;;  %v2260_v43 = vadd.f32 0.18741608, %v2259_v52 }
 0x208   : > { %v2207_v27 = vsel %vm2204_vm3, %v2206_v0, %v2202_v49  ;;  %v2297_v14 = vmul.f32 %v2296_v2, %v10803_v32  ;;  %v2334_v12 = vadd.f32 0.00028619796, %v2333_v62  ;;  %v2386_v37 = vmul.f32 %v2385_v4, %v10945_v46  ;;  %v375_v2 = vld [vmem:[%s9449_s22 + $0xd0] sm:$0xff]  ;;  %v376_v62 = vld [vmem:[%s9449_s22 + $0xd8] sm:$0xff] }
 0x209   : > { %17352 = vst [vmem:[#allocation33_spill] sm:$0xff] %v10995_v11  ;;  %v2237_v55 = vmul.f32 %v10956_v22, %v2236_v60  ;;  %v11001_v58 = vmul.f32 0.5, %v10786_v26  ;;  %v2373_v30 = vmul.f32 2.1237322e-06, %v10945_v46  ;;  %v2426_v25 = vmul.f32 %v2425_v10, %v10954_v31 }
 0x20a   : > { %v11005_v18 = vpop.eup %8779  ;;  %v11008_v54 = vmul.f32 %v6354_v45, %v10684_v17  ;;  %v11010_v38 = vadd.f32 1.0, %v2312_v24  ;;  %v2351_v52 = vadd.f32 0.4994258, %v2350_v28  ;;  %v11012_v15 = vmin.f32 %v2451_v16, 16.0 }
 0x20b   : > { %v2208_v4 = vmul.f32 %v2207_v27, %v2183_v8  ;;  %v2221_v26 = vmul.f32 %v2220_v41, %v10689_v47  ;;  %vm2240_vm4 = vweird.f32 %v10956_v22  ;;  %v2261_v49 = vmul.f32 %v2260_v43, %v10754_v23 }
 0x20c   : > { %17353 = vst [vmem:[#allocation34_spill] sm:$0xff] %v11008_v54  ;;  %v2298_v0 = vadd.f32 0.05243302, %v2297_v14  ;;  %v2335_v60 = vmul.f32 %v2334_v12, %v10851_v53  ;;  %v2387_v10 = vadd.f32 0.014752088, %v2386_v37  ;;  %v11021_v17 = vadd.f32 %v628_v20, %v9483_v19 }
 0x20d   : > { %v2238_v45 = vadd.f32 %v10956_v22, %v2237_v55  ;;  %v2275_v24 = vmul.f32 %v11005_v18, %v10965_v61  ;;  %v2427_v28 = vadd.f32 0.014752088, %v2426_v25  ;;  %v394_v8 = vpack.c.bf16 %v376_v62, %v375_v2 }
 0x20e   : > { %8781 = vrcp.f32 %v11010_v38  ;;  %v2352_v47 = vmul.f32 %v2351_v52, %v10851_v53  ;;  %v2374_v16 = vadd.f32 0.00028619796, %v2373_v30  ;;  %v2464_v23 = vmul.f32 3.8918573e-05, %v11012_v15 }
 0x20f   : > { %v8335_v43 = vclamps-f32 %v2208_v4, 1.0  ;;  %v2222_v41 = vadd.f32 1.1283791, %v2221_v26  ;;  %vm2239_vm5 = vweird.f32 %v10899_v7  ;;  %v2245_v27 = vand.u32 2147483648, %v10899_v7  ;;  %672 = vmatmul.bf16.gmra.mxu0 %v394_v8  ;;  %761 = vmatmul.bf16.gmra.mxu1 %v394_v8 }
 0x210   : > { %vm11033_vm6 = vmor %vm2239_vm5, %vm2240_vm4  ;;  %v2243_v12 = vand.u32 2147483647, %v10899_v7  ;;  %v2336_v37 = vadd.f32 0.0036580483, %v2335_v60  ;;  %v2388_v55 = vmul.f32 %v2387_v10, %v10945_v46  ;;  %v11040_v30 = vmul.f32 0.70710677, %v11021_v17  ;;  %850 = vmatmul.bf16.gmra.mxu2 %v394_v8  ;;  %939 = vmatmul.bf16.gmra.mxu3 %v394_v8 }
 0x211   : > { %v2242_v25 = vsel %vm11033_vm6, %v10956_v22, %v2238_v45  ;;  %v2262_v20 = vadd.f32 1.1283791, %v2261_v49  ;;  %v2299_v52 = vmul.f32 %v2298_v0, %v10803_v32  ;;  %v2428_v2 = vmul.f32 %v2427_v28, %v10954_v31 }
 0x212   : > { %v2276_v62 = vsub.f32 1.0, %v2275_v24  ;;  %v11047_v4 = vadd.f32 1.0, %v2352_v47  ;;  %v2375_v7 = vmul.f32 %v2374_v16, %v10945_v46  ;;  %v2465_v26 = vadd.f32 0.001143296, %v2464_v23 }
 0x213   : > { %v6355_v60 = vadd.f32 1.0, %v8335_v43  ;;  %v2223_v10 = vmul.f32 %v2222_v41, %v10653_v50  ;;  %v2246_v54 = vor.u32 1.1754944e-38, %v2245_v27  ;;  %v11052_v8 = vmul.f32 0.5, %v10874_v1 }
 0x214   : > { %v11054_v14 = vpop.eup %8781  ;;  %vm2244_vm7 = vcmp.eq.f32.partialorder %v2243_v12, 8.507059e+37  ;;  %v2337_v22 = vmul.f32 %v2336_v37, %v10851_v53  ;;  %v2389_v49 = vadd.f32 0.112945676, %v2388_v55  ;;  %v2491_v0 = vmul.f32 %v11040_v30, %v11040_v30  ;;  %v717_v55 = vpop.f32.mrf.mxu1 }
 0x215   : > { %v2247_v45 = vsel %vm2244_vm7, %v2246_v54, %v2242_v25  ;;  %v11060_v24 = vmul.f32 %v2262_v20, %v10706_v6  ;;  %v2300_v28 = vadd.f32 0.18741608, %v2299_v52  ;;  %v2429_v47 = vadd.f32 0.112945676, %v2428_v2  ;;  %v806_v2 = vpop.f32.mrf.mxu2 }
 0x216   : > { %v2277_v50 = vmul.f32 %v11005_v18, %v2276_v62  ;;  %8783 = vrcp.f32 %v11047_v4  ;;  %v2376_v1 = vadd.f32 0.0036580483, %v2375_v7  ;;  %v2466_v16 = vmul.f32 %v2465_v26, %v11012_v15 }
 0x217   : > { %v11066_v23 = vmul.f32 %v6355_v60, %v10736_v51  ;;  %v2315_v43 = vmul.f32 %v11054_v14, %v11010_v38  ;;  %v11071_v54 = vmul.f32 0.5, %v10879_v35  ;;  %v2413_v6 = vmul.f32 2.1237322e-06, %v10954_v31 }
 0x218   : > { %v2283_v41 = vand.u32 2147483647, %v10965_v61  ;;  %v2338_v27 = vadd.f32 0.05243302, %v2337_v22  ;;  %v2390_v12 = vmul.f32 %v2389_v49, %v10945_v46  ;;  %v11076_v37 = vmin.f32 %v2491_v0, 16.0 }
 0x219   : > { %17356 = vst [vmem:[#allocation35_spill] sm:$0xff] %v11066_v23  ;;  %v2248_v25 = vmul.f32 %v2247_v45, %v2223_v10  ;;  %v2285_v51 = vand.u32 2147483648, %v10965_v61  ;;  %v2301_v20 = vmul.f32 %v2300_v28, %v10803_v32  ;;  %v2430_v52 = vmul.f32 %v2429_v47, %v10954_v31 }
 0x21a   : > { %v2278_v35 = vadd.f32 %v11005_v18, %v2277_v50  ;;  %vm2280_vm8 = vweird.f32 %v11005_v18  ;;  %v2377_v62 = vmul.f32 %v2376_v1, %v10945_v46  ;;  %v2467_v7 = vadd.f32 0.014752088, %v2466_v16 }
 0x21b   : > { %vm2279_vm9 = vweird.f32 %v10965_v61  ;;  %v2316_v26 = vsub.f32 1.0, %v2315_v43  ;;  %v2414_v60 = vadd.f32 0.00028619796, %v2413_v6  ;;  %v11086_v10 = vadd.f32 %v717_v55, %v9485_v21 }
 0x21c   : > { %v11088_v22 = vpop.eup %8783  ;;  %v2339_v32 = vmul.f32 %v2338_v27, %v10851_v53  ;;  %v2391_v49 = vadd.f32 0.4994258, %v2390_v12  ;;  %v2504_v0 = vmul.f32 3.8918573e-05, %v11076_v37  ;;  %v11093_v45 = vadd.f32 %v806_v2, %v9503_v29  ;;  %vm11095_vm10 = vmor %vm2279_vm9, %vm2280_vm8 }
 0x21d   : > { %v8336_v28 = vclamps-f32 %v2248_v25, 1.0  ;;  %vm11099_vm11 = vcmp.eq.f32.partialorder %v2283_v41, 8.507059e+37  ;;  %v2302_v50 = vadd.f32 1.1283791, %v2301_v20  ;;  %v2431_v1 = vadd.f32 0.4994258, %v2430_v52 }
 0x21e   : > { %v2282_v16 = vsel %vm11095_vm10, %v11005_v18, %v2278_v35  ;;  %v2286_v43 = vor.u32 1.1754944e-38, %v2285_v51  ;;  %v2378_v6 = vadd.f32 0.05243302, %v2377_v62  ;;  %v2468_v27 = vmul.f32 %v2467_v7, %v11012_v15 }
 0x21f   : > { %v2317_v12 = vmul.f32 %v11054_v14, %v2316_v26  ;;  %v2355_v55 = vmul.f32 %v11088_v22, %v11047_v4  ;;  %v2415_v41 = vmul.f32 %v2414_v60, %v10954_v31  ;;  %v11112_v25 = vmul.f32 0.70710677, %v11086_v10 }
 0x220   : > { %v2340_v20 = vadd.f32 0.18741608, %v2339_v32  ;;  %v2392_v52 = vmul.f32 %v2391_v49, %v10945_v46  ;;  %v2505_v2 = vadd.f32 0.001143296, %v2504_v0  ;;  %v11116_v18 = vmul.f32 0.70710677, %v11093_v45 }
 0x221   : > { %v6356_v51 = vadd.f32 1.0, %v8336_v28  ;;  %v2303_v35 = vmul.f32 %v2302_v50, %v10765_v5  ;;  %v2325_v62 = vand.u32 2147483648, %v11010_v38  ;;  %v2432_v7 = vmul.f32 %v2431_v1, %v10954_v31 }
 0x222   : > { %v2287_v26 = vsel %vm11099_vm11, %v2286_v43, %v2282_v16  ;;  %vm2320_vm12 = vweird.f32 %v11054_v14  ;;  %v2379_v60 = vmul.f32 %v2378_v6, %v10945_v46  ;;  %v2469_v32 = vadd.f32 0.112945676, %v2468_v27  ;;  %v895_v27 = vpop.f32.mrf.mxu3 }
 0x223   : > { %v2318_v49 = vadd.f32 %v11054_v14, %v2317_v12  ;;  %v2356_v0 = vsub.f32 1.0, %v2355_v55  ;;  %v2416_v47 = vadd.f32 0.0036580483, %v2415_v41  ;;  %v2531_v28 = vmul.f32 %v11112_v25, %v11112_v25 }
 0x224   : > { %vm2319_vm13 = vweird.f32 %v11010_v38  ;;  %v11129_v5 = vadd.f32 1.0, %v2392_v52  ;;  %v2506_v50 = vmul.f32 %v2505_v2, %v11076_v37  ;;  %v2571_v61 = vmul.f32 %v11116_v18, %v11116_v18 }
 0x225   : > { %v11135_v1 = vmul.f32 %v6356_v51, %v10841_v13  ;;  %v2323_v16 = vand.u32 2147483647, %v11010_v38  ;;  %v11138_v43 = vadd.f32 1.0, %v2432_v7  ;;  %v2453_v6 = vmul.f32 2.1237322e-06, %v11012_v15  ;;  %vm11144_vm14 = vmor %vm2319_vm13, %vm2320_vm12 }
 0x226   : > { %v2288_v12 = vmul.f32 %v2287_v26, %v11060_v24  ;;  %v2326_v41 = vor.u32 1.1754944e-38, %v2325_v62  ;;  %v2380_v52 = vadd.f32 0.18741608, %v2379_v60  ;;  %v2470_v13 = vmul.f32 %v2469_v32, %v11012_v15 }
 0x227   : > { %17361 = vst [vmem:[#allocation36_spill] sm:$0xff] %v11135_v1  ;;  %v2322_v38 = vsel %vm11144_vm14, %v11054_v14, %v2318_v49  ;;  %v2357_v2 = vmul.f32 %v11088_v22, %v2356_v0  ;;  %v2417_v51 = vmul.f32 %v2416_v47, %v10954_v31  ;;  %v11154_v7 = vmin.f32 %v2531_v28, 16.0 }
 0x228   : > { %8785 = vrcp.f32 %v11129_v5  ;;  %v2507_v24 = vadd.f32 0.014752088, %v2506_v50  ;;  %v11157_v26 = vmin.f32 %v2571_v61, 16.0  ;;  %v11160_v62 = vadd.f32 %v895_v27, %v9512_v34 }
 0x229   : > { %vm2324_vm15 = vcmp.eq.f32.partialorder %v2323_v16, 8.507059e+37  ;;  %v2341_v60 = vmul.f32 %v2340_v20, %v10851_v53  ;;  %8787 = vrcp.f32 %v11138_v43  ;;  %v2454_v14 = vadd.f32 0.00028619796, %v2453_v6 }
 0x22a   : > { %v8337_v32 = vclamps-f32 %v2288_v12, 1.0  ;;  %v2327_v49 = vsel %vm2324_vm15, %v2326_v41, %v2322_v38  ;;  %v2365_v0 = vand.u32 2147483648, %v11047_v4  ;;  %v2471_v47 = vadd.f32 0.4994258, %v2470_v13 }
 0x22b   : > { %v2358_v28 = vadd.f32 %v11088_v22, %v2357_v2  ;;  %vm2360_vm0 = vweird.f32 %v11088_v22  ;;  %v2418_v50 = vadd.f32 0.05243302, %v2417_v51  ;;  %v2544_v61 = vmul.f32 3.8918573e-05, %v11154_v7 }
 0x22c   : > { %v2381_v27 = vmul.f32 %v2380_v52, %v10945_v46  ;;  %v2508_v16 = vmul.f32 %v2507_v24, %v11076_v37  ;;  %v2584_v53 = vmul.f32 3.8918573e-05, %v11157_v26  ;;  %v11172_v20 = vmul.f32 0.70710677, %v11160_v62 }
 0x22d   : > { %v2328_v6 = vmul.f32 %v2327_v49, %v2303_v35  ;;  %vm2359_vm1 = vweird.f32 %v11047_v4  ;;  %v2363_v12 = vand.u32 2147483647, %v11047_v4  ;;  %v2455_v55 = vmul.f32 %v2454_v14, %v11012_v15 }
 0x22e   : > { %v11177_v41 = vpop.eup %8785  ;;  %v2342_v13 = vadd.f32 1.1283791, %v2341_v60  ;;  %vm11179_vm2 = vmor %vm2359_vm1, %vm2360_vm0  ;;  %v2366_v46 = vor.u32 1.1754944e-38, %v2365_v0  ;;  %v11184_v52 = vmul.f32 0.5, %v10961_v33  ;;  %v2472_v2 = vmul.f32 %v2471_v47, %v11012_v15 }
 0x22f   : > { %v11187_v35 = vpop.eup %8787  ;;  %v6357_v51 = vadd.f32 1.0, %v8337_v32  ;;  %v2362_v4 = vsel %vm11179_vm2, %v11088_v22, %v2358_v28  ;;  %v2419_v24 = vmul.f32 %v2418_v50, %v10954_v31  ;;  %v2545_v60 = vadd.f32 0.001143296, %v2544_v61 }
 0x230   : > { %v2382_v14 = vadd.f32 1.1283791, %v2381_v27  ;;  %v2509_v49 = vadd.f32 0.112945676, %v2508_v16  ;;  %v2585_v1 = vadd.f32 0.001143296, %v2584_v53  ;;  %v2611_v0 = vmul.f32 %v11172_v20, %v11172_v20 }
 0x231   : > { %v8338_v33 = vclamps-f32 %v2328_v6, 1.0  ;;  %vm2364_vm3 = vcmp.eq.f32.partialorder %v2363_v12, 8.507059e+37  ;;  %v2456_v23 = vadd.f32 0.0036580483, %v2455_v55  ;;  %v2493_v47 = vmul.f32 2.1237322e-06, %v11076_v37 }
 0x232   : > { %v2367_v11 = vsel %vm2364_vm3, %v2366_v46, %v2362_v4  ;;  %v2395_v32 = vmul.f32 %v11177_v41, %v11129_v5  ;;  %v2435_v22 = vmul.f32 %v11187_v35, %v11138_v43  ;;  %v11200_v28 = vadd.f32 1.0, %v2472_v2 }
 0x233   : > { %v11203_v50 = vmul.f32 %v6357_v51, %v10949_v40  ;;  %v2343_v61 = vmul.f32 %v2342_v13, %v10806_v9  ;;  %v2420_v27 = vadd.f32 0.18741608, %v2419_v24  ;;  %v2546_v16 = vmul.f32 %v2545_v60, %v11154_v7  ;;  %v630_v51 = vpop.f32.mrf.mxu0 }
 0x234   : > { %v11208_v53 = vmul.f32 %v2382_v14, %v10903_v56  ;;  %v2510_v6 = vmul.f32 %v2509_v49, %v11076_v37  ;;  %v2586_v12 = vmul.f32 %v2585_v1, %v11157_v26  ;;  %v11212_v55 = vmin.f32 %v2611_v0, 16.0 }
 0x235   : > { %17366 = vst [vmem:[#allocation37_spill] sm:$0xff] %v11203_v50  ;;  %v6358_v38 = vadd.f32 1.0, %v8338_v33  ;;  %v2368_v46 = vmul.f32 %v2367_v11, %v2343_v61  ;;  %v2457_v2 = vmul.f32 %v2456_v23, %v11012_v15  ;;  %v2494_v40 = vadd.f32 0.00028619796, %v2493_v47 }
 0x236   : > { %v2396_v4 = vsub.f32 1.0, %v2395_v32  ;;  %v2405_v9 = vand.u32 2147483648, %v11129_v5  ;;  %v2436_v13 = vsub.f32 1.0, %v2435_v22  ;;  %8789 = vrcp.f32 %v11200_v28 }
 0x237   : > { %vm2399_vm4 = vweird.f32 %v11129_v5  ;;  %v2421_v56 = vmul.f32 %v2420_v27, %v10954_v31  ;;  %v2533_v1 = vmul.f32 2.1237322e-06, %v11154_v7  ;;  %v2547_v24 = vadd.f32 0.014752088, %v2546_v16 }
 0x238   : > { %v2511_v60 = vadd.f32 0.4994258, %v2510_v6  ;;  %v2587_v14 = vadd.f32 0.014752088, %v2586_v12  ;;  %v2624_v11 = vmul.f32 3.8918573e-05, %v11212_v55  ;;  %v11222_v23 = vadd.f32 %v630_v51, %v9483_v19 }
 0x239   : > { %v8339_v49 = vclamps-f32 %v2368_v46, 1.0  ;;  %v2403_v0 = vand.u32 2147483647, %v11129_v5  ;;  %v2458_v33 = vadd.f32 0.05243302, %v2457_v2  ;;  %v2495_v47 = vmul.f32 %v2494_v40, %v11076_v37 }
 0x23a   : > { %v11227_v32 = vmul.f32 %v6358_v38, %v10952_v42  ;;  %v2397_v31 = vmul.f32 %v11177_v41, %v2396_v4  ;;  %v2406_v22 = vor.u32 1.1754944e-38, %v2405_v9  ;;  %v2437_v61 = vmul.f32 %v11187_v35, %v2436_v13 }
 0x23b   : > { %v2422_v27 = vadd.f32 1.1283791, %v2421_v56  ;;  %v11232_v16 = vmul.f32 0.5, %v11021_v17  ;;  %v2534_v6 = vadd.f32 0.00028619796, %v2533_v1  ;;  %v2548_v12 = vmul.f32 %v2547_v24, %v11154_v7 }
 0x23c   : > { %17367 = vst [vmem:[#allocation38_spill] sm:$0xff] %v11227_v32  ;;  %v11235_v46 = vpop.eup %8789  ;;  %v2512_v2 = vmul.f32 %v2511_v60, %v11076_v37  ;;  %v2588_v40 = vmul.f32 %v2587_v14, %v11157_v26  ;;  %v2625_v42 = vadd.f32 0.001143296, %v2624_v11  ;;  %v11240_v38 = vmul.f32 0.70710677, %v11222_v23 }
 0x23d   : > { %v6359_v51 = vadd.f32 1.0, %v8339_v49  ;;  %vm2400_vm5 = vweird.f32 %v11177_v41  ;;  %vm11243_vm6 = vcmp.eq.f32.partialorder %v2403_v0, 8.507059e+37  ;;  %v2459_v17 = vmul.f32 %v2458_v33, %v11012_v15 }
 0x23e   : > { %v2496_v9 = vadd.f32 0.0036580483, %v2495_v47  ;;  %v2398_v13 = vadd.f32 %v11177_v41, %v2397_v31  ;;  %v2438_v56 = vadd.f32 %v11187_v35, %v2437_v61  ;;  %vm2440_vm7 = vweird.f32 %v11187_v35  ;;  %vm11258_vm9 = vmor %vm2399_vm4, %vm2400_vm5 }
 0x23f   : > { %v2445_v1 = vand.u32 2147483648, %v11138_v43  ;;  %vm2439_vm8 = vweird.f32 %v11138_v43  ;;  %v2475_v24 = vmul.f32 %v11235_v46, %v11200_v28  ;;  %v2535_v60 = vmul.f32 %v2534_v6, %v11154_v7 }
 0x240   : > { %v2549_v14 = vadd.f32 0.112945676, %v2548_v12  ;;  %v11262_v49 = vadd.f32 1.0, %v2512_v2  ;;  %v2589_v0 = vadd.f32 0.112945676, %v2588_v40  ;;  %v2626_v33 = vmul.f32 %v2625_v42, %v11212_v55  ;;  %vm11268_vm10 = vmor %vm2439_vm8, %vm2440_vm7 }
 0x241   : > { %v2651_v47 = vmul.f32 %v11240_v38, %v11240_v38  ;;  %v2423_v31 = vmul.f32 %v2422_v27, %v10916_v36  ;;  %v2443_v5 = vand.u32 2147483647, %v11138_v43  ;;  %v2460_v6 = vadd.f32 0.18741608, %v2459_v17  ;;  %v719_v17 = vpop.f32.mrf.mxu1 }
 0x242   : > { %v2497_v12 = vmul.f32 %v2496_v9, %v11076_v37  ;;  %v11275_v2 = vmul.f32 %v6359_v51, %v11001_v58  ;;  %v2402_v40 = vsel %vm11258_vm9, %v11177_v41, %v2398_v13  ;;  %v2442_v36 = vsel %vm11268_vm10, %v11187_v35, %v2438_v56 }
 0x243   : > { %v2446_v27 = vor.u32 1.1754944e-38, %v2445_v1  ;;  %v2476_v42 = vsub.f32 1.0, %v2475_v24  ;;  %v2536_v32 = vadd.f32 0.0036580483, %v2535_v60  ;;  %v2550_v50 = vmul.f32 %v2549_v14, %v11154_v7 }
 0x244   : > { %17374 = vst [vmem:[#allocation39_spill] sm:$0xff] %v11275_v2  ;;  %v2573_v43 = vmul.f32 2.1237322e-06, %v11157_v26  ;;  %8791 = vrcp.f32 %v11262_v49  ;;  %v2590_v58 = vmul.f32 %v2589_v0, %v11157_v26  ;;  %v2627_v51 = vadd.f32 0.014752088, %v2626_v33 }
 0x245   : > { %v11287_v9 = vmin.f32 %v2651_v47, 16.0  ;;  %vm2444_vm11 = vcmp.eq.f32.partialorder %v2443_v5, 8.507059e+37  ;;  %v2461_v41 = vmul.f32 %v2460_v6, %v11012_v15  ;;  %v2498_v13 = vadd.f32 0.05243302, %v2497_v12  ;;  %v808_v12 = vpop.f32.mrf.mxu2 }
 0x246   : > { %v11291_v35 = vmul.f32 0.5, %v11086_v10  ;;  %v2407_v56 = vsel %vm11243_vm6, %v2406_v22, %v2402_v40  ;;  %v2447_v1 = vsel %vm2444_vm11, %v2446_v27, %v2442_v36  ;;  %v11296_v24 = vmul.f32 0.5, %v11093_v45 }
 0x247   : > { %v11299_v60 = vadd.f32 %v719_v17, %v9485_v21  ;;  %v2477_v14 = vmul.f32 %v11235_v46, %v2476_v42  ;;  %v2537_v11 = vmul.f32 %v2536_v32, %v11154_v7  ;;  %v2551_v0 = vadd.f32 0.4994258, %v2550_v50 }
 0x248   : > { %v2574_v15 = vadd.f32 0.00028619796, %v2573_v43  ;;  %v2591_v33 = vadd.f32 0.4994258, %v2590_v58  ;;  %v2613_v10 = vmul.f32 2.1237322e-06, %v11212_v55  ;;  %v2628_v47 = vmul.f32 %v2627_v51, %v11212_v55 }
 0x249   : > { %v2664_v22 = vmul.f32 3.8918573e-05, %v11287_v9  ;;  %v2408_v4 = vmul.f32 %v2407_v56, %v11208_v53  ;;  %v2462_v45 = vadd.f32 1.1283791, %v2461_v41  ;;  %v2499_v61 = vmul.f32 %v2498_v13, %v11076_v37 }
 0x24a   : > { %v11309_v5 = vmul.f32 0.5, %v11160_v62  ;;  %v11311_v6 = vpop.eup %8791  ;;  %v2448_v32 = vmul.f32 %v2447_v1, %v2423_v31  ;;  %vm2479_vm12 = vweird.f32 %v11200_v28  ;;  %vm2480_vm13 = vweird.f32 %v11235_v46 }
 0x24b   : > { %v11316_v50 = vmul.f32 0.70710677, %v11299_v60  ;;  %v2478_v40 = vadd.f32 %v11235_v46, %v2477_v14  ;;  %v2538_v53 = vadd.f32 0.05243302, %v2537_v11  ;;  %v2552_v36 = vmul.f32 %v2551_v0, %v11154_v7  ;;  %vm11332_vm14 = vmor %vm2479_vm12, %vm2480_vm13 }
 0x24c   : > { %v2575_v27 = vmul.f32 %v2574_v15, %v11157_v26  ;;  %v2592_v62 = vmul.f32 %v2591_v33, %v11157_v26  ;;  %v2614_v42 = vadd.f32 0.00028619796, %v2613_v10  ;;  %v2629_v43 = vadd.f32 0.112945676, %v2628_v47 }
 0x24d   : > { %v2665_v31 = vadd.f32 0.001143296, %v2664_v22  ;;  %v2485_v17 = vand.u32 2147483648, %v11200_v28  ;;  %v2500_v58 = vadd.f32 0.18741608, %v2499_v61  ;;  %v2515_v51 = vmul.f32 %v11311_v6, %v11262_v49 }
 0x24e   : > { %v11326_v41 = vadd.f32 %v808_v12, %v9503_v29  ;;  %v8340_v13 = vclamps-f32 %v2408_v4, 1.0  ;;  %v8341_v56 = vclamps-f32 %v2448_v32, 1.0  ;;  %v2483_v14 = vand.u32 2147483647, %v11200_v28 }
 0x24f   : > { %v2691_v11 = vmul.f32 %v11316_v50, %v11316_v50  ;;  %v2482_v0 = vsel %vm11332_vm14, %v11235_v46, %v2478_v40  ;;  %v2539_v15 = vmul.f32 %v2538_v53, %v11154_v7  ;;  %v11343_v33 = vadd.f32 1.0, %v2552_v36 }
 0x250   : > { %v2576_v10 = vadd.f32 0.0036580483, %v2575_v27  ;;  %v11345_v47 = vadd.f32 1.0, %v2592_v62  ;;  %v2615_v22 = vmul.f32 %v2614_v42, %v11212_v55  ;;  %v2630_v4 = vmul.f32 %v2629_v43, %v11212_v55  ;;  %v897_v42 = vpop.f32.mrf.mxu3 }
 0x251   : > { %v2666_v28 = vmul.f32 %v2665_v31, %v11287_v9  ;;  %v2486_v61 = vor.u32 1.1754944e-38, %v2485_v17  ;;  %v2501_v32 = vmul.f32 %v2500_v58, %v11076_v37  ;;  %v2516_v12 = vsub.f32 1.0, %v2515_v51 }
 0x252   : > { %v11352_v1 = vmul.f32 0.70710677, %v11326_v41  ;;  %v6360_v46 = vadd.f32 1.0, %v8340_v13  ;;  %v6361_v40 = vadd.f32 1.0, %v8341_v56  ;;  %vm2484_vm15 = vcmp.eq.f32.partialorder %v2483_v14, 8.507059e+37 }
 0x253   : > { %v11354_v53 = vmin.f32 %v2691_v11, 16.0  ;;  %v2487_v36 = vsel %vm2484_vm15, %v2486_v61, %v2482_v0  ;;  %v2540_v27 = vadd.f32 0.18741608, %v2539_v15  ;;  %8793 = vrcp.f32 %v11343_v33 }
 0x254   : > { %v2577_v62 = vmul.f32 %v2576_v10, %v11157_v26  ;;  %8795 = vrcp.f32 %v11345_v47  ;;  %v2616_v43 = vadd.f32 0.0036580483, %v2615_v22  ;;  %v2631_v37 = vadd.f32 0.4994258, %v2630_v4 }
 0x255   : > { %v2667_v31 = vadd.f32 0.014752088, %v2666_v28  ;;  %v2463_v17 = vmul.f32 %v2462_v45, %v10976_v48  ;;  %v2502_v58 = vadd.f32 1.1283791, %v2501_v32  ;;  %v2517_v51 = vmul.f32 %v11311_v6, %v2516_v12 }
 0x256   : > { %v2731_v13 = vmul.f32 %v11352_v1, %v11352_v1  ;;  %v11364_v56 = vmul.f32 %v6360_v46, %v11052_v8  ;;  %v11367_v14 = vmul.f32 %v6361_v40, %v11071_v54  ;;  %v2704_v11 = vmul.f32 3.8918573e-05, %v11354_v53 }
 0x257   : > { %v11371_v0 = vadd.f32 %v897_v42, %v9512_v34  ;;  %v2488_v15 = vmul.f32 %v2487_v36, %v2463_v17  ;;  %v2541_v48 = vmul.f32 %v2540_v27, %v11154_v7  ;;  %v2578_v45 = vadd.f32 0.05243302, %v2577_v62 }
 0x258   : > { %17377 = vst [vmem:[#allocation40_spill] sm:$0xff] %v11364_v56  ;;  %v2653_v10 = vmul.f32 2.1237322e-06, %v11287_v9  ;;  %v2523_v22 = vand.u32 2147483647, %v11262_v49  ;;  %v2617_v4 = vmul.f32 %v2616_v43, %v11212_v55  ;;  %v2632_v8 = vmul.f32 %v2631_v37, %v11212_v55  ;;  %v633_v43 = vpop.f32.mrf.mxu0 }
 0x259   : > { %17378 = vst [vmem:[#allocation41_spill] sm:$0xff] %v11367_v14  ;;  %v2668_v54 = vmul.f32 %v2667_v31, %v11287_v9  ;;  %v11379_v28 = vpop.eup %8793  ;;  %v2503_v61 = vmul.f32 %v2502_v58, %v11040_v30  ;;  %v2518_v32 = vadd.f32 %v11311_v6, %v2517_v51  ;;  %vm2520_vm0 = vweird.f32 %v11311_v6  ;;  %v377_v14 = vld [vmem:[%s9449_s22 + $0xe0] sm:$0xff] }
 0x25a   : > { %v11384_v7 = vmin.f32 %v2731_v13, 16.0  ;;  %v11386_v12 = vpop.eup %8795  ;;  %vm2519_vm1 = vweird.f32 %v11262_v49  ;;  %v2525_v46 = vand.u32 2147483648, %v11262_v49  ;;  %v2705_v40 = vadd.f32 0.001143296, %v2704_v11 }
 0x25b   : > { %v11391_v36 = vmul.f32 0.70710677, %v11371_v0  ;;  %v8342_v27 = vclamps-f32 %v2488_v15, 1.0  ;;  %v2542_v62 = vadd.f32 1.1283791, %v2541_v48  ;;  %v2579_v30 = vmul.f32 %v2578_v45, %v11157_v26  ;;  %vm11394_vm2 = vmor %vm2519_vm1, %vm2520_vm0 }
 0x25c   : > { %v2654_v42 = vadd.f32 0.00028619796, %v2653_v10  ;;  %vm11398_vm3 = vcmp.eq.f32.partialorder %v2523_v22, 8.507059e+37  ;;  %v2618_v17 = vadd.f32 0.05243302, %v2617_v4  ;;  %v11402_v49 = vadd.f32 1.0, %v2632_v8 }
 0x25d   : > { %v2669_v58 = vadd.f32 0.112945676, %v2668_v54  ;;  %v2522_v51 = vsel %vm11394_vm2, %v11311_v6, %v2518_v32  ;;  %v2555_v13 = vmul.f32 %v11379_v28, %v11343_v33  ;;  %v2595_v11 = vmul.f32 %v11386_v12, %v11345_v47 }
 0x25e   : > { %v2744_v15 = vmul.f32 3.8918573e-05, %v11384_v7  ;;  %v2526_v48 = vor.u32 1.1754944e-38, %v2525_v46  ;;  %v2706_v45 = vmul.f32 %v2705_v40, %v11354_v53  ;;  %v2771_v10 = vmul.f32 %v11391_v36, %v11391_v36 }
 0x25f   : > { %v11416_v22 = vadd.f32 %v633_v43, %v9483_v19  ;;  %v6362_v6 = vadd.f32 1.0, %v8342_v27  ;;  %v2580_v4 = vadd.f32 0.18741608, %v2579_v30  ;;  %v11419_v8 = vmul.f32 0.5, %v11222_v23  ;;  %v378_v23 = vld [vmem:[%s9449_s22 + $0xe8] sm:$0xff] }
 0x260   : > { %v2655_v54 = vmul.f32 %v2654_v42, %v11287_v9  ;;  %v2527_v32 = vsel %vm11398_vm3, %v2526_v48, %v2522_v51  ;;  %v2619_v46 = vmul.f32 %v2618_v17, %v11212_v55  ;;  %8797 = vrcp.f32 %v11402_v49 }
 0x261   : > { %v2670_v40 = vmul.f32 %v2669_v58, %v11287_v9  ;;  %v11428_v37 = vmul.f32 %v2542_v62, %v11112_v25  ;;  %v2556_v43 = vsub.f32 1.0, %v2555_v13  ;;  %v2596_v27 = vsub.f32 1.0, %v2595_v11 }
 0x262   : > { %v2745_v30 = vadd.f32 0.001143296, %v2744_v15  ;;  %v2565_v56 = vand.u32 2147483648, %v11343_v33  ;;  %v2707_v42 = vadd.f32 0.014752088, %v2706_v45  ;;  %v11433_v2 = vmin.f32 %v2771_v10, 16.0 }
 0x263   : > { %v11436_v31 = vmul.f32 0.70710677, %v11416_v22  ;;  %v2528_v17 = vmul.f32 %v2527_v32, %v2503_v61  ;;  %v2563_v51 = vand.u32 2147483647, %v11343_v33  ;;  %v2581_v58 = vmul.f32 %v2580_v4, %v11157_v26 }
 0x264   : > { %v2656_v25 = vadd.f32 0.0036580483, %v2655_v54  ;;  %v11441_v62 = vmul.f32 %v6362_v6, %v11184_v52  ;;  %v2620_v13 = vadd.f32 0.18741608, %v2619_v46  ;;  %v2671_v11 = vadd.f32 0.4994258, %v2670_v40 }
 0x265   : > { %v395_v15 = vpack.c.bf16 %v378_v23, %v377_v14  ;;  %v2557_v48 = vmul.f32 %v11379_v28, %v2556_v43  ;;  %vm2559_vm4 = vweird.f32 %v11343_v33  ;;  %v2597_v45 = vmul.f32 %v11386_v12, %v2596_v27 }
 0x266   : > { %17383 = vst [vmem:[#allocation42_spill] sm:$0xff] %v11441_v62  ;;  %v2746_v10 = vmul.f32 %v2745_v30, %v11384_v7  ;;  %v11447_v61 = vpop.eup %8797  ;;  %v2566_v32 = vor.u32 1.1754944e-38, %v2565_v56  ;;  %v2708_v26 = vmul.f32 %v2707_v42, %v11354_v53  ;;  %v2784_v4 = vmul.f32 3.8918573e-05, %v11433_v2 }
 0x267   : > { %v2811_v52 = vmul.f32 %v11436_v31, %v11436_v31  ;;  %677 = vmatmul.bf16.gmra.mxu0 %v395_v15  ;;  %766 = vmatmul.bf16.gmra.mxu1 %v395_v15  ;;  %v8343_v14 = vclamps-f32 %v2528_v17, 1.0  ;;  %vm11453_vm5 = vcmp.eq.f32.partialorder %v2563_v51, 8.507059e+37  ;;  %v2582_v54 = vadd.f32 1.1283791, %v2581_v58  ;;  %v8621_v17 = vld [vmem:[#allocation8 + $0x80] sm:$0xff] }
 0x268   : > { %v2657_v46 = vmul.f32 %v2656_v25, %v11287_v9  ;;  %v2693_v40 = vmul.f32 2.1237322e-06, %v11354_v53  ;;  %855 = vmatmul.bf16.gmra.mxu2 %v395_v15  ;;  %944 = vmatmul.bf16.gmra.mxu3 %v395_v15  ;;  %vm2560_vm6 = vweird.f32 %v11379_v28  ;;  %vm2600_vm7 = vweird.f32 %v11386_v12  ;;  %v8605_v51 = vld [vmem:[#allocation8] sm:$0xff] }
 0x269   : > { %v2621_v56 = vmul.f32 %v2620_v13, %v11212_v55  ;;  %v2672_v43 = vmul.f32 %v2671_v11, %v11287_v9  ;;  %v2558_v27 = vadd.f32 %v11379_v28, %v2557_v48  ;;  %v2598_v30 = vadd.f32 %v11386_v12, %v2597_v45  ;;  %v8629_v58 = vld [vmem:[#allocation8 + $0xc0] sm:$0xff]  ;;  %vm11474_vm8 = vmor %vm2559_vm4, %vm2560_vm6  ;;  %7096 = vmatpush.bf16.msrb.mxu2 %v8621_v17 }
 0x26a   : > { %v2635_v23 = vmul.f32 %v11447_v61, %v11402_v49  ;;  %v2747_v42 = vadd.f32 0.014752088, %v2746_v10  ;;  %v2605_v25 = vand.u32 2147483648, %v11345_v47  ;;  %v2709_v15 = vadd.f32 0.112945676, %v2708_v26  ;;  %6918 = vmatpush.bf16.msrb.mxu0 %v8605_v51  ;;  %7185 = vmatpush.bf16.msrb.mxu3 %v8629_v58 }
 0x26b   : > { %v2785_v62 = vadd.f32 0.001143296, %v2784_v4  ;;  %v11468_v44 = vmin.f32 %v2811_v52, 16.0  ;;  %vm2599_vm9 = vweird.f32 %v11345_v47  ;;  %v2603_v13 = vand.u32 2147483647, %v11345_v47 }
 0x26c   : > { %v2658_v11 = vadd.f32 0.05243302, %v2657_v46  ;;  %v2694_v48 = vadd.f32 0.00028619796, %v2693_v40  ;;  %v6363_v45 = vadd.f32 1.0, %v8343_v14  ;;  %vm11482_vm10 = vmor %vm2599_vm9, %vm2600_vm7  ;;  %v11486_v26 = vadd.f32 1.0, %v2672_v43 }
 0x26d   : > { %v2622_v33 = vadd.f32 1.1283791, %v2621_v56  ;;  %v2733_v4 = vmul.f32 2.1237322e-06, %v11384_v7  ;;  %v2562_v47 = vsel %vm11474_vm8, %v11379_v28, %v2558_v27  ;;  %v2602_v52 = vsel %vm11482_vm10, %v11386_v12, %v2598_v30  ;;  %v722_v27 = vpop.f32.mrf.mxu1 }
 0x26e   : > { %v2636_v14 = vsub.f32 1.0, %v2635_v23  ;;  %v2748_v46 = vmul.f32 %v2747_v42, %v11384_v7  ;;  %v2606_v40 = vor.u32 1.1754944e-38, %v2605_v25  ;;  %v2710_v17 = vmul.f32 %v2709_v15, %v11354_v53 }
 0x26f   : > { %v2786_v56 = vmul.f32 %v2785_v62, %v11433_v2  ;;  %v2824_v43 = vmul.f32 3.8918573e-05, %v11468_v44  ;;  %v2583_v51 = vmul.f32 %v2582_v54, %v11116_v18  ;;  %vm2604_vm11 = vcmp.eq.f32.partialorder %v2603_v13, 8.507059e+37 }
 0x270   : > { %v2659_v58 = vmul.f32 %v2658_v11, %v11287_v9  ;;  %v2695_v28 = vmul.f32 %v2694_v48, %v11354_v53  ;;  %v2567_v12 = vsel %vm11453_vm5, %v2566_v32, %v2562_v47  ;;  %v2607_v30 = vsel %vm2604_vm11, %v2606_v40, %v2602_v52  ;;  %v811_v47 = vpop.f32.mrf.mxu2 }
 0x271   : > { %8799 = vrcp.f32 %v11486_v26  ;;  %v2734_v23 = vadd.f32 0.00028619796, %v2733_v4  ;;  %v11506_v42 = vmul.f32 %v6363_v45, %v11232_v16  ;;  %v2623_v62 = vmul.f32 %v2622_v33, %v11172_v20  ;;  %v8613_v33 = vld [vmem:[#allocation8 + $0x40] sm:$0xff] }
 0x272   : > { %v2637_v18 = vmul.f32 %v11447_v61, %v2636_v14  ;;  %v2749_v54 = vadd.f32 0.112945676, %v2748_v46  ;;  %v2711_v25 = vadd.f32 0.4994258, %v2710_v17  ;;  %v2787_v15 = vadd.f32 0.014752088, %v2786_v56  ;;  %7007 = vmatpush.bf16.msrb.mxu1 %v8613_v33 }
 0x273   : > { %17390 = vst [vmem:[#allocation43_spill] sm:$0xff] %v11506_v42  ;;  %v2825_v55 = vadd.f32 0.001143296, %v2824_v43  ;;  %v11511_v13 = vadd.f32 %v722_v27, %v9485_v21  ;;  %v2568_v32 = vmul.f32 %v2567_v12, %v11428_v37  ;;  %v2608_v6 = vmul.f32 %v2607_v30, %v2583_v51 }
 0x274   : > { %v2660_v11 = vadd.f32 0.18741608, %v2659_v58  ;;  %v2696_v48 = vadd.f32 0.0036580483, %v2695_v28  ;;  %v2643_v10 = vand.u32 2147483647, %v11402_v49  ;;  %v2735_v45 = vmul.f32 %v2734_v23, %v11384_v7 }
 0x275   : > { %v2645_v16 = vand.u32 2147483648, %v11402_v49  ;;  %v11517_v20 = vmul.f32 0.5, %v11299_v60  ;;  %v2638_v4 = vadd.f32 %v11447_v61, %v2637_v18  ;;  %vm2639_vm12 = vweird.f32 %v11402_v49 }
 0x276   : > { %vm2640_vm13 = vweird.f32 %v11447_v61  ;;  %v2750_v37 = vmul.f32 %v2749_v54, %v11384_v7  ;;  %v2712_v14 = vmul.f32 %v2711_v25, %v11354_v53  ;;  %v2788_v46 = vmul.f32 %v2787_v15, %v11433_v2  ;;  %v900_v54 = vpop.f32.mrf.mxu3 }
 0x277   : > { %v11524_v52 = vpop.eup %8799  ;;  %v2826_v60 = vmul.f32 %v2825_v55, %v11468_v44  ;;  %v11530_v40 = vmul.f32 0.70710677, %v11511_v13  ;;  %v8344_v17 = vclamps-f32 %v2568_v32, 1.0  ;;  %v8345_v56 = vclamps-f32 %v2608_v6, 1.0  ;;  %vm11534_vm14 = vmor %vm2639_vm12, %vm2640_vm13 }
 0x278   : > { %v2661_v49 = vmul.f32 %v2660_v11, %v11287_v9  ;;  %v2697_v43 = vmul.f32 %v2696_v48, %v11354_v53  ;;  %vm11538_vm15 = vcmp.eq.f32.partialorder %v2643_v10, 8.507059e+37  ;;  %v2646_v28 = vor.u32 1.1754944e-38, %v2645_v16 }
 0x279   : > { %v2736_v27 = vadd.f32 0.0036580483, %v2735_v45  ;;  %v11543_v12 = vadd.f32 %v811_v47, %v9503_v29  ;;  %v2642_v30 = vsel %vm11534_vm14, %v11447_v61, %v2638_v4  ;;  %v2675_v9 = vmul.f32 %v11524_v52, %v11486_v26 }
 0x27a   : > { %v2751_v23 = vadd.f32 0.4994258, %v2750_v37  ;;  %v2773_v18 = vmul.f32 2.1237322e-06, %v11433_v2  ;;  %v11551_v25 = vadd.f32 1.0, %v2712_v14  ;;  %v2851_v32 = vmul.f32 %v11530_v40, %v11530_v40 }
 0x27b   : > { %v2789_v15 = vadd.f32 0.112945676, %v2788_v46  ;;  %v2827_v55 = vadd.f32 0.014752088, %v2826_v60  ;;  %v6364_v6 = vadd.f32 1.0, %v8344_v17  ;;  %v6365_v11 = vadd.f32 1.0, %v8345_v56 }
 0x27c   : > { %v2662_v48 = vadd.f32 1.1283791, %v2661_v49  ;;  %v2698_v10 = vadd.f32 0.05243302, %v2697_v43  ;;  %v2647_v61 = vsel %vm11538_vm15, %v2646_v28, %v2642_v30  ;;  %v2737_v16 = vmul.f32 %v2736_v27, %v11384_v7 }
 0x27d   : > { %v11559_v45 = vmul.f32 0.70710677, %v11543_v12  ;;  %v11562_v33 = vadd.f32 %v900_v54, %v9512_v34  ;;  %v2676_v4 = vsub.f32 1.0, %v2675_v9  ;;  %v2752_v37 = vmul.f32 %v2751_v23, %v11384_v7 }
 0x27e   : > { %v2774_v47 = vadd.f32 0.00028619796, %v2773_v18  ;;  %v2813_v14 = vmul.f32 2.1237322e-06, %v11468_v44  ;;  %8801 = vrcp.f32 %v11551_v25  ;;  %v2790_v46 = vmul.f32 %v2789_v15, %v11433_v2 }
 0x27f   : > { %v2828_v60 = vmul.f32 %v2827_v55, %v11468_v44  ;;  %v11569_v17 = vmin.f32 %v2851_v32, 16.0  ;;  %v11572_v56 = vmul.f32 %v6364_v6, %v11291_v35  ;;  %v2648_v49 = vmul.f32 %v2647_v61, %v2623_v62 }
 0x280   : > { %v2699_v43 = vmul.f32 %v2698_v10, %v11354_v53  ;;  %v11576_v51 = vmul.f32 0.5, %v11326_v41  ;;  %v11579_v58 = vmul.f32 %v2662_v48, %v11240_v38  ;;  %v2738_v28 = vadd.f32 0.05243302, %v2737_v16 }
 0x281   : > { %17395 = vst [vmem:[#allocation44_spill] sm:$0xff] %v11572_v56  ;;  %v2891_v27 = vmul.f32 %v11559_v45, %v11559_v45  ;;  %v11584_v30 = vmul.f32 0.70710677, %v11562_v33  ;;  %v2677_v9 = vmul.f32 %v11524_v52, %v2676_v4  ;;  %v11587_v35 = vadd.f32 1.0, %v2752_v37 }
 0x282   : > { %v2775_v62 = vmul.f32 %v2774_v47, %v11433_v2  ;;  %v2814_v23 = vadd.f32 0.00028619796, %v2813_v14  ;;  %v11591_v41 = vmul.f32 %v6365_v11, %v11296_v24  ;;  %v2791_v18 = vadd.f32 0.4994258, %v2790_v46  ;;  %v635_v46 = vpop.f32.mrf.mxu0 }
 0x283   : > { %v2829_v38 = vadd.f32 0.112945676, %v2828_v60  ;;  %v2864_v54 = vmul.f32 3.8918573e-05, %v11569_v17  ;;  %v8346_v15 = vclamps-f32 %v2648_v49, 1.0  ;;  %vm2679_vm0 = vweird.f32 %v11486_v26 }
 0x284   : > { %17396 = vst [vmem:[#allocation45_spill] sm:$0xff] %v11591_v41  ;;  %v2683_v55 = vand.u32 2147483647, %v11486_v26  ;;  %v2700_v32 = vadd.f32 0.18741608, %v2699_v43  ;;  %v11596_v6 = vpop.eup %8801  ;;  %v2685_v48 = vand.u32 2147483648, %v11486_v26  ;;  %v2739_v10 = vmul.f32 %v2738_v28, %v11384_v7 }
 0x285   : > { %v11600_v61 = vmin.f32 %v2891_v27, 16.0  ;;  %v2931_v24 = vmul.f32 %v11584_v30, %v11584_v30  ;;  %v2678_v11 = vadd.f32 %v11524_v52, %v2677_v9  ;;  %vm2680_vm1 = vweird.f32 %v11524_v52 }
 0x286   : > { %v2776_v16 = vadd.f32 0.0036580483, %v2775_v62  ;;  %v2815_v4 = vmul.f32 %v2814_v23, %v11468_v44  ;;  %8803 = vrcp.f32 %v11587_v35  ;;  %v2792_v37 = vmul.f32 %v2791_v18, %v11433_v2  ;;  %vm11624_vm3 = vmor %vm2679_vm0, %vm2680_vm1 }
 0x287   : > { %v2830_v47 = vmul.f32 %v2829_v38, %v11468_v44  ;;  %v2865_v14 = vadd.f32 0.001143296, %v2864_v54  ;;  %v6366_v60 = vadd.f32 1.0, %v8346_v15  ;;  %vm11610_vm2 = vcmp.eq.f32.partialorder %v2683_v55, 8.507059e+37 }
 0x288   : > { %v2701_v43 = vmul.f32 %v2700_v32, %v11354_v53  ;;  %v2715_v28 = vmul.f32 %v11596_v6, %v11551_v25  ;;  %v2686_v27 = vor.u32 1.1754944e-38, %v2685_v48  ;;  %v2740_v9 = vadd.f32 0.18741608, %v2739_v10 }
 0x289   : > { %v2904_v62 = vmul.f32 3.8918573e-05, %v11600_v61  ;;  %v11618_v23 = vmin.f32 %v2931_v24, 16.0  ;;  %v11629_v38 = vmul.f32 0.5, %v11371_v0  ;;  %v2777_v53 = vmul.f32 %v2776_v16, %v11433_v2 }
 0x28a   : > { %v2816_v54 = vadd.f32 0.0036580483, %v2815_v4  ;;  %v11633_v15 = vadd.f32 %v635_v46, %v9483_v19  ;;  %v2682_v55 = vsel %vm11624_vm3, %v11524_v52, %v2678_v11  ;;  %v11638_v32 = vadd.f32 1.0, %v2792_v37 }
 0x28b   : > { %v2831_v26 = vadd.f32 0.4994258, %v2830_v47  ;;  %v2866_v48 = vmul.f32 %v2865_v14, %v11569_v17  ;;  %v11642_v10 = vmul.f32 %v6366_v60, %v11309_v5  ;;  %v2702_v0 = vadd.f32 1.1283791, %v2701_v43 }
 0x28c   : > { %v2716_v24 = vsub.f32 1.0, %v2715_v28  ;;  %v11645_v16 = vmul.f32 0.5, %v11416_v22  ;;  %v11647_v4 = vpop.eup %8803  ;;  %v2741_v46 = vmul.f32 %v2740_v9, %v11384_v7  ;;  %v11651_v18 = vmul.f32 0.5, %v11511_v13 }
 0x28d   : > { %17401 = vst [vmem:[#allocation46_spill] sm:$0xff] %v11642_v10  ;;  %v2905_v52 = vadd.f32 0.001143296, %v2904_v62  ;;  %v2944_v11 = vmul.f32 3.8918573e-05, %v11618_v23  ;;  %v2687_v37 = vsel %vm11610_vm2, %v2686_v27, %v2682_v55  ;;  %v2817_v47 = vmul.f32 %v2816_v54, %v11468_v44 }
 0x28e   : > { %v2778_v5 = vadd.f32 0.05243302, %v2777_v53  ;;  %v11658_v14 = vmul.f32 0.70710677, %v11633_v15  ;;  %8805 = vrcp.f32 %v11638_v32  ;;  %v2832_v22 = vmul.f32 %v2831_v26, %v11468_v44 }
 0x28f   : > { %v2853_v7 = vmul.f32 2.1237322e-06, %v11569_v17  ;;  %v2867_v13 = vadd.f32 0.014752088, %v2866_v48  ;;  %v2703_v60 = vmul.f32 %v2702_v0, %v11316_v50  ;;  %v2717_v43 = vmul.f32 %v11596_v6, %v2716_v24 }
 0x290   : > { %v2723_v49 = vand.u32 2147483647, %v11551_v25  ;;  %v2755_v28 = vmul.f32 %v11647_v4, %v11587_v35  ;;  %v2688_v27 = vmul.f32 %v2687_v37, %v11579_v58  ;;  %v2725_v9 = vand.u32 2147483648, %v11551_v25 }
 0x291   : > { %v2906_v62 = vmul.f32 %v2905_v52, %v11600_v61  ;;  %v2945_v53 = vadd.f32 0.001143296, %v2944_v11  ;;  %v2742_v54 = vadd.f32 1.1283791, %v2741_v46  ;;  %v2779_v55 = vmul.f32 %v2778_v5, %v11433_v2 }
 0x292   : > { %v2818_v26 = vadd.f32 0.05243302, %v2817_v47  ;;  %v2971_v50 = vmul.f32 %v11658_v14, %v11658_v14  ;;  %vm2719_vm4 = vweird.f32 %v11551_v25  ;;  %v11675_v48 = vadd.f32 1.0, %v2832_v22 }
 0x293   : > { %v2854_v0 = vadd.f32 0.00028619796, %v2853_v7  ;;  %v2868_v24 = vmul.f32 %v2867_v13, %v11569_v17  ;;  %v2718_v58 = vadd.f32 %v11596_v6, %v2717_v43  ;;  %vm2720_vm5 = vweird.f32 %v11596_v6 }
 0x294   : > { %vm11680_vm6 = vcmp.eq.f32.partialorder %v2723_v49, 8.507059e+37  ;;  %v2756_v46 = vsub.f32 1.0, %v2755_v28  ;;  %v11684_v11 = vpop.eup %8805  ;;  %v8347_v37 = vclamps-f32 %v2688_v27, 1.0  ;;  %v2726_v5 = vor.u32 1.1754944e-38, %v2725_v9  ;;  %vm11695_vm7 = vmor %vm2719_vm4, %vm2720_vm5 }
 0x295   : > { %v2907_v47 = vadd.f32 0.014752088, %v2906_v62  ;;  %v2946_v22 = vmul.f32 %v2945_v53, %v11618_v23  ;;  %v11688_v7 = vmul.f32 %v2742_v54, %v11352_v1  ;;  %v2780_v13 = vadd.f32 0.18741608, %v2779_v55 }
 0x296   : > { %v2819_v43 = vmul.f32 %v2818_v26, %v11468_v44  ;;  %v11691_v10 = vmin.f32 %v2971_v50, 16.0  ;;  %8807 = vrcp.f32 %v11675_v48  ;;  %v2855_v28 = vmul.f32 %v2854_v0, %v11569_v17 }
 0x297   : > { %v2869_v27 = vadd.f32 0.112945676, %v2868_v24  ;;  %v2893_v9 = vmul.f32 2.1237322e-06, %v11600_v61  ;;  %v2722_v1 = vsel %vm11695_vm7, %v11596_v6, %v2718_v58  ;;  %v2757_v62 = vmul.f32 %v11647_v4, %v2756_v46  ;;  %v724_v58 = vpop.f32.mrf.mxu1 }
 0x298   : > { %v2763_v53 = vand.u32 2147483647, %v11587_v35  ;;  %v2795_v25 = vmul.f32 %v11684_v11, %v11638_v32  ;;  %vm2759_vm8 = vweird.f32 %v11587_v35  ;;  %v2765_v54 = vand.u32 2147483648, %v11587_v35 }
 0x299   : > { %v2908_v55 = vmul.f32 %v2907_v47, %v11600_v61  ;;  %v2947_v26 = vadd.f32 0.014752088, %v2946_v22  ;;  %v6367_v50 = vadd.f32 1.0, %v8347_v37  ;;  %v2781_v0 = vmul.f32 %v2780_v13, %v11433_v2 }
 0x29a   : > { %v2820_v24 = vadd.f32 0.18741608, %v2819_v43  ;;  %v2984_v6 = vmul.f32 3.8918573e-05, %v11691_v10  ;;  %v2727_v46 = vsel %vm11680_vm6, %v2726_v5, %v2722_v1  ;;  %v2856_v49 = vadd.f32 0.0036580483, %v2855_v28 }
 0x29b   : > { %v2870_v41 = vmul.f32 %v2869_v27, %v11569_v17  ;;  %v2894_v56 = vadd.f32 0.00028619796, %v2893_v9  ;;  %v2758_v42 = vadd.f32 %v11647_v4, %v2757_v62  ;;  %vm2760_vm9 = vweird.f32 %v11647_v4 }
 0x29c   : > { %vm11719_vm10 = vcmp.eq.f32.partialorder %v2763_v53, 8.507059e+37  ;;  %v2796_v2 = vsub.f32 1.0, %v2795_v25  ;;  %v11723_v37 = vpop.eup %8807  ;;  %v2766_v22 = vor.u32 1.1754944e-38, %v2765_v54  ;;  %v2909_v13 = vadd.f32 0.112945676, %v2908_v55  ;;  %vm11737_vm11 = vmor %vm2759_vm8, %vm2760_vm9  ;;  %v813_v55 = vpop.f32.mrf.mxu2 }
 0x29d   : > { %v2948_v52 = vmul.f32 %v2947_v26, %v11618_v23  ;;  %v11727_v5 = vadd.f32 %v724_v58, %v9485_v21  ;;  %v11729_v43 = vmul.f32 %v2727_v46, %v2703_v60  ;;  %v2782_v28 = vadd.f32 1.1283791, %v2781_v0 }
 0x29e   : > { %v2821_v27 = vmul.f32 %v2820_v24, %v11468_v44  ;;  %v2985_v9 = vadd.f32 0.001143296, %v2984_v6  ;;  %v11733_v1 = vmul.f32 %v6367_v50, %v11419_v8  ;;  %v2857_v53 = vmul.f32 %v2856_v49, %v11569_v17 }
 0x29f   : > { %v2871_v25 = vadd.f32 0.4994258, %v2870_v41  ;;  %v2895_v54 = vmul.f32 %v2894_v56, %v11600_v61  ;;  %v2762_v60 = vsel %vm11737_vm11, %v11647_v4, %v2758_v42  ;;  %v2797_v44 = vmul.f32 %v11684_v11, %v2796_v2 }
 0x2a0   : > { %17408 = vst [vmem:[#allocation47_spill] sm:$0xff] %v11733_v1  ;;  %v2835_v8 = vmul.f32 %v11723_v37, %v11675_v48  ;;  %v11750_v35 = vmul.f32 0.5, %v11543_v12  ;;  %v2910_v26 = vmul.f32 %v2909_v13, %v11600_v61  ;;  %v2933_v50 = vmul.f32 2.1237322e-06, %v11618_v23 }
 0x2a1   : > { %v2949_v41 = vadd.f32 0.112945676, %v2948_v52  ;;  %v11755_v56 = vmul.f32 0.70710677, %v11727_v5  ;;  %v8348_v0 = vclamps-f32 %v11729_v43, 1.0  ;;  %v2783_v42 = vmul.f32 %v2782_v28, %v11391_v36 }
 0x2a2   : > { %v11759_v4 = vadd.f32 1.1283791, %v2821_v27  ;;  %v2986_v24 = vmul.f32 %v2985_v9, %v11691_v10  ;;  %v2858_v6 = vadd.f32 0.05243302, %v2857_v53  ;;  %v2872_v12 = vmul.f32 %v2871_v25, %v11569_v17  ;;  %v902_v27 = vpop.f32.mrf.mxu3 }
 0x2a3   : > { %v2896_v58 = vadd.f32 0.0036580483, %v2895_v54  ;;  %v11764_v46 = vadd.f32 %v813_v55, %v9503_v29  ;;  %v2767_v49 = vsel %vm11719_vm10, %v2766_v22, %v2762_v60  ;;  %v2798_v2 = vadd.f32 %v11684_v11, %v2797_v44 }
 0x2a4   : > { %vm2800_vm12 = vweird.f32 %v11684_v11  ;;  %v2836_v13 = vsub.f32 1.0, %v2835_v8  ;;  %v2911_v36 = vadd.f32 0.4994258, %v2910_v26  ;;  %v2934_v52 = vadd.f32 0.00028619796, %v2933_v50 }
 0x2a5   : > { %v2950_v43 = vmul.f32 %v2949_v41, %v11618_v23  ;;  %v3011_v28 = vmul.f32 %v11755_v56, %v11755_v56  ;;  %vm2799_vm13 = vweird.f32 %v11638_v32  ;;  %v2803_v9 = vand.u32 2147483647, %v11638_v32 }
 0x2a6   : > { %v2805_v47 = vand.u32 2147483648, %v11638_v32  ;;  %v2987_v22 = vadd.f32 0.014752088, %v2986_v24  ;;  %vm11776_vm14 = vmor %vm2799_vm13, %vm2800_vm12  ;;  %v2859_v53 = vmul.f32 %v2858_v6, %v11569_v17  ;;  %v11781_v25 = vadd.f32 1.0, %v2872_v12 }
 0x2a7   : > { %v2897_v54 = vmul.f32 %v2896_v58, %v11600_v61  ;;  %v11785_v60 = vmul.f32 0.70710677, %v11764_v46  ;;  %v2768_v44 = vmul.f32 %v2767_v49, %v11688_v7  ;;  %v2802_v32 = vsel %vm11776_vm14, %v11684_v11, %v2798_v2 }
 0x2a8   : > { %v2837_v8 = vmul.f32 %v11723_v37, %v2836_v13  ;;  %v11793_v55 = vadd.f32 %v902_v27, %v9512_v34  ;;  %v2912_v26 = vmul.f32 %v2911_v36, %v11600_v61  ;;  %v2935_v50 = vmul.f32 %v2934_v52, %v11618_v23 }
 0x2a9   : > { %v2951_v41 = vadd.f32 0.4994258, %v2950_v43  ;;  %v11797_v24 = vmin.f32 %v3011_v28, 16.0  ;;  %vm2804_vm15 = vcmp.eq.f32.partialorder %v2803_v9, 8.507059e+37  ;;  %v2806_v6 = vor.u32 1.1754944e-38, %v2805_v47 }
 0x2aa   : > { %v2845_v7 = vand.u32 2147483648, %v11675_v48  ;;  %v2988_v12 = vmul.f32 %v2987_v22, %v11691_v10  ;;  %v2860_v58 = vadd.f32 0.18741608, %v2859_v53  ;;  %8809 = vrcp.f32 %v11781_v25 }
 0x2ab   : > { %v2898_v11 = vadd.f32 0.05243302, %v2897_v54  ;;  %v3051_v49 = vmul.f32 %v11785_v60, %v11785_v60  ;;  %v2807_v2 = vsel %vm2804_vm15, %v2806_v6, %v2802_v32  ;;  %v2838_v13 = vadd.f32 %v11723_v37, %v2837_v8 }
 0x2ac   : > { %vm2840_vm0 = vweird.f32 %v11723_v37  ;;  %v11807_v36 = vmul.f32 0.70710677, %v11793_v55  ;;  %v11809_v52 = vadd.f32 1.0, %v2912_v26  ;;  %v2936_v43 = vadd.f32 0.0036580483, %v2935_v50 }
 0x2ad   : > { %v2952_v28 = vmul.f32 %v2951_v41, %v11618_v23  ;;  %v3024_v27 = vmul.f32 3.8918573e-05, %v11797_v24  ;;  %v8349_v9 = vclamps-f32 %v2768_v44, 1.0  ;;  %vm2839_vm1 = vweird.f32 %v11675_v48 }
 0x2ae   : > { %v2843_v47 = vand.u32 2147483647, %v11675_v48  ;;  %v2989_v22 = vadd.f32 0.112945676, %v2988_v12  ;;  %v6368_v62 = vadd.f32 1.0, %v8348_v0  ;;  %v2808_v53 = vmul.f32 %v2807_v2, %v2783_v42  ;;  %vm11815_vm2 = vmor %vm2839_vm1, %vm2840_vm0 }
 0x2af   : > { %v2899_v32 = vmul.f32 %v2898_v11, %v11600_v61  ;;  %v11820_v8 = vmin.f32 %v3051_v49, 16.0  ;;  %v2842_v26 = vsel %vm11815_vm2, %v11723_v37, %v2838_v13  ;;  %v2846_v44 = vor.u32 1.1754944e-38, %v2845_v7 }
 0x2b0   : > { %v2861_v50 = vmul.f32 %v2860_v58, %v11569_v17  ;;  %v3091_v48 = vmul.f32 %v11807_v36, %v11807_v36  ;;  %v11828_v0 = vpop.eup %8809  ;;  %8811 = vrcp.f32 %v11809_v52  ;;  %v2937_v42 = vmul.f32 %v2936_v43, %v11618_v23 }
 0x2b1   : > { %v11832_v41 = vadd.f32 1.0, %v2952_v28  ;;  %v3025_v6 = vadd.f32 0.001143296, %v3024_v27  ;;  %v6369_v12 = vadd.f32 1.0, %v8349_v9  ;;  %v2823_v11 = vmul.f32 %v11759_v4, %v11436_v31  ;;  %v638_v9 = vpop.f32.mrf.mxu0 }
 0x2b2   : > { %vm2844_vm3 = vcmp.eq.f32.partialorder %v2843_v47, 8.507059e+37  ;;  %v2990_v37 = vmul.f32 %v2989_v22, %v11691_v10  ;;  %v8350_v17 = vclamps-f32 %v2808_v53, 1.0  ;;  %v2900_v58 = vadd.f32 0.18741608, %v2899_v32 }
 0x2b3   : > { %v2847_v7 = vsel %vm2844_vm3, %v2846_v44, %v2842_v26  ;;  %v3064_v49 = vmul.f32 3.8918573e-05, %v11820_v8  ;;  %v11839_v2 = vmul.f32 %v6368_v62, %v11517_v20  ;;  %v2875_v13 = vmul.f32 %v11828_v0, %v11781_v25 }
 0x2b4   : > { %v2973_v43 = vmul.f32 2.1237322e-06, %v11691_v10  ;;  %v11844_v28 = vmin.f32 %v3091_v48, 16.0  ;;  %v2862_v27 = vadd.f32 1.1283791, %v2861_v50  ;;  %8813 = vrcp.f32 %v11832_v41 }
 0x2b5   : > { %17415 = vst [vmem:[#allocation48_spill] sm:$0xff] %v11839_v2  ;;  %v2938_v31 = vadd.f32 0.05243302, %v2937_v42  ;;  %v3026_v4 = vmul.f32 %v3025_v6, %v11797_v24  ;;  %v11849_v47 = vmul.f32 %v6369_v12, %v11576_v51  ;;  %v2848_v22 = vmul.f32 %v2847_v7, %v2823_v11 }
 0x2b6   : > { %v11852_v20 = vmul.f32 0.5, %v11562_v33  ;;  %v2991_v62 = vadd.f32 0.4994258, %v2990_v37  ;;  %v11854_v53 = vpop.eup %8811  ;;  %v6370_v54 = vadd.f32 1.0, %v8350_v17  ;;  %v2885_v32 = vand.u32 2147483648, %v11781_v25 }
 0x2b7   : > { %17416 = vst [vmem:[#allocation49_spill] sm:$0xff] %v11849_v47  ;;  %v2901_v26 = vmul.f32 %v2900_v58, %v11600_v61  ;;  %v3065_v44 = vadd.f32 0.001143296, %v3064_v49  ;;  %v2876_v50 = vsub.f32 1.0, %v2875_v13  ;;  %v2974_v48 = vadd.f32 0.00028619796, %v2973_v43 }
 0x2b8   : > { %v3104_v42 = vmul.f32 3.8918573e-05, %v11844_v28  ;;  %v11860_v51 = vadd.f32 %v638_v9, %v9483_v19  ;;  %v11863_v6 = vmul.f32 %v2862_v27, %v11530_v40  ;;  %v2939_v33 = vmul.f32 %v2938_v31, %v11618_v23 }
 0x2b9   : > { %v11867_v12 = vmul.f32 0.5, %v11633_v15  ;;  %v3027_v11 = vadd.f32 0.014752088, %v3026_v4  ;;  %v8351_v37 = vclamps-f32 %v2848_v22, 1.0  ;;  %vm2879_vm4 = vweird.f32 %v11781_v25 }
 0x2ba   : > { %v2883_v61 = vand.u32 2147483647, %v11781_v25  ;;  %v2915_v17 = vmul.f32 %v11854_v53, %v11809_v52  ;;  %v2992_v7 = vmul.f32 %v2991_v62, %v11691_v10  ;;  %v11874_v58 = vpop.eup %8813  ;;  %v11877_v40 = vmul.f32 %v6370_v54, %v11629_v38  ;;  %v727_v25 = vpop.f32.mrf.mxu1 }
 0x2bb   : > { %v2886_v49 = vor.u32 1.1754944e-38, %v2885_v32  ;;  %v2902_v13 = vadd.f32 1.1283791, %v2901_v26  ;;  %v3066_v15 = vmul.f32 %v3065_v44, %v11820_v8  ;;  %v2877_v43 = vmul.f32 %v11828_v0, %v2876_v50 }
 0x2bc   : > { %17417 = vst [vmem:[#allocation50_spill] sm:$0xff] %v11877_v40  ;;  %v2975_v27 = vmul.f32 %v2974_v48, %v11691_v10  ;;  %v3105_v31 = vadd.f32 0.001143296, %v3104_v42  ;;  %v11883_v4 = vmul.f32 0.70710677, %v11860_v51  ;;  %v11886_v22 = vmul.f32 0.5, %v11727_v5 }
 0x2bd   : > { %v2940_v9 = vadd.f32 0.18741608, %v2939_v33  ;;  %v3013_v38 = vmul.f32 2.1237322e-06, %v11797_v24  ;;  %v3028_v62 = vmul.f32 %v3027_v11, %v11797_v24  ;;  %v6371_v54 = vadd.f32 1.0, %v8351_v37  ;;  %v379_v33 = vld [vmem:[%s9449_s22 + $0xf0] sm:$0xff] }
 0x2be   : > { %vm11890_vm5 = vcmp.eq.f32.partialorder %v2883_v61, 8.507059e+37  ;;  %v2916_v26 = vsub.f32 1.0, %v2915_v17  ;;  %v2955_v44 = vmul.f32 %v11874_v58, %v11832_v41  ;;  %v11896_v50 = vadd.f32 1.0, %v2992_v7  ;;  %v380_v11 = vld [vmem:[%s9449_s22 + $0xf8] sm:$0xff] }
 0x2bf   : > { %vm2880_vm6 = vweird.f32 %v11828_v0  ;;  %v11900_v5 = vmul.f32 %v2902_v13, %v11559_v45  ;;  %v2923_v48 = vand.u32 2147483647, %v11809_v52  ;;  %v3067_v42 = vadd.f32 0.014752088, %v3066_v15 }
 0x2c0   : > { %v2878_v37 = vadd.f32 %v11828_v0, %v2877_v43  ;;  %v2976_v61 = vadd.f32 0.0036580483, %v2975_v27  ;;  %v3106_v17 = vmul.f32 %v3105_v31, %v11844_v28  ;;  %v3131_v40 = vmul.f32 %v11883_v4, %v11883_v4  ;;  %vm11920_vm7 = vmor %vm2879_vm4, %vm2880_vm6 }
 0x2c1   : > { %v2925_v7 = vand.u32 2147483648, %v11809_v52  ;;  %v2941_v47 = vmul.f32 %v2940_v9, %v11618_v23  ;;  %v3014_v2 = vadd.f32 0.00028619796, %v3013_v38  ;;  %v3029_v45 = vadd.f32 0.112945676, %v3028_v62 }
 0x2c2   : > { %v2917_v13 = vmul.f32 %v11854_v53, %v2916_v26  ;;  %v2956_v1 = vsub.f32 1.0, %v2955_v44  ;;  %8815 = vrcp.f32 %v11896_v50  ;;  %v396_v15 = vpack.c.bf16 %v380_v11, %v379_v33 }
 0x2c3   : > { %v11914_v43 = vmul.f32 %v6371_v54, %v11645_v16  ;;  %vm2919_vm8 = vweird.f32 %v11809_v52  ;;  %v3053_v23 = vmul.f32 2.1237322e-06, %v11820_v8  ;;  %v3068_v31 = vmul.f32 %v3067_v42, %v11820_v8 }
 0x2c4   : > { %v2882_v9 = vsel %vm11920_vm7, %v11828_v0, %v2878_v37  ;;  %v2977_v16 = vmul.f32 %v2976_v61, %v11691_v10  ;;  %v3107_v38 = vadd.f32 0.014752088, %v3106_v17  ;;  %v11931_v62 = vmin.f32 %v3131_v40, 16.0  ;;  %682 = vmatmul.bf16.gmra.mxu0 %v396_v15  ;;  %771 = vmatmul.bf16.gmra.mxu1 %v396_v15 }
 0x2c5   : > { %17420 = vst [vmem:[#allocation51_spill] sm:$0xff] %v11914_v43  ;;  %vm11933_vm9 = vcmp.eq.f32.partialorder %v2923_v48, 8.507059e+37  ;;  %v2926_v26 = vor.u32 1.1754944e-38, %v2925_v7  ;;  %v3015_v44 = vmul.f32 %v3014_v2, %v11797_v24  ;;  %v3030_v42 = vmul.f32 %v3029_v45, %v11797_v24  ;;  %860 = vmatmul.bf16.gmra.mxu2 %v396_v15  ;;  %949 = vmatmul.bf16.gmra.mxu3 %v396_v15 }
 0x2c6   : > { %v2918_v0 = vadd.f32 %v11854_v53, %v2917_v13  ;;  %vm2920_vm10 = vweird.f32 %v11854_v53  ;;  %v2942_v40 = vadd.f32 1.1283791, %v2941_v47  ;;  %v2957_v33 = vmul.f32 %v11874_v58, %v2956_v1 }
 0x2c7   : > { %v2887_v48 = vsel %vm11890_vm5, %v2886_v49, %v2882_v9  ;;  %v3054_v11 = vadd.f32 0.00028619796, %v3053_v23  ;;  %v3069_v37 = vadd.f32 0.112945676, %v3068_v31  ;;  %v11945_v61 = vadd.f32 %v727_v25, %v9485_v21  ;;  %vm11956_vm11 = vmor %vm2919_vm8, %vm2920_vm10 }
 0x2c8   : > { %v11947_v2 = vpop.eup %8815  ;;  %v2978_v17 = vadd.f32 0.05243302, %v2977_v16  ;;  %v11950_v7 = vmul.f32 0.5, %v11764_v46  ;;  %v3108_v45 = vmul.f32 %v3107_v38, %v11844_v28  ;;  %v3144_v47 = vmul.f32 3.8918573e-05, %v11931_v62 }
 0x2c9   : > { %vm2959_vm12 = vweird.f32 %v11832_v41  ;;  %v2965_v49 = vand.u32 2147483648, %v11832_v41  ;;  %v3016_v32 = vadd.f32 0.0036580483, %v3015_v44  ;;  %v3031_v13 = vadd.f32 0.4994258, %v3030_v42 }
 0x2ca   : > { %v2888_v15 = vmul.f32 %v2887_v48, %v11863_v6  ;;  %v2922_v46 = vsel %vm11956_vm11, %v11854_v53, %v2918_v0  ;;  %v2958_v27 = vadd.f32 %v11874_v58, %v2957_v33  ;;  %vm2960_vm13 = vweird.f32 %v11874_v58 }
 0x2cb   : > { %v2995_v52 = vmul.f32 %v11947_v2, %v11896_v50  ;;  %v3055_v23 = vmul.f32 %v3054_v11, %v11820_v8  ;;  %v3070_v31 = vmul.f32 %v3069_v37, %v11820_v8  ;;  %v11973_v9 = vmul.f32 0.70710677, %v11945_v61  ;;  %vm11981_vm14 = vmor %vm2959_vm12, %vm2960_vm13 }
 0x2cc   : > { %v2963_v6 = vand.u32 2147483647, %v11832_v41  ;;  %v2979_v16 = vmul.f32 %v2978_v17, %v11691_v10  ;;  %v3109_v38 = vadd.f32 0.112945676, %v3108_v45  ;;  %v3145_v53 = vadd.f32 0.001143296, %v3144_v47  ;;  %v816_v47 = vpop.f32.mrf.mxu2 }
 0x2cd   : > { %v2927_v25 = vsel %vm11933_vm9, %v2926_v26, %v2922_v46  ;;  %v3017_v42 = vmul.f32 %v3016_v32, %v11797_v24  ;;  %v3032_v0 = vmul.f32 %v3031_v13, %v11797_v24  ;;  %v3093_v33 = vmul.f32 2.1237322e-06, %v11844_v28 }
 0x2ce   : > { %v8352_v48 = vclamps-f32 %v2888_v15, 1.0  ;;  %v2943_v11 = vmul.f32 %v2942_v40, %v11584_v30  ;;  %v2962_v54 = vsel %vm11981_vm14, %v11874_v58, %v2958_v27  ;;  %v2966_v26 = vor.u32 1.1754944e-38, %v2965_v49 }
 0x2cf   : > { %v2996_v37 = vsub.f32 1.0, %v2995_v52  ;;  %v3056_v41 = vadd.f32 0.0036580483, %v3055_v23  ;;  %v3071_v17 = vadd.f32 0.4994258, %v3070_v31  ;;  %v3171_v45 = vmul.f32 %v11973_v9, %v11973_v9 }
 0x2d0   : > { %v2928_v1 = vmul.f32 %v2927_v25, %v11900_v5  ;;  %v2980_v32 = vadd.f32 0.18741608, %v2979_v16  ;;  %v3110_v13 = vmul.f32 %v3109_v38, %v11844_v28  ;;  %v3146_v15 = vmul.f32 %v3145_v53, %v11931_v62 }
 0x2d1   : > { %vm2964_vm15 = vcmp.eq.f32.partialorder %v2963_v6, 8.507059e+37  ;;  %v3018_v30 = vadd.f32 0.05243302, %v3017_v42  ;;  %v11997_v40 = vadd.f32 1.0, %v3032_v0  ;;  %v3094_v58 = vadd.f32 0.00028619796, %v3093_v33  ;;  %v905_v6 = vpop.f32.mrf.mxu3 }
 0x2d2   : > { %v6372_v49 = vadd.f32 1.0, %v8352_v48  ;;  %v2967_v46 = vsel %vm2964_vm15, %v2966_v26, %v2962_v54  ;;  %v12000_v27 = vmul.f32 0.5, %v11793_v55  ;;  %v12003_v52 = vadd.f32 %v816_v47, %v9503_v29 }
 0x2d3   : > { %v2997_v5 = vmul.f32 %v11947_v2, %v2996_v37  ;;  %v3057_v23 = vmul.f32 %v3056_v41, %v11820_v8  ;;  %v3072_v31 = vmul.f32 %v3071_v17, %v11820_v8  ;;  %v12008_v16 = vmin.f32 %v3171_v45, 16.0 }
 0x2d4   : > { %v8353_v38 = vclamps-f32 %v2928_v1, 1.0  ;;  %v2981_v53 = vmul.f32 %v2980_v32, %v11691_v10  ;;  %v3111_v25 = vadd.f32 0.4994258, %v3110_v13  ;;  %v3147_v44 = vadd.f32 0.014752088, %v3146_v15 }
 0x2d5   : > { %v2968_v42 = vmul.f32 %v2967_v46, %v2943_v11  ;;  %v3019_v55 = vmul.f32 %v3018_v30, %v11797_v24  ;;  %8817 = vrcp.f32 %v11997_v40  ;;  %v3095_v0 = vmul.f32 %v3094_v58, %v11844_v28 }
 0x2d6   : > { %vm3000_vm0 = vweird.f32 %v11947_v2  ;;  %v3003_v33 = vand.u32 2147483647, %v11896_v50  ;;  %v12017_v48 = vmul.f32 0.70710677, %v12003_v52  ;;  %v12020_v54 = vadd.f32 %v905_v6, %v9512_v34 }
 0x2d7   : > { %v2998_v10 = vadd.f32 %v11947_v2, %v2997_v5  ;;  %v3058_v26 = vadd.f32 0.05243302, %v3057_v23  ;;  %v12023_v11 = vadd.f32 1.0, %v3072_v31  ;;  %v3184_v37 = vmul.f32 3.8918573e-05, %v12008_v16 }
 0x2d8   : > { %v3005_v41 = vand.u32 2147483648, %v11896_v50  ;;  %v3112_v17 = vmul.f32 %v3111_v25, %v11844_v28  ;;  %v3133_v45 = vmul.f32 2.1237322e-06, %v11931_v62  ;;  %v3148_v47 = vmul.f32 %v3147_v44, %v11931_v62 }
 0x2d9   : > { %v8354_v1 = vclamps-f32 %v2968_v42, 1.0  ;;  %vm2999_vm1 = vweird.f32 %v11896_v50  ;;  %v3020_v32 = vadd.f32 0.18741608, %v3019_v55  ;;  %v3096_v13 = vadd.f32 0.0036580483, %v3095_v0  ;;  %v640_v42 = vpop.f32.mrf.mxu0 }
 0x2da   : > { %v6373_v15 = vadd.f32 1.0, %v8353_v38  ;;  %v2982_v30 = vadd.f32 1.1283791, %v2981_v53  ;;  %vm12033_vm2 = vmor %vm2999_vm1, %vm3000_vm0  ;;  %v3211_v46 = vmul.f32 %v12017_v48, %v12017_v48  ;;  %v12040_v5 = vmul.f32 0.70710677, %v12020_v54 }
 0x2db   : > { %v12042_v23 = vpop.eup %8817  ;;  %v3002_v50 = vsel %vm12033_vm2, %v11947_v2, %v2998_v10  ;;  %v3059_v31 = vmul.f32 %v3058_v26, %v11820_v8  ;;  %8819 = vrcp.f32 %v12023_v11  ;;  %v3185_v6 = vadd.f32 0.001143296, %v3184_v37 }
 0x2dc   : > { %v3006_v38 = vor.u32 1.1754944e-38, %v3005_v41  ;;  %v12049_v53 = vadd.f32 1.0, %v3112_v17  ;;  %v3134_v25 = vadd.f32 0.00028619796, %v3133_v45  ;;  %v3149_v44 = vadd.f32 0.112945676, %v3148_v47 }
 0x2dd   : > { %v6374_v55 = vadd.f32 1.0, %v8354_v1  ;;  %vm3004_vm3 = vcmp.eq.f32.partialorder %v3003_v33, 8.507059e+37  ;;  %v3021_v0 = vmul.f32 %v3020_v32, %v11797_v24  ;;  %v3097_v43 = vmul.f32 %v3096_v13, %v11844_v28 }
 0x2de   : > { %v3007_v3 = vsel %vm3004_vm3, %v3006_v38, %v3002_v50  ;;  %v3035_v2 = vmul.f32 %v12042_v23, %v11997_v40  ;;  %v12055_v10 = vmin.f32 %v3211_v46, 16.0  ;;  %v3251_v26 = vmul.f32 %v12040_v5, %v12040_v5 }
 0x2df   : > { %v2983_v37 = vmul.f32 %v2982_v30, %v11658_v14  ;;  %v3060_v41 = vadd.f32 0.18741608, %v3059_v31  ;;  %v3186_v17 = vmul.f32 %v3185_v6, %v12008_v16  ;;  %v12062_v33 = vadd.f32 %v640_v42, %v9483_v19 }
 0x2e0   : > { %v12065_v24 = vmul.f32 %v6372_v49, %v11651_v18  ;;  %8821 = vrcp.f32 %v12049_v53  ;;  %v3135_v45 = vmul.f32 %v3134_v25, %v11931_v62  ;;  %v3150_v47 = vmul.f32 %v3149_v44, %v11931_v62 }
 0x2e1   : > { %v12070_v1 = vpop.eup %8819  ;;  %v12073_v32 = vmul.f32 %v6373_v15, %v11750_v35  ;;  %v3008_v14 = vmul.f32 %v3007_v3, %v2983_v37  ;;  %v3022_v13 = vadd.f32 1.1283791, %v3021_v0  ;;  %v3098_v30 = vadd.f32 0.05243302, %v3097_v43 }
 0x2e2   : > { %17431 = vst [vmem:[#allocation52_spill] sm:$0xff] %v12065_v24  ;;  %v12076_v58 = vmul.f32 %v6374_v55, %v11852_v20  ;;  %v3036_v46 = vsub.f32 1.0, %v3035_v2  ;;  %v3224_v18 = vmul.f32 3.8918573e-05, %v12055_v10  ;;  %v12079_v49 = vmin.f32 %v3251_v26, 16.0 }
 0x2e3   : > { %17432 = vst [vmem:[#allocation53_spill] sm:$0xff] %v12073_v32  ;;  %v3043_v50 = vand.u32 2147483647, %v11997_v40  ;;  %v3061_v31 = vmul.f32 %v3060_v41, %v11820_v8  ;;  %v3187_v6 = vadd.f32 0.014752088, %v3186_v17  ;;  %v3045_v3 = vand.u32 2147483648, %v11997_v40 }
 0x2e4   : > { %17433 = vst [vmem:[#allocation54_spill] sm:$0xff] %v12076_v58  ;;  %v12084_v38 = vmul.f32 0.70710677, %v12062_v33  ;;  %v3075_v35 = vmul.f32 %v12070_v1, %v12023_v11  ;;  %v3136_v20 = vadd.f32 0.0036580483, %v3135_v45  ;;  %v8355_v15 = vclamps-f32 %v3008_v14, 1.0 }
 0x2e5   : > { %v3151_v43 = vadd.f32 0.4994258, %v3150_v47  ;;  %v12090_v25 = vmul.f32 %v3022_v13, %v11755_v56  ;;  %v3099_v44 = vmul.f32 %v3098_v30, %v11844_v28  ;;  %v12094_v42 = vmul.f32 0.5, %v11860_v51 }
 0x2e6   : > { %v12096_v8 = vpop.eup %8821  ;;  %v3037_v55 = vmul.f32 %v12042_v23, %v3036_v46  ;;  %vm3039_vm4 = vweird.f32 %v11997_v40  ;;  %v3225_v0 = vadd.f32 0.001143296, %v3224_v18  ;;  %v3264_v2 = vmul.f32 3.8918573e-05, %v12079_v49 }
 0x2e7   : > { %v3062_v26 = vadd.f32 1.1283791, %v3061_v31  ;;  %v3173_v37 = vmul.f32 2.1237322e-06, %v12008_v16  ;;  %v3188_v56 = vmul.f32 %v3187_v6, %v12008_v16  ;;  %v3291_v41 = vmul.f32 %v12084_v38, %v12084_v38 }
 0x2e8   : > { %vm12105_vm5 = vcmp.eq.f32.partialorder %v3043_v50, 8.507059e+37  ;;  %v3046_v17 = vor.u32 1.1754944e-38, %v3045_v3  ;;  %v3076_v45 = vsub.f32 1.0, %v3075_v35  ;;  %v3137_v47 = vmul.f32 %v3136_v20, %v11931_v62 }
 0x2e9   : > { %v3152_v14 = vmul.f32 %v3151_v43, %v11931_v62  ;;  %v6375_v13 = vadd.f32 1.0, %v8355_v15  ;;  %vm3040_vm6 = vweird.f32 %v12042_v23  ;;  %v3100_v30 = vadd.f32 0.18741608, %v3099_v44  ;;  %v729_v15 = vpop.f32.mrf.mxu1 }
 0x2ea   : > { %v3115_v46 = vmul.f32 %v12096_v8, %v12049_v53  ;;  %v3038_v18 = vadd.f32 %v12042_v23, %v3037_v55  ;;  %v3083_v50 = vand.u32 2147483647, %v12023_v11  ;;  %v3226_v31 = vmul.f32 %v3225_v0, %v12055_v10  ;;  %vm12132_vm7 = vmor %vm3039_vm4, %vm3040_vm6 }
 0x2eb   : > { %v3265_v6 = vadd.f32 0.001143296, %v3264_v2  ;;  %v12118_v3 = vmul.f32 %v3062_v26, %v11785_v60  ;;  %v3174_v35 = vadd.f32 0.00028619796, %v3173_v37  ;;  %v3189_v20 = vadd.f32 0.112945676, %v3188_v56 }
 0x2ec   : > { %v12120_v43 = vmin.f32 %v3291_v41, 16.0  ;;  %v3077_v44 = vmul.f32 %v12070_v1, %v3076_v45  ;;  %v3138_v58 = vadd.f32 0.05243302, %v3137_v47  ;;  %v12123_v32 = vadd.f32 1.0, %v3152_v14 }
 0x2ed   : > { %v12126_v55 = vmul.f32 0.5, %v11945_v61  ;;  %vm3079_vm8 = vweird.f32 %v12023_v11  ;;  %v3085_v0 = vand.u32 2147483648, %v12023_v11  ;;  %v3101_v2 = vmul.f32 %v3100_v30, %v11844_v28 }
 0x2ee   : > { %v3116_v26 = vsub.f32 1.0, %v3115_v46  ;;  %v3042_v61 = vsel %vm12132_vm7, %v12042_v23, %v3038_v18  ;;  %vm12142_vm9 = vcmp.eq.f32.partialorder %v3083_v50, 8.507059e+37  ;;  %v3227_v40 = vadd.f32 0.014752088, %v3226_v31 }
 0x2ef   : > { %v3266_v56 = vmul.f32 %v3265_v6, %v12079_v49  ;;  %v12148_v41 = vadd.f32 %v729_v15, %v9485_v21  ;;  %vm3080_vm10 = vweird.f32 %v12070_v1  ;;  %v3175_v45 = vmul.f32 %v3174_v35, %v12008_v16 }
 0x2f0   : > { %v3190_v28 = vmul.f32 %v3189_v20, %v12008_v16  ;;  %v3304_v47 = vmul.f32 3.8918573e-05, %v12120_v43  ;;  %v3078_v23 = vadd.f32 %v12070_v1, %v3077_v44  ;;  %v3139_v14 = vmul.f32 %v3138_v58, %v11931_v62  ;;  %vm12173_vm11 = vmor %vm3079_vm8, %vm3080_vm10 }
 0x2f1   : > { %8823 = vrcp.f32 %v12123_v32  ;;  %v3213_v30 = vmul.f32 2.1237322e-06, %v12055_v10  ;;  %v3047_v46 = vsel %vm12105_vm5, %v3046_v17, %v3042_v61  ;;  %v3086_v18 = vor.u32 1.1754944e-38, %v3085_v0 }
 0x2f2   : > { %v3102_v50 = vadd.f32 1.1283791, %v3101_v2  ;;  %v3117_v31 = vmul.f32 %v12096_v8, %v3116_v26  ;;  %v3125_v6 = vand.u32 2147483648, %v12049_v53  ;;  %v3228_v35 = vmul.f32 %v3227_v40, %v12055_v10 }
 0x2f3   : > { %v3267_v20 = vadd.f32 0.014752088, %v3266_v56  ;;  %v12164_v15 = vmul.f32 0.70710677, %v12148_v41  ;;  %v12167_v58 = vmul.f32 %v6375_v13, %v11867_v12  ;;  %v3176_v17 = vadd.f32 0.0036580483, %v3175_v45  ;;  %v818_v45 = vpop.f32.mrf.mxu2 }
 0x2f4   : > { %v3191_v44 = vadd.f32 0.4994258, %v3190_v28  ;;  %v3305_v60 = vadd.f32 0.001143296, %v3304_v47  ;;  %v3048_v0 = vmul.f32 %v3047_v46, %v12090_v25  ;;  %v3082_v2 = vsel %vm12173_vm11, %v12070_v1, %v3078_v23 }
 0x2f5   : > { %v3140_v26 = vadd.f32 0.18741608, %v3139_v14  ;;  %v3214_v12 = vadd.f32 0.00028619796, %v3213_v30  ;;  %v3118_v13 = vadd.f32 %v12096_v8, %v3117_v31  ;;  %vm3119_vm12 = vweird.f32 %v12049_v53 }
 0x2f6   : > { %vm3120_vm13 = vweird.f32 %v12096_v8  ;;  %v3253_v11 = vmul.f32 2.1237322e-06, %v12079_v49  ;;  %v3123_v40 = vand.u32 2147483647, %v12049_v53  ;;  %v3229_v56 = vadd.f32 0.112945676, %v3228_v35 }
 0x2f7   : > { %v12185_v61 = vpop.eup %8823  ;;  %v3268_v25 = vmul.f32 %v3267_v20, %v12079_v49  ;;  %v3331_v1 = vmul.f32 %v12164_v15, %v12164_v15  ;;  %v3087_v28 = vsel %vm12142_vm9, %v3086_v18, %v3082_v2  ;;  %v3177_v47 = vmul.f32 %v3176_v17, %v12008_v16  ;;  %vm12196_vm14 = vmor %vm3119_vm12, %vm3120_vm13 }
 0x2f8   : > { %v3192_v23 = vmul.f32 %v3191_v44, %v12008_v16  ;;  %v3306_v14 = vmul.f32 %v3305_v60, %v12120_v43  ;;  %v8356_v30 = vclamps-f32 %v3048_v0, 1.0  ;;  %v3126_v53 = vor.u32 1.1754944e-38, %v3125_v6 }
 0x2f9   : > { %v3141_v31 = vmul.f32 %v3140_v26, %v11931_v62  ;;  %v3215_v35 = vmul.f32 %v3214_v12, %v12055_v10  ;;  %v3122_v37 = vsel %vm12196_vm14, %v12096_v8, %v3118_v13  ;;  %v3155_v18 = vmul.f32 %v12185_v61, %v12123_v32 }
 0x2fa   : > { %v3254_v20 = vadd.f32 0.00028619796, %v3253_v11  ;;  %v12208_v51 = vadd.f32 %v818_v45, %v9503_v29  ;;  %v3088_v17 = vmul.f32 %v3087_v28, %v12118_v3  ;;  %v3230_v44 = vmul.f32 %v3229_v56, %v12055_v10 }
 0x2fb   : > { %v3269_v6 = vadd.f32 0.112945676, %v3268_v25  ;;  %v12212_v60 = vmin.f32 %v3331_v1, 16.0  ;;  %vm3124_vm15 = vcmp.eq.f32.partialorder %v3123_v40, 8.507059e+37  ;;  %v3178_v62 = vadd.f32 0.05243302, %v3177_v47 }
 0x2fc   : > { %v12214_v0 = vadd.f32 1.0, %v3192_v23  ;;  %v3307_v2 = vadd.f32 0.014752088, %v3306_v14  ;;  %v6376_v8 = vadd.f32 1.0, %v8356_v30  ;;  %v3103_v26 = vmul.f32 %v3102_v50, %v11807_v36 }
 0x2fd   : > { %v3127_v12 = vsel %vm3124_vm15, %v3126_v53, %v3122_v37  ;;  %v3216_v13 = vadd.f32 0.0036580483, %v3215_v35  ;;  %v3142_v11 = vadd.f32 1.1283791, %v3141_v31  ;;  %v3156_v45 = vsub.f32 1.0, %v3155_v18 }
 0x2fe   : > { %v3255_v46 = vmul.f32 %v3254_v20, %v12079_v49  ;;  %v12219_v3 = vmul.f32 0.70710677, %v12208_v51  ;;  %v8357_v56 = vclamps-f32 %v3088_v17, 1.0  ;;  %v3231_v25 = vadd.f32 0.4994258, %v3230_v44 }
 0x2ff   : > { %v3270_v40 = vmul.f32 %v3269_v6, %v12079_v49  ;;  %v3344_v1 = vmul.f32 3.8918573e-05, %v12212_v60  ;;  %v3128_v28 = vmul.f32 %v3127_v12, %v3103_v26  ;;  %v3179_v47 = vmul.f32 %v3178_v62, %v12008_v16 }
 0x300   : > { %8825 = vrcp.f32 %v12214_v0  ;;  %v3308_v36 = vmul.f32 %v3307_v2, %v12120_v43  ;;  %v12227_v50 = vmul.f32 %v6376_v8, %v11886_v22  ;;  %v12230_v23 = vmul.f32 0.5, %v12003_v52  ;;  %v907_v52 = vpop.f32.mrf.mxu3 }
 0x301   : > { %v3217_v14 = vmul.f32 %v3216_v13, %v12055_v10  ;;  %v12234_v30 = vmul.f32 0.5, %v12020_v54  ;;  %v3143_v53 = vmul.f32 %v3142_v11, %v11883_v4  ;;  %v3157_v31 = vmul.f32 %v12185_v61, %v3156_v45 }
 0x302   : > { %17444 = vst [vmem:[#allocation55_spill] sm:$0xff] %v12227_v50  ;;  %v3256_v35 = vadd.f32 0.0036580483, %v3255_v46  ;;  %v3371_v37 = vmul.f32 %v12219_v3, %v12219_v3  ;;  %v6377_v18 = vadd.f32 1.0, %v8357_v56  ;;  %v3232_v22 = vmul.f32 %v3231_v25, %v12055_v10  ;;  %v17456_v50 = vld [vmem:[#allocation19_spill] sm:$0xff] }
 0x303   : > { %v3271_v20 = vadd.f32 0.4994258, %v3270_v40  ;;  %v3345_v17 = vadd.f32 0.001143296, %v3344_v1  ;;  %v8358_v44 = vclamps-f32 %v3128_v28, 1.0  ;;  %vm3159_vm0 = vweird.f32 %v12123_v32 }
 0x304   : > { %v3180_v6 = vadd.f32 0.18741608, %v3179_v47  ;;  %v3309_v54 = vadd.f32 0.112945676, %v3308_v36  ;;  %vm3160_vm1 = vweird.f32 %v12185_v61  ;;  %v3163_v4 = vand.u32 2147483647, %v12123_v32 }
 0x305   : > { %v3165_v62 = vand.u32 2147483648, %v12123_v32  ;;  %v3218_v2 = vadd.f32 0.05243302, %v3217_v14  ;;  %v3158_v26 = vadd.f32 %v12185_v61, %v3157_v31  ;;  %v3257_v12 = vmul.f32 %v3256_v35, %v12079_v49  ;;  %vm12268_vm2 = vmor %vm3159_vm0, %vm3160_vm1 }
 0x306   : > { %v12245_v8 = vpop.eup %8825  ;;  %v12249_v13 = vmin.f32 %v3371_v37, 16.0  ;;  %v12252_v11 = vadd.f32 %v907_v52, %v9512_v34  ;;  %v12254_v45 = vadd.f32 1.0, %v3232_v22  ;;  %v3272_v46 = vmul.f32 %v3271_v20, %v12079_v49  ;;  %v643_v22 = vpop.f32.mrf.mxu0 }
 0x307   : > { %v3293_v56 = vmul.f32 2.1237322e-06, %v12120_v43  ;;  %v3346_v25 = vmul.f32 %v3345_v17, %v12212_v60  ;;  %v12260_v40 = vmul.f32 %v6377_v18, %v11950_v7  ;;  %v6378_v1 = vadd.f32 1.0, %v8358_v44 }
 0x308   : > { %v3181_v28 = vmul.f32 %v3180_v6, %v12008_v16  ;;  %v3310_v47 = vmul.f32 %v3309_v54, %v12120_v43  ;;  %vm12272_vm3 = vcmp.eq.f32.partialorder %v3163_v4, 8.507059e+37  ;;  %v3166_v31 = vor.u32 1.1754944e-38, %v3165_v62 }
 0x309   : > { %17445 = vst [vmem:[#allocation56_spill] sm:$0xff] %v12260_v40  ;;  %v3195_v7 = vmul.f32 %v12245_v8, %v12214_v0  ;;  %v3219_v16 = vmul.f32 %v3218_v2, %v12055_v10  ;;  %v3162_v35 = vsel %vm12268_vm2, %v12185_v61, %v3158_v26  ;;  %v3258_v37 = vadd.f32 0.05243302, %v3257_v12  ;;  %v17455_v40 = vld [vmem:[#allocation16_spill] sm:$0xff] }
 0x30a   : > { %v3384_v32 = vmul.f32 3.8918573e-05, %v12249_v13  ;;  %v12284_v18 = vmul.f32 0.70710677, %v12252_v11  ;;  %8827 = vrcp.f32 %v12254_v45  ;;  %v12287_v20 = vadd.f32 1.0, %v3272_v46 }
 0x30b   : > { %v3294_v17 = vadd.f32 0.00028619796, %v3293_v56  ;;  %v3347_v52 = vadd.f32 0.014752088, %v3346_v25  ;;  %v12290_v44 = vmul.f32 %v6378_v1, %v12000_v27  ;;  %v3182_v6 = vadd.f32 1.1283791, %v3181_v28 }
 0x30c   : > { %v3203_v54 = vand.u32 2147483647, %v12214_v0  ;;  %v3311_v61 = vadd.f32 0.4994258, %v3310_v47  ;;  %v3167_v4 = vsel %vm12272_vm3, %v3166_v31, %v3162_v35  ;;  %v3196_v62 = vsub.f32 1.0, %v3195_v7 }
 0x30d   : > { %17450 = vst [vmem:[#allocation57_spill] sm:$0xff] %v12290_v44  ;;  %v3220_v2 = vadd.f32 0.18741608, %v3219_v16  ;;  %v12296_v26 = vadd.f32 %v643_v22, %v9483_v19  ;;  %v3205_v12 = vand.u32 2147483648, %v12214_v0  ;;  %v3259_v46 = vmul.f32 %v3258_v37, %v12079_v49 }
 0x30e   : > { %v3385_v56 = vadd.f32 0.001143296, %v3384_v32  ;;  %v3411_v27 = vmul.f32 %v12284_v18, %v12284_v18  ;;  %8829 = vrcp.f32 %v12287_v20  ;;  %v3295_v25 = vmul.f32 %v3294_v17, %v12120_v43 }
 0x30f   : > { %v3333_v1 = vmul.f32 2.1237322e-06, %v12212_v60  ;;  %v3348_v28 = vmul.f32 %v3347_v52, %v12212_v60  ;;  %v3168_v47 = vmul.f32 %v3167_v4, %v3143_v53  ;;  %v12307_v36 = vmul.f32 %v3182_v6, %v11973_v9 }
 0x310   : > { %v12310_v14 = vmul.f32 0.5, %v12062_v33  ;;  %v3312_v31 = vmul.f32 %v3311_v61, %v12120_v43  ;;  %v12313_v7 = vpop.eup %8827  ;;  %v3197_v16 = vmul.f32 %v12245_v8, %v3196_v62  ;;  %v3221_v35 = vmul.f32 %v3220_v2, %v12055_v10 }
 0x311   : > { %v12318_v37 = vmul.f32 0.5, %v12148_v41  ;;  %v12321_v32 = vmul.f32 0.70710677, %v12296_v26  ;;  %v3206_v53 = vor.u32 1.1754944e-38, %v3205_v12  ;;  %v3260_v9 = vadd.f32 0.18741608, %v3259_v46 }
 0x312   : > { %v3386_v22 = vmul.f32 %v3385_v56, %v12249_v13  ;;  %v12324_v33 = vmin.f32 %v3411_v27, 16.0  ;;  %vm3199_vm4 = vweird.f32 %v12214_v0  ;;  %vm12327_vm5 = vcmp.eq.f32.partialorder %v3203_v54, 8.507059e+37 }
 0x313   : > { %v3296_v52 = vadd.f32 0.0036580483, %v3295_v25  ;;  %v3334_v10 = vadd.f32 0.00028619796, %v3333_v1  ;;  %v3349_v6 = vadd.f32 0.112945676, %v3348_v28  ;;  %vm3200_vm6 = vweird.f32 %v12245_v8  ;;  %v732_v1 = vpop.f32.mrf.mxu1 }
 0x314   : > { %v8359_v41 = vclamps-f32 %v3168_v47, 1.0  ;;  %v3235_v61 = vmul.f32 %v12313_v7, %v12254_v45  ;;  %v12334_v4 = vadd.f32 1.0, %v3312_v31  ;;  %v12336_v62 = vpop.eup %8829  ;;  %v3198_v2 = vadd.f32 %v12245_v8, %v3197_v16  ;;  %v17453_v28 = vld [vmem:[#allocation15_spill] sm:$0xff]  ;;  %v17454_v47 = vld [vmem:[#allocation18_spill] sm:$0xff]  ;;  %vm12356_vm7 = vmor %vm3199_vm4, %vm3200_vm6 }
 0x315   : > { %v3222_v12 = vadd.f32 1.1283791, %v3221_v35  ;;  %v3451_v54 = vmul.f32 %v12321_v32, %v12321_v32  ;;  %v6587_v46 = vpack.c.bf16 %v9943_v63, %v9866_v39  ;;  %v3261_v56 = vmul.f32 %v3260_v9, %v12079_v49 }
 0x316   : > { %v3387_v27 = vadd.f32 0.014752088, %v3386_v22  ;;  %v3424_v25 = vmul.f32 3.8918573e-05, %v12324_v33  ;;  %v6588_v31 = vpack.c.bf16 %v17454_v47, %v17453_v28  ;;  %v3297_v44 = vmul.f32 %v3296_v52, %v12120_v43  ;;  %v17459_v47 = vld [vmem:[#allocation17_spill] sm:$0xff] }
 0x317   : > { %v3335_v16 = vmul.f32 %v3334_v10, %v12212_v60  ;;  %v3350_v35 = vmul.f32 %v3349_v6, %v12212_v60  ;;  %6919 = vmatmul.bf16.vlgmr.msrb.gmra.mxu0 %v6587_v46  ;;  %v6589_v24 = vpack.c.bf16 %v17456_v50, %v17455_v40  ;;  %v6379_v39 = vadd.f32 1.0, %v8359_v41 }
 0x318   : > { %v3236_v49 = vsub.f32 1.0, %v3235_v61  ;;  %v3275_v9 = vmul.f32 %v12336_v62, %v12287_v20  ;;  %8831 = vrcp.f32 %v12334_v4  ;;  %7008 = vmatmul.bf16.vlgmr.msrb.gmra.mxu1 %v6588_v31  ;;  %v3202_v50 = vsel %vm12356_vm7, %v12245_v8, %v3198_v2  ;;  %v17460_v31 = vld [vmem:[#allocation20_spill] sm:$0xff] }
 0x319   : > { %v3243_v40 = vand.u32 2147483647, %v12254_v45  ;;  %v12367_v22 = vmin.f32 %v3451_v54, 16.0  ;;  %v12370_v0 = vadd.f32 %v732_v1, %v9485_v21  ;;  %7097 = vmatmul.bf16.vlgmr.msrb.gmra.mxu2 %v6589_v24  ;;  %v3245_v52 = vand.u32 2147483648, %v12254_v45 }
 0x31a   : > { %v3262_v10 = vadd.f32 1.1283791, %v3261_v56  ;;  %v3388_v6 = vmul.f32 %v3387_v27, %v12249_v13  ;;  %v3425_v41 = vadd.f32 0.001143296, %v3424_v25  ;;  %v3298_v61 = vadd.f32 0.05243302, %v3297_v44 }
 0x31b   : > { %v3336_v46 = vadd.f32 0.0036580483, %v3335_v16  ;;  %v3351_v28 = vadd.f32 0.4994258, %v3350_v35  ;;  %v6590_v8 = vpack.c.bf16 %v17460_v31, %v17459_v47  ;;  %v3207_v2 = vsel %vm12327_vm5, %v3206_v53, %v3202_v50 }
 0x31c   : > { %v12379_v54 = vmul.f32 %v3222_v12, %v12017_v48  ;;  %v3237_v24 = vmul.f32 %v12313_v7, %v3236_v49  ;;  %v3276_v1 = vsub.f32 1.0, %v3275_v9  ;;  %v12383_v56 = vmul.f32 %v6379_v39, %v12094_v42 }
 0x31d   : > { %vm3239_vm8 = vweird.f32 %v12254_v45  ;;  %v3464_v44 = vmul.f32 3.8918573e-05, %v12367_v22  ;;  %v12388_v27 = vmul.f32 0.70710677, %v12370_v0  ;;  %7186 = vmatmul.bf16.vlgmr.msrb.gmra.mxu3 %v6590_v8  ;;  %v3246_v53 = vor.u32 1.1754944e-38, %v3245_v52 }
 0x31e   : > { %v12390_v25 = vpop.eup %8831  ;;  %v12393_v48 = vmul.f32 %v3262_v10, %v12040_v5  ;;  %v3389_v17 = vadd.f32 0.112945676, %v3388_v6  ;;  %v3426_v12 = vmul.f32 %v3425_v41, %v12324_v33  ;;  %v12397_v42 = vmul.f32 %v3207_v2, %v12307_v36 }
 0x31f   : > { %vm12399_vm9 = vcmp.eq.f32.partialorder %v3243_v40, 8.507059e+37  ;;  %v3299_v35 = vmul.f32 %v3298_v61, %v12120_v43  ;;  %v3337_v39 = vmul.f32 %v3336_v46, %v12212_v60  ;;  %v3352_v63 = vmul.f32 %v3351_v28, %v12212_v60 }
 0x320   : > { %v3238_v49 = vadd.f32 %v12313_v7, %v3237_v24  ;;  %vm3240_vm10 = vweird.f32 %v12313_v7  ;;  %v3277_v5 = vmul.f32 %v12336_v62, %v3276_v1  ;;  %v3373_v9 = vmul.f32 2.1237322e-06, %v12249_v13 }
 0x321   : > { %vm3279_vm11 = vweird.f32 %v12287_v20  ;;  %v3315_v36 = vmul.f32 %v12390_v25, %v12334_v4  ;;  %v3465_v50 = vadd.f32 0.001143296, %v3464_v44  ;;  %v3491_v40 = vmul.f32 %v12388_v27, %v12388_v27  ;;  %vm12421_vm12 = vmor %vm3239_vm8, %vm3240_vm10 }
 0x322   : > { %v3283_v52 = vand.u32 2147483647, %v12287_v20  ;;  %v3285_v10 = vand.u32 2147483648, %v12287_v20  ;;  %v3390_v6 = vmul.f32 %v3389_v17, %v12249_v13  ;;  %v3427_v41 = vadd.f32 0.014752088, %v3426_v12  ;;  %v821_v17 = vpop.f32.mrf.mxu2  ;;  %v17465_v12 = vld [vmem:[#allocation21_spill] sm:$0xff] }
 0x323   : > { %v8360_v61 = vclamps-f32 %v12397_v42, 1.0  ;;  %v3300_v28 = vadd.f32 0.18741608, %v3299_v35  ;;  %v3338_v47 = vadd.f32 0.05243302, %v3337_v39  ;;  %v12425_v31 = vadd.f32 1.0, %v3352_v63 }
 0x324   : > { %v3242_v8 = vsel %vm12421_vm12, %v12313_v7, %v3238_v49  ;;  %v3278_v2 = vadd.f32 %v12336_v62, %v3277_v5  ;;  %vm3280_vm13 = vweird.f32 %v12336_v62  ;;  %v3374_v24 = vadd.f32 0.00028619796, %v3373_v9  ;;  %v17466_v7 = vld [vmem:[#allocation22_spill] sm:$0xff] }
 0x325   : > { %v3316_v1 = vsub.f32 1.0, %v3315_v36  ;;  %v3466_v45 = vmul.f32 %v3465_v50, %v12367_v22  ;;  %v12433_v44 = vmin.f32 %v3491_v40, 16.0  ;;  %v6591_v35 = vpack.c.bf16 %v10447_v59, %v17465_v12  ;;  %v17469_v36 = vld [vmem:[#allocation23_spill] sm:$0xff]  ;;  %v17470_v50 = vld [vmem:[#allocation25_spill] sm:$0xff]  ;;  %vm12455_vm15 = vmor %vm3279_vm11, %vm3280_vm13 }
 0x326   : > { %v3391_v39 = vadd.f32 0.4994258, %v3390_v6  ;;  %v3413_v63 = vmul.f32 2.1237322e-06, %v12324_v33  ;;  %v3428_v46 = vmul.f32 %v3427_v41, %v12324_v33  ;;  %v6592_v49 = vpack.c.bf16 %v10450_v57, %v17466_v7  ;;  %v17473_v7 = vld [vmem:[#allocation24_spill] sm:$0xff] }
 0x327   : > { %vm12441_vm14 = vcmp.eq.f32.partialorder %v3283_v52, 8.507059e+37  ;;  %v3339_v9 = vmul.f32 %v3338_v47, %v12212_v60  ;;  %8833 = vrcp.f32 %v12425_v31  ;;  %6924 = vmatmul.bf16.gmra.mxu0 %v6591_v35  ;;  %v6593_v59 = vpack.c.bf16 %v17470_v50, %v17469_v36  ;;  %v910_v50 = vpop.f32.mrf.mxu3 }
 0x328   : > { %v3247_v40 = vsel %vm12399_vm9, %v3246_v53, %v3242_v8  ;;  %v3286_v52 = vor.u32 1.1754944e-38, %v3285_v10  ;;  %v3301_v6 = vmul.f32 %v3300_v28, %v12120_v43  ;;  %v12461_v41 = vadd.f32 %v821_v17, %v9503_v29  ;;  %7013 = vmatmul.bf16.gmra.mxu1 %v6592_v49  ;;  %v17474_v49 = vld [vmem:[#allocation26_spill] sm:$0xff] }
 0x329   : > { %v3282_v16 = vsel %vm12455_vm15, %v12336_v62, %v3278_v2  ;;  %v3317_v53 = vmul.f32 %v12390_v25, %v3316_v1  ;;  %v3467_v47 = vadd.f32 0.014752088, %v3466_v45  ;;  %v3504_v20 = vmul.f32 3.8918573e-05, %v12433_v44  ;;  %7102 = vmatmul.bf16.gmra.mxu2 %v6593_v59 }
 0x32a   : > { %v3375_v8 = vmul.f32 %v3374_v24, %v12249_v13  ;;  %v3392_v10 = vmul.f32 %v3391_v39, %v12249_v13  ;;  %v3414_v12 = vadd.f32 0.00028619796, %v3413_v63  ;;  %v3429_v43 = vadd.f32 0.112945676, %v3428_v46 }
 0x32b   : > { %v3248_v28 = vmul.f32 %v3247_v40, %v12379_v54  ;;  %v3325_v17 = vand.u32 2147483648, %v12334_v4  ;;  %v3340_v35 = vadd.f32 0.18741608, %v3339_v9  ;;  %v6594_v62 = vpack.c.bf16 %v17474_v49, %v17473_v7 }
 0x32c   : > { %v3287_v2 = vsel %vm12441_vm14, %v3286_v52, %v3282_v16  ;;  %v3302_v1 = vadd.f32 1.1283791, %v3301_v6  ;;  %vm3319_vm0 = vweird.f32 %v12334_v4  ;;  %v12478_v24 = vmul.f32 0.70710677, %v12461_v41 }
 0x32d   : > { %v12480_v45 = vpop.eup %8833  ;;  %v3318_v39 = vadd.f32 %v12390_v25, %v3317_v53  ;;  %vm3320_vm1 = vweird.f32 %v12390_v25  ;;  %v3468_v54 = vmul.f32 %v3467_v47, %v12367_v22  ;;  %v3505_v63 = vadd.f32 0.001143296, %v3504_v20  ;;  %7191 = vmatmul.bf16.gmra.mxu3 %v6594_v62 }
 0x32e   : > { %v3376_v46 = vadd.f32 0.0036580483, %v3375_v8  ;;  %v12485_v9 = vadd.f32 1.0, %v3392_v10  ;;  %v3415_v5 = vmul.f32 %v3414_v12, %v12324_v33  ;;  %v3430_v36 = vmul.f32 %v3429_v43, %v12324_v33  ;;  %vm12494_vm2 = vmor %vm3319_vm0, %vm3320_vm1 }
 0x32f   : > { %v8361_v59 = vclamps-f32 %v3248_v28, 1.0  ;;  %v3323_v40 = vand.u32 2147483647, %v12334_v4  ;;  %v3326_v57 = vor.u32 1.1754944e-38, %v3325_v17  ;;  %v3341_v52 = vmul.f32 %v3340_v35, %v12212_v60 }
 0x330   : > { %v3288_v6 = vmul.f32 %v3287_v2, %v12393_v48  ;;  %v3355_v53 = vmul.f32 %v12480_v45, %v12425_v31  ;;  %v3453_v47 = vmul.f32 2.1237322e-06, %v12367_v22  ;;  %v3531_v20 = vmul.f32 %v12478_v24, %v12478_v24 }
 0x331   : > { %v3322_v60 = vsel %vm12494_vm2, %v12390_v25, %v3318_v39  ;;  %v3469_v8 = vadd.f32 0.112945676, %v3468_v54  ;;  %v3506_v48 = vmul.f32 %v3505_v63, %v12433_v44  ;;  %v12508_v4 = vadd.f32 %v910_v50, %v9512_v34 }
 0x332   : > { %v3377_v10 = vmul.f32 %v3376_v46, %v12249_v13  ;;  %8835 = vrcp.f32 %v12485_v9  ;;  %v3416_v12 = vadd.f32 0.0036580483, %v3415_v5  ;;  %v3431_v43 = vadd.f32 0.4994258, %v3430_v36 }
 0x333   : > { %v6380_v28 = vadd.f32 1.0, %v8360_v61  ;;  %v6381_v17 = vadd.f32 1.0, %v8361_v59  ;;  %v3303_v35 = vmul.f32 %v3302_v1, %v12084_v38  ;;  %vm3324_vm3 = vcmp.eq.f32.partialorder %v3323_v40, 8.507059e+37 }
 0x334   : > { %v3327_v25 = vsel %vm3324_vm3, %v3326_v57, %v3322_v60  ;;  %v3356_v7 = vsub.f32 1.0, %v3355_v53  ;;  %v3454_v49 = vadd.f32 0.00028619796, %v3453_v47  ;;  %v12515_v62 = vmin.f32 %v3531_v20, 16.0 }
 0x335   : > { %v3342_v2 = vadd.f32 1.1283791, %v3341_v52  ;;  %v3470_v39 = vmul.f32 %v3469_v8, %v12367_v22  ;;  %v3507_v54 = vadd.f32 0.014752088, %v3506_v48  ;;  %v12519_v63 = vmul.f32 0.70710677, %v12508_v4 }
 0x336   : > { %v8362_v46 = vclamps-f32 %v3288_v6, 1.0  ;;  %v3378_v5 = vadd.f32 0.05243302, %v3377_v10  ;;  %v3417_v42 = vmul.f32 %v3416_v12, %v12324_v33  ;;  %v3432_v61 = vmul.f32 %v3431_v43, %v12324_v33  ;;  %v645_v43 = vpop.f32.mrf.mxu0 }
 0x337   : > { %v12524_v38 = vmul.f32 %v6380_v28, %v12126_v55  ;;  %v3328_v1 = vmul.f32 %v3327_v25, %v3303_v35  ;;  %v12527_v36 = vmul.f32 0.5, %v12208_v51  ;;  %v12530_v50 = vmul.f32 0.5, %v12252_v11 }
 0x338   : > { %v12532_v59 = vpop.eup %8835  ;;  %v12535_v40 = vmul.f32 %v6381_v17, %v12230_v23  ;;  %v3357_v57 = vmul.f32 %v12480_v45, %v3356_v7  ;;  %v3455_v52 = vmul.f32 %v3454_v49, %v12367_v22  ;;  %v3544_v6 = vmul.f32 3.8918573e-05, %v12515_v62 }
 0x339   : > { %17477 = vst [vmem:[#allocation15_spill] sm:$0xff] %v12524_v38  ;;  %v3343_v55 = vmul.f32 %v3342_v2, %v12164_v15  ;;  %v3471_v16 = vadd.f32 0.4994258, %v3470_v39  ;;  %v3508_v51 = vmul.f32 %v3507_v54, %v12433_v44  ;;  %v3571_v11 = vmul.f32 %v12519_v63, %v12519_v63 }
 0x33a   : > { %17478 = vst [vmem:[#allocation18_spill] sm:$0xff] %v12535_v40  ;;  %v6382_v53 = vadd.f32 1.0, %v8362_v46  ;;  %v3379_v47 = vmul.f32 %v3378_v5, %v12249_v13  ;;  %v3418_v20 = vadd.f32 0.05243302, %v3417_v42  ;;  %v12545_v23 = vadd.f32 1.0, %v3432_v61 }
 0x33b   : > { %v8363_v60 = vclamps-f32 %v3328_v1, 1.0  ;;  %vm3359_vm4 = vweird.f32 %v12425_v31  ;;  %v3365_v8 = vand.u32 2147483648, %v12425_v31  ;;  %v3395_v15 = vmul.f32 %v12532_v59, %v12485_v9 }
 0x33c   : > { %v3358_v48 = vadd.f32 %v12480_v45, %v3357_v57  ;;  %vm3360_vm5 = vweird.f32 %v12480_v45  ;;  %v3456_v10 = vadd.f32 0.0036580483, %v3455_v52  ;;  %v3545_v12 = vadd.f32 0.001143296, %v3544_v6 }
 0x33d   : > { %v3472_v28 = vmul.f32 %v3471_v16, %v12367_v22  ;;  %v3493_v17 = vmul.f32 2.1237322e-06, %v12433_v44  ;;  %v3509_v35 = vadd.f32 0.112945676, %v3508_v51  ;;  %v12555_v25 = vmin.f32 %v3571_v11, 16.0  ;;  %vm12565_vm6 = vmor %vm3359_vm4, %vm3360_vm5  ;;  %v734_v51 = vpop.f32.mrf.mxu1 }
 0x33e   : > { %v3363_v7 = vand.u32 2147483647, %v12425_v31  ;;  %v3380_v49 = vadd.f32 0.18741608, %v3379_v47  ;;  %v3419_v2 = vmul.f32 %v3418_v20, %v12324_v33  ;;  %8837 = vrcp.f32 %v12545_v23 }
 0x33f   : > { %v12561_v39 = vmul.f32 %v6382_v53, %v12234_v30  ;;  %v3366_v46 = vor.u32 1.1754944e-38, %v3365_v8  ;;  %v3396_v5 = vsub.f32 1.0, %v3395_v15  ;;  %v12570_v42 = vadd.f32 %v645_v43, %v9483_v19 }
 0x340   : > { %v6383_v61 = vadd.f32 1.0, %v8363_v60  ;;  %v3362_v1 = vsel %vm12565_vm6, %v12480_v45, %v3358_v48  ;;  %v3457_v57 = vmul.f32 %v3456_v10, %v12367_v22  ;;  %v3546_v30 = vmul.f32 %v3545_v12, %v12515_v62 }
 0x341   : > { %17479 = vst [vmem:[#allocation16_spill] sm:$0xff] %v12561_v39  ;;  %v12577_v52 = vadd.f32 1.0, %v3472_v28  ;;  %v3494_v31 = vadd.f32 0.00028619796, %v3493_v17  ;;  %v3510_v6 = vmul.f32 %v3509_v35, %v12433_v44  ;;  %v3584_v16 = vmul.f32 3.8918573e-05, %v12555_v25 }
 0x342   : > { %vm3364_vm7 = vcmp.eq.f32.partialorder %v3363_v7, 8.507059e+37  ;;  %v3381_v11 = vmul.f32 %v3380_v49, %v12249_v13  ;;  %v3420_v53 = vadd.f32 0.18741608, %v3419_v2  ;;  %v12583_v47 = vmul.f32 0.5, %v12296_v26 }
 0x343   : > { %v3367_v45 = vsel %vm3364_vm7, %v3366_v46, %v3362_v1  ;;  %v3397_v20 = vmul.f32 %v12532_v59, %v3396_v5  ;;  %v12587_v60 = vmul.f32 0.5, %v12370_v0  ;;  %v12590_v8 = vmul.f32 0.70710677, %v12570_v42 }
 0x344   : > { %v12592_v15 = vpop.eup %8837  ;;  %v12595_v48 = vmul.f32 %v6383_v61, %v12310_v14  ;;  %v3458_v10 = vadd.f32 0.05243302, %v3457_v57  ;;  %v3547_v13 = vadd.f32 0.014752088, %v3546_v30  ;;  %v12598_v12 = vadd.f32 %v734_v51, %v9485_v21  ;;  %v823_v57 = vpop.f32.mrf.mxu2 }
 0x345   : > { %8839 = vrcp.f32 %v12577_v52  ;;  %v3495_v26 = vmul.f32 %v3494_v31, %v12433_v44  ;;  %v3511_v43 = vadd.f32 0.4994258, %v3510_v6  ;;  %v3585_v0 = vadd.f32 0.001143296, %v3584_v16 }
 0x346   : > { %17482 = vst [vmem:[#allocation19_spill] sm:$0xff] %v12595_v48  ;;  %v3368_v28 = vmul.f32 %v3367_v45, %v3343_v55  ;;  %v3382_v17 = vadd.f32 1.1283791, %v3381_v11  ;;  %v3405_v35 = vand.u32 2147483648, %v12485_v9  ;;  %v3421_v7 = vmul.f32 %v3420_v53, %v12324_v33 }
 0x347   : > { %v3398_v14 = vadd.f32 %v12532_v59, %v3397_v20  ;;  %vm3400_vm8 = vweird.f32 %v12532_v59  ;;  %v3435_v49 = vmul.f32 %v12592_v15, %v12545_v23  ;;  %v3611_v2 = vmul.f32 %v12590_v8, %v12590_v8 }
 0x348   : > { %vm3399_vm9 = vweird.f32 %v12485_v9  ;;  %v3533_v54 = vmul.f32 2.1237322e-06, %v12515_v62  ;;  %v3548_v55 = vmul.f32 %v3547_v13, %v12515_v62  ;;  %v12614_v46 = vmul.f32 0.70710677, %v12598_v12 }
 0x349   : > { %v3459_v33 = vmul.f32 %v3458_v10, %v12367_v22  ;;  %v3496_v5 = vadd.f32 0.0036580483, %v3495_v26  ;;  %v3512_v61 = vmul.f32 %v3511_v43, %v12433_v44  ;;  %v3586_v1 = vmul.f32 %v3585_v0, %v12555_v25  ;;  %vm12620_vm10 = vmor %vm3399_vm9, %vm3400_vm8 }
 0x34a   : > { %v8364_v30 = vclamps-f32 %v3368_v28, 1.0  ;;  %v3383_v31 = vmul.f32 %v3382_v17, %v12219_v3  ;;  %v3403_v16 = vand.u32 2147483647, %v12485_v9  ;;  %v3422_v51 = vadd.f32 1.1283791, %v3421_v7 }
 0x34b   : > { %v12625_v11 = vpop.eup %8839  ;;  %v3402_v53 = vsel %vm12620_vm10, %v12532_v59, %v3398_v14  ;;  %v3406_v45 = vor.u32 1.1754944e-38, %v3405_v35  ;;  %v3436_v20 = vsub.f32 1.0, %v3435_v49  ;;  %v12630_v10 = vmin.f32 %v3611_v2, 16.0 }
 0x34c   : > { %v3534_v13 = vadd.f32 0.00028619796, %v3533_v54  ;;  %v3549_v26 = vadd.f32 0.112945676, %v3548_v55  ;;  %v3651_v3 = vmul.f32 %v12614_v46, %v12614_v46  ;;  %v12635_v43 = vadd.f32 %v823_v57, %v9503_v29 }
 0x34d   : > { %v3460_v9 = vadd.f32 0.18741608, %v3459_v33  ;;  %v3497_v0 = vmul.f32 %v3496_v5, %v12433_v44  ;;  %v12638_v28 = vadd.f32 1.0, %v3512_v61  ;;  %v3587_v17 = vadd.f32 0.014752088, %v3586_v1 }
 0x34e   : > { %v6384_v7 = vadd.f32 1.0, %v8364_v30  ;;  %vm3404_vm11 = vcmp.eq.f32.partialorder %v3403_v16, 8.507059e+37  ;;  %v12641_v59 = vmul.f32 %v3422_v51, %v12284_v18  ;;  %v3475_v35 = vmul.f32 %v12625_v11, %v12577_v52 }
 0x34f   : > { %v3407_v14 = vsel %vm3404_vm11, %v3406_v45, %v3402_v53  ;;  %v3437_v49 = vmul.f32 %v12592_v15, %v3436_v20  ;;  %v3443_v2 = vand.u32 2147483647, %v12545_v23  ;;  %v3624_v54 = vmul.f32 3.8918573e-05, %v12630_v10 }
 0x350   : > { %v3535_v55 = vmul.f32 %v3534_v13, %v12515_v62  ;;  %v3550_v33 = vmul.f32 %v3549_v26, %v12515_v62  ;;  %v12650_v5 = vmin.f32 %v3651_v3, 16.0  ;;  %v12653_v61 = vmul.f32 0.70710677, %v12635_v43 }
 0x351   : > { %v3461_v18 = vmul.f32 %v3460_v9, %v12367_v22  ;;  %v3498_v1 = vadd.f32 0.05243302, %v3497_v0  ;;  %8841 = vrcp.f32 %v12638_v28  ;;  %v3588_v57 = vmul.f32 %v3587_v17, %v12555_v25 }
 0x352   : > { %v12659_v30 = vmul.f32 %v6384_v7, %v12318_v37  ;;  %vm3439_vm12 = vweird.f32 %v12545_v23  ;;  %v3445_v6 = vand.u32 2147483648, %v12545_v23  ;;  %v3476_v16 = vsub.f32 1.0, %v3475_v35 }
 0x353   : > { %v3408_v51 = vmul.f32 %v3407_v14, %v3383_v31  ;;  %v3438_v53 = vadd.f32 %v12592_v15, %v3437_v49  ;;  %vm3440_vm13 = vweird.f32 %v12592_v15  ;;  %v3625_v45 = vadd.f32 0.001143296, %v3624_v54 }
 0x354   : > { %17485 = vst [vmem:[#allocation17_spill] sm:$0xff] %v12659_v30  ;;  %v3536_v22 = vadd.f32 0.0036580483, %v3535_v55  ;;  %v3551_v20 = vadd.f32 0.4994258, %v3550_v33  ;;  %v3691_v26 = vmul.f32 %v12653_v61, %v12653_v61  ;;  %vm12668_vm14 = vcmp.eq.f32.partialorder %v3443_v2, 8.507059e+37  ;;  %vm12675_vm15 = vmor %vm3439_vm12, %vm3440_vm13 }
 0x355   : > { %v3664_v13 = vmul.f32 3.8918573e-05, %v12650_v5  ;;  %v3462_v3 = vadd.f32 1.1283791, %v3461_v18  ;;  %v3499_v9 = vmul.f32 %v3498_v1, %v12433_v44  ;;  %v3589_v31 = vadd.f32 0.112945676, %v3588_v57 }
 0x356   : > { %v3446_v17 = vor.u32 1.1754944e-38, %v3445_v6  ;;  %v3477_v7 = vmul.f32 %v12625_v11, %v3476_v16  ;;  %v12681_v35 = vmul.f32 0.5, %v12461_v41  ;;  %v3573_v14 = vmul.f32 2.1237322e-06, %v12555_v25 }
 0x357   : > { %v12684_v49 = vpop.eup %8841  ;;  %v8365_v2 = vclamps-f32 %v3408_v51, 1.0  ;;  %v3442_v54 = vsel %vm12675_vm15, %v12592_v15, %v3438_v53  ;;  %v12690_v23 = vmul.f32 0.5, %v12508_v4  ;;  %v3626_v55 = vmul.f32 %v3625_v45, %v12630_v10 }
 0x358   : > { %v3537_v33 = vmul.f32 %v3536_v22, %v12515_v62  ;;  %v3552_v18 = vmul.f32 %v3551_v20, %v12515_v62  ;;  %v3665_v41 = vadd.f32 0.001143296, %v3664_v13  ;;  %v12695_v1 = vmin.f32 %v3691_v26, 16.0  ;;  %v912_v20 = vpop.f32.mrf.mxu3 }
 0x359   : > { %v3463_v57 = vmul.f32 %v3462_v3, %v12321_v32  ;;  %vm3479_vm0 = vweird.f32 %v12577_v52  ;;  %v3500_v6 = vadd.f32 0.18741608, %v3499_v9  ;;  %v3590_v16 = vmul.f32 %v3589_v31, %v12555_v25 }
 0x35a   : > { %v3478_v15 = vadd.f32 %v12625_v11, %v3477_v7  ;;  %vm3480_vm1 = vweird.f32 %v12625_v11  ;;  %v3515_v4 = vmul.f32 %v12684_v49, %v12638_v28  ;;  %v3574_v51 = vadd.f32 0.00028619796, %v3573_v14 }
 0x35b   : > { %v3447_v53 = vsel %vm12668_vm14, %v3446_v17, %v3442_v54  ;;  %v3483_v45 = vand.u32 2147483647, %v12577_v52  ;;  %v3485_v32 = vand.u32 2147483648, %v12577_v52  ;;  %v3627_v22 = vadd.f32 0.014752088, %v3626_v55  ;;  %vm12714_vm2 = vmor %vm3479_vm0, %vm3480_vm1 }
 0x35c   : > { %v3538_v13 = vadd.f32 0.05243302, %v3537_v33  ;;  %v12708_v26 = vadd.f32 1.0, %v3552_v18  ;;  %v3666_v3 = vmul.f32 %v3665_v41, %v12650_v5  ;;  %v3704_v9 = vmul.f32 3.8918573e-05, %v12695_v1 }
 0x35d   : > { %v6385_v31 = vadd.f32 1.0, %v8365_v2  ;;  %v3501_v37 = vmul.f32 %v3500_v6, %v12433_v44  ;;  %v3591_v17 = vadd.f32 0.4994258, %v3590_v16  ;;  %v3613_v7 = vmul.f32 2.1237322e-06, %v12630_v10  ;;  %v648_v44 = vpop.f32.mrf.mxu0 }
 0x35e   : > { %v3482_v14 = vsel %vm12714_vm2, %v12625_v11, %v3478_v15  ;;  %v3516_v54 = vsub.f32 1.0, %v3515_v4  ;;  %v3575_v55 = vmul.f32 %v3574_v51, %v12555_v25  ;;  %v12725_v2 = vadd.f32 %v912_v20, %v9512_v34 }
 0x35f   : > { %v3448_v52 = vmul.f32 %v3447_v53, %v12641_v59  ;;  %vm3484_vm3 = vcmp.eq.f32.partialorder %v3483_v45, 8.507059e+37  ;;  %v3486_v33 = vor.u32 1.1754944e-38, %v3485_v32  ;;  %v3628_v18 = vmul.f32 %v3627_v22, %v12630_v10 }
 0x360   : > { %v3539_v41 = vmul.f32 %v3538_v13, %v12515_v62  ;;  %8843 = vrcp.f32 %v12708_v26  ;;  %v3667_v6 = vadd.f32 0.014752088, %v3666_v3  ;;  %v3705_v16 = vadd.f32 0.001143296, %v3704_v9 }
 0x361   : > { %v3487_v11 = vsel %vm3484_vm3, %v3486_v33, %v3482_v14  ;;  %v3502_v15 = vadd.f32 1.1283791, %v3501_v37  ;;  %v3592_v4 = vmul.f32 %v3591_v17, %v12555_v25  ;;  %v3614_v51 = vadd.f32 0.00028619796, %v3613_v7  ;;  %v737_v17 = vpop.f32.mrf.mxu1 }
 0x362   : > { %v3517_v20 = vmul.f32 %v12684_v49, %v3516_v54  ;;  %v3576_v0 = vadd.f32 0.0036580483, %v3575_v55  ;;  %v12734_v59 = vmul.f32 0.70710677, %v12725_v2  ;;  %v12737_v53 = vadd.f32 %v648_v44, %v9483_v19 }
 0x363   : > { %v8366_v45 = vclamps-f32 %v3448_v52, 1.0  ;;  %vm3519_vm4 = vweird.f32 %v12638_v28  ;;  %v12741_v32 = vmul.f32 0.5, %v12570_v42  ;;  %v3629_v22 = vadd.f32 0.112945676, %v3628_v18 }
 0x364   : > { %v3525_v13 = vand.u32 2147483648, %v12638_v28  ;;  %v3540_v3 = vadd.f32 0.18741608, %v3539_v41  ;;  %v3668_v9 = vmul.f32 %v3667_v6, %v12650_v5  ;;  %v3706_v37 = vmul.f32 %v3705_v16, %v12695_v1 }
 0x365   : > { %v3488_v7 = vmul.f32 %v3487_v11, %v3463_v57  ;;  %vm3520_vm5 = vweird.f32 %v12684_v49  ;;  %v12747_v14 = vadd.f32 1.0, %v3592_v4  ;;  %v3615_v54 = vmul.f32 %v3614_v51, %v12630_v10 }
 0x366   : > { %v12750_v55 = vpop.eup %8843  ;;  %v3518_v42 = vadd.f32 %v12684_v49, %v3517_v20  ;;  %v3577_v52 = vmul.f32 %v3576_v0, %v12555_v25  ;;  %v3731_v33 = vmul.f32 %v12734_v59, %v12734_v59  ;;  %v12757_v18 = vmul.f32 0.70710677, %v12737_v53  ;;  %vm12769_vm6 = vmor %vm3519_vm4, %vm3520_vm5 }
 0x367   : > { %v6386_v44 = vadd.f32 1.0, %v8366_v45  ;;  %v3523_v57 = vand.u32 2147483647, %v12638_v28  ;;  %v3630_v41 = vmul.f32 %v3629_v22, %v12630_v10  ;;  %v12762_v6 = vadd.f32 %v737_v17, %v9485_v21 }
 0x368   : > { %v3526_v16 = vor.u32 1.1754944e-38, %v3525_v13  ;;  %v3541_v11 = vmul.f32 %v3540_v3, %v12515_v62  ;;  %v3669_v4 = vadd.f32 0.112945676, %v3668_v9  ;;  %v3707_v51 = vadd.f32 0.014752088, %v3706_v37 }
 0x369   : > { %v8367_v20 = vclamps-f32 %v3488_v7, 1.0  ;;  %v3555_v45 = vmul.f32 %v12750_v55, %v12708_v26  ;;  %8845 = vrcp.f32 %v12747_v14  ;;  %v3616_v22 = vadd.f32 0.0036580483, %v3615_v54 }
 0x36a   : > { %v3522_v62 = vsel %vm12769_vm6, %v12684_v49, %v3518_v42  ;;  %v3578_v13 = vadd.f32 0.05243302, %v3577_v52  ;;  %v12779_v3 = vmin.f32 %v3731_v33, 16.0  ;;  %v3771_v28 = vmul.f32 %v12757_v18, %v12757_v18 }
 0x36b   : > { %v12784_v9 = vmul.f32 %v6385_v31, %v12527_v36  ;;  %v3631_v37 = vadd.f32 0.4994258, %v3630_v41  ;;  %v3653_v17 = vmul.f32 2.1237322e-06, %v12650_v5  ;;  %v12788_v7 = vmul.f32 0.70710677, %v12762_v6 }
 0x36c   : > { %vm3524_vm7 = vcmp.eq.f32.partialorder %v3523_v57, 8.507059e+37  ;;  %v3542_v54 = vadd.f32 1.1283791, %v3541_v11  ;;  %v3670_v0 = vmul.f32 %v3669_v4, %v12650_v5  ;;  %v3708_v49 = vmul.f32 %v3707_v51, %v12695_v1 }
 0x36d   : > { %17494 = vst [vmem:[#allocation20_spill] sm:$0xff] %v12784_v9  ;;  %v6387_v42 = vadd.f32 1.0, %v8367_v20  ;;  %v3527_v52 = vsel %vm3524_vm7, %v3526_v16, %v3522_v62  ;;  %v3556_v33 = vsub.f32 1.0, %v3555_v45  ;;  %v3617_v39 = vmul.f32 %v3616_v22, %v12630_v10 }
 0x36e   : > { %v3503_v36 = vmul.f32 %v3502_v15, %v12388_v27  ;;  %v3579_v31 = vmul.f32 %v3578_v13, %v12555_v25  ;;  %v3744_v41 = vmul.f32 3.8918573e-05, %v12779_v3  ;;  %v12796_v9 = vmin.f32 %v3771_v28, 16.0 }
 0x36f   : > { %v12798_v40 = vpop.eup %8845  ;;  %v12801_v57 = vmul.f32 %v6386_v44, %v12530_v50  ;;  %v3632_v11 = vmul.f32 %v3631_v37, %v12630_v10  ;;  %v3654_v4 = vadd.f32 0.00028619796, %v3653_v17  ;;  %v3811_v16 = vmul.f32 %v12788_v7, %v12788_v7 }
 0x370   : > { %v3528_v51 = vmul.f32 %v3527_v52, %v3503_v36  ;;  %v12807_v27 = vmul.f32 0.5, %v12598_v12  ;;  %v3671_v15 = vadd.f32 0.4994258, %v3670_v0  ;;  %v3709_v20 = vadd.f32 0.112945676, %v3708_v49 }
 0x371   : > { %17495 = vst [vmem:[#allocation21_spill] sm:$0xff] %v12801_v57  ;;  %v12810_v45 = vmul.f32 %v6387_v42, %v12583_v47  ;;  %v3543_v22 = vmul.f32 %v3542_v54, %v12478_v24  ;;  %v3557_v50 = vmul.f32 %v12750_v55, %v3556_v33  ;;  %v3618_v44 = vadd.f32 0.05243302, %v3617_v39 }
 0x372   : > { %v3580_v62 = vadd.f32 0.18741608, %v3579_v31  ;;  %v3595_v13 = vmul.f32 %v12798_v40, %v12747_v14  ;;  %v3745_v28 = vadd.f32 0.001143296, %v3744_v41  ;;  %v3784_v37 = vmul.f32 3.8918573e-05, %v12796_v9 }
 0x373   : > { %17496 = vst [vmem:[#allocation22_spill] sm:$0xff] %v12810_v45  ;;  %vm3559_vm8 = vweird.f32 %v12708_v26  ;;  %v12818_v12 = vadd.f32 1.0, %v3632_v11  ;;  %v3655_v17 = vmul.f32 %v3654_v4, %v12650_v5  ;;  %v12821_v47 = vmin.f32 %v3811_v16, 16.0 }
 0x374   : > { %v8368_v0 = vclamps-f32 %v3528_v51, 1.0  ;;  %v3563_v24 = vand.u32 2147483647, %v12708_v26  ;;  %v3672_v39 = vmul.f32 %v3671_v15, %v12650_v5  ;;  %v3710_v54 = vmul.f32 %v3709_v20, %v12695_v1  ;;  %v826_v51 = vpop.f32.mrf.mxu2 }
 0x375   : > { %v3558_v49 = vadd.f32 %v12750_v55, %v3557_v50  ;;  %vm3560_vm9 = vweird.f32 %v12750_v55  ;;  %v3565_v42 = vand.u32 2147483648, %v12708_v26  ;;  %v3619_v52 = vmul.f32 %v3618_v44, %v12630_v10 }
 0x376   : > { %v3581_v33 = vmul.f32 %v3580_v62, %v12555_v25  ;;  %v3596_v36 = vsub.f32 1.0, %v3595_v13  ;;  %v3746_v31 = vmul.f32 %v3745_v28, %v12779_v3  ;;  %v3785_v41 = vadd.f32 0.001143296, %v3784_v37  ;;  %vm12837_vm10 = vmor %vm3559_vm8, %vm3560_vm9 }
 0x377   : > { %8847 = vrcp.f32 %v12818_v12  ;;  %v3656_v11 = vadd.f32 0.0036580483, %v3655_v17  ;;  %v3693_v4 = vmul.f32 2.1237322e-06, %v12695_v1  ;;  %v3824_v16 = vmul.f32 3.8918573e-05, %v12821_v47 }
 0x378   : > { %v6388_v15 = vadd.f32 1.0, %v8368_v0  ;;  %vm12841_vm11 = vcmp.eq.f32.partialorder %v3563_v24, 8.507059e+37  ;;  %v12845_v50 = vadd.f32 1.0, %v3672_v39  ;;  %v3711_v44 = vadd.f32 0.4994258, %v3710_v54 }
 0x379   : > { %v3562_v62 = vsel %vm12837_vm10, %v12750_v55, %v3558_v49  ;;  %v3566_v13 = vor.u32 1.1754944e-38, %v3565_v42  ;;  %v3620_v28 = vadd.f32 0.18741608, %v3619_v52  ;;  %v12851_v37 = vmul.f32 0.5, %v12635_v43 }
 0x37a   : > { %v3597_v26 = vmul.f32 %v12798_v40, %v3596_v36  ;;  %v3747_v17 = vadd.f32 0.014752088, %v3746_v31  ;;  %v3786_v0 = vmul.f32 %v3785_v41, %v12796_v9  ;;  %v12856_v24 = vadd.f32 %v826_v51, %v9503_v29 }
 0x37b   : > { %v3582_v39 = vadd.f32 1.1283791, %v3581_v33  ;;  %v3657_v54 = vmul.f32 %v3656_v11, %v12650_v5  ;;  %v3694_v45 = vadd.f32 0.00028619796, %v3693_v4  ;;  %v3825_v57 = vadd.f32 0.001143296, %v3824_v16 }
 0x37c   : > { %v12860_v55 = vmul.f32 %v6388_v15, %v12587_v60  ;;  %v3603_v49 = vand.u32 2147483647, %v12747_v14  ;;  %8849 = vrcp.f32 %v12845_v50  ;;  %v3712_v43 = vmul.f32 %v3711_v44, %v12695_v1 }
 0x37d   : > { %v12865_v42 = vpop.eup %8847  ;;  %v3567_v52 = vsel %vm12841_vm11, %v3566_v13, %v3562_v62  ;;  %vm3600_vm12 = vweird.f32 %v12798_v40  ;;  %v3605_v33 = vand.u32 2147483648, %v12747_v14  ;;  %v3621_v36 = vmul.f32 %v3620_v28, %v12630_v10 }
 0x37e   : > { %17501 = vst [vmem:[#allocation23_spill] sm:$0xff] %v12860_v55  ;;  %v3598_v60 = vadd.f32 %v12798_v40, %v3597_v26  ;;  %v3748_v31 = vmul.f32 %v3747_v17, %v12779_v3  ;;  %v3787_v41 = vadd.f32 0.014752088, %v3786_v0  ;;  %v12875_v11 = vmul.f32 0.70710677, %v12856_v24 }
 0x37f   : > { %v3658_v4 = vadd.f32 0.05243302, %v3657_v54  ;;  %v3695_v16 = vmul.f32 %v3694_v45, %v12695_v1  ;;  %v3733_v51 = vmul.f32 2.1237322e-06, %v12779_v3  ;;  %v3826_v15 = vmul.f32 %v3825_v57, %v12821_v47 }
 0x380   : > { %v3568_v20 = vmul.f32 %v3567_v52, %v3543_v22  ;;  %vm3599_vm13 = vweird.f32 %v12747_v14  ;;  %v3635_v10 = vmul.f32 %v12865_v42, %v12818_v12  ;;  %v12883_v25 = vadd.f32 1.0, %v3712_v43 }
 0x381   : > { %v3583_v44 = vmul.f32 %v3582_v39, %v12519_v63  ;;  %vm12888_vm14 = vmor %vm3599_vm13, %vm3600_vm12  ;;  %vm12892_vm15 = vcmp.eq.f32.partialorder %v3603_v49, 8.507059e+37  ;;  %v3606_v57 = vor.u32 1.1754944e-38, %v3605_v33  ;;  %v3622_v22 = vadd.f32 1.1283791, %v3621_v36 }
 0x382   : > { %v12896_v14 = vpop.eup %8849  ;;  %v3602_v13 = vsel %vm12888_vm14, %v12798_v40, %v3598_v60  ;;  %v3749_v28 = vadd.f32 0.112945676, %v3748_v31  ;;  %v3788_v63 = vmul.f32 %v3787_v41, %v12796_v9  ;;  %v3851_v26 = vmul.f32 %v12875_v11, %v12875_v11 }
 0x383   : > { %v3659_v17 = vmul.f32 %v3658_v4, %v12650_v5  ;;  %v3696_v0 = vadd.f32 0.0036580483, %v3695_v16  ;;  %v3734_v39 = vadd.f32 0.00028619796, %v3733_v51  ;;  %v3827_v54 = vadd.f32 0.014752088, %v3826_v15 }
 0x384   : > { %v8369_v49 = vclamps-f32 %v3568_v20, 1.0  ;;  %v3636_v43 = vsub.f32 1.0, %v3635_v10  ;;  %v3645_v52 = vand.u32 2147483648, %v12818_v12  ;;  %8851 = vrcp.f32 %v12883_v25  ;;  %v915_v10 = vpop.f32.mrf.mxu3 }
 0x385   : > { %v3607_v40 = vsel %vm12892_vm15, %v3606_v57, %v3602_v13  ;;  %v12910_v33 = vmul.f32 %v3622_v22, %v12590_v8  ;;  %v3675_v36 = vmul.f32 %v12896_v14, %v12845_v50  ;;  %v3773_v60 = vmul.f32 2.1237322e-06, %v12796_v9 }
 0x386   : > { %vm3639_vm0 = vweird.f32 %v12818_v12  ;;  %v3643_v31 = vand.u32 2147483647, %v12818_v12  ;;  %v3750_v41 = vmul.f32 %v3749_v28, %v12779_v3  ;;  %v3789_v4 = vadd.f32 0.112945676, %v3788_v63 }
 0x387   : > { %v12918_v16 = vmin.f32 %v3851_v26, 16.0  ;;  %v3660_v51 = vadd.f32 0.18741608, %v3659_v17  ;;  %v3697_v15 = vmul.f32 %v3696_v0, %v12695_v1  ;;  %v3735_v8 = vmul.f32 %v3734_v39, %v12779_v3 }
 0x388   : > { %v3828_v20 = vmul.f32 %v3827_v54, %v12821_v47  ;;  %v6389_v62 = vadd.f32 1.0, %v8369_v49  ;;  %v3608_v45 = vmul.f32 %v3607_v40, %v3583_v44  ;;  %v3637_v57 = vmul.f32 %v12865_v42, %v3636_v43 }
 0x389   : > { %v3646_v22 = vor.u32 1.1754944e-38, %v3645_v52  ;;  %v3676_v13 = vsub.f32 1.0, %v3675_v36  ;;  %v12925_v55 = vmul.f32 0.5, %v12725_v2  ;;  %v12928_v28 = vmul.f32 0.5, %v12737_v53 }
 0x38a   : > { %v3774_v63 = vadd.f32 0.00028619796, %v3773_v60  ;;  %v12930_v26 = vpop.eup %8851  ;;  %v3751_v17 = vadd.f32 0.4994258, %v3750_v41  ;;  %v3790_v0 = vmul.f32 %v3789_v4, %v12796_v9  ;;  %v3864_v39 = vmul.f32 3.8918573e-05, %v12918_v16  ;;  %v650_v4 = vpop.f32.mrf.mxu0 }
 0x38b   : > { %v12935_v44 = vadd.f32 %v915_v10, %v9512_v34  ;;  %vm12937_vm1 = vcmp.eq.f32.partialorder %v3643_v31, 8.507059e+37  ;;  %v3661_v2 = vmul.f32 %v3660_v51, %v12650_v5  ;;  %v3698_v49 = vadd.f32 0.05243302, %v3697_v15 }
 0x38c   : > { %v3736_v53 = vadd.f32 0.0036580483, %v3735_v8  ;;  %v3829_v43 = vadd.f32 0.112945676, %v3828_v20  ;;  %v12943_v52 = vmul.f32 %v6389_v62, %v12681_v35  ;;  %v8370_v40 = vclamps-f32 %v3608_v45, 1.0 }
 0x38d   : > { %v3638_v36 = vadd.f32 %v12865_v42, %v3637_v57  ;;  %vm3640_vm2 = vweird.f32 %v12865_v42  ;;  %v3677_v60 = vmul.f32 %v12896_v14, %v3676_v13  ;;  %v3715_v31 = vmul.f32 %v12930_v26, %v12883_v25 }
 0x38e   : > { %17508 = vst [vmem:[#allocation25_spill] sm:$0xff] %v12943_v52  ;;  %v3775_v41 = vmul.f32 %v3774_v63, %v12796_v9  ;;  %v3813_v5 = vmul.f32 2.1237322e-06, %v12821_v47  ;;  %v3752_v51 = vmul.f32 %v3751_v17, %v12779_v3  ;;  %v3791_v15 = vadd.f32 0.4994258, %v3790_v0  ;;  %vm12958_vm3 = vmor %vm3639_vm0, %vm3640_vm2 }
 0x38f   : > { %v3865_v35 = vadd.f32 0.001143296, %v3864_v39  ;;  %v12954_v8 = vmul.f32 0.70710677, %v12935_v44  ;;  %v3662_v10 = vadd.f32 1.1283791, %v3661_v2  ;;  %v3699_v62 = vmul.f32 %v3698_v49, %v12695_v1 }
 0x390   : > { %v3737_v45 = vmul.f32 %v3736_v53, %v12779_v3  ;;  %v3830_v57 = vmul.f32 %v3829_v43, %v12821_v47  ;;  %v3642_v13 = vsel %vm12958_vm3, %v12865_v42, %v3638_v36  ;;  %vm3680_vm4 = vweird.f32 %v12896_v14 }
 0x391   : > { %v3683_v63 = vand.u32 2147483647, %v12845_v50  ;;  %v12971_v12 = vadd.f32 %v650_v4, %v9483_v19  ;;  %v3678_v17 = vadd.f32 %v12896_v14, %v3677_v60  ;;  %v3716_v0 = vsub.f32 1.0, %v3715_v31 }
 0x392   : > { %v3776_v39 = vadd.f32 0.0036580483, %v3775_v41  ;;  %v3814_v2 = vadd.f32 0.00028619796, %v3813_v5  ;;  %v12974_v49 = vadd.f32 1.0, %v3752_v51  ;;  %v3792_v53 = vmul.f32 %v3791_v15, %v12796_v9 }
 0x393   : > { %v3866_v43 = vmul.f32 %v3865_v35, %v12918_v16  ;;  %v3891_v42 = vmul.f32 %v12954_v8, %v12954_v8  ;;  %vm3679_vm5 = vweird.f32 %v12845_v50  ;;  %v3685_v36 = vand.u32 2147483648, %v12845_v50 }
 0x394   : > { %v3738_v4 = vadd.f32 0.05243302, %v3737_v45  ;;  %v3831_v20 = vadd.f32 0.4994258, %v3830_v57  ;;  %v6390_v52 = vadd.f32 1.0, %v8370_v40  ;;  %v3647_v60 = vsel %vm12937_vm1, %v3646_v22, %v3642_v13  ;;  %vm12986_vm6 = vmor %vm3679_vm5, %vm3680_vm4 }
 0x395   : > { %v3700_v41 = vadd.f32 0.18741608, %v3699_v62  ;;  %v12991_v5 = vmul.f32 0.70710677, %v12971_v12  ;;  %v3682_v50 = vsel %vm12986_vm6, %v12896_v14, %v3678_v17  ;;  %v3717_v51 = vmul.f32 %v12930_v26, %v3716_v0 }
 0x396   : > { %v3777_v40 = vmul.f32 %v3776_v39, %v12796_v9  ;;  %v3815_v22 = vmul.f32 %v3814_v2, %v12821_v47  ;;  %8853 = vrcp.f32 %v12974_v49  ;;  %v13000_v54 = vadd.f32 1.0, %v3792_v53  ;;  %v739_v39 = vpop.f32.mrf.mxu1 }
 0x397   : > { %v3867_v15 = vadd.f32 0.014752088, %v3866_v43  ;;  %v13002_v35 = vmin.f32 %v3891_v42, 16.0  ;;  %vm3684_vm7 = vcmp.eq.f32.partialorder %v3683_v63, 8.507059e+37  ;;  %v3686_v62 = vor.u32 1.1754944e-38, %v3685_v36 }
 0x398   : > { %v3739_v45 = vmul.f32 %v3738_v4, %v12779_v3  ;;  %v3832_v57 = vmul.f32 %v3831_v20, %v12821_v47  ;;  %v3648_v14 = vmul.f32 %v3647_v60, %v12910_v33  ;;  %v3701_v13 = vmul.f32 %v3700_v41, %v12695_v1 }
 0x399   : > { %v3725_v17 = vand.u32 2147483648, %v12883_v25  ;;  %v3931_v0 = vmul.f32 %v12991_v5, %v12991_v5  ;;  %v3687_v2 = vsel %vm3684_vm7, %v3686_v62, %v3682_v50  ;;  %vm3720_vm8 = vweird.f32 %v12930_v26 }
 0x39a   : > { %v3778_v53 = vadd.f32 0.05243302, %v3777_v40  ;;  %v3816_v63 = vadd.f32 0.0036580483, %v3815_v22  ;;  %v3718_v43 = vadd.f32 %v12930_v26, %v3717_v51  ;;  %8855 = vrcp.f32 %v13000_v54 }
 0x39b   : > { %v3868_v42 = vmul.f32 %v3867_v15, %v12918_v16  ;;  %v3904_v33 = vmul.f32 3.8918573e-05, %v13002_v35  ;;  %v3663_v1 = vmul.f32 %v3662_v10, %v12614_v46  ;;  %v3740_v36 = vadd.f32 0.18741608, %v3739_v45 }
 0x39c   : > { %v13017_v4 = vadd.f32 1.0, %v3832_v57  ;;  %v13020_v20 = vadd.f32 %v739_v39, %v9485_v21  ;;  %v13022_v60 = vpop.eup %8853  ;;  %v8371_v31 = vclamps-f32 %v3648_v14, 1.0  ;;  %vm3719_vm9 = vweird.f32 %v12883_v25 }
 0x39d   : > { %v3723_v41 = vand.u32 2147483647, %v12883_v25  ;;  %v13026_v50 = vmin.f32 %v3931_v0, 16.0  ;;  %v3688_v51 = vmul.f32 %v3687_v2, %v3663_v1  ;;  %v3702_v40 = vadd.f32 1.1283791, %v3701_v13  ;;  %vm13030_vm10 = vmor %vm3719_vm9, %vm3720_vm8 }
 0x39e   : > { %v3726_v10 = vor.u32 1.1754944e-38, %v3725_v17  ;;  %v3817_v22 = vmul.f32 %v3816_v63, %v12821_v47  ;;  %v3722_v15 = vsel %vm13030_vm10, %v12930_v26, %v3718_v43  ;;  %v3779_v62 = vmul.f32 %v3778_v53, %v12796_v9 }
 0x39f   : > { %v3869_v25 = vadd.f32 0.112945676, %v3868_v42  ;;  %v3905_v45 = vadd.f32 0.001143296, %v3904_v33  ;;  %v3741_v57 = vmul.f32 %v3740_v36, %v12779_v3  ;;  %v3755_v14 = vmul.f32 %v13022_v60, %v12974_v49 }
 0x3a0   : > { %8857 = vrcp.f32 %v13017_v4  ;;  %v13044_v13 = vmul.f32 0.70710677, %v13020_v20  ;;  %v13046_v17 = vpop.eup %8855  ;;  %v13049_v0 = vmul.f32 %v6390_v52, %v12690_v23  ;;  %v6391_v26 = vadd.f32 1.0, %v8371_v31 }
 0x3a1   : > { %vm3724_vm11 = vcmp.eq.f32.partialorder %v3723_v41, 8.507059e+37  ;;  %v3944_v39 = vmul.f32 3.8918573e-05, %v13026_v50  ;;  %v3703_v2 = vmul.f32 %v3702_v40, %v12653_v61  ;;  %v3818_v53 = vadd.f32 0.05243302, %v3817_v22 }
 0x3a2   : > { %17515 = vst [vmem:[#allocation24_spill] sm:$0xff] %v13049_v0  ;;  %v3727_v3 = vsel %vm3724_vm11, %v3726_v10, %v3722_v15  ;;  %v3853_v63 = vmul.f32 2.1237322e-06, %v12918_v16  ;;  %v8372_v43 = vclamps-f32 %v3688_v51, 1.0  ;;  %v3780_v42 = vadd.f32 0.18741608, %v3779_v62 }
 0x3a3   : > { %v3870_v33 = vmul.f32 %v3869_v25, %v12918_v16  ;;  %v3906_v1 = vmul.f32 %v3905_v45, %v13002_v35  ;;  %v3742_v36 = vadd.f32 1.1283791, %v3741_v57  ;;  %v3756_v46 = vsub.f32 1.0, %v3755_v14 }
 0x3a4   : > { %v3795_v23 = vmul.f32 %v13046_v17, %v13000_v54  ;;  %v3971_v52 = vmul.f32 %v13044_v13, %v13044_v13  ;;  %v13061_v61 = vmul.f32 %v6391_v26, %v12741_v32  ;;  %v13063_v31 = vmul.f32 %v3727_v3, %v3703_v2  ;;  %v828_v2 = vpop.f32.mrf.mxu2 }
 0x3a5   : > { %v13066_v41 = vmul.f32 0.5, %v12762_v6  ;;  %v3945_v51 = vadd.f32 0.001143296, %v3944_v39  ;;  %v3763_v10 = vand.u32 2147483647, %v12974_v49  ;;  %v3765_v22 = vand.u32 2147483648, %v12974_v49 }
 0x3a6   : > { %17516 = vst [vmem:[#allocation26_spill] sm:$0xff] %v13061_v61  ;;  %v13068_v40 = vpop.eup %8857  ;;  %v3819_v15 = vmul.f32 %v3818_v53, %v12821_v47  ;;  %v3854_v62 = vadd.f32 0.00028619796, %v3853_v63  ;;  %v13073_v25 = vadd.f32 1.0, %v8372_v43  ;;  %v3781_v32 = vmul.f32 %v3780_v42, %v12796_v9 }
 0x3a7   : > { %v3871_v45 = vadd.f32 0.4994258, %v3870_v33  ;;  %v3907_v57 = vadd.f32 0.014752088, %v3906_v1  ;;  %v13077_v14 = vmul.f32 %v3742_v36, %v12734_v59  ;;  %v3757_v6 = vmul.f32 %v13022_v60, %v3756_v46 }
 0x3a8   : > { %v3796_v26 = vsub.f32 1.0, %v3795_v23  ;;  %v13080_v39 = vmin.f32 %v3971_v52, 16.0  ;;  %vm3759_vm12 = vweird.f32 %v12974_v49  ;;  %v3835_v53 = vmul.f32 %v13068_v40, %v13017_v4 }
 0x3a9   : > { %v3946_v9 = vmul.f32 %v3945_v51, %v13026_v50  ;;  %vm13087_vm13 = vcmp.eq.f32.partialorder %v3763_v10, 8.507059e+37  ;;  %v3766_v59 = vor.u32 1.1754944e-38, %v3765_v22  ;;  %v3820_v43 = vadd.f32 0.18741608, %v3819_v15 }
 0x3aa   : > { %v3855_v42 = vmul.f32 %v3854_v62, %v12918_v16  ;;  %v3893_v33 = vmul.f32 2.1237322e-06, %v13002_v35  ;;  %v3782_v1 = vadd.f32 1.1283791, %v3781_v32  ;;  %v3872_v36 = vmul.f32 %v3871_v45, %v12918_v16  ;;  %v917_v32 = vpop.f32.mrf.mxu3 }
 0x3ab   : > { %v3908_v46 = vmul.f32 %v3907_v57, %v13002_v35  ;;  %v13096_v23 = vadd.f32 %v828_v2, %v9503_v29  ;;  %v3758_v52 = vadd.f32 %v13022_v60, %v3757_v6  ;;  %vm3760_vm14 = vweird.f32 %v13022_v60 }
 0x3ac   : > { %v3797_v51 = vmul.f32 %v13046_v17, %v3796_v26  ;;  %v3984_v10 = vmul.f32 3.8918573e-05, %v13080_v39  ;;  %vm3799_vm15 = vweird.f32 %v13000_v54  ;;  %v3803_v22 = vand.u32 2147483647, %v13000_v54  ;;  %vm13108_vm0 = vmor %vm3759_vm12, %vm3760_vm14 }
 0x3ad   : > { %v3836_v15 = vsub.f32 1.0, %v3835_v53  ;;  %v3947_v62 = vadd.f32 0.014752088, %v3946_v9  ;;  %v3805_v45 = vand.u32 2147483648, %v13000_v54  ;;  %v3821_v57 = vmul.f32 %v3820_v43, %v12821_v47 }
 0x3ae   : > { %v3856_v2 = vadd.f32 0.0036580483, %v3855_v42  ;;  %v3894_v3 = vadd.f32 0.00028619796, %v3893_v33  ;;  %vm3800_vm1 = vweird.f32 %v13046_v17  ;;  %v13113_v26 = vadd.f32 1.0, %v3872_v36 }
 0x3af   : > { %v3909_v0 = vadd.f32 0.112945676, %v3908_v46  ;;  %v13116_v53 = vmul.f32 0.70710677, %v13096_v23  ;;  %v3762_v47 = vsel %vm13108_vm0, %v13022_v60, %v3758_v52  ;;  %v3798_v9 = vadd.f32 %v13046_v17, %v3797_v51  ;;  %vm13140_vm3 = vmor %vm3799_vm15, %vm3800_vm1 }
 0x3b0   : > { %v3985_v43 = vadd.f32 0.001143296, %v3984_v10  ;;  %v13123_v49 = vadd.f32 %v917_v32, %v9512_v34  ;;  %vm13125_vm2 = vcmp.eq.f32.partialorder %v3803_v22, 8.507059e+37  ;;  %v3837_v33 = vmul.f32 %v13068_v40, %v3836_v15 }
 0x3b1   : > { %v3933_v36 = vmul.f32 2.1237322e-06, %v13026_v50  ;;  %v3948_v46 = vmul.f32 %v3947_v62, %v13026_v50  ;;  %v3806_v61 = vor.u32 1.1754944e-38, %v3805_v45  ;;  %v3822_v30 = vadd.f32 1.1283791, %v3821_v57 }
 0x3b2   : > { %v3857_v60 = vmul.f32 %v3856_v2, %v12918_v16  ;;  %v3895_v52 = vmul.f32 %v3894_v3, %v13002_v35  ;;  %v3767_v51 = vsel %vm13087_vm13, %v3766_v59, %v3762_v47  ;;  %8859 = vrcp.f32 %v13113_v26 }
 0x3b3   : > { %v3910_v22 = vmul.f32 %v3909_v0, %v13002_v35  ;;  %v4011_v15 = vmul.f32 %v13116_v53, %v13116_v53  ;;  %v3802_v3 = vsel %vm13140_vm3, %v13046_v17, %v3798_v9  ;;  %vm3840_vm4 = vweird.f32 %v13068_v40 }
 0x3b4   : > { %v3986_v63 = vmul.f32 %v3985_v43, %v13080_v39  ;;  %v13154_v54 = vmul.f32 0.70710677, %v13123_v49  ;;  %v3838_v59 = vadd.f32 %v13068_v40, %v3837_v33  ;;  %v3934_v62 = vadd.f32 0.00028619796, %v3933_v36 }
 0x3b5   : > { %v3949_v32 = vadd.f32 0.112945676, %v3948_v46  ;;  %v3973_v0 = vmul.f32 2.1237322e-06, %v13080_v39  ;;  %vm3839_vm5 = vweird.f32 %v13017_v4  ;;  %v3845_v45 = vand.u32 2147483648, %v13017_v4 }
 0x3b6   : > { %v3858_v57 = vadd.f32 0.05243302, %v3857_v60  ;;  %v3896_v2 = vadd.f32 0.0036580483, %v3895_v52  ;;  %v3807_v17 = vsel %vm13125_vm2, %v3806_v61, %v3802_v3  ;;  %v3843_v6 = vand.u32 2147483647, %v13017_v4  ;;  %vm13169_vm6 = vmor %vm3839_vm5, %vm3840_vm4 }
 0x3b7   : > { %v3911_v47 = vadd.f32 0.4994258, %v3910_v22  ;;  %v13163_v9 = vmin.f32 %v4011_v15, 16.0  ;;  %v3768_v43 = vmul.f32 %v3767_v51, %v13077_v14  ;;  %v3783_v33 = vmul.f32 %v3782_v1, %v12757_v18 }
 0x3b8   : > { %v3987_v46 = vadd.f32 0.014752088, %v3986_v63  ;;  %v4051_v42 = vmul.f32 %v13154_v54, %v13154_v54  ;;  %v13175_v61 = vpop.eup %8859  ;;  %v3842_v4 = vsel %vm13169_vm6, %v13068_v40, %v3838_v59  ;;  %v3935_v14 = vmul.f32 %v3934_v62, %v13026_v50 }
 0x3b9   : > { %v3950_v18 = vmul.f32 %v3949_v32, %v13026_v50  ;;  %v3974_v1 = vadd.f32 0.00028619796, %v3973_v0  ;;  %v3808_v60 = vmul.f32 %v3807_v17, %v3783_v33  ;;  %v3846_v52 = vor.u32 1.1754944e-38, %v3845_v45  ;;  %v653_v32 = vpop.f32.mrf.mxu0 }
 0x3ba   : > { %v3859_v51 = vmul.f32 %v3858_v57, %v12918_v16  ;;  %v3897_v10 = vmul.f32 %v3896_v2, %v13002_v35  ;;  %v3823_v22 = vmul.f32 %v3822_v30, %v12788_v7  ;;  %vm3844_vm7 = vcmp.eq.f32.partialorder %v3843_v6, 8.507059e+37 }
 0x3bb   : > { %v3912_v15 = vmul.f32 %v3911_v47, %v13002_v35  ;;  %v4024_v3 = vmul.f32 3.8918573e-05, %v13163_v9  ;;  %v3847_v63 = vsel %vm3844_vm7, %v3846_v52, %v3842_v4  ;;  %v3875_v40 = vmul.f32 %v13175_v61, %v13113_v26 }
 0x3bc   : > { %v3988_v59 = vmul.f32 %v3987_v46, %v13080_v39  ;;  %v13190_v62 = vmin.f32 %v4051_v42, 16.0  ;;  %v8374_v0 = vclamps-f32 %v3768_v43, 1.0  ;;  %v3936_v45 = vadd.f32 0.0036580483, %v3935_v14 }
 0x3bd   : > { %v3951_v57 = vadd.f32 0.4994258, %v3950_v18  ;;  %v3975_v2 = vmul.f32 %v3974_v1, %v13080_v39  ;;  %v17527_v30 = vclamps-f32 %v13063_v31, 1.0  ;;  %v8375_v17 = vclamps-f32 %v3808_v60, 1.0 }
 0x3be   : > { %v3860_v6 = vadd.f32 0.18741608, %v3859_v51  ;;  %v3898_v47 = vadd.f32 0.05243302, %v3897_v10  ;;  %v3848_v33 = vmul.f32 %v3847_v63, %v3823_v22  ;;  %v13195_v36 = vadd.f32 1.0, %v3912_v15 }
 0x3bf   : > { %v6393_v7 = vadd.f32 1.0, %v17527_v30  ;;  %v4025_v4 = vadd.f32 0.001143296, %v4024_v3  ;;  %v13198_v46 = vadd.f32 %v653_v32, %v9483_v19  ;;  %v13202_v43 = vmul.f32 %v13073_v25, %v12807_v27 }
 0x3c0   : > { %v3876_v42 = vsub.f32 1.0, %v3875_v40  ;;  %v3989_v14 = vadd.f32 0.112945676, %v3988_v59  ;;  %v4064_v18 = vmul.f32 3.8918573e-05, %v13190_v62  ;;  %v6394_v31 = vadd.f32 1.0, %v8374_v0 }
 0x3c1   : > { %17528 = vst [vmem:[#allocation58_spill] sm:$0xff] %v13202_v43  ;;  %v3937_v1 = vmul.f32 %v3936_v45, %v13026_v50  ;;  %v3952_v60 = vmul.f32 %v3951_v57, %v13026_v50  ;;  %v3976_v52 = vadd.f32 0.0036580483, %v3975_v2  ;;  %v13208_v51 = vmul.f32 %v6393_v7, %v12851_v37 }
 0x3c2   : > { %v6395_v10 = vadd.f32 1.0, %v8375_v17  ;;  %v3861_v22 = vmul.f32 %v3860_v6, %v12918_v16  ;;  %v3899_v15 = vmul.f32 %v3898_v47, %v13002_v35  ;;  %v8376_v27 = vclamps-f32 %v3848_v33, 1.0 }
 0x3c3   : > { %17529 = vst [vmem:[#allocation59_spill] sm:$0xff] %v13208_v51  ;;  %8861 = vrcp.f32 %v13195_v36  ;;  %v4026_v25 = vmul.f32 %v4025_v4, %v13163_v9  ;;  %v13215_v3 = vmul.f32 0.70710677, %v13198_v46  ;;  %v13218_v63 = vmul.f32 0.5, %v12856_v24 }
 0x3c4   : > { %v3877_v40 = vmul.f32 %v13175_v61, %v3876_v42  ;;  %v3990_v37 = vmul.f32 %v3989_v14, %v13080_v39  ;;  %v4065_v59 = vadd.f32 0.001143296, %v4064_v18  ;;  %v13223_v16 = vmul.f32 %v6394_v31, %v12925_v55 }
 0x3c5   : > { %v3938_v32 = vadd.f32 0.05243302, %v3937_v1  ;;  %v13225_v0 = vadd.f32 1.0, %v3952_v60  ;;  %v3977_v45 = vmul.f32 %v3976_v52, %v13080_v39  ;;  %v13229_v57 = vmul.f32 %v6395_v10, %v12928_v28 }
 0x3c6   : > { %17530 = vst [vmem:[#allocation60_spill] sm:$0xff] %v13223_v16  ;;  %v13232_v2 = vmul.f32 0.5, %v12935_v44  ;;  %v3900_v24 = vadd.f32 0.18741608, %v3899_v15  ;;  %v4013_v30 = vmul.f32 2.1237322e-06, %v13163_v9  ;;  %v4091_v55 = vmul.f32 %v13215_v3, %v13215_v3 }
 0x3c7   : > { %17531 = vst [vmem:[#allocation61_spill] sm:$0xff] %v13229_v57  ;;  %v6396_v7 = vadd.f32 1.0, %v8376_v27  ;;  %v3862_v17 = vadd.f32 1.1283791, %v3861_v22  ;;  %v4027_v6 = vadd.f32 0.014752088, %v4026_v25  ;;  %v3878_v47 = vadd.f32 %v13175_v61, %v3877_v40  ;;  %v742_v40 = vpop.f32.mrf.mxu1 }
 0x3c8   : > { %vm3880_vm8 = vweird.f32 %v13175_v61  ;;  %v3991_v33 = vadd.f32 0.4994258, %v3990_v37  ;;  %v4066_v28 = vmul.f32 %v4065_v59, %v13190_v62  ;;  %v3885_v44 = vand.u32 2147483648, %v13113_v26  ;;  %v17543_v57 = vld [vmem:[#allocation30_spill] sm:$0xff] }
 0x3c9   : > { %v13240_v4 = vpop.eup %8861  ;;  %v3939_v42 = vmul.f32 %v3938_v32, %v13026_v50  ;;  %8863 = vrcp.f32 %v13225_v0  ;;  %v3978_v14 = vadd.f32 0.05243302, %v3977_v45  ;;  %vm3879_vm9 = vweird.f32 %v13113_v26  ;;  %v831_v32 = vpop.f32.mrf.mxu2  ;;  %v17544_v16 = vld [vmem:[#allocation34_spill] sm:$0xff] }
 0x3ca   : > { %v3883_v18 = vand.u32 2147483647, %v13113_v26  ;;  %v3901_v31 = vmul.f32 %v3900_v24, %v13002_v35  ;;  %v4014_v1 = vadd.f32 0.00028619796, %v4013_v30  ;;  %vm13248_vm10 = vmor %vm3879_vm9, %vm3880_vm8  ;;  %v13253_v52 = vmul.f32 0.5, %v12971_v12 }
 0x3cb   : > { %v13256_v10 = vmul.f32 0.5, %v13020_v20  ;;  %v4028_v22 = vmul.f32 %v4027_v6, %v13163_v9  ;;  %v13259_v15 = vmin.f32 %v4091_v55, 16.0  ;;  %v3882_v26 = vsel %vm13248_vm10, %v13175_v61, %v3878_v47 }
 0x3cc   : > { %v3915_v35 = vmul.f32 %v13240_v4, %v13195_v36  ;;  %v3992_v27 = vmul.f32 %v3991_v33, %v13080_v39  ;;  %v4067_v25 = vadd.f32 0.014752088, %v4066_v28  ;;  %v3863_v12 = vmul.f32 %v3862_v17, %v12875_v11 }
 0x3cd   : > { %v3886_v37 = vor.u32 1.1754944e-38, %v3885_v44  ;;  %v3940_v20 = vadd.f32 0.18741608, %v3939_v42  ;;  %v3979_v59 = vmul.f32 %v3978_v14, %v13080_v39  ;;  %v13270_v45 = vmul.f32 %v6396_v7, %v13066_v41 }
 0x3ce   : > { %vm3884_vm11 = vcmp.eq.f32.partialorder %v3883_v18, 8.507059e+37  ;;  %v3902_v24 = vadd.f32 1.1283791, %v3901_v31  ;;  %v4015_v61 = vmul.f32 %v4014_v1, %v13163_v9  ;;  %v4029_v55 = vadd.f32 0.112945676, %v4028_v22 }
 0x3cf   : > { %17534 = vst [vmem:[#allocation62_spill] sm:$0xff] %v13270_v45  ;;  %v13273_v30 = vpop.eup %8863  ;;  %v3887_v6 = vsel %vm3884_vm11, %v3886_v37, %v3882_v26  ;;  %v4104_v47 = vmul.f32 3.8918573e-05, %v13259_v15  ;;  %v13277_v11 = vadd.f32 %v742_v40, %v9485_v21  ;;  %v3916_v17 = vsub.f32 1.0, %v3915_v35  ;;  %v17535_v35 = vld [vmem:[#allocation27_spill] sm:$0xff] }
 0x3d0   : > { %v13279_v33 = vadd.f32 1.0, %v3992_v27  ;;  %v4068_v28 = vmul.f32 %v4067_v25, %v13190_v62  ;;  %v13283_v41 = vadd.f32 %v831_v32, %v9503_v29  ;;  %v3941_v7 = vmul.f32 %v3940_v20, %v13026_v50 }
 0x3d1   : > { %v3980_v44 = vadd.f32 0.18741608, %v3979_v59  ;;  %v13287_v42 = vmul.f32 0.5, %v13096_v23  ;;  %v13290_v14 = vmul.f32 0.5, %v13123_v49  ;;  %v3888_v18 = vmul.f32 %v3887_v6, %v3863_v12  ;;  %v17536_v23 = vld [vmem:[#allocation31_spill] sm:$0xff] }
 0x3d2   : > { %v13293_v31 = vmul.f32 %v3902_v24, %v12954_v8  ;;  %v3955_v1 = vmul.f32 %v13273_v30, %v13225_v0  ;;  %v4016_v60 = vadd.f32 0.0036580483, %v4015_v61  ;;  %v4030_v22 = vmul.f32 %v4029_v55, %v13163_v9 }
 0x3d3   : > { %v4105_v26 = vadd.f32 0.001143296, %v4104_v47  ;;  %v13299_v50 = vmul.f32 0.70710677, %v13277_v11  ;;  %v6595_v27 = vpack.c.bf16 %v17536_v23, %v17535_v35  ;;  %v3917_v49 = vmul.f32 %v13240_v4, %v3916_v17  ;;  %v920_v47 = vpop.f32.mrf.mxu3  ;;  %v17541_v35 = vld [vmem:[#allocation29_spill] sm:$0xff] }
 0x3d4   : > { %8865 = vrcp.f32 %v13279_v33  ;;  %v4069_v25 = vadd.f32 0.112945676, %v4068_v28  ;;  %v13306_v8 = vmul.f32 0.70710677, %v13283_v41  ;;  %vm3919_vm12 = vweird.f32 %v13195_v36  ;;  %v17542_v23 = vld [vmem:[#allocation33_spill] sm:$0xff] }
 0x3d5   : > { %v3923_v40 = vand.u32 2147483647, %v13195_v36  ;;  %v3925_v12 = vand.u32 2147483648, %v13195_v36  ;;  %v3942_v37 = vadd.f32 1.1283791, %v3941_v7  ;;  %6929 = vmatmul.bf16.gmra.mxu0 %v6595_v27  ;;  %v8377_v20 = vclamps-f32 %v3888_v18, 1.0 }
 0x3d6   : > { %v3981_v59 = vmul.f32 %v3980_v44, %v13080_v39  ;;  %v4017_v32 = vmul.f32 %v4016_v60, %v13163_v9  ;;  %v4053_v24 = vmul.f32 2.1237322e-06, %v13190_v62  ;;  %vm3920_vm13 = vweird.f32 %v13240_v4  ;;  %v17539_v60 = vld [vmem:[#allocation28_spill] sm:$0xff] }
 0x3d7   : > { %v4031_v61 = vadd.f32 0.4994258, %v4030_v22  ;;  %v4106_v6 = vmul.f32 %v4105_v26, %v13259_v15  ;;  %v4131_v55 = vmul.f32 %v13299_v50, %v13299_v50  ;;  %v3918_v17 = vadd.f32 %v13240_v4, %v3917_v49  ;;  %v17540_v22 = vld [vmem:[#allocation32_spill] sm:$0xff]  ;;  %vm13341_vm15 = vmor %vm3919_vm12, %vm3920_vm13 }
 0x3d8   : > { %v3956_v28 = vsub.f32 1.0, %v3955_v1  ;;  %v4070_v7 = vmul.f32 %v4069_v25, %v13190_v62  ;;  %v4171_v39 = vmul.f32 %v13306_v8, %v13306_v8  ;;  %vm13322_vm14 = vcmp.eq.f32.partialorder %v3923_v40, 8.507059e+37 }
 0x3d9   : > { %v3926_v18 = vor.u32 1.1754944e-38, %v3925_v12  ;;  %v6596_v26 = vpack.c.bf16 %v17540_v22, %v17539_v60  ;;  %v6597_v27 = vpack.c.bf16 %v17542_v23, %v17541_v35  ;;  %v4018_v49 = vadd.f32 0.05243302, %v4017_v32 }
 0x3da   : > { %v13330_v45 = vpop.eup %8865  ;;  %v4054_v1 = vadd.f32 0.00028619796, %v4053_v24  ;;  %v13333_v25 = vadd.f32 %v920_v47, %v9512_v34  ;;  %v6598_v40 = vpack.c.bf16 %v17544_v16, %v17543_v57  ;;  %v13346_v60 = vmul.f32 %v3942_v37, %v12991_v5 }
 0x3db   : > { %v4032_v32 = vmul.f32 %v4031_v61, %v13163_v9  ;;  %v4107_v24 = vadd.f32 0.014752088, %v4106_v6  ;;  %v13349_v22 = vmin.f32 %v4131_v55, 16.0  ;;  %7018 = vmatmul.bf16.gmra.mxu1 %v6596_v26  ;;  %7107 = vmatmul.bf16.gmra.mxu2 %v6597_v27  ;;  %v3922_v16 = vsel %vm13341_vm15, %v13240_v4, %v3918_v17 }
 0x3dc   : > { %v3957_v36 = vmul.f32 %v13273_v30, %v3956_v28  ;;  %v4071_v57 = vadd.f32 0.4994258, %v4070_v7  ;;  %v13355_v47 = vmin.f32 %v4171_v39, 16.0  ;;  %7196 = vmatmul.bf16.gmra.mxu3 %v6598_v40  ;;  %v6397_v35 = vadd.f32 1.0, %v8377_v20 }
 0x3dd   : > { %vm3959_vm0 = vweird.f32 %v13225_v0  ;;  %v3963_v5 = vand.u32 2147483647, %v13225_v0  ;;  %v3995_v37 = vmul.f32 %v13330_v45, %v13279_v33  ;;  %v3965_v61 = vand.u32 2147483648, %v13225_v0 }
 0x3de   : > { %v4019_v6 = vmul.f32 %v4018_v49, %v13163_v9  ;;  %v4055_v4 = vmul.f32 %v4054_v1, %v13190_v62  ;;  %v13365_v55 = vmul.f32 0.70710677, %v13333_v25  ;;  %v3927_v17 = vsel %vm13322_vm14, %v3926_v18, %v3922_v16  ;;  %v17550_v16 = vld [vmem:[#allocation35_spill] sm:$0xff] }
 0x3df   : > { %v13369_v20 = vadd.f32 1.0, %v4032_v32  ;;  %v4108_v28 = vmul.f32 %v4107_v24, %v13259_v15  ;;  %v4144_v7 = vmul.f32 3.8918573e-05, %v13349_v22  ;;  %v3958_v39 = vadd.f32 %v13273_v30, %v3957_v36  ;;  %v17551_v36 = vld [vmem:[#allocation39_spill] sm:$0xff] }
 0x3e0   : > { %vm3960_vm1 = vweird.f32 %v13273_v30  ;;  %v4072_v26 = vmul.f32 %v4071_v57, %v13190_v62  ;;  %v4184_v23 = vmul.f32 3.8918573e-05, %v13355_v47  ;;  %v13378_v27 = vmul.f32 %v6397_v35, %v13218_v63 }
 0x3e1   : > { %v3982_v49 = vadd.f32 1.1283791, %v3981_v59  ;;  %v3996_v44 = vsub.f32 1.0, %v3995_v37  ;;  %v4003_v18 = vand.u32 2147483647, %v13279_v33  ;;  %v3928_v1 = vmul.f32 %v3927_v17, %v13293_v31  ;;  %vm13386_vm2 = vmor %vm3959_vm0, %vm3960_vm1 }
 0x3e2   : > { %17547 = vst [vmem:[#allocation27_spill] sm:$0xff] %v13378_v27  ;;  %v4020_v40 = vadd.f32 0.18741608, %v4019_v6  ;;  %v4056_v12 = vadd.f32 0.0036580483, %v4055_v4  ;;  %v4211_v32 = vmul.f32 %v13365_v55, %v13365_v55  ;;  %8867 = vrcp.f32 %v13369_v20 }
 0x3e3   : > { %v4109_v63 = vadd.f32 0.112945676, %v4108_v28  ;;  %v4145_v59 = vadd.f32 0.001143296, %v4144_v7  ;;  %v6599_v57 = vpack.c.bf16 %v17551_v36, %v17550_v16  ;;  %v3962_v31 = vsel %vm13386_vm2, %v13273_v30, %v3958_v39  ;;  %v17555_v16 = vld [vmem:[#allocation40_spill] sm:$0xff] }
 0x3e4   : > { %v13396_v35 = vadd.f32 1.0, %v4072_v26  ;;  %v4093_v37 = vmul.f32 2.1237322e-06, %v13259_v15  ;;  %v4185_v0 = vadd.f32 0.001143296, %v4184_v23  ;;  %vm3964_vm3 = vcmp.eq.f32.partialorder %v3963_v5, 8.507059e+37  ;;  %v655_v23 = vpop.f32.mrf.mxu0 }
 0x3e5   : > { %v3966_v6 = vor.u32 1.1754944e-38, %v3965_v61  ;;  %v3997_v4 = vmul.f32 %v13330_v45, %v3996_v44  ;;  %vm3999_vm4 = vweird.f32 %v13279_v33  ;;  %6934 = vmatmul.bf16.gmra.mxu0 %v6599_v57  ;;  %vm4000_vm5 = vweird.f32 %v13330_v45  ;;  %v17557_v57 = vld [vmem:[#allocation41_spill] sm:$0xff] }
 0x3e6   : > { %v4005_v17 = vand.u32 2147483648, %v13279_v33  ;;  %v4021_v28 = vmul.f32 %v4020_v40, %v13163_v9  ;;  %v13404_v7 = vmin.f32 %v4211_v32, 16.0  ;;  %v8378_v30 = vclamps-f32 %v3928_v1, 1.0  ;;  %v17554_v32 = vld [vmem:[#allocation36_spill] sm:$0xff]  ;;  %vm13437_vm7 = vmor %vm3999_vm4, %vm4000_vm5 }
 0x3e7   : > { %v3967_v39 = vsel %vm3964_vm3, %v3966_v6, %v3962_v31  ;;  %vm13406_vm6 = vcmp.eq.f32.partialorder %v4003_v18, 8.507059e+37  ;;  %v4110_v5 = vmul.f32 %v4109_v63, %v13259_v15  ;;  %v4146_v61 = vmul.f32 %v4145_v59, %v13349_v22  ;;  %v17556_v63 = vld [vmem:[#allocation37_spill] sm:$0xff]  ;;  %v17559_v6 = vld [vmem:[#allocation42_spill] sm:$0xff] }
 0x3e8   : > { %v4057_v44 = vmul.f32 %v4056_v12, %v13190_v62  ;;  %8869 = vrcp.f32 %v13396_v35  ;;  %v4094_v24 = vadd.f32 0.00028619796, %v4093_v37  ;;  %v4186_v9 = vmul.f32 %v4185_v0, %v13355_v47  ;;  %v13415_v40 = vpop.eup %8867  ;;  %v17558_v0 = vld [vmem:[#allocation38_spill] sm:$0xff] }
 0x3e9   : > { %v3998_v1 = vadd.f32 %v13330_v45, %v3997_v4  ;;  %v4133_v18 = vmul.f32 2.1237322e-06, %v13349_v22  ;;  %v6600_v36 = vpack.c.bf16 %v17555_v16, %v17554_v32  ;;  %v6601_v59 = vpack.c.bf16 %v17557_v57, %v17556_v63 }
 0x3ea   : > { %v13424_v31 = vmul.f32 0.5, %v13198_v46  ;;  %v4224_v12 = vmul.f32 3.8918573e-05, %v13404_v7  ;;  %v13428_v37 = vadd.f32 %v655_v23, %v9483_v19  ;;  %v6602_v27 = vpack.c.bf16 %v17559_v6, %v17558_v0 }
 0x3eb   : > { %v3968_v4 = vmul.f32 %v3967_v39, %v13346_v60  ;;  %v4022_v51 = vadd.f32 1.1283791, %v4021_v28  ;;  %v4111_v43 = vadd.f32 0.4994258, %v4110_v5  ;;  %v4147_v38 = vadd.f32 0.014752088, %v4146_v61  ;;  %7023 = vmatmul.bf16.gmra.mxu1 %v6600_v36  ;;  %7112 = vmatmul.bf16.gmra.mxu2 %v6601_v59 }
 0x3ec   : > { %v4006_v23 = vor.u32 1.1754944e-38, %v4005_v17  ;;  %v4035_v32 = vmul.f32 %v13415_v40, %v13369_v20  ;;  %v4095_v16 = vmul.f32 %v4094_v24, %v13259_v15  ;;  %v4187_v60 = vadd.f32 0.014752088, %v4186_v9  ;;  %7201 = vmatmul.bf16.gmra.mxu3 %v6602_v27 }
 0x3ed   : > { %v6398_v28 = vadd.f32 1.0, %v8378_v30  ;;  %v4002_v39 = vsel %vm13437_vm7, %v13330_v45, %v3998_v1  ;;  %v4058_v5 = vadd.f32 0.05243302, %v4057_v44  ;;  %v4134_v61 = vadd.f32 0.00028619796, %v4133_v18 }
 0x3ee   : > { %v13447_v33 = vpop.eup %8869  ;;  %v3983_v36 = vmul.f32 %v3982_v49, %v13044_v13  ;;  %v4173_v17 = vmul.f32 2.1237322e-06, %v13355_v47  ;;  %v4225_v63 = vadd.f32 0.001143296, %v4224_v12  ;;  %v13452_v57 = vmul.f32 0.70710677, %v13428_v37  ;;  %v744_v12 = vpop.f32.mrf.mxu1 }
 0x3ef   : > { %v8379_v24 = vclamps-f32 %v3968_v4, 1.0  ;;  %v13455_v27 = vmul.f32 %v4022_v51, %v13116_v53  ;;  %v4112_v30 = vmul.f32 %v4111_v43, %v13259_v15  ;;  %v4148_v45 = vmul.f32 %v4147_v38, %v13349_v22 }
 0x3f0   : > { %v4007_v44 = vsel %vm13406_vm6, %v4006_v23, %v4002_v39  ;;  %v4036_v9 = vsub.f32 1.0, %v4035_v32  ;;  %v4096_v1 = vadd.f32 0.0036580483, %v4095_v16  ;;  %v4188_v13 = vmul.f32 %v4187_v60, %v13355_v47 }
 0x3f1   : > { %v13463_v49 = vmul.f32 %v6398_v28, %v13232_v2  ;;  %v4075_v18 = vmul.f32 %v13447_v33, %v13396_v35  ;;  %v13468_v53 = vmul.f32 0.5, %v13277_v11  ;;  %v4135_v43 = vmul.f32 %v4134_v61, %v13349_v22 }
 0x3f2   : > { %v4059_v38 = vmul.f32 %v4058_v5, %v13190_v62  ;;  %v4174_v51 = vadd.f32 0.00028619796, %v4173_v17  ;;  %v4226_v26 = vmul.f32 %v4225_v63, %v13404_v7  ;;  %v4251_v59 = vmul.f32 %v13452_v57, %v13452_v57 }
 0x3f3   : > { %17562 = vst [vmem:[#allocation31_spill] sm:$0xff] %v13463_v49  ;;  %v13475_v0 = vadd.f32 1.0, %v8379_v24  ;;  %v4008_v2 = vmul.f32 %v4007_v44, %v3983_v36  ;;  %v13477_v6 = vadd.f32 1.0, %v4112_v30  ;;  %v4149_v4 = vadd.f32 0.112945676, %v4148_v45 }
 0x3f4   : > { %v4037_v11 = vmul.f32 %v13415_v40, %v4036_v9  ;;  %v4097_v46 = vmul.f32 %v4096_v1, %v13259_v15  ;;  %v13482_v23 = vmul.f32 0.5, %v13283_v41  ;;  %v4189_v32 = vadd.f32 0.112945676, %v4188_v13 }
 0x3f5   : > { %v4043_v16 = vand.u32 2147483647, %v13369_v20  ;;  %v4076_v60 = vsub.f32 1.0, %v4075_v18  ;;  %v4136_v28 = vadd.f32 0.0036580483, %v4135_v43  ;;  %v13486_v39 = vadd.f32 %v744_v12, %v9485_v21 }
 0x3f6   : > { %v4060_v5 = vadd.f32 0.18741608, %v4059_v38  ;;  %v4175_v61 = vmul.f32 %v4174_v51, %v13355_v47  ;;  %v4227_v36 = vadd.f32 0.014752088, %v4226_v26  ;;  %v13489_v17 = vmin.f32 %v4251_v59, 16.0 }
 0x3f7   : > { %v8380_v63 = vclamps-f32 %v4008_v2, 1.0  ;;  %v4045_v24 = vand.u32 2147483648, %v13369_v20  ;;  %8871 = vrcp.f32 %v13477_v6  ;;  %v4150_v41 = vmul.f32 %v4149_v4, %v13349_v22 }
 0x3f8   : > { %v4038_v30 = vadd.f32 %v13415_v40, %v4037_v11  ;;  %vm4040_vm8 = vweird.f32 %v13415_v40  ;;  %v4098_v45 = vadd.f32 0.05243302, %v4097_v46  ;;  %v4190_v44 = vmul.f32 %v4189_v32, %v13355_v47 }
 0x3f9   : > { %vm4039_vm9 = vweird.f32 %v13369_v20  ;;  %v4077_v9 = vmul.f32 %v13447_v33, %v4076_v60  ;;  %v4137_v1 = vmul.f32 %v4136_v28, %v13349_v22  ;;  %v13501_v13 = vmul.f32 0.70710677, %v13486_v39 }
 0x3fa   : > { %v4061_v18 = vmul.f32 %v4060_v5, %v13190_v62  ;;  %v4176_v43 = vadd.f32 0.0036580483, %v4175_v61  ;;  %v4228_v38 = vmul.f32 %v4227_v36, %v13404_v7  ;;  %v4264_v51 = vmul.f32 3.8918573e-05, %v13489_v17  ;;  %vm13506_vm10 = vmor %vm4039_vm9, %vm4040_vm8 }
 0x3fb   : > { %v6400_v26 = vadd.f32 1.0, %v8380_v63  ;;  %vm13510_vm11 = vcmp.eq.f32.partialorder %v4043_v16, 8.507059e+37  ;;  %v4046_v12 = vor.u32 1.1754944e-38, %v4045_v24  ;;  %v4151_v2 = vadd.f32 0.4994258, %v4150_v41 }
 0x3fc   : > { %v4042_v62 = vsel %vm13506_vm10, %v13415_v40, %v4038_v30  ;;  %v4085_v4 = vand.u32 2147483648, %v13396_v35  ;;  %v4099_v11 = vmul.f32 %v4098_v45, %v13259_v15  ;;  %v4191_v46 = vadd.f32 0.4994258, %v4190_v44  ;;  %v833_v30 = vpop.f32.mrf.mxu2 }
 0x3fd   : > { %v13519_v32 = vpop.eup %8871  ;;  %v4078_v60 = vadd.f32 %v13447_v33, %v4077_v9  ;;  %vm4080_vm12 = vweird.f32 %v13447_v33  ;;  %v4138_v16 = vadd.f32 0.05243302, %v4137_v1  ;;  %v4291_v28 = vmul.f32 %v13501_v13, %v13501_v13 }
 0x3fe   : > { %v4062_v5 = vadd.f32 1.1283791, %v4061_v18  ;;  %v4177_v61 = vmul.f32 %v4176_v43, %v13355_v47  ;;  %v4229_v36 = vadd.f32 0.112945676, %v4228_v38  ;;  %v4265_v40 = vadd.f32 0.001143296, %v4264_v51 }
 0x3ff   : > { %vm4079_vm13 = vweird.f32 %v13396_v35  ;;  %v4083_v63 = vand.u32 2147483647, %v13396_v35  ;;  %v4152_v24 = vmul.f32 %v4151_v2, %v13349_v22  ;;  %v4213_v41 = vmul.f32 2.1237322e-06, %v13404_v7 }
 0x400   : > { %v4047_v45 = vsel %vm13510_vm11, %v4046_v12, %v4042_v62  ;;  %vm13532_vm14 = vmor %vm4079_vm13, %vm4080_vm12  ;;  %v4100_v9 = vadd.f32 0.18741608, %v4099_v11  ;;  %v4115_v1 = vmul.f32 %v13519_v32, %v13477_v6  ;;  %v4192_v18 = vmul.f32 %v4191_v46, %v13355_v47 }
 0x401   : > { %v4082_v35 = vsel %vm13532_vm14, %v13447_v33, %v4078_v60  ;;  %v4086_v43 = vor.u32 1.1754944e-38, %v4085_v4  ;;  %v4139_v38 = vmul.f32 %v4138_v16, %v13349_v22  ;;  %v13543_v51 = vmin.f32 %v4291_v28, 16.0 }
 0x402   : > { %v4178_v59 = vadd.f32 0.05243302, %v4177_v61  ;;  %v4230_v20 = vmul.f32 %v4229_v36, %v13404_v7  ;;  %v4266_v12 = vmul.f32 %v4265_v40, %v13489_v17  ;;  %v13548_v2 = vadd.f32 %v833_v30, %v9503_v29 }
 0x403   : > { %v4048_v62 = vmul.f32 %v4047_v45, %v13455_v27  ;;  %vm4084_vm15 = vcmp.eq.f32.partialorder %v4083_v63, 8.507059e+37  ;;  %v13551_v11 = vadd.f32 1.0, %v4152_v24  ;;  %v4214_v46 = vadd.f32 0.00028619796, %v4213_v41 }
 0x404   : > { %v4087_v33 = vsel %vm4084_vm15, %v4086_v43, %v4082_v35  ;;  %v4101_v4 = vmul.f32 %v4100_v9, %v13259_v15  ;;  %v4116_v60 = vsub.f32 1.0, %v4115_v1  ;;  %v13554_v16 = vadd.f32 1.0, %v4192_v18  ;;  %v922_v18 = vpop.f32.mrf.mxu3 }
 0x405   : > { %v13558_v28 = vmul.f32 %v13475_v0, %v13253_v52  ;;  %v4063_v61 = vmul.f32 %v4062_v5, %v13154_v54  ;;  %v4140_v36 = vadd.f32 0.18741608, %v4139_v38  ;;  %v4304_v40 = vmul.f32 3.8918573e-05, %v13543_v51 }
 0x406   : > { %v4179_v27 = vmul.f32 %v4178_v59, %v13355_v47  ;;  %v4231_v63 = vadd.f32 0.4994258, %v4230_v20  ;;  %v4267_v24 = vadd.f32 0.014752088, %v4266_v12  ;;  %v13564_v41 = vmul.f32 0.70710677, %v13548_v2 }
 0x407   : > { %17569 = vst [vmem:[#allocation28_spill] sm:$0xff] %v13558_v28  ;;  %v8381_v15 = vclamps-f32 %v4048_v62, 1.0  ;;  %v4088_v30 = vmul.f32 %v4087_v33, %v4063_v61  ;;  %8873 = vrcp.f32 %v13551_v11  ;;  %v4215_v45 = vmul.f32 %v4214_v46, %v13404_v7 }
 0x408   : > { %v13569_v52 = vmul.f32 %v6400_v26, %v13256_v10  ;;  %v4102_v54 = vadd.f32 1.1283791, %v4101_v4  ;;  %v4117_v0 = vmul.f32 %v13519_v32, %v4116_v60  ;;  %8875 = vrcp.f32 %v13554_v16 }
 0x409   : > { %v4123_v5 = vand.u32 2147483647, %v13477_v6  ;;  %v4141_v44 = vmul.f32 %v4140_v36, %v13349_v22  ;;  %v13576_v9 = vmul.f32 0.5, %v13333_v25  ;;  %v4305_v1 = vadd.f32 0.001143296, %v4304_v40 }
 0x40a   : > { %17570 = vst [vmem:[#allocation32_spill] sm:$0xff] %v13569_v52  ;;  %v4180_v35 = vadd.f32 0.18741608, %v4179_v27  ;;  %v4232_v43 = vmul.f32 %v4231_v63, %v13404_v7  ;;  %v4268_v10 = vmul.f32 %v4267_v24, %v13489_v17  ;;  %v4331_v26 = vmul.f32 %v13564_v41, %v13564_v41 }
 0x40b   : > { %v6401_v38 = vadd.f32 1.0, %v8381_v15  ;;  %v8382_v59 = vclamps-f32 %v4088_v30, 1.0  ;;  %v4125_v20 = vand.u32 2147483648, %v13477_v6  ;;  %v4216_v12 = vadd.f32 0.0036580483, %v4215_v45 }
 0x40c   : > { %v4103_v22 = vmul.f32 %v4102_v54, %v13215_v3  ;;  %v4118_v25 = vadd.f32 %v13519_v32, %v4117_v0  ;;  %vm4120_vm0 = vweird.f32 %v13519_v32  ;;  %v13587_v62 = vadd.f32 %v922_v18, %v9512_v34 }
 0x40d   : > { %v13589_v46 = vpop.eup %8873  ;;  %vm4119_vm1 = vweird.f32 %v13477_v6  ;;  %vm13592_vm2 = vcmp.eq.f32.partialorder %v4123_v5, 8.507059e+37  ;;  %v4142_v4 = vadd.f32 1.1283791, %v4141_v44  ;;  %v4306_v60 = vmul.f32 %v4305_v1, %v13543_v51 }
 0x40e   : > { %v13597_v61 = vpop.eup %8875  ;;  %v4181_v3 = vmul.f32 %v4180_v35, %v13355_v47  ;;  %v13600_v36 = vadd.f32 1.0, %v4232_v43  ;;  %v4269_v40 = vadd.f32 0.112945676, %v4268_v10  ;;  %v13602_v27 = vmin.f32 %v4331_v26, 16.0  ;;  %vm13607_vm3 = vmor %vm4119_vm1, %vm4120_vm0  ;;  %v658_v43 = vpop.f32.mrf.mxu0 }
 0x40f   : > { %v13605_v63 = vmul.f32 %v6401_v38, %v13287_v42  ;;  %v6402_v6 = vadd.f32 1.0, %v8382_v59  ;;  %v4126_v15 = vor.u32 1.1754944e-38, %v4125_v20  ;;  %v4217_v30 = vmul.f32 %v4216_v12, %v13404_v7  ;;  %v747_v59 = vpop.f32.mrf.mxu1 }
 0x410   : > { %v4122_v47 = vsel %vm13607_vm3, %v13519_v32, %v4118_v25  ;;  %v4155_v45 = vmul.f32 %v13589_v46, %v13551_v11  ;;  %v4253_v54 = vmul.f32 2.1237322e-06, %v13489_v17  ;;  %v13619_v42 = vmul.f32 0.70710677, %v13587_v62 }
 0x411   : > { %17573 = vst [vmem:[#allocation29_spill] sm:$0xff] %v13605_v63  ;;  %v13622_v0 = vmul.f32 %v4142_v4, %v13299_v50  ;;  %v4165_v5 = vand.u32 2147483648, %v13551_v11  ;;  %v4195_v44 = vmul.f32 %v13597_v61, %v13554_v16  ;;  %v4307_v1 = vadd.f32 0.014752088, %v4306_v60 }
 0x412   : > { %v4182_v18 = vadd.f32 1.1283791, %v4181_v3  ;;  %8877 = vrcp.f32 %v13600_v36  ;;  %v4270_v32 = vmul.f32 %v4269_v40, %v13489_v17  ;;  %v4344_v35 = vmul.f32 3.8918573e-05, %v13602_v27 }
 0x413   : > { %v13631_v10 = vmul.f32 %v6402_v6, %v13290_v14  ;;  %v4127_v50 = vsel %vm13592_vm2, %v4126_v15, %v4122_v47  ;;  %v4163_v26 = vand.u32 2147483647, %v13551_v11  ;;  %v4218_v38 = vadd.f32 0.05243302, %v4217_v30 }
 0x414   : > { %v4156_v20 = vsub.f32 1.0, %v4155_v45  ;;  %v4254_v12 = vadd.f32 0.00028619796, %v4253_v54  ;;  %v4293_v25 = vmul.f32 2.1237322e-06, %v13543_v51  ;;  %v4371_v4 = vmul.f32 %v13619_v42, %v13619_v42 }
 0x415   : > { %17576 = vst [vmem:[#allocation33_spill] sm:$0xff] %v13631_v10  ;;  %v13639_v60 = vor.u32 1.1754944e-38, %v4165_v5  ;;  %v4196_v3 = vsub.f32 1.0, %v4195_v44  ;;  %v4308_v14 = vmul.f32 %v4307_v1, %v13543_v51  ;;  %v13643_v40 = vadd.f32 %v658_v43, %v9483_v19 }
 0x416   : > { %vm4159_vm4 = vweird.f32 %v13551_v11  ;;  %v13647_v33 = vmul.f32 %v4182_v18, %v13306_v8  ;;  %v4271_v6 = vadd.f32 0.4994258, %v4270_v32  ;;  %v4345_v24 = vadd.f32 0.001143296, %v4344_v35 }
 0x417   : > { %v13650_v15 = vadd.f32 %v747_v59, %v9485_v21  ;;  %v4128_v30 = vmul.f32 %v4127_v50, %v4103_v22  ;;  %vm4199_vm5 = vweird.f32 %v13554_v16  ;;  %v4219_v47 = vmul.f32 %v4218_v38, %v13404_v7 }
 0x418   : > { %v13655_v45 = vmul.f32 0.5, %v13428_v37  ;;  %v13657_v54 = vpop.eup %8877  ;;  %v4157_v5 = vmul.f32 %v13589_v46, %v4156_v20  ;;  %v4255_v8 = vmul.f32 %v4254_v12, %v13489_v17  ;;  %v4294_v44 = vadd.f32 0.00028619796, %v4293_v25 }
 0x419   : > { %v13661_v1 = vmin.f32 %v4371_v4, 16.0  ;;  %v4197_v18 = vmul.f32 %v13597_v61, %v4196_v3  ;;  %v4203_v22 = vand.u32 2147483647, %v13554_v16  ;;  %v4309_v32 = vadd.f32 0.112945676, %v4308_v14 }
 0x41a   : > { %v13666_v35 = vmul.f32 0.70710677, %v13643_v40  ;;  %vm13668_vm6 = vcmp.eq.f32.partialorder %v4163_v26, 8.507059e+37  ;;  %v4205_v43 = vand.u32 2147483648, %v13554_v16  ;;  %v4272_v50 = vmul.f32 %v4271_v6, %v13489_v17  ;;  %v836_v6 = vpop.f32.mrf.mxu2 }
 0x41b   : > { %v4346_v38 = vmul.f32 %v4345_v24, %v13602_v27  ;;  %v13676_v59 = vmul.f32 0.70710677, %v13650_v15  ;;  %v8383_v20 = vclamps-f32 %v4128_v30, 1.0  ;;  %vm4160_vm7 = vweird.f32 %v13589_v46 }
 0x41c   : > { %v4220_v12 = vadd.f32 0.18741608, %v4219_v47  ;;  %v4235_v25 = vmul.f32 %v13657_v54, %v13600_v36  ;;  %v4158_v26 = vadd.f32 %v13589_v46, %v4157_v5  ;;  %v4256_v4 = vadd.f32 0.0036580483, %v4255_v8  ;;  %vm13701_vm10 = vmor %vm4159_vm4, %vm4160_vm7 }
 0x41d   : > { %v4295_v3 = vmul.f32 %v4294_v44, %v13543_v51  ;;  %v4384_v14 = vmul.f32 3.8918573e-05, %v13661_v1  ;;  %v4198_v24 = vadd.f32 %v13597_v61, %v4197_v18  ;;  %vm4200_vm8 = vweird.f32 %v13597_v61 }
 0x41e   : > { %v4310_v30 = vmul.f32 %v4309_v32, %v13543_v51  ;;  %v4411_v47 = vmul.f32 %v13666_v35, %v13666_v35  ;;  %vm13689_vm9 = vcmp.eq.f32.partialorder %v4203_v22, 8.507059e+37  ;;  %v13693_v5 = vadd.f32 1.0, %v4272_v50  ;;  %vm13714_vm11 = vmor %vm4199_vm5, %vm4200_vm8 }
 0x41f   : > { %v4347_v8 = vadd.f32 0.014752088, %v4346_v38  ;;  %v4451_v44 = vmul.f32 %v13676_v59, %v13676_v59  ;;  %v4206_v32 = vor.u32 1.1754944e-38, %v4205_v43  ;;  %v4221_v22 = vmul.f32 %v4220_v12, %v13404_v7 }
 0x420   : > { %v4236_v49 = vsub.f32 1.0, %v4235_v25  ;;  %v13707_v63 = vadd.f32 %v836_v6, %v9503_v29  ;;  %v4162_v50 = vsel %vm13701_vm10, %v13589_v46, %v4158_v26  ;;  %v4257_v11 = vmul.f32 %v4256_v4, %v13489_v17 }
 0x421   : > { %v4296_v52 = vadd.f32 0.0036580483, %v4295_v3  ;;  %v4385_v43 = vadd.f32 0.001143296, %v4384_v14  ;;  %v4202_v7 = vsel %vm13714_vm11, %v13597_v61, %v4198_v24  ;;  %v4311_v12 = vadd.f32 0.4994258, %v4310_v30 }
 0x422   : > { %v4333_v25 = vmul.f32 2.1237322e-06, %v13602_v27  ;;  %v13723_v6 = vmin.f32 %v4411_v47, 16.0  ;;  %v6403_v46 = vadd.f32 1.0, %v8383_v20  ;;  %8879 = vrcp.f32 %v13693_v5 }
 0x423   : > { %v4348_v16 = vmul.f32 %v4347_v8, %v13602_v27  ;;  %v13727_v26 = vmin.f32 %v4451_v44, 16.0  ;;  %v4167_v4 = vsel %vm13668_vm6, %v13639_v60, %v4162_v50  ;;  %v4237_v3 = vmul.f32 %v13657_v54, %v4236_v49 }
 0x424   : > { %v13734_v61 = vmul.f32 0.5, %v13486_v39  ;;  %v13737_v14 = vmul.f32 0.70710677, %v13707_v63  ;;  %v4207_v20 = vsel %vm13689_vm9, %v4206_v32, %v4202_v7  ;;  %v4222_v24 = vadd.f32 1.1283791, %v4221_v22 }
 0x425   : > { %v4258_v30 = vadd.f32 0.05243302, %v4257_v11  ;;  %v4386_v47 = vmul.f32 %v4385_v43, %v13661_v1  ;;  %v4297_v8 = vmul.f32 %v4296_v52, %v13543_v51  ;;  %v4312_v37 = vmul.f32 %v4311_v12, %v13543_v51 }
 0x426   : > { %v4334_v60 = vadd.f32 0.00028619796, %v4333_v25  ;;  %v4424_v49 = vmul.f32 3.8918573e-05, %v13723_v6  ;;  %v4168_v39 = vmul.f32 %v4167_v4, %v13622_v0  ;;  %v4243_v44 = vand.u32 2147483647, %v13600_v36 }
 0x427   : > { %v4349_v18 = vadd.f32 0.112945676, %v4348_v16  ;;  %v4464_v50 = vmul.f32 3.8918573e-05, %v13727_v26  ;;  %v4238_v10 = vadd.f32 %v13657_v54, %v4237_v3  ;;  %vm4240_vm12 = vweird.f32 %v13657_v54 }
 0x428   : > { %v4245_v32 = vand.u32 2147483648, %v13600_v36  ;;  %v4491_v52 = vmul.f32 %v13737_v14, %v13737_v14  ;;  %v13753_v22 = vpop.eup %8879  ;;  %v4208_v38 = vmul.f32 %v4207_v20, %v13647_v33  ;;  %vm4239_vm13 = vweird.f32 %v13600_v36 }
 0x429   : > { %v4259_v0 = vmul.f32 %v4258_v30, %v13489_v17  ;;  %v4387_v11 = vadd.f32 0.014752088, %v4386_v47  ;;  %v4298_v43 = vadd.f32 0.05243302, %v4297_v8  ;;  %v13758_v7 = vadd.f32 1.0, %v4312_v37  ;;  %vm13761_vm14 = vmor %vm4239_vm13, %vm4240_vm12 }
 0x42a   : > { %v4335_v12 = vmul.f32 %v4334_v60, %v13602_v27  ;;  %v4425_v25 = vadd.f32 0.001143296, %v4424_v49  ;;  %v8384_v16 = vclamps-f32 %v4168_v39, 1.0  ;;  %vm13765_vm15 = vcmp.eq.f32.partialorder %v4243_v44, 8.507059e+37 }
 0x42b   : > { %v4350_v36 = vmul.f32 %v4349_v18, %v13602_v27  ;;  %v4465_v33 = vadd.f32 0.001143296, %v4464_v50  ;;  %v4242_v20 = vsel %vm13761_vm14, %v13657_v54, %v4238_v10  ;;  %v4246_v30 = vor.u32 1.1754944e-38, %v4245_v32 }
 0x42c   : > { %v4275_v47 = vmul.f32 %v13753_v22, %v13693_v5  ;;  %v13775_v8 = vmin.f32 %v4491_v52, 16.0  ;;  %v8385_v37 = vclamps-f32 %v4208_v38, 1.0  ;;  %v4260_v60 = vadd.f32 0.18741608, %v4259_v0 }
 0x42d   : > { %v4373_v49 = vmul.f32 2.1237322e-06, %v13661_v1  ;;  %v4388_v39 = vmul.f32 %v4387_v11, %v13661_v1  ;;  %v4299_v44 = vmul.f32 %v4298_v43, %v13543_v51  ;;  %8881 = vrcp.f32 %v13758_v7 }
 0x42e   : > { %v4336_v18 = vadd.f32 0.0036580483, %v4335_v12  ;;  %v4426_v50 = vmul.f32 %v4425_v25, %v13723_v6  ;;  %v6404_v54 = vadd.f32 1.0, %v8384_v16  ;;  %v4247_v10 = vsel %vm13765_vm15, %v4246_v30, %v4242_v20  ;;  %v925_v16 = vpop.f32.mrf.mxu3 }
 0x42f   : > { %v4351_v32 = vadd.f32 0.4994258, %v4350_v36  ;;  %v4466_v52 = vmul.f32 %v4465_v33, %v13727_v26  ;;  %v13786_v38 = vmul.f32 %v6403_v46, %v13424_v31  ;;  %v4223_v0 = vmul.f32 %v4222_v24, %v13365_v55 }
 0x430   : > { %v4276_v11 = vsub.f32 1.0, %v4275_v47  ;;  %v4504_v43 = vmul.f32 3.8918573e-05, %v13775_v8  ;;  %v6405_v4 = vadd.f32 1.0, %v8385_v37  ;;  %v4261_v12 = vmul.f32 %v4260_v60, %v13489_v17 }
 0x431   : > { %v4374_v28 = vadd.f32 0.00028619796, %v4373_v49  ;;  %v4389_v25 = vadd.f32 0.112945676, %v4388_v39  ;;  %v4248_v48 = vmul.f32 %v4247_v10, %v4223_v0  ;;  %v4300_v3 = vadd.f32 0.18741608, %v4299_v44 }
 0x432   : > { %v4337_v36 = vmul.f32 %v4336_v18, %v13602_v27  ;;  %v4427_v20 = vadd.f32 0.014752088, %v4426_v50  ;;  %v13793_v33 = vmul.f32 %v6404_v54, %v13468_v53  ;;  %v13796_v31 = vmul.f32 0.5, %v13548_v2 }
 0x433   : > { %v4352_v55 = vmul.f32 %v4351_v32, %v13602_v27  ;;  %v4467_v46 = vadd.f32 0.014752088, %v4466_v52  ;;  %v13799_v24 = vpop.eup %8881  ;;  %v4277_v17 = vmul.f32 %v13753_v22, %v4276_v11  ;;  %v13803_v30 = vmul.f32 0.5, %v13587_v62 }
 0x434   : > { %17589 = vst [vmem:[#allocation30_spill] sm:$0xff] %v13793_v33  ;;  %v4505_v47 = vadd.f32 0.001143296, %v4504_v43  ;;  %v13806_v37 = vadd.f32 %v925_v16, %v9512_v34  ;;  %v13809_v53 = vmul.f32 %v6405_v4, %v13482_v23  ;;  %v4262_v60 = vadd.f32 1.1283791, %v4261_v12 }
 0x435   : > { %v4375_v2 = vmul.f32 %v4374_v28, %v13661_v1  ;;  %v4390_v49 = vmul.f32 %v4389_v25, %v13661_v1  ;;  %v8386_v39 = vclamps-f32 %v4248_v48, 1.0  ;;  %v4301_v44 = vmul.f32 %v4300_v3, %v13543_v51 }
 0x436   : > { %17590 = vst [vmem:[#allocation34_spill] sm:$0xff] %v13809_v53  ;;  %v4338_v18 = vadd.f32 0.05243302, %v4337_v36  ;;  %v4428_v50 = vmul.f32 %v4427_v20, %v13723_v6  ;;  %v4315_v62 = vmul.f32 %v13799_v24, %v13758_v7  ;;  %v13817_v54 = vadd.f32 1.0, %v4352_v55 }
 0x437   : > { %v4413_v10 = vmul.f32 2.1237322e-06, %v13723_v6  ;;  %v4468_v23 = vmul.f32 %v4467_v46, %v13727_v26  ;;  %v4278_v32 = vadd.f32 %v13753_v22, %v4277_v17  ;;  %vm4280_vm0 = vweird.f32 %v13753_v22 }
 0x438   : > { %v4506_v48 = vmul.f32 %v4505_v47, %v13775_v8  ;;  %v13825_v51 = vmul.f32 0.70710677, %v13806_v37  ;;  %vm4279_vm1 = vweird.f32 %v13693_v5  ;;  %v4285_v28 = vand.u32 2147483648, %v13693_v5 }
 0x439   : > { %v4376_v52 = vadd.f32 0.0036580483, %v4375_v2  ;;  %v4391_v0 = vadd.f32 0.4994258, %v4390_v49  ;;  %v4283_v11 = vand.u32 2147483647, %v13693_v5  ;;  %v4339_v4 = vmul.f32 %v4338_v18, %v13602_v27  ;;  %vm13831_vm2 = vmor %vm4279_vm1, %vm4280_vm0 }
 0x43a   : > { %v4302_v43 = vadd.f32 1.1283791, %v4301_v44  ;;  %v4429_v12 = vadd.f32 0.112945676, %v4428_v50  ;;  %v4316_v16 = vsub.f32 1.0, %v4315_v62  ;;  %8883 = vrcp.f32 %v13817_v54 }
 0x43b   : > { %v4414_v3 = vadd.f32 0.00028619796, %v4413_v10  ;;  %v4469_v36 = vadd.f32 0.112945676, %v4468_v23  ;;  %v6406_v20 = vadd.f32 1.0, %v8386_v39  ;;  %v4282_v55 = vsel %vm13831_vm2, %v13753_v22, %v4278_v32 }
 0x43c   : > { %v4507_v46 = vadd.f32 0.014752088, %v4506_v48  ;;  %v4531_v5 = vmul.f32 %v13825_v51, %v13825_v51  ;;  %v4263_v17 = vmul.f32 %v4262_v60, %v13452_v57  ;;  %v4286_v47 = vor.u32 1.1754944e-38, %v4285_v28  ;;  %v660_v57 = vpop.f32.mrf.mxu0 }
 0x43d   : > { %v4377_v2 = vmul.f32 %v4376_v52, %v13661_v1  ;;  %v4392_v49 = vmul.f32 %v4391_v0, %v13661_v1  ;;  %vm4284_vm3 = vcmp.eq.f32.partialorder %v4283_v11, 8.507059e+37  ;;  %v13845_v44 = vmul.f32 %v4302_v43, %v13501_v13 }
 0x43e   : > { %v4340_v39 = vadd.f32 0.18741608, %v4339_v4  ;;  %v4430_v18 = vmul.f32 %v4429_v12, %v13723_v6  ;;  %v4287_v50 = vsel %vm4284_vm3, %v4286_v47, %v4282_v55  ;;  %v4317_v22 = vmul.f32 %v13799_v24, %v4316_v16 }
 0x43f   : > { %v4415_v62 = vmul.f32 %v4414_v3, %v13723_v6  ;;  %v4470_v10 = vmul.f32 %v4469_v36, %v13727_v26  ;;  %v13852_v60 = vmul.f32 %v6406_v20, %v13576_v9  ;;  %v4453_v23 = vmul.f32 2.1237322e-06, %v13727_v26 }
 0x440   : > { %v4508_v32 = vmul.f32 %v4507_v46, %v13775_v8  ;;  %v13856_v13 = vmin.f32 %v4531_v5, 16.0  ;;  %v13858_v48 = vpop.eup %8883  ;;  %vm4319_vm4 = vweird.f32 %v13758_v7  ;;  %v4323_v28 = vand.u32 2147483647, %v13758_v7 }
 0x441   : > { %17593 = vst [vmem:[#allocation35_spill] sm:$0xff] %v13852_v60  ;;  %v4378_v52 = vadd.f32 0.05243302, %v4377_v2  ;;  %v13862_v0 = vadd.f32 1.0, %v4392_v49  ;;  %v4288_v11 = vmul.f32 %v4287_v50, %v4263_v17  ;;  %v4341_v43 = vmul.f32 %v4340_v39, %v13602_v27 }
 0x442   : > { %v4431_v9 = vadd.f32 0.4994258, %v4430_v18  ;;  %v13866_v4 = vadd.f32 %v660_v57, %v9483_v19  ;;  %v4318_v12 = vadd.f32 %v13799_v24, %v4317_v22  ;;  %vm4320_vm5 = vweird.f32 %v13799_v24  ;;  %v749_v18 = vpop.f32.mrf.mxu1 }
 0x443   : > { %v4416_v25 = vadd.f32 0.0036580483, %v4415_v62  ;;  %v4471_v16 = vadd.f32 0.4994258, %v4470_v10  ;;  %v4355_v3 = vmul.f32 %v13858_v48, %v13817_v54  ;;  %v4454_v36 = vadd.f32 0.00028619796, %v4453_v23  ;;  %vm13881_vm6 = vmor %vm4319_vm4, %vm4320_vm5 }
 0x444   : > { %v4509_v20 = vadd.f32 0.112945676, %v4508_v32  ;;  %v4544_v55 = vmul.f32 3.8918573e-05, %v13856_v13  ;;  %v4325_v46 = vand.u32 2147483648, %v13758_v7  ;;  %v4379_v27 = vmul.f32 %v4378_v52, %v13661_v1 }
 0x445   : > { %8885 = vrcp.f32 %v13862_v0  ;;  %v13877_v5 = vmul.f32 0.5, %v13643_v40  ;;  %v8387_v17 = vclamps-f32 %v4288_v11, 1.0  ;;  %v4342_v2 = vadd.f32 1.1283791, %v4341_v43 }
 0x446   : > { %v4432_v49 = vmul.f32 %v4431_v9, %v13723_v6  ;;  %v13887_v39 = vmul.f32 0.70710677, %v13866_v4  ;;  %v4322_v50 = vsel %vm13881_vm6, %v13799_v24, %v4318_v12  ;;  %vm13892_vm7 = vcmp.eq.f32.partialorder %v4323_v28, 8.507059e+37 }
 0x447   : > { %v4417_v7 = vmul.f32 %v4416_v25, %v13723_v6  ;;  %v4472_v22 = vmul.f32 %v4471_v16, %v13727_v26  ;;  %v4356_v62 = vsub.f32 1.0, %v4355_v3  ;;  %v4455_v10 = vmul.f32 %v4454_v36, %v13727_v26 }
 0x448   : > { %v4510_v57 = vmul.f32 %v4509_v20, %v13775_v8  ;;  %v4545_v23 = vadd.f32 0.001143296, %v4544_v55  ;;  %v4326_v32 = vor.u32 1.1754944e-38, %v4325_v46  ;;  %v4380_v52 = vadd.f32 0.18741608, %v4379_v27 }
 0x449   : > { %v13901_v11 = vmul.f32 0.5, %v13650_v15  ;;  %v13904_v24 = vadd.f32 %v749_v18, %v9485_v21  ;;  %v6407_v28 = vadd.f32 1.0, %v8387_v17  ;;  %v13907_v43 = vmul.f32 %v4342_v2, %v13564_v41 }
 0x44a   : > { %v13909_v9 = vadd.f32 1.0, %v4432_v49  ;;  %v4571_v12 = vmul.f32 %v13887_v39, %v13887_v39  ;;  %v4327_v16 = vsel %vm13892_vm7, %v4326_v32, %v4322_v50  ;;  %v4418_v3 = vadd.f32 0.05243302, %v4417_v7 }
 0x44b   : > { %v13913_v25 = vpop.eup %8885  ;;  %v13917_v15 = vadd.f32 1.0, %v4472_v22  ;;  %v4493_v36 = vmul.f32 2.1237322e-06, %v13775_v8  ;;  %v4357_v20 = vmul.f32 %v13858_v48, %v4356_v62  ;;  %v4456_v55 = vadd.f32 0.0036580483, %v4455_v10 }
 0x44c   : > { %v4511_v41 = vadd.f32 0.4994258, %v4510_v57  ;;  %v4546_v46 = vmul.f32 %v4545_v23, %v13856_v13  ;;  %v4363_v27 = vand.u32 2147483647, %v13817_v54  ;;  %v4365_v17 = vand.u32 2147483648, %v13817_v54 }
 0x44d   : > { %v4381_v47 = vmul.f32 %v4380_v52, %v13661_v1  ;;  %v13926_v2 = vmul.f32 0.70710677, %v13904_v24  ;;  %v4328_v49 = vmul.f32 %v4327_v16, %v13845_v44  ;;  %v4395_v18 = vmul.f32 %v13913_v25, %v13862_v0 }
 0x44e   : > { %8887 = vrcp.f32 %v13909_v9  ;;  %v13932_v50 = vmin.f32 %v4571_v12, 16.0  ;;  %vm4360_vm8 = vweird.f32 %v13858_v48  ;;  %v4419_v40 = vmul.f32 %v4418_v3, %v13723_v6 }
 0x44f   : > { %8889 = vrcp.f32 %v13917_v15  ;;  %v4494_v7 = vadd.f32 0.00028619796, %v4493_v36  ;;  %v4358_v1 = vadd.f32 %v13858_v48, %v4357_v20  ;;  %v4457_v22 = vmul.f32 %v4456_v55, %v13727_v26  ;;  %v838_v20 = vpop.f32.mrf.mxu2 }
 0x450   : > { %v4512_v44 = vmul.f32 %v4511_v41, %v13775_v8  ;;  %v4547_v62 = vadd.f32 0.014752088, %v4546_v46  ;;  %v13941_v10 = vmul.f32 %v6407_v28, %v13655_v45  ;;  %vm4359_vm9 = vweird.f32 %v13817_v54 }
 0x451   : > { %v4382_v57 = vadd.f32 1.1283791, %v4381_v47  ;;  %v4611_v23 = vmul.f32 %v13926_v2, %v13926_v2  ;;  %v8388_v32 = vclamps-f32 %v4328_v49, 1.0  ;;  %vm13946_vm10 = vcmp.eq.f32.partialorder %v4363_v27, 8.507059e+37  ;;  %vm13953_vm11 = vmor %vm4359_vm9, %vm4360_vm8 }
 0x452   : > { %17598 = vst [vmem:[#allocation39_spill] sm:$0xff] %v13941_v10  ;;  %v4396_v12 = vsub.f32 1.0, %v4395_v18  ;;  %v4584_v16 = vmul.f32 3.8918573e-05, %v13932_v50  ;;  %v4366_v45 = vor.u32 1.1754944e-38, %v4365_v17  ;;  %v4495_v36 = vmul.f32 %v4494_v7, %v13775_v8 }
 0x453   : > { %v4403_v54 = vand.u32 2147483647, %v13862_v0  ;;  %v4420_v28 = vadd.f32 0.18741608, %v4419_v40  ;;  %v4362_v41 = vsel %vm13953_vm11, %v13858_v48, %v4358_v1  ;;  %v4458_v46 = vadd.f32 0.05243302, %v4457_v22 }
 0x454   : > { %v13959_v55 = vpop.eup %8887  ;;  %v13964_v27 = vadd.f32 1.0, %v4512_v44  ;;  %v4548_v47 = vmul.f32 %v4547_v62, %v13856_v13  ;;  %v13970_v17 = vmul.f32 %v4382_v57, %v13619_v42  ;;  %vm4399_vm12 = vweird.f32 %v13862_v0  ;;  %v927_v57 = vpop.f32.mrf.mxu3 }
 0x455   : > { %v13967_v49 = vpop.eup %8889  ;;  %v4405_v18 = vand.u32 2147483648, %v13862_v0  ;;  %v13974_v40 = vmin.f32 %v4611_v23, 16.0  ;;  %v6408_v7 = vadd.f32 1.0, %v8388_v32  ;;  %v4397_v3 = vmul.f32 %v13913_v25, %v4396_v12 }
 0x456   : > { %v4585_v48 = vadd.f32 0.001143296, %v4584_v16  ;;  %v13978_v1 = vadd.f32 %v838_v20, %v9503_v29  ;;  %v4367_v22 = vsel %vm13946_vm10, %v4366_v45, %v4362_v41  ;;  %v4421_v44 = vmul.f32 %v4420_v28, %v13723_v6 }
 0x457   : > { %v4435_v42 = vmul.f32 %v13959_v55, %v13909_v9  ;;  %v4496_v62 = vadd.f32 0.0036580483, %v4495_v36  ;;  %vm13985_vm13 = vcmp.eq.f32.partialorder %v4403_v54, 8.507059e+37  ;;  %v4459_v32 = vmul.f32 %v4458_v46, %v13727_v26 }
 0x458   : > { %v4475_v12 = vmul.f32 %v13967_v49, %v13917_v15  ;;  %8891 = vrcp.f32 %v13964_v27  ;;  %v4549_v52 = vadd.f32 0.112945676, %v4548_v47  ;;  %vm4400_vm14 = vweird.f32 %v13913_v25 }
 0x459   : > { %v4406_v6 = vor.u32 1.1754944e-38, %v4405_v18  ;;  %v4533_v16 = vmul.f32 2.1237322e-06, %v13856_v13  ;;  %v4624_v45 = vmul.f32 3.8918573e-05, %v13974_v40  ;;  %v4398_v54 = vadd.f32 %v13913_v25, %v4397_v3  ;;  %vm14017_vm15 = vmor %vm4399_vm12, %vm4400_vm14 }
 0x45a   : > { %v4586_v28 = vmul.f32 %v4585_v48, %v13932_v50  ;;  %v13999_v36 = vmul.f32 0.70710677, %v13978_v1  ;;  %v14002_v20 = vadd.f32 %v927_v57, %v9512_v34  ;;  %v14005_v41 = vmul.f32 %v4367_v22, %v13907_v43 }
 0x45b   : > { %v4422_v46 = vadd.f32 1.1283791, %v4421_v44  ;;  %v4436_v47 = vsub.f32 1.0, %v4435_v42  ;;  %v4497_v18 = vmul.f32 %v4496_v62, %v13775_v8  ;;  %v4443_v60 = vand.u32 2147483647, %v13909_v9 }
 0x45c   : > { %v4460_v53 = vadd.f32 0.18741608, %v4459_v32  ;;  %v4476_v33 = vsub.f32 1.0, %v4475_v12  ;;  %v4550_v3 = vmul.f32 %v4549_v52, %v13856_v13  ;;  %v14011_v48 = vmul.f32 %v6408_v7, %v13734_v61 }
 0x45d   : > { %v4445_v22 = vand.u32 2147483648, %v13909_v9  ;;  %v4534_v44 = vadd.f32 0.00028619796, %v4533_v16  ;;  %v4625_v42 = vadd.f32 0.001143296, %v4624_v45  ;;  %v4402_v57 = vsel %vm14017_vm15, %v13913_v25, %v4398_v54 }
 0x45e   : > { %17605 = vst [vmem:[#allocation36_spill] sm:$0xff] %v14011_v48  ;;  %v14022_v62 = vpop.eup %8891  ;;  %v4587_v61 = vadd.f32 0.014752088, %v4586_v28  ;;  %v4651_v7 = vmul.f32 %v13999_v36, %v13999_v36  ;;  %v14030_v0 = vmul.f32 0.70710677, %v14002_v20  ;;  %v14034_v12 = vmul.f32 %v4422_v46, %v13666_v35 }
 0x45f   : > { %v4437_v52 = vmul.f32 %v13959_v55, %v4436_v47  ;;  %v4498_v16 = vadd.f32 0.05243302, %v4497_v18  ;;  %vm4439_vm0 = vweird.f32 %v13909_v9  ;;  %v4461_v45 = vmul.f32 %v4460_v53, %v13727_v26 }
 0x460   : > { %v4477_v25 = vmul.f32 %v13967_v49, %v4476_v33  ;;  %v4551_v54 = vadd.f32 0.4994258, %v4550_v3  ;;  %v4407_v28 = vsel %vm13985_vm13, %v4406_v6, %v4402_v57  ;;  %v4515_v43 = vmul.f32 %v14022_v62, %v13964_v27 }
 0x461   : > { %v4535_v32 = vmul.f32 %v4534_v44, %v13856_v13  ;;  %v4626_v35 = vmul.f32 %v4625_v42, %v13974_v40  ;;  %vm14046_vm1 = vcmp.eq.f32.partialorder %v4443_v60, 8.507059e+37  ;;  %v4446_v47 = vor.u32 1.1754944e-38, %v4445_v22 }
 0x462   : > { %v4588_v26 = vmul.f32 %v4587_v61, %v13932_v50  ;;  %v14051_v53 = vmin.f32 %v4651_v7, 16.0  ;;  %v4691_v33 = vmul.f32 %v14030_v0, %v14030_v0  ;;  %v4438_v23 = vadd.f32 %v13959_v55, %v4437_v52 }
 0x463   : > { %vm4440_vm2 = vweird.f32 %v13959_v55  ;;  %v4483_v6 = vand.u32 2147483647, %v13917_v15  ;;  %v4499_v18 = vmul.f32 %v4498_v16, %v13775_v8  ;;  %v4478_v60 = vadd.f32 %v13967_v49, %v4477_v25 }
 0x464   : > { %vm4480_vm3 = vweird.f32 %v13967_v49  ;;  %v4552_v3 = vmul.f32 %v4551_v54, %v13856_v13  ;;  %v4573_v22 = vmul.f32 2.1237322e-06, %v13932_v50  ;;  %v4485_v44 = vand.u32 2147483648, %v13917_v15  ;;  %vm14066_vm4 = vmor %vm4439_vm0, %vm4440_vm2 }
 0x465   : > { %v4516_v42 = vsub.f32 1.0, %v4515_v43  ;;  %v4536_v57 = vadd.f32 0.0036580483, %v4535_v32  ;;  %v4627_v61 = vadd.f32 0.014752088, %v4626_v35  ;;  %vm4479_vm5 = vweird.f32 %v13917_v15 }
 0x466   : > { %v4589_v52 = vadd.f32 0.112945676, %v4588_v26  ;;  %v4664_v16 = vmul.f32 3.8918573e-05, %v14051_v53  ;;  %v14072_v25 = vmin.f32 %v4691_v33, 16.0  ;;  %v14075_v54 = vmul.f32 %v4407_v28, %v13970_v17  ;;  %vm14082_vm6 = vmor %vm4479_vm5, %vm4480_vm3 }
 0x467   : > { %v4442_v32 = vsel %vm14066_vm4, %v13959_v55, %v4438_v23  ;;  %v4462_v43 = vadd.f32 1.1283791, %v4461_v45  ;;  %v4500_v15 = vadd.f32 0.18741608, %v4499_v18  ;;  %v4482_v35 = vsel %vm14082_vm6, %v13967_v49, %v4478_v60 }
 0x468   : > { %v14089_v26 = vadd.f32 1.0, %v4552_v3  ;;  %v4574_v17 = vadd.f32 0.00028619796, %v4573_v22  ;;  %v4613_v28 = vmul.f32 2.1237322e-06, %v13974_v40  ;;  %v4486_v33 = vor.u32 1.1754944e-38, %v4485_v44  ;;  %v663_v44 = vpop.f32.mrf.mxu0 }
 0x469   : > { %v4517_v55 = vmul.f32 %v14022_v62, %v4516_v42  ;;  %v4537_v45 = vmul.f32 %v4536_v57, %v13856_v13  ;;  %v4628_v23 = vmul.f32 %v4627_v61, %v13974_v40  ;;  %vm4484_vm7 = vcmp.eq.f32.partialorder %v4483_v6, 8.507059e+37 }
 0x46a   : > { %v4590_v7 = vmul.f32 %v4589_v52, %v13932_v50  ;;  %v4665_v18 = vadd.f32 0.001143296, %v4664_v16  ;;  %v4704_v48 = vmul.f32 3.8918573e-05, %v14072_v25  ;;  %v4447_v49 = vsel %vm14046_vm1, %v4446_v47, %v4442_v32 }
 0x46b   : > { %v4463_v60 = vmul.f32 %v4462_v43, %v13676_v59  ;;  %v4487_v3 = vsel %vm4484_vm7, %v4486_v33, %v4482_v35  ;;  %v4501_v22 = vmul.f32 %v4500_v15, %v13775_v8  ;;  %v4525_v42 = vand.u32 2147483648, %v13964_v27 }
 0x46c   : > { %8893 = vrcp.f32 %v14089_v26  ;;  %v4575_v6 = vmul.f32 %v4574_v17, %v13932_v50  ;;  %v4614_v57 = vadd.f32 0.00028619796, %v4613_v28  ;;  %v4518_v61 = vadd.f32 %v14022_v62, %v4517_v55 }
 0x46d   : > { %vm4520_vm8 = vweird.f32 %v14022_v62  ;;  %v4538_v52 = vadd.f32 0.05243302, %v4537_v45  ;;  %v4629_v46 = vadd.f32 0.112945676, %v4628_v23  ;;  %v4591_v47 = vadd.f32 0.4994258, %v4590_v7 }
 0x46e   : > { %v4666_v59 = vmul.f32 %v4665_v18, %v14051_v53  ;;  %v4705_v16 = vadd.f32 0.001143296, %v4704_v48  ;;  %v14108_v8 = vadd.f32 %v663_v44, %v9483_v19  ;;  %v4448_v32 = vmul.f32 %v4447_v49, %v14034_v12 }
 0x46f   : > { %v4488_v43 = vmul.f32 %v4487_v3, %v4463_v60  ;;  %vm4519_vm9 = vweird.f32 %v13964_v27  ;;  %v4523_v9 = vand.u32 2147483647, %v13964_v27  ;;  %v17614_v15 = vclamps-f32 %v14005_v41, 1.0 }
 0x470   : > { %v4502_v17 = vadd.f32 1.1283791, %v4501_v22  ;;  %vm14115_vm10 = vmor %vm4519_vm9, %vm4520_vm8  ;;  %v4576_v33 = vadd.f32 0.0036580483, %v4575_v6  ;;  %v4615_v48 = vmul.f32 %v4614_v57, %v13974_v40  ;;  %v4526_v55 = vor.u32 1.1754944e-38, %v4525_v42 }
 0x471   : > { %v6409_v35 = vadd.f32 1.0, %v17614_v15  ;;  %v4522_v12 = vsel %vm14115_vm10, %v14022_v62, %v4518_v61  ;;  %v4539_v45 = vmul.f32 %v4538_v52, %v13856_v13  ;;  %v4630_v27 = vmul.f32 %v4629_v46, %v13974_v40 }
 0x472   : > { %v14125_v23 = vpop.eup %8893  ;;  %v4592_v41 = vmul.f32 %v4591_v47, %v13932_v50  ;;  %v4667_v7 = vadd.f32 0.014752088, %v4666_v59  ;;  %v4706_v18 = vmul.f32 %v4705_v16, %v14072_v25  ;;  %v14130_v49 = vmul.f32 0.70710677, %v14108_v8 }
 0x473   : > { %v8390_v60 = vclamps-f32 %v14075_v54, 1.0  ;;  %v8391_v3 = vclamps-f32 %v4448_v32, 1.0  ;;  %v8392_v22 = vclamps-f32 %v4488_v43, 1.0  ;;  %vm4524_vm11 = vcmp.eq.f32.partialorder %v4523_v9, 8.507059e+37 }
 0x474   : > { %v4527_v62 = vsel %vm4524_vm11, %v4526_v55, %v4522_v12  ;;  %v4577_v44 = vmul.f32 %v4576_v33, %v13932_v50  ;;  %v4616_v42 = vadd.f32 0.0036580483, %v4615_v48  ;;  %v4653_v6 = vmul.f32 2.1237322e-06, %v14051_v53 }
 0x475   : > { %v4503_v57 = vmul.f32 %v4502_v17, %v13737_v14  ;;  %v4540_v61 = vadd.f32 0.18741608, %v4539_v45  ;;  %v4555_v52 = vmul.f32 %v14125_v23, %v14089_v26  ;;  %v4631_v46 = vadd.f32 0.4994258, %v4630_v27  ;;  %v752_v27 = vpop.f32.mrf.mxu1 }
 0x476   : > { %v14138_v47 = vadd.f32 1.0, %v4592_v41  ;;  %v4668_v54 = vmul.f32 %v4667_v7, %v14051_v53  ;;  %v4707_v59 = vadd.f32 0.014752088, %v4706_v18  ;;  %v4731_v16 = vmul.f32 %v14130_v49, %v14130_v49  ;;  %v841_v7 = vpop.f32.mrf.mxu2 }
 0x477   : > { %v14144_v32 = vmul.f32 %v6409_v35, %v13796_v31  ;;  %v6410_v43 = vadd.f32 1.0, %v8390_v60  ;;  %v6411_v9 = vadd.f32 1.0, %v8391_v3  ;;  %v4528_v15 = vmul.f32 %v4527_v62, %v4503_v57 }
 0x478   : > { %v1037_v14 = vmul.f32 0.5, %v13707_v63  ;;  %v4578_v17 = vadd.f32 0.05243302, %v4577_v44  ;;  %v4617_v28 = vmul.f32 %v4616_v42, %v13974_v40  ;;  %v4654_v33 = vadd.f32 0.00028619796, %v4653_v6 }
 0x479   : > { %17617 = vst [vmem:[#allocation40_spill] sm:$0xff] %v14144_v32  ;;  %v6412_v48 = vadd.f32 1.0, %v8392_v22  ;;  %v4541_v12 = vmul.f32 %v4540_v61, %v13856_v13  ;;  %v4556_v55 = vsub.f32 1.0, %v4555_v52  ;;  %v4632_v45 = vmul.f32 %v4631_v46, %v13974_v40 }
 0x47a   : > { %8895 = vrcp.f32 %v14138_v47  ;;  %v4669_v31 = vadd.f32 0.112945676, %v4668_v54  ;;  %v4708_v35 = vmul.f32 %v4707_v59, %v14072_v25  ;;  %v14152_v41 = vmin.f32 %v4731_v16, 16.0 }
 0x47b   : > { %v14155_v63 = vmul.f32 %v6410_v43, %v13803_v30  ;;  %v14158_v18 = vmul.f32 %v6411_v9, %v13877_v5  ;;  %v8393_v60 = vclamps-f32 %v4528_v15, 1.0  ;;  %v14161_v13 = vmul.f32 0.5, %v13806_v37 }
 0x47c   : > { %v4579_v3 = vmul.f32 %v4578_v17, %v13932_v50  ;;  %v4618_v22 = vadd.f32 0.05243302, %v4617_v28  ;;  %v4655_v62 = vmul.f32 %v4654_v33, %v14051_v53  ;;  %v14166_v44 = vadd.f32 %v752_v27, %v9485_v21 }
 0x47d   : > { %17618 = vst [vmem:[#allocation37_spill] sm:$0xff] %v14155_v63  ;;  %v14169_v42 = vmul.f32 %v6412_v48, %v13901_v11  ;;  %v4542_v30 = vadd.f32 1.1283791, %v4541_v12  ;;  %v4557_v6 = vmul.f32 %v14125_v23, %v4556_v55  ;;  %v14173_v5 = vadd.f32 %v841_v7, %v9503_v29 }
 0x47e   : > { %17619 = vst [vmem:[#allocation41_spill] sm:$0xff] %v14158_v18  ;;  %v14175_v57 = vadd.f32 1.0, %v4632_v45  ;;  %v4670_v37 = vmul.f32 %v4669_v31, %v14051_v53  ;;  %v4709_v61 = vadd.f32 0.112945676, %v4708_v35  ;;  %v4744_v52 = vmul.f32 3.8918573e-05, %v14152_v41  ;;  %v930_v45 = vpop.f32.mrf.mxu3 }
 0x47f   : > { %17620 = vst [vmem:[#allocation38_spill] sm:$0xff] %v14169_v42  ;;  %v6413_v46 = vadd.f32 1.0, %v8393_v60  ;;  %v14180_v54 = vmul.f32 0.5, %v13866_v4  ;;  %v14183_v11 = vmul.f32 0.5, %v13904_v24  ;;  %v14186_v59 = vmul.f32 0.5, %v13978_v1 }
 0x480   : > { %v14188_v16 = vpop.eup %8895  ;;  %v4580_v43 = vadd.f32 0.18741608, %v4579_v3  ;;  %v4619_v9 = vmul.f32 %v4618_v22, %v13974_v40  ;;  %v4656_v15 = vadd.f32 0.0036580483, %v4655_v62  ;;  %v14192_v17 = vmul.f32 0.70710677, %v14166_v44 }
 0x481   : > { %v4543_v28 = vmul.f32 %v4542_v30, %v13825_v51  ;;  %v4558_v4 = vadd.f32 %v14125_v23, %v4557_v6  ;;  %vm4560_vm12 = vweird.f32 %v14125_v23  ;;  %v14198_v24 = vmul.f32 0.70710677, %v14173_v5 }
 0x482   : > { %8897 = vrcp.f32 %v14175_v57  ;;  %v4671_v1 = vadd.f32 0.4994258, %v4670_v37  ;;  %v4710_v33 = vmul.f32 %v4709_v61, %v14072_v25  ;;  %v4745_v48 = vadd.f32 0.001143296, %v4744_v52 }
 0x483   : > { %vm4559_vm13 = vweird.f32 %v14089_v26  ;;  %v4563_v12 = vand.u32 2147483647, %v14089_v26  ;;  %v4565_v55 = vand.u32 2147483648, %v14089_v26  ;;  %v4595_v51 = vmul.f32 %v14188_v16, %v14138_v47 }
 0x484   : > { %vm14207_vm14 = vmor %vm4559_vm13, %vm4560_vm12  ;;  %v4581_v31 = vmul.f32 %v4580_v43, %v13932_v50  ;;  %v4620_v35 = vadd.f32 0.18741608, %v4619_v9  ;;  %v4657_v7 = vmul.f32 %v4656_v15, %v14051_v53  ;;  %v4771_v60 = vmul.f32 %v14192_v17, %v14192_v17 }
 0x485   : > { %v14215_v3 = vmul.f32 %v6413_v46, %v1037_v14  ;;  %v4562_v26 = vsel %vm14207_vm14, %v14125_v23, %v4558_v4  ;;  %v4693_v22 = vmul.f32 2.1237322e-06, %v14072_v25  ;;  %v4811_v62 = vmul.f32 %v14198_v24, %v14198_v24 }
 0x486   : > { %v4672_v30 = vmul.f32 %v4671_v1, %v14051_v53  ;;  %v4711_v50 = vadd.f32 0.4994258, %v4710_v33  ;;  %v4746_v6 = vmul.f32 %v4745_v48, %v14152_v41  ;;  %v14226_v37 = vadd.f32 %v930_v45, %v9512_v34 }
 0x487   : > { %17623 = vst [vmem:[#allocation42_spill] sm:$0xff] %v14215_v3  ;;  %vm4564_vm15 = vcmp.eq.f32.partialorder %v4563_v12, 8.507059e+37  ;;  %v4566_v14 = vor.u32 1.1754944e-38, %v4565_v55  ;;  %v4596_v61 = vsub.f32 1.0, %v4595_v51  ;;  %v14229_v52 = vmul.f32 0.5, %v14002_v20  ;;  %v17626_v3 = vld [vmem:[#allocation43_spill] sm:$0xff] }
 0x488   : > { %v14231_v23 = vpop.eup %8897  ;;  %v4582_v46 = vadd.f32 1.1283791, %v4581_v31  ;;  %v4621_v43 = vmul.f32 %v4620_v35, %v13974_v40  ;;  %v4658_v9 = vadd.f32 0.05243302, %v4657_v7  ;;  %v14234_v15 = vmin.f32 %v4771_v60, 16.0 }
 0x489   : > { %v4567_v4 = vsel %vm4564_vm15, %v4566_v14, %v4562_v26  ;;  %v4603_v1 = vand.u32 2147483647, %v14138_v47  ;;  %v4694_v33 = vadd.f32 0.00028619796, %v4693_v22  ;;  %v14237_v48 = vmin.f32 %v4811_v62, 16.0 }
 0x48a   : > { %v14239_v12 = vadd.f32 1.0, %v4672_v30  ;;  %v4712_v55 = vmul.f32 %v4711_v50, %v14072_v25  ;;  %v4747_v20 = vadd.f32 0.014752088, %v4746_v6  ;;  %v14243_v51 = vmul.f32 0.70710677, %v14226_v37 }
 0x48b   : > { %v4597_v45 = vmul.f32 %v14188_v16, %v4596_v61  ;;  %v4605_v40 = vand.u32 2147483648, %v14138_v47  ;;  %v4635_v27 = vmul.f32 %v14231_v23, %v14175_v57  ;;  %v14250_v31 = vmul.f32 0.5, %v14108_v8 }
 0x48c   : > { %v4583_v35 = vmul.f32 %v4582_v46, %v13887_v39  ;;  %v4622_v7 = vadd.f32 1.1283791, %v4621_v43  ;;  %v4659_v60 = vmul.f32 %v4658_v9, %v14051_v53  ;;  %v4784_v26 = vmul.f32 3.8918573e-05, %v14234_v15 }
 0x48d   : > { %v4568_v22 = vmul.f32 %v4567_v4, %v4543_v28  ;;  %vm14255_vm0 = vcmp.eq.f32.partialorder %v4603_v1, 8.507059e+37  ;;  %v4695_v30 = vmul.f32 %v4694_v33, %v14072_v25  ;;  %v4733_v50 = vmul.f32 2.1237322e-06, %v14152_v41 }
 0x48e   : > { %v4824_v6 = vmul.f32 3.8918573e-05, %v14237_v48  ;;  %8899 = vrcp.f32 %v14239_v12  ;;  %v14263_v8 = vadd.f32 1.0, %v4712_v55  ;;  %v4748_v39 = vmul.f32 %v4747_v20, %v14152_v41  ;;  %v17627_v20 = vld [vmem:[#allocation47_spill] sm:$0xff] }
 0x48f   : > { %v4851_v14 = vmul.f32 %v14243_v51, %v14243_v51  ;;  %v4598_v28 = vadd.f32 %v14188_v16, %v4597_v45  ;;  %vm4600_vm1 = vweird.f32 %v14188_v16  ;;  %v4606_v61 = vor.u32 1.1754944e-38, %v4605_v40 }
 0x490   : > { %v4636_v46 = vsub.f32 1.0, %v4635_v27  ;;  %vm4599_vm2 = vweird.f32 %v14138_v47  ;;  %v4643_v43 = vand.u32 2147483647, %v14175_v57  ;;  %v4660_v9 = vadd.f32 0.18741608, %v4659_v60 }
 0x491   : > { %v4785_v4 = vadd.f32 0.001143296, %v4784_v26  ;;  %v8394_v1 = vclamps-f32 %v4568_v22, 1.0  ;;  %v4696_v33 = vadd.f32 0.0036580483, %v4695_v30  ;;  %v6603_v42 = vpack.c.bf16 %v17627_v20, %v17626_v3  ;;  %vm14274_vm3 = vmor %vm4599_vm2, %vm4600_vm1  ;;  %v17635_v20 = vld [vmem:[#allocation49_spill] sm:$0xff] }
 0x492   : > { %v4825_v55 = vadd.f32 0.001143296, %v4824_v6  ;;  %8901 = vrcp.f32 %v14263_v8  ;;  %v4734_v45 = vadd.f32 0.00028619796, %v4733_v50  ;;  %v4749_v40 = vadd.f32 0.112945676, %v4748_v39 }
 0x493   : > { %v14279_v27 = vmin.f32 %v4851_v14, 16.0  ;;  %v4602_v47 = vsel %vm14274_vm3, %v14188_v16, %v4598_v28  ;;  %v14285_v60 = vmul.f32 %v4622_v7, %v13926_v2  ;;  %v4637_v26 = vmul.f32 %v14231_v23, %v4636_v46  ;;  %6939 = vmatmul.bf16.gmra.mxu0 %v6603_v42  ;;  %v17630_v6 = vld [vmem:[#allocation44_spill] sm:$0xff] }
 0x494   : > { %vm4639_vm4 = vweird.f32 %v14175_v57  ;;  %v14289_v3 = vpop.eup %8899  ;;  %v4645_v22 = vand.u32 2147483648, %v14175_v57  ;;  %v4661_v30 = vmul.f32 %v4660_v9, %v14051_v53  ;;  %v4786_v50 = vmul.f32 %v4785_v4, %v14234_v15  ;;  %v17631_v39 = vld [vmem:[#allocation48_spill] sm:$0xff] }
 0x495   : > { %v6604_v18 = vpack.c.bf16 %v17631_v39, %v17630_v6  ;;  %v6414_v16 = vadd.f32 1.0, %v8394_v1  ;;  %vm14296_vm5 = vcmp.eq.f32.partialorder %v4643_v43, 8.507059e+37  ;;  %v4697_v7 = vmul.f32 %v4696_v33, %v14072_v25  ;;  %v17636_v39 = vld [vmem:[#allocation46_spill] sm:$0xff] }
 0x496   : > { %v4826_v42 = vmul.f32 %v4825_v55, %v14237_v48  ;;  %v4607_v14 = vsel %vm14255_vm0, %v4606_v61, %v4602_v47  ;;  %v4735_v28 = vmul.f32 %v4734_v45, %v14152_v41  ;;  %v4750_v53 = vmul.f32 %v4749_v40, %v14152_v41  ;;  %v17634_v55 = vld [vmem:[#allocation45_spill] sm:$0xff] }
 0x497   : > { %v4864_v46 = vmul.f32 3.8918573e-05, %v14279_v27  ;;  %7028 = vmatmul.bf16.gmra.mxu1 %v6604_v18  ;;  %v4638_v9 = vadd.f32 %v14231_v23, %v4637_v26  ;;  %vm4640_vm6 = vweird.f32 %v14231_v23  ;;  %v4675_v43 = vmul.f32 %v14289_v3, %v14239_v12  ;;  %v665_v26 = vpop.f32.mrf.mxu0  ;;  %v17637_v18 = vld [vmem:[#allocation50_spill] sm:$0xff] }
 0x498   : > { %v4773_v4 = vmul.f32 2.1237322e-06, %v14234_v15  ;;  %v14312_v1 = vpop.eup %8901  ;;  %v4646_v62 = vor.u32 1.1754944e-38, %v4645_v22  ;;  %v4662_v61 = vadd.f32 1.1283791, %v4661_v30  ;;  %v6605_v45 = vpack.c.bf16 %v17635_v20, %v17634_v55  ;;  %vm14325_vm7 = vmor %vm4639_vm4, %vm4640_vm6 }
 0x499   : > { %v4787_v33 = vadd.f32 0.014752088, %v4786_v50  ;;  %v14316_v40 = vmul.f32 %v4607_v14, %v4583_v35  ;;  %v4698_v47 = vadd.f32 0.05243302, %v4697_v7  ;;  %v4827_v6 = vadd.f32 0.014752088, %v4826_v42 }
 0x49a   : > { %v6606_v63 = vpack.c.bf16 %v17637_v18, %v17636_v39  ;;  %v14321_v32 = vmul.f32 %v6414_v16, %v14161_v13  ;;  %v4736_v30 = vadd.f32 0.0036580483, %v4735_v28  ;;  %v4751_v50 = vadd.f32 0.4994258, %v4750_v53  ;;  %7117 = vmatmul.bf16.gmra.mxu2 %v6605_v45  ;;  %v17641_v18 = vld [vmem:[#allocation51_spill] sm:$0xff] }
 0x49b   : > { %v4865_v55 = vadd.f32 0.001143296, %v4864_v46  ;;  %v4642_v35 = vsel %vm14325_vm7, %v14231_v23, %v4638_v9  ;;  %v4676_v7 = vsub.f32 1.0, %v4675_v43  ;;  %v4715_v42 = vmul.f32 %v14312_v1, %v14263_v8 }
 0x49c   : > { %17638 = vst [vmem:[#allocation43_spill] sm:$0xff] %v14321_v32  ;;  %v4774_v13 = vadd.f32 0.00028619796, %v4773_v4  ;;  %7206 = vmatmul.bf16.gmra.mxu3 %v6606_v63  ;;  %v14335_v57 = vmul.f32 %v4662_v61, %v13999_v36  ;;  %v4788_v16 = vmul.f32 %v4787_v33, %v14234_v15  ;;  %v4813_v14 = vmul.f32 2.1237322e-06, %v14237_v48 }
 0x49d   : > { %v14340_v28 = vadd.f32 %v665_v26, %v9483_v19  ;;  %v8395_v53 = vclamps-f32 %v14316_v40, 1.0  ;;  %v4683_v23 = vand.u32 2147483647, %v14239_v12  ;;  %v4699_v46 = vmul.f32 %v4698_v47, %v14072_v25 }
 0x49e   : > { %v4828_v9 = vmul.f32 %v4827_v6, %v14237_v48  ;;  %v4647_v63 = vsel %vm14296_vm5, %v4646_v62, %v4642_v35  ;;  %v4737_v36 = vmul.f32 %v4736_v30, %v14152_v41  ;;  %v4752_v43 = vmul.f32 %v4751_v50, %v14152_v41 }
 0x49f   : > { %v4866_v4 = vmul.f32 %v4865_v55, %v14279_v27  ;;  %v4677_v61 = vmul.f32 %v14289_v3, %v4676_v7  ;;  %v4685_v33 = vand.u32 2147483648, %v14239_v12  ;;  %v4716_v20 = vsub.f32 1.0, %v4715_v42  ;;  %v754_v7 = vpop.f32.mrf.mxu1 }
 0x4a0   : > { %v4775_v45 = vmul.f32 %v4774_v13, %v14234_v15  ;;  %vm4679_vm8 = vweird.f32 %v14239_v12  ;;  %v4789_v47 = vadd.f32 0.112945676, %v4788_v16  ;;  %v4814_v6 = vadd.f32 0.00028619796, %v4813_v14 }
 0x4a1   : > { %v14356_v2 = vmul.f32 0.70710677, %v14340_v28  ;;  %v14359_v62 = vmul.f32 %v4647_v63, %v14285_v60  ;;  %v4700_v26 = vadd.f32 0.18741608, %v4699_v46  ;;  %v4829_v39 = vadd.f32 0.112945676, %v4828_v9 }
 0x4a2   : > { %v6607_v22 = vpack.c.bf16 %v12167_v58, %v17641_v18  ;;  %vm14363_vm9 = vcmp.eq.f32.partialorder %v4683_v23, 8.507059e+37  ;;  %v4738_v50 = vadd.f32 0.05243302, %v4737_v36  ;;  %v14367_v55 = vadd.f32 1.0, %v4752_v43  ;;  %v17644_v23 = vld [vmem:[#allocation52_spill] sm:$0xff]  ;;  %v17645_v46 = vld [vmem:[#allocation55_spill] sm:$0xff] }
 0x4a3   : > { %v4867_v35 = vadd.f32 0.014752088, %v4866_v4  ;;  %v4678_v42 = vadd.f32 %v14289_v3, %v4677_v61  ;;  %vm4680_vm10 = vweird.f32 %v14289_v3  ;;  %v4717_v60 = vmul.f32 %v14312_v1, %v4716_v20 }
 0x4a4   : > { %v4776_v13 = vadd.f32 0.0036580483, %v4775_v45  ;;  %6944 = vmatmul.bf16.gmra.mxu0 %v6607_v22  ;;  %v4790_v16 = vmul.f32 %v4789_v47, %v14234_v15  ;;  %v4815_v58 = vmul.f32 %v4814_v6, %v14237_v48  ;;  %v4891_v14 = vmul.f32 %v14356_v2, %v14356_v2  ;;  %vm14385_vm11 = vmor %vm4679_vm8, %vm4680_vm10  ;;  %v17648_v22 = vld [vmem:[#allocation53_spill] sm:$0xff] }
 0x4a5   : > { %v6608_v9 = vpack.c.bf16 %v17645_v46, %v17644_v23  ;;  %v4686_v63 = vor.u32 1.1754944e-38, %v4685_v33  ;;  %v4701_v36 = vmul.f32 %v4700_v26, %v14072_v25  ;;  %v4830_v43 = vmul.f32 %v4829_v39, %v14237_v48  ;;  %v843_v25 = vpop.f32.mrf.mxu2 }
 0x4a6   : > { %v14381_v4 = vadd.f32 %v754_v7, %v9485_v21  ;;  %v4725_v20 = vand.u32 2147483648, %v14263_v8  ;;  %v4739_v45 = vmul.f32 %v4738_v50, %v14152_v41  ;;  %8903 = vrcp.f32 %v14367_v55  ;;  %v17649_v50 = vld [vmem:[#allocation56_spill] sm:$0xff] }
 0x4a7   : > { %v4868_v33 = vmul.f32 %v4867_v35, %v14279_v27  ;;  %7033 = vmatmul.bf16.gmra.mxu1 %v6608_v9  ;;  %v4682_v47 = vsel %vm14385_vm11, %v14289_v3, %v4678_v42  ;;  %v4718_v12 = vadd.f32 %v14312_v1, %v4717_v60  ;;  %vm4720_vm12 = vweird.f32 %v14312_v1  ;;  %v17650_v3 = vld [vmem:[#allocation54_spill] sm:$0xff]  ;;  %v17651_v42 = vld [vmem:[#allocation57_spill] sm:$0xff] }
 0x4a8   : > { %v4777_v6 = vmul.f32 %v4776_v13, %v14234_v15  ;;  %v4791_v26 = vadd.f32 0.4994258, %v4790_v16  ;;  %v4816_v39 = vadd.f32 0.0036580483, %v4815_v58  ;;  %v14399_v18 = vmin.f32 %v4891_v14, 16.0 }
 0x4a9   : > { %v6609_v7 = vpack.c.bf16 %v17649_v50, %v17648_v22  ;;  %v4831_v35 = vadd.f32 0.4994258, %v4830_v43  ;;  %v14404_v23 = vmul.f32 0.70710677, %v14381_v4  ;;  %v14407_v46 = vadd.f32 %v843_v25, %v9503_v29 }
 0x4aa   : > { %v6610_v60 = vpack.c.bf16 %v17651_v42, %v17650_v3  ;;  %v4702_v9 = vadd.f32 1.1283791, %v4701_v36  ;;  %vm4719_vm13 = vweird.f32 %v14263_v8  ;;  %v4723_v13 = vand.u32 2147483647, %v14263_v8 }
 0x4ab   : > { %v4869_v16 = vadd.f32 0.112945676, %v4868_v33  ;;  %7122 = vmatmul.bf16.gmra.mxu2 %v6609_v7  ;;  %v4687_v58 = vsel %vm14363_vm9, %v4686_v63, %v4682_v47  ;;  %vm14417_vm14 = vmor %vm4719_vm13, %vm4720_vm12  ;;  %v4726_v43 = vor.u32 1.1754944e-38, %v4725_v20  ;;  %v4740_v61 = vadd.f32 0.18741608, %v4739_v45 }
 0x4ac   : > { %v4853_v25 = vmul.f32 2.1237322e-06, %v14279_v27  ;;  %7211 = vmatmul.bf16.gmra.mxu3 %v6610_v60  ;;  %v14422_v36 = vpop.eup %8903  ;;  %v4722_v8 = vsel %vm14417_vm14, %v14312_v1, %v4718_v12  ;;  %v4778_v33 = vadd.f32 0.05243302, %v4777_v6  ;;  %v4792_v30 = vmul.f32 %v4791_v26, %v14234_v15 }
 0x4ad   : > { %v4904_v63 = vmul.f32 3.8918573e-05, %v14399_v18  ;;  %v4817_v47 = vmul.f32 %v4816_v39, %v14237_v48  ;;  %v4832_v22 = vmul.f32 %v4831_v35, %v14237_v48  ;;  %v4931_v20 = vmul.f32 %v14404_v23, %v14404_v23 }
 0x4ae   : > { %v14434_v45 = vmul.f32 0.70710677, %v14407_v46  ;;  %v8396_v50 = vclamps-f32 %v14359_v62, 1.0  ;;  %v4688_v7 = vmul.f32 %v4687_v58, %v14335_v57  ;;  %vm4724_vm15 = vcmp.eq.f32.partialorder %v4723_v13, 8.507059e+37 }
 0x4af   : > { %v4870_v1 = vmul.f32 %v4869_v16, %v14279_v27  ;;  %v4703_v12 = vmul.f32 %v4702_v9, %v14030_v0  ;;  %v4727_v6 = vsel %vm4724_vm15, %v4726_v43, %v4722_v8  ;;  %v4741_v26 = vmul.f32 %v4740_v61, %v14152_v41 }
 0x4b0   : > { %v4755_v39 = vmul.f32 %v14422_v36, %v14367_v55  ;;  %v4779_v35 = vmul.f32 %v4778_v33, %v14234_v15  ;;  %v14444_v3 = vadd.f32 1.0, %v4792_v30  ;;  %v4854_v42 = vadd.f32 0.00028619796, %v4853_v25 }
 0x4b1   : > { %v4905_v60 = vadd.f32 0.001143296, %v4904_v63  ;;  %v4818_v62 = vadd.f32 0.05243302, %v4817_v47  ;;  %v14446_v14 = vadd.f32 1.0, %v4832_v22  ;;  %v14448_v57 = vmin.f32 %v4931_v20, 16.0  ;;  %v932_v63 = vpop.f32.mrf.mxu3 }
 0x4b2   : > { %v4971_v0 = vmul.f32 %v14434_v45, %v14434_v45  ;;  %v6415_v41 = vadd.f32 1.0, %v8395_v53  ;;  %v6416_v9 = vadd.f32 1.0, %v8396_v50  ;;  %v8397_v13 = vclamps-f32 %v4688_v7, 1.0 }
 0x4b3   : > { %v4871_v16 = vadd.f32 0.4994258, %v4870_v1  ;;  %v4728_v58 = vmul.f32 %v4727_v6, %v4703_v12  ;;  %v4742_v43 = vadd.f32 1.1283791, %v4741_v26  ;;  %v4756_v61 = vsub.f32 1.0, %v4755_v39 }
 0x4b4   : > { %v14455_v25 = vmul.f32 0.5, %v14166_v44  ;;  %v4780_v8 = vadd.f32 0.18741608, %v4779_v35  ;;  %8905 = vrcp.f32 %v14444_v3  ;;  %v4855_v33 = vmul.f32 %v4854_v42, %v14279_v27 }
 0x4b5   : > { %v4906_v30 = vmul.f32 %v4905_v60, %v14399_v18  ;;  %v4819_v40 = vmul.f32 %v4818_v62, %v14237_v48  ;;  %8907 = vrcp.f32 %v14446_v14  ;;  %v4944_v53 = vmul.f32 3.8918573e-05, %v14448_v57 }
 0x4b6   : > { %v14463_v47 = vmin.f32 %v4971_v0, 16.0  ;;  %v14466_v22 = vmul.f32 %v6415_v41, %v14180_v54  ;;  %v14469_v44 = vmul.f32 %v6416_v9, %v14183_v11  ;;  %v6417_v20 = vadd.f32 1.0, %v8397_v13 }
 0x4b7   : > { %v4872_v50 = vmul.f32 %v4871_v16, %v14279_v27  ;;  %v4757_v7 = vmul.f32 %v14422_v36, %v4756_v61  ;;  %v14474_v1 = vmul.f32 0.5, %v14173_v5  ;;  %v14477_v12 = vmul.f32 0.5, %v14226_v37 }
 0x4b8   : > { %17654 = vst [vmem:[#allocation47_spill] sm:$0xff] %v14466_v22  ;;  %v14480_v6 = vadd.f32 %v932_v63, %v9512_v34  ;;  %v8398_v26 = vclamps-f32 %v4728_v58, 1.0  ;;  %v4781_v54 = vmul.f32 %v4780_v8, %v14234_v15  ;;  %v4856_v39 = vadd.f32 0.0036580483, %v4855_v33 }
 0x4b9   : > { %17655 = vst [vmem:[#allocation44_spill] sm:$0xff] %v14469_v44  ;;  %v4907_v11 = vadd.f32 0.014752088, %v4906_v30  ;;  %v4743_v35 = vmul.f32 %v4742_v43, %v14130_v49  ;;  %v4820_v42 = vadd.f32 0.18741608, %v4819_v40  ;;  %v14488_v5 = vmul.f32 %v6417_v20, %v14186_v59 }
 0x4ba   : > { %v4945_v60 = vadd.f32 0.001143296, %v4944_v53  ;;  %v4984_v62 = vmul.f32 3.8918573e-05, %v14463_v47  ;;  %v14485_v0 = vpop.eup %8905  ;;  %v4763_v37 = vand.u32 2147483647, %v14367_v55  ;;  %v4758_v13 = vadd.f32 %v14422_v36, %v4757_v7 }
 0x4bb   : > { %17656 = vst [vmem:[#allocation48_spill] sm:$0xff] %v14488_v5  ;;  %v14491_v41 = vadd.f32 1.0, %v4872_v50  ;;  %v4893_v9 = vmul.f32 2.1237322e-06, %v14399_v18  ;;  %v14494_v15 = vpop.eup %8907  ;;  %vm4760_vm0 = vweird.f32 %v14422_v36  ;;  %v4765_v49 = vand.u32 2147483648, %v14367_v55 }
 0x4bc   : > { %v14500_v16 = vmul.f32 0.70710677, %v14480_v6  ;;  %v6418_v58 = vadd.f32 1.0, %v8398_v26  ;;  %vm4759_vm1 = vweird.f32 %v14367_v55  ;;  %v4782_v59 = vadd.f32 1.1283791, %v4781_v54 }
 0x4bd   : > { %v4908_v43 = vmul.f32 %v4907_v11, %v14399_v18  ;;  %v4821_v61 = vmul.f32 %v4820_v42, %v14237_v48  ;;  %v4857_v8 = vmul.f32 %v4856_v39, %v14279_v27  ;;  %v4946_v33 = vmul.f32 %v4945_v60, %v14448_v57  ;;  %vm14507_vm2 = vmor %vm4759_vm1, %vm4760_vm0 }
 0x4be   : > { %v4985_v30 = vadd.f32 0.001143296, %v4984_v62  ;;  %v4795_v40 = vmul.f32 %v14485_v0, %v14444_v3  ;;  %v4835_v55 = vmul.f32 %v14494_v15, %v14446_v14  ;;  %8909 = vrcp.f32 %v14491_v41 }
 0x4bf   : > { %v4894_v53 = vadd.f32 0.00028619796, %v4893_v9  ;;  %v4762_v48 = vsel %vm14507_vm2, %v14422_v36, %v4758_v13  ;;  %vm4764_vm3 = vcmp.eq.f32.partialorder %v4763_v37, 8.507059e+37  ;;  %v4766_v20 = vor.u32 1.1754944e-38, %v4765_v49  ;;  %v668_v36 = vpop.f32.mrf.mxu0 }
 0x4c0   : > { %v5011_v50 = vmul.f32 %v14500_v16, %v14500_v16  ;;  %v14522_v7 = vmul.f32 %v6418_v58, %v14229_v52  ;;  %v14525_v26 = vmul.f32 %v4782_v59, %v14192_v17  ;;  %v4805_v54 = vand.u32 2147483648, %v14444_v3 }
 0x4c1   : > { %v4909_v39 = vadd.f32 0.112945676, %v4908_v43  ;;  %v4822_v11 = vadd.f32 1.1283791, %v4821_v61  ;;  %v4858_v42 = vadd.f32 0.05243302, %v4857_v8  ;;  %v4986_v62 = vmul.f32 %v4985_v30, %v14463_v47  ;;  %v757_v30 = vpop.f32.mrf.mxu1 }
 0x4c2   : > { %17659 = vst [vmem:[#allocation45_spill] sm:$0xff] %v14522_v7  ;;  %v4947_v60 = vadd.f32 0.014752088, %v4946_v33  ;;  %v4767_v37 = vsel %vm4764_vm3, %v4766_v20, %v4762_v48  ;;  %v4796_v9 = vsub.f32 1.0, %v4795_v40  ;;  %v4836_v13 = vsub.f32 1.0, %v4835_v55 }
 0x4c3   : > { %v4895_v49 = vmul.f32 %v4894_v53, %v14399_v18  ;;  %vm4799_vm4 = vweird.f32 %v14444_v3  ;;  %v14532_v52 = vmul.f32 0.5, %v14340_v28  ;;  %v4933_v17 = vmul.f32 2.1237322e-06, %v14448_v57 }
 0x4c4   : > { %v14535_v58 = vmin.f32 %v5011_v50, 16.0  ;;  %v14537_v59 = vpop.eup %8909  ;;  %v4803_v43 = vand.u32 2147483647, %v14444_v3  ;;  %v4806_v61 = vor.u32 1.1754944e-38, %v4805_v54  ;;  %v4910_v8 = vmul.f32 %v4909_v39, %v14399_v18 }
 0x4c5   : > { %v14542_v33 = vadd.f32 %v668_v36, %v9483_v19  ;;  %v4768_v63 = vmul.f32 %v4767_v37, %v4743_v35  ;;  %v4859_v40 = vmul.f32 %v4858_v42, %v14279_v27  ;;  %v4948_v28 = vmul.f32 %v4947_v60, %v14448_v57 }
 0x4c6   : > { %v4987_v55 = vadd.f32 0.014752088, %v4986_v62  ;;  %v4797_v53 = vmul.f32 %v14485_v0, %v4796_v9  ;;  %v14548_v48 = vmul.f32 %v4822_v11, %v14198_v24  ;;  %v4837_v20 = vmul.f32 %v14494_v15, %v4836_v13  ;;  %v846_v13 = vpop.f32.mrf.mxu2 }
 0x4c7   : > { %v4896_v50 = vadd.f32 0.0036580483, %v4895_v49  ;;  %v4875_v54 = vmul.f32 %v14537_v59, %v14491_v41  ;;  %v4934_v39 = vadd.f32 0.00028619796, %v4933_v17  ;;  %v5024_v36 = vmul.f32 3.8918573e-05, %v14535_v58 }
 0x4c8   : > { %v14555_v35 = vadd.f32 %v757_v30, %v9485_v21  ;;  %vm4839_vm5 = vweird.f32 %v14446_v14  ;;  %v4843_v42 = vand.u32 2147483647, %v14446_v14  ;;  %v4911_v60 = vadd.f32 0.4994258, %v4910_v8 }
 0x4c9   : > { %v14560_v24 = vmul.f32 0.70710677, %v14542_v33  ;;  %vm4800_vm6 = vweird.f32 %v14485_v0  ;;  %vm14563_vm7 = vcmp.eq.f32.partialorder %v4803_v43, 8.507059e+37  ;;  %v4845_v62 = vand.u32 2147483648, %v14446_v14 }
 0x4ca   : > { %v4949_v37 = vadd.f32 0.112945676, %v4948_v28  ;;  %v4988_v9 = vmul.f32 %v4987_v55, %v14463_v47  ;;  %v4798_v49 = vadd.f32 %v14485_v0, %v4797_v53  ;;  %v4838_v17 = vadd.f32 %v14494_v15, %v4837_v20  ;;  %vm14579_vm9 = vmor %vm4799_vm4, %vm4800_vm6 }
 0x4cb   : > { %vm4840_vm8 = vweird.f32 %v14494_v15  ;;  %v4897_v8 = vmul.f32 %v4896_v50, %v14399_v18  ;;  %v4876_v30 = vsub.f32 1.0, %v4875_v54  ;;  %v4935_v43 = vmul.f32 %v4934_v39, %v14448_v57 }
 0x4cc   : > { %v5025_v7 = vadd.f32 0.001143296, %v5024_v36  ;;  %v14575_v32 = vmul.f32 0.70710677, %v14555_v35  ;;  %v4860_v55 = vadd.f32 0.18741608, %v4859_v40  ;;  %v4912_v53 = vmul.f32 %v4911_v60, %v14399_v18  ;;  %vm14591_vm10 = vmor %vm4839_vm5, %vm4840_vm8 }
 0x4cd   : > { %v5051_v20 = vmul.f32 %v14560_v24, %v14560_v24  ;;  %v14587_v50 = vadd.f32 %v846_v13, %v9503_v29  ;;  %v8399_v54 = vclamps-f32 %v4768_v63, 1.0  ;;  %vm14595_vm11 = vcmp.eq.f32.partialorder %v4843_v42, 8.507059e+37 }
 0x4ce   : > { %v4950_v40 = vmul.f32 %v4949_v37, %v14448_v57  ;;  %v4989_v36 = vadd.f32 0.112945676, %v4988_v9  ;;  %v4802_v60 = vsel %vm14579_vm9, %v14485_v0, %v4798_v49  ;;  %v4842_v63 = vsel %vm14591_vm10, %v14494_v15, %v4838_v17 }
 0x4cf   : > { %v4846_v14 = vor.u32 1.1754944e-38, %v4845_v62  ;;  %v4898_v13 = vadd.f32 0.05243302, %v4897_v8  ;;  %v4877_v5 = vmul.f32 %v14537_v59, %v4876_v30  ;;  %v4936_v44 = vadd.f32 0.0036580483, %v4935_v43 }
 0x4d0   : > { %v5026_v42 = vmul.f32 %v5025_v7, %v14535_v58  ;;  %v5091_v22 = vmul.f32 %v14575_v32, %v14575_v32  ;;  %v14610_v37 = vadd.f32 1.0, %v4912_v53  ;;  %v4973_v9 = vmul.f32 2.1237322e-06, %v14463_v47 }
 0x4d1   : > { %v14613_v28 = vmin.f32 %v5051_v20, 16.0  ;;  %v14616_v0 = vmul.f32 0.70710677, %v14587_v50  ;;  %v6419_v15 = vadd.f32 1.0, %v8399_v54  ;;  %v4861_v62 = vmul.f32 %v4860_v55, %v14279_v27 }
 0x4d2   : > { %v4951_v49 = vadd.f32 0.4994258, %v4950_v40  ;;  %v4990_v17 = vmul.f32 %v4989_v36, %v14463_v47  ;;  %v4807_v7 = vsel %vm14563_vm7, %v4806_v61, %v4802_v60  ;;  %v4847_v8 = vsel %vm14595_vm11, %v4846_v14, %v4842_v63 }
 0x4d3   : > { %vm4880_vm12 = vweird.f32 %v14537_v59  ;;  %v4899_v30 = vmul.f32 %v4898_v13, %v14399_v18  ;;  %v4878_v43 = vadd.f32 %v14537_v59, %v4877_v5  ;;  %v4937_v53 = vmul.f32 %v4936_v44, %v14448_v57 }
 0x4d4   : > { %v5027_v20 = vadd.f32 0.014752088, %v5026_v42  ;;  %v14628_v54 = vmin.f32 %v5091_v22, 16.0  ;;  %8911 = vrcp.f32 %v14610_v37  ;;  %v4974_v27 = vadd.f32 0.00028619796, %v4973_v9 }
 0x4d5   : > { %v5064_v11 = vmul.f32 3.8918573e-05, %v14613_v28  ;;  %v5131_v61 = vmul.f32 %v14616_v0, %v14616_v0  ;;  %vm4879_vm13 = vweird.f32 %v14491_v41  ;;  %v4885_v55 = vand.u32 2147483648, %v14491_v41 }
 0x4d6   : > { %v4952_v39 = vmul.f32 %v4951_v49, %v14448_v57  ;;  %v4991_v5 = vadd.f32 0.4994258, %v4990_v17  ;;  %v4808_v44 = vmul.f32 %v4807_v7, %v14525_v26  ;;  %v4848_v22 = vmul.f32 %v4847_v8, %v14548_v48  ;;  %vm14641_vm14 = vmor %vm4879_vm13, %vm4880_vm12 }
 0x4d7   : > { %v4862_v3 = vadd.f32 1.1283791, %v4861_v62  ;;  %v4883_v36 = vand.u32 2147483647, %v14491_v41  ;;  %v4882_v60 = vsel %vm14641_vm14, %v14537_v59, %v4878_v43  ;;  %v4900_v63 = vadd.f32 0.18741608, %v4899_v30 }
 0x4d8   : > { %v5028_v14 = vmul.f32 %v5027_v20, %v14535_v58  ;;  %v5104_v26 = vmul.f32 3.8918573e-05, %v14628_v54  ;;  %v4938_v13 = vadd.f32 0.05243302, %v4937_v53  ;;  %v4975_v48 = vmul.f32 %v4974_v27, %v14463_v47 }
 0x4d9   : > { %v5065_v42 = vadd.f32 0.001143296, %v5064_v11  ;;  %v14652_v9 = vmin.f32 %v5131_v61, 16.0  ;;  %v4886_v62 = vor.u32 1.1754944e-38, %v4885_v55  ;;  %v14654_v49 = vadd.f32 1.0, %v4952_v39 }
 0x4da   : > { %v4992_v41 = vmul.f32 %v4991_v5, %v14463_v47  ;;  %v5013_v17 = vmul.f32 2.1237322e-06, %v14535_v58  ;;  %v14658_v7 = vpop.eup %8911  ;;  %v8400_v59 = vclamps-f32 %v4808_v44, 1.0  ;;  %v8401_v8 = vclamps-f32 %v4848_v22, 1.0 }
 0x4db   : > { %v4863_v30 = vmul.f32 %v4862_v3, %v14243_v51  ;;  %vm4884_vm15 = vcmp.eq.f32.partialorder %v4883_v36, 8.507059e+37  ;;  %v4901_v53 = vmul.f32 %v4900_v63, %v14399_v18  ;;  %v5029_v20 = vadd.f32 0.112945676, %v5028_v14 }
 0x4dc   : > { %v4887_v43 = vsel %vm4884_vm15, %v4886_v62, %v4882_v60  ;;  %v5105_v27 = vadd.f32 0.001143296, %v5104_v26  ;;  %v4939_v11 = vmul.f32 %v4938_v13, %v14448_v57  ;;  %v4976_v61 = vadd.f32 0.0036580483, %v4975_v48 }
 0x4dd   : > { %v5066_v55 = vmul.f32 %v5065_v42, %v14613_v28  ;;  %v5144_v39 = vmul.f32 3.8918573e-05, %v14652_v9  ;;  %v4915_v5 = vmul.f32 %v14658_v7, %v14610_v37  ;;  %8913 = vrcp.f32 %v14654_v49 }
 0x4de   : > { %v14668_v44 = vadd.f32 1.0, %v4992_v41  ;;  %v5014_v51 = vadd.f32 0.00028619796, %v5013_v17  ;;  %v6420_v22 = vadd.f32 1.0, %v8400_v59  ;;  %v6421_v3 = vadd.f32 1.0, %v8401_v8 }
 0x4df   : > { %v14671_v18 = vmul.f32 0.5, %v14381_v4  ;;  %v14674_v40 = vmul.f32 0.5, %v14407_v46  ;;  %v4888_v36 = vmul.f32 %v4887_v43, %v4863_v30  ;;  %v4902_v60 = vadd.f32 1.1283791, %v4901_v53 }
 0x4e0   : > { %v5030_v63 = vmul.f32 %v5029_v20, %v14535_v58  ;;  %v5106_v14 = vmul.f32 %v5105_v27, %v14628_v54  ;;  %v14679_v26 = vmul.f32 %v6419_v15, %v14250_v31  ;;  %v4940_v13 = vadd.f32 0.18741608, %v4939_v11 }
 0x4e1   : > { %v5067_v48 = vadd.f32 0.014752088, %v5066_v55  ;;  %v5145_v42 = vadd.f32 0.001143296, %v5144_v39  ;;  %v4916_v62 = vsub.f32 1.0, %v4915_v5  ;;  %v4977_v41 = vmul.f32 %v4976_v61, %v14463_v47 }
 0x4e2   : > { %17670 = vst [vmem:[#allocation49_spill] sm:$0xff] %v14679_v26  ;;  %8915 = vrcp.f32 %v14668_v44  ;;  %v5015_v4 = vmul.f32 %v5014_v51, %v14535_v58  ;;  %v14685_v46 = vmul.f32 %v6420_v22, %v14455_v25  ;;  %v4925_v17 = vand.u32 2147483648, %v14610_v37 }
 0x4e3   : > { %v14689_v59 = vmul.f32 0.5, %v14480_v6  ;;  %v5053_v31 = vmul.f32 2.1237322e-06, %v14613_v28  ;;  %v14692_v15 = vpop.eup %8913  ;;  %v14695_v8 = vmul.f32 %v6421_v3, %v14474_v1  ;;  %v8402_v30 = vclamps-f32 %v4888_v36, 1.0  ;;  %v935_v6 = vpop.f32.mrf.mxu3 }
 0x4e4   : > { %17671 = vst [vmem:[#allocation46_spill] sm:$0xff] %v14685_v46  ;;  %v5031_v43 = vadd.f32 0.4994258, %v5030_v63  ;;  %v5107_v53 = vadd.f32 0.014752088, %v5106_v14  ;;  %v4941_v25 = vmul.f32 %v4940_v13, %v14448_v57  ;;  %v5068_v27 = vmul.f32 %v5067_v48, %v14613_v28 }
 0x4e5   : > { %17672 = vst [vmem:[#allocation50_spill] sm:$0xff] %v14695_v8  ;;  %v4923_v20 = vand.u32 2147483647, %v14610_v37  ;;  %v5146_v11 = vmul.f32 %v5145_v42, %v14652_v9  ;;  %v14702_v61 = vmul.f32 %v4902_v60, %v14356_v2  ;;  %v4917_v55 = vmul.f32 %v14658_v7, %v4916_v62 }
 0x4e6   : > { %v4978_v39 = vadd.f32 0.05243302, %v4977_v41  ;;  %v5016_v1 = vadd.f32 0.0036580483, %v5015_v4  ;;  %v4926_v5 = vor.u32 1.1754944e-38, %v4925_v17  ;;  %v4955_v51 = vmul.f32 %v14692_v15, %v14654_v49 }
 0x4e7   : > { %v5054_v22 = vadd.f32 0.00028619796, %v5053_v31  ;;  %v5093_v3 = vmul.f32 2.1237322e-06, %v14628_v54  ;;  %v6422_v36 = vadd.f32 1.0, %v8402_v30  ;;  %v5032_v63 = vmul.f32 %v5031_v43, %v14535_v58 }
 0x4e8   : > { %v14708_v57 = vpop.eup %8915  ;;  %v5108_v14 = vmul.f32 %v5107_v53, %v14628_v54  ;;  %v14713_v2 = vadd.f32 %v935_v6, %v9512_v34  ;;  %vm4919_vm0 = vweird.f32 %v14610_v37  ;;  %vm14716_vm1 = vcmp.eq.f32.partialorder %v4923_v20, 8.507059e+37 }
 0x4e9   : > { %v4942_v13 = vadd.f32 1.1283791, %v4941_v25  ;;  %v5069_v48 = vadd.f32 0.112945676, %v5068_v27  ;;  %v5147_v42 = vadd.f32 0.014752088, %v5146_v11  ;;  %v4918_v62 = vadd.f32 %v14658_v7, %v4917_v55 }
 0x4ea   : > { %vm4920_vm2 = vweird.f32 %v14658_v7  ;;  %v4979_v41 = vmul.f32 %v4978_v39, %v14463_v47  ;;  %v5017_v4 = vmul.f32 %v5016_v1, %v14535_v58  ;;  %v4956_v17 = vsub.f32 1.0, %v4955_v51  ;;  %v670_v39 = vpop.f32.mrf.mxu0 }
 0x4eb   : > { %v4995_v31 = vmul.f32 %v14708_v57, %v14668_v44  ;;  %v5055_v30 = vmul.f32 %v5054_v22, %v14613_v28  ;;  %v5094_v43 = vadd.f32 0.00028619796, %v5093_v3  ;;  %v14728_v53 = vmul.f32 %v6422_v36, %v14477_v12  ;;  %vm14737_vm3 = vmor %vm4919_vm0, %vm4920_vm2  ;;  %v759_v3 = vpop.f32.mrf.mxu1 }
 0x4ec   : > { %v14730_v20 = vadd.f32 1.0, %v5032_v63  ;;  %v5109_v25 = vadd.f32 0.112945676, %v5108_v14  ;;  %v14733_v27 = vmul.f32 0.70710677, %v14713_v2  ;;  %v14742_v6 = vmul.f32 %v4942_v13, %v14404_v23 }
 0x4ed   : > { %17675 = vst [vmem:[#allocation51_spill] sm:$0xff] %v14728_v53  ;;  %vm4959_vm4 = vweird.f32 %v14654_v49  ;;  %v5070_v12 = vmul.f32 %v5069_v48, %v14613_v28  ;;  %v5148_v55 = vmul.f32 %v5147_v42, %v14652_v9  ;;  %v4922_v1 = vsel %vm14737_vm3, %v14658_v7, %v4918_v62 }
 0x4ee   : > { %v4963_v37 = vand.u32 2147483647, %v14654_v49  ;;  %v4980_v51 = vadd.f32 0.18741608, %v4979_v41  ;;  %v5018_v22 = vadd.f32 0.05243302, %v5017_v4  ;;  %v4957_v36 = vmul.f32 %v14692_v15, %v4956_v17 }
 0x4ef   : > { %v4996_v23 = vsub.f32 1.0, %v4995_v31  ;;  %v5056_v63 = vadd.f32 0.0036580483, %v5055_v30  ;;  %v5095_v14 = vmul.f32 %v5094_v43, %v14628_v54  ;;  %8917 = vrcp.f32 %v14730_v20 }
 0x4f0   : > { %v5110_v13 = vmul.f32 %v5109_v25, %v14628_v54  ;;  %v5171_v48 = vmul.f32 %v14733_v27, %v14733_v27  ;;  %v14758_v7 = vadd.f32 %v670_v39, %v9483_v19  ;;  %v4965_v42 = vand.u32 2147483648, %v14654_v49 }
 0x4f1   : > { %v5071_v62 = vadd.f32 0.4994258, %v5070_v12  ;;  %v5149_v41 = vadd.f32 0.112945676, %v5148_v55  ;;  %v14762_v4 = vadd.f32 %v759_v3, %v9485_v21  ;;  %v4927_v17 = vsel %vm14716_vm1, %v4926_v5, %v4922_v1 }
 0x4f2   : > { %vm4960_vm5 = vweird.f32 %v14692_v15  ;;  %v4981_v31 = vmul.f32 %v4980_v51, %v14463_v47  ;;  %v5019_v30 = vmul.f32 %v5018_v22, %v14535_v58  ;;  %v4958_v43 = vadd.f32 %v14692_v15, %v4957_v36 }
 0x4f3   : > { %v4997_v25 = vmul.f32 %v14708_v57, %v4996_v23  ;;  %v5057_v11 = vmul.f32 %v5056_v63, %v14613_v28  ;;  %v5096_v12 = vadd.f32 0.0036580483, %v5095_v14  ;;  %vm14772_vm6 = vcmp.eq.f32.partialorder %v4963_v37, 8.507059e+37  ;;  %vm14793_vm7 = vmor %vm4959_vm4, %vm4960_vm5 }
 0x4f4   : > { %v5111_v39 = vadd.f32 0.4994258, %v5110_v13  ;;  %v14776_v60 = vmin.f32 %v5171_v48, 16.0  ;;  %v14779_v5 = vmul.f32 0.70710677, %v14758_v7  ;;  %v4966_v47 = vor.u32 1.1754944e-38, %v4965_v42 }
 0x4f5   : > { %v5072_v1 = vmul.f32 %v5071_v62, %v14613_v28  ;;  %v5150_v51 = vmul.f32 %v5149_v41, %v14652_v9  ;;  %v14784_v22 = vmul.f32 0.70710677, %v14762_v4  ;;  %v14786_v3 = vpop.eup %8917  ;;  %v4928_v37 = vmul.f32 %v4927_v17, %v14702_v61 }
 0x4f6   : > { %v4982_v23 = vadd.f32 1.1283791, %v4981_v31  ;;  %vm4999_vm8 = vweird.f32 %v14668_v44  ;;  %v5020_v63 = vadd.f32 0.18741608, %v5019_v30  ;;  %v4962_v14 = vsel %vm14793_vm7, %v14692_v15, %v4958_v43 }
 0x4f7   : > { %v4998_v13 = vadd.f32 %v14708_v57, %v4997_v25  ;;  %vm5000_vm9 = vweird.f32 %v14708_v57  ;;  %v5058_v61 = vadd.f32 0.05243302, %v5057_v11  ;;  %v5097_v48 = vmul.f32 %v5096_v12, %v14628_v54 }
 0x4f8   : > { %v5112_v49 = vmul.f32 %v5111_v39, %v14628_v54  ;;  %v5184_v42 = vmul.f32 3.8918573e-05, %v14776_v60  ;;  %v5211_v62 = vmul.f32 %v14779_v5, %v14779_v5  ;;  %v5035_v41 = vmul.f32 %v14786_v3, %v14730_v20  ;;  %vm14816_vm10 = vmor %vm4999_vm8, %vm5000_vm9 }
 0x4f9   : > { %v14810_v17 = vadd.f32 1.0, %v5072_v1  ;;  %v5151_v15 = vadd.f32 0.4994258, %v5150_v51  ;;  %v5251_v31 = vmul.f32 %v14784_v22, %v14784_v22  ;;  %v8403_v30 = vclamps-f32 %v4928_v37, 1.0 }
 0x4fa   : > { %v5003_v25 = vand.u32 2147483647, %v14668_v44  ;;  %v5005_v11 = vand.u32 2147483648, %v14668_v44  ;;  %v5133_v12 = vmul.f32 2.1237322e-06, %v14652_v9  ;;  %v4967_v39 = vsel %vm14772_vm6, %v4966_v47, %v4962_v14 }
 0x4fb   : > { %v5002_v1 = vsel %vm14816_vm10, %v14708_v57, %v4998_v13  ;;  %v5021_v51 = vmul.f32 %v5020_v63, %v14535_v58  ;;  %v5059_v37 = vmul.f32 %v5058_v61, %v14613_v28  ;;  %v5098_v36 = vadd.f32 0.05243302, %v5097_v48 }
 0x4fc   : > { %v14830_v53 = vadd.f32 1.0, %v5112_v49  ;;  %v5185_v8 = vadd.f32 0.001143296, %v5184_v42  ;;  %v14832_v46 = vmin.f32 %v5211_v62, 16.0  ;;  %v5036_v44 = vsub.f32 1.0, %v5035_v41 }
 0x4fd   : > { %8919 = vrcp.f32 %v14810_v17  ;;  %v5152_v55 = vmul.f32 %v5151_v15, %v14652_v9  ;;  %v14836_v47 = vmin.f32 %v5251_v31, 16.0  ;;  %v6423_v14 = vadd.f32 1.0, %v8403_v30 }
 0x4fe   : > { %v4983_v57 = vmul.f32 %v4982_v23, %v14434_v45  ;;  %v5006_v13 = vor.u32 1.1754944e-38, %v5005_v11  ;;  %v5134_v58 = vadd.f32 0.00028619796, %v5133_v12  ;;  %v4968_v63 = vmul.f32 %v4967_v39, %v14742_v6  ;;  %v848_v23 = vpop.f32.mrf.mxu2 }
 0x4ff   : > { %vm5004_vm11 = vcmp.eq.f32.partialorder %v5003_v25, 8.507059e+37  ;;  %v5022_v61 = vadd.f32 1.1283791, %v5021_v51  ;;  %v5060_v48 = vadd.f32 0.18741608, %v5059_v37  ;;  %8921 = vrcp.f32 %v14830_v53 }
 0x500   : > { %v5007_v49 = vsel %vm5004_vm11, %v5006_v13, %v5002_v1  ;;  %v5186_v42 = vmul.f32 %v5185_v8, %v14776_v60  ;;  %v5224_v62 = vmul.f32 3.8918573e-05, %v14832_v46  ;;  %v5037_v41 = vmul.f32 %v14786_v3, %v5036_v44 }
 0x501   : > { %v5099_v15 = vmul.f32 %v5098_v36, %v14628_v54  ;;  %v14845_v31 = vadd.f32 1.0, %v5152_v55  ;;  %v5264_v45 = vmul.f32 3.8918573e-05, %v14836_v47  ;;  %v14849_v6 = vmul.f32 %v6423_v14, %v14532_v52 }
 0x502   : > { %v14852_v30 = vmul.f32 0.5, %v14542_v33  ;;  %v14855_v43 = vmul.f32 0.5, %v14555_v35  ;;  %v5135_v8 = vmul.f32 %v5134_v58, %v14652_v9  ;;  %v8404_v11 = vclamps-f32 %v4968_v63, 1.0 }
 0x503   : > { %17684 = vst [vmem:[#allocation52_spill] sm:$0xff] %v14849_v6  ;;  %v14858_v25 = vpop.eup %8919  ;;  %v5008_v12 = vmul.f32 %v5007_v49, %v4983_v57  ;;  %v5023_v39 = vmul.f32 %v5022_v61, %v14500_v16  ;;  %v5061_v1 = vmul.f32 %v5060_v48, %v14613_v28  ;;  %vm5040_vm12 = vweird.f32 %v14786_v3 }
 0x504   : > { %v5187_v52 = vadd.f32 0.014752088, %v5186_v42  ;;  %v5225_v51 = vadd.f32 0.001143296, %v5224_v62  ;;  %v14864_v33 = vadd.f32 %v848_v23, %v9503_v29  ;;  %v5038_v35 = vadd.f32 %v14786_v3, %v5037_v41 }
 0x505   : > { %v5100_v37 = vadd.f32 0.18741608, %v5099_v15  ;;  %8923 = vrcp.f32 %v14845_v31  ;;  %v5265_v36 = vadd.f32 0.001143296, %v5264_v45  ;;  %v14868_v44 = vpop.eup %8921  ;;  %v5045_v55 = vand.u32 2147483648, %v14730_v20 }
 0x506   : > { %v5075_v16 = vmul.f32 %v14858_v25, %v14810_v17  ;;  %v5136_v28 = vadd.f32 0.0036580483, %v5135_v8  ;;  %v5173_v14 = vmul.f32 2.1237322e-06, %v14776_v60  ;;  %v14874_v57 = vadd.f32 1.0, %v8404_v11 }
 0x507   : > { %vm5039_vm13 = vweird.f32 %v14730_v20  ;;  %v5043_v13 = vand.u32 2147483647, %v14730_v20  ;;  %v5062_v58 = vadd.f32 1.1283791, %v5061_v1  ;;  %v8405_v63 = vclamps-f32 %v5008_v12, 1.0 }
 0x508   : > { %vm14880_vm14 = vmor %vm5039_vm13, %vm5040_vm12  ;;  %v5188_v48 = vmul.f32 %v5187_v52, %v14776_v60  ;;  %v5226_v49 = vmul.f32 %v5225_v51, %v14832_v46  ;;  %v14887_v42 = vmul.f32 0.70710677, %v14864_v33  ;;  %v5101_v20 = vmul.f32 %v5100_v37, %v14628_v54 }
 0x509   : > { %v5042_v62 = vsel %vm14880_vm14, %v14786_v3, %v5038_v35  ;;  %v5115_v41 = vmul.f32 %v14868_v44, %v14830_v53  ;;  %v5266_v15 = vmul.f32 %v5265_v36, %v14836_v47  ;;  %v5046_v45 = vor.u32 1.1754944e-38, %v5045_v55  ;;  %v937_v36 = vpop.f32.mrf.mxu3 }
 0x50a   : > { %v5076_v23 = vsub.f32 1.0, %v5075_v16  ;;  %v5137_v8 = vmul.f32 %v5136_v28, %v14652_v9  ;;  %v5174_v11 = vadd.f32 0.00028619796, %v5173_v14  ;;  %vm5044_vm15 = vcmp.eq.f32.partialorder %v5043_v13, 8.507059e+37 }
 0x50b   : > { %v14897_v12 = vpop.eup %8923  ;;  %v14900_v1 = vmul.f32 %v5062_v58, %v14560_v24  ;;  %v5083_v3 = vand.u32 2147483647, %v14810_v17  ;;  %v5085_v54 = vand.u32 2147483648, %v14810_v17  ;;  %v5047_v52 = vsel %vm5044_vm15, %v5046_v45, %v5042_v62 }
 0x50c   : > { %vm5079_vm0 = vweird.f32 %v14810_v17  ;;  %v5189_v51 = vadd.f32 0.112945676, %v5188_v48  ;;  %v5227_v35 = vadd.f32 0.014752088, %v5226_v49  ;;  %v5291_v37 = vmul.f32 %v14887_v42, %v14887_v42 }
 0x50d   : > { %v14907_v55 = vadd.f32 1.0, %v8405_v63  ;;  %v5102_v16 = vadd.f32 1.1283791, %v5101_v20  ;;  %v5116_v28 = vsub.f32 1.0, %v5115_v41  ;;  %v5267_v14 = vadd.f32 0.014752088, %v5266_v15 }
 0x50e   : > { %v5077_v24 = vmul.f32 %v14858_v25, %v5076_v23  ;;  %v5138_v13 = vadd.f32 0.05243302, %v5137_v8  ;;  %v5155_v58 = vmul.f32 %v14897_v12, %v14845_v31  ;;  %v5175_v61 = vmul.f32 %v5174_v11, %v14776_v60 }
 0x50f   : > { %v14913_v62 = vmul.f32 %v5047_v52, %v5023_v39  ;;  %v5086_v48 = vor.u32 1.1754944e-38, %v5085_v54  ;;  %v5213_v49 = vmul.f32 2.1237322e-06, %v14832_v46  ;;  %v14917_v45 = vadd.f32 %v937_v36, %v9512_v34  ;;  %v673_v39 = vpop.f32.mrf.mxu0 }
 0x510   : > { %vm5080_vm1 = vweird.f32 %v14858_v25  ;;  %vm14920_vm2 = vcmp.eq.f32.partialorder %v5083_v3, 8.507059e+37  ;;  %v5190_v20 = vmul.f32 %v5189_v51, %v14776_v60  ;;  %v5228_v41 = vmul.f32 %v5227_v35, %v14832_v46 }
 0x511   : > { %v14926_v15 = vmin.f32 %v5291_v37, 16.0  ;;  %v14929_v23 = vmul.f32 %v5102_v16, %v14575_v32  ;;  %v5117_v8 = vmul.f32 %v14868_v44, %v5116_v28  ;;  %v5123_v11 = vand.u32 2147483647, %v14830_v53  ;;  %vm14949_vm4 = vmor %vm5079_vm0, %vm5080_vm1 }
 0x512   : > { %v5268_v54 = vmul.f32 %v5267_v14, %v14836_v47  ;;  %v5078_v3 = vadd.f32 %v14858_v25, %v5077_v24  ;;  %v5139_v52 = vmul.f32 %v5138_v13, %v14652_v9  ;;  %v5156_v36 = vsub.f32 1.0, %v5155_v58 }
 0x513   : > { %v5176_v51 = vadd.f32 0.0036580483, %v5175_v61  ;;  %v5214_v6 = vadd.f32 0.00028619796, %v5213_v49  ;;  %v5253_v35 = vmul.f32 2.1237322e-06, %v14836_v47  ;;  %v14941_v32 = vadd.f32 %v673_v39, %v9483_v19 }
 0x514   : > { %v14938_v37 = vmul.f32 0.70710677, %v14917_v45  ;;  %vm5119_vm3 = vweird.f32 %v14830_v53  ;;  %v5191_v16 = vadd.f32 0.4994258, %v5190_v20  ;;  %v5229_v28 = vadd.f32 0.112945676, %v5228_v41 }
 0x515   : > { %v5304_v14 = vmul.f32 3.8918573e-05, %v14926_v15  ;;  %v5118_v13 = vadd.f32 %v14868_v44, %v5117_v8  ;;  %vm5120_vm5 = vweird.f32 %v14868_v44  ;;  %v5125_v58 = vand.u32 2147483648, %v14830_v53 }
 0x516   : > { %v5269_v61 = vadd.f32 0.112945676, %v5268_v54  ;;  %v5082_v49 = vsel %vm14949_vm4, %v14858_v25, %v5078_v3  ;;  %vm14959_vm6 = vcmp.eq.f32.partialorder %v5123_v11, 8.507059e+37  ;;  %v5140_v17 = vadd.f32 0.18741608, %v5139_v52  ;;  %vm14972_vm7 = vmor %vm5119_vm3, %vm5120_vm5 }
 0x517   : > { %v5177_v41 = vmul.f32 %v5176_v51, %v14776_v60  ;;  %v5157_v39 = vmul.f32 %v14897_v12, %v5156_v36  ;;  %v5254_v26 = vadd.f32 0.00028619796, %v5253_v35  ;;  %v5331_v8 = vmul.f32 %v14938_v37, %v14938_v37 }
 0x518   : > { %v14968_v10 = vmul.f32 0.70710677, %v14941_v32  ;;  %v5192_v11 = vmul.f32 %v5191_v16, %v14776_v60  ;;  %v5215_v54 = vmul.f32 %v5214_v6, %v14832_v46  ;;  %v5230_v3 = vmul.f32 %v5229_v28, %v14832_v46 }
 0x519   : > { %v5305_v52 = vadd.f32 0.001143296, %v5304_v14  ;;  %v5087_v36 = vsel %vm14920_vm2, %v5086_v48, %v5082_v49  ;;  %v5122_v51 = vsel %vm14972_vm7, %v14868_v44, %v5118_v13  ;;  %v5126_v35 = vor.u32 1.1754944e-38, %v5125_v58 }
 0x51a   : > { %v5270_v53 = vmul.f32 %v5269_v61, %v14836_v47  ;;  %v5141_v24 = vmul.f32 %v5140_v17, %v14652_v9  ;;  %vm5160_vm8 = vweird.f32 %v14897_v12  ;;  %v5165_v16 = vand.u32 2147483648, %v14845_v31 }
 0x51b   : > { %v5178_v6 = vadd.f32 0.05243302, %v5177_v41  ;;  %v5158_v28 = vadd.f32 %v14897_v12, %v5157_v39  ;;  %v5255_v14 = vmul.f32 %v5254_v26, %v14836_v47  ;;  %v14990_v63 = vmin.f32 %v5331_v8, 16.0 }
 0x51c   : > { %v5371_v48 = vmul.f32 %v14968_v10, %v14968_v10  ;;  %v14994_v44 = vadd.f32 1.0, %v5192_v11  ;;  %v5216_v13 = vadd.f32 0.0036580483, %v5215_v54  ;;  %v5231_v58 = vadd.f32 0.4994258, %v5230_v3 }
 0x51d   : > { %v5306_v9 = vmul.f32 %v5305_v52, %v14926_v15  ;;  %v5088_v61 = vmul.f32 %v5087_v36, %v14900_v1  ;;  %vm5159_vm9 = vweird.f32 %v14845_v31  ;;  %v5163_v49 = vand.u32 2147483647, %v14845_v31  ;;  %v762_v36 = vpop.f32.mrf.mxu1 }
 0x51e   : > { %v5271_v17 = vadd.f32 0.4994258, %v5270_v53  ;;  %v5127_v26 = vsel %vm14959_vm6, %v5126_v35, %v5122_v51  ;;  %v5142_v41 = vadd.f32 1.1283791, %v5141_v24  ;;  %vm15004_vm10 = vmor %vm5159_vm9, %vm5160_vm8  ;;  %v5166_v8 = vor.u32 1.1754944e-38, %v5165_v16 }
 0x51f   : > { %v5179_v25 = vmul.f32 %v5178_v6, %v14776_v60  ;;  %v5162_v1 = vsel %vm15004_vm10, %v14897_v12, %v5158_v28  ;;  %v5256_v11 = vadd.f32 0.0036580483, %v5255_v14  ;;  %v5344_v31 = vmul.f32 3.8918573e-05, %v14990_v63 }
 0x520   : > { %v15013_v54 = vmin.f32 %v5371_v48, 16.0  ;;  %8925 = vrcp.f32 %v14994_v44  ;;  %v5217_v20 = vmul.f32 %v5216_v13, %v14832_v46  ;;  %v5232_v3 = vmul.f32 %v5231_v58, %v14832_v46 }
 0x521   : > { %v5307_v52 = vadd.f32 0.014752088, %v5306_v9  ;;  %v8406_v51 = vclamps-f32 %v14913_v62, 1.0  ;;  %v5128_v35 = vmul.f32 %v5127_v26, %v14929_v23  ;;  %vm5164_vm11 = vcmp.eq.f32.partialorder %v5163_v49, 8.507059e+37 }
 0x522   : > { %v5272_v12 = vmul.f32 %v5271_v17, %v14836_v47  ;;  %v8407_v53 = vclamps-f32 %v5088_v61, 1.0  ;;  %v5143_v24 = vmul.f32 %v5142_v41, %v14616_v0  ;;  %v5167_v16 = vsel %vm5164_vm11, %v5166_v8, %v5162_v1 }
 0x523   : > { %v5180_v6 = vadd.f32 0.18741608, %v5179_v25  ;;  %v5257_v28 = vmul.f32 %v5256_v11, %v14836_v47  ;;  %v5345_v14 = vadd.f32 0.001143296, %v5344_v31  ;;  %v5384_v48 = vmul.f32 3.8918573e-05, %v15013_v54 }
 0x524   : > { %v15025_v13 = vadd.f32 %v762_v36, %v9485_v21  ;;  %v5218_v58 = vadd.f32 0.05243302, %v5217_v20  ;;  %v15027_v62 = vadd.f32 1.0, %v5232_v3  ;;  %v5293_v23 = vmul.f32 2.1237322e-06, %v14926_v15 }
 0x525   : > { %v5308_v9 = vmul.f32 %v5307_v52, %v14926_v15  ;;  %v15033_v0 = vmul.f32 %v14874_v57, %v14671_v18  ;;  %v15037_v61 = vmul.f32 %v14907_v55, %v14674_v40  ;;  %v8408_v49 = vclamps-f32 %v5128_v35, 1.0 }
 0x526   : > { %v15039_v17 = vadd.f32 1.0, %v5272_v12  ;;  %v15041_v26 = vpop.eup %8925  ;;  %v6426_v41 = vadd.f32 1.0, %v8406_v51  ;;  %v6427_v39 = vadd.f32 1.0, %v8407_v53  ;;  %v5168_v8 = vmul.f32 %v5167_v16, %v5143_v24 }
 0x527   : > { %v5181_v25 = vmul.f32 %v5180_v6, %v14776_v60  ;;  %v5258_v1 = vadd.f32 0.05243302, %v5257_v28  ;;  %v5346_v11 = vmul.f32 %v5345_v14, %v14990_v63  ;;  %v5385_v31 = vadd.f32 0.001143296, %v5384_v48 }
 0x528   : > { %v15046_v18 = vmul.f32 0.70710677, %v15025_v13  ;;  %v5219_v40 = vmul.f32 %v5218_v58, %v14832_v46  ;;  %8927 = vrcp.f32 %v15027_v62  ;;  %v5294_v57 = vadd.f32 0.00028619796, %v5293_v23 }
 0x529   : > { %v5309_v55 = vadd.f32 0.112945676, %v5308_v9  ;;  %v6428_v20 = vadd.f32 1.0, %v8408_v49  ;;  %v1053_v3 = vmul.f32 0.5, %v14587_v50  ;;  %v5195_v52 = vmul.f32 %v15041_v26, %v14994_v44 }
 0x52a   : > { %8929 = vrcp.f32 %v15039_v17  ;;  %v15055_v60 = vmul.f32 %v6426_v41, %v14689_v59  ;;  %v15058_v36 = vmul.f32 %v6427_v39, %v14852_v30  ;;  %v8409_v51 = vclamps-f32 %v5168_v8, 1.0 }
 0x52b   : > { %v15061_v35 = vmul.f32 0.5, %v14713_v2  ;;  %v5259_v12 = vmul.f32 %v5258_v1, %v14836_v47  ;;  %v5347_v53 = vadd.f32 0.014752088, %v5346_v11  ;;  %v5386_v50 = vmul.f32 %v5385_v31, %v15013_v54 }
 0x52c   : > { %17697 = vst [vmem:[#allocation55_spill] sm:$0xff] %v15058_v36  ;;  %v5411_v24 = vmul.f32 %v15046_v18, %v15046_v18  ;;  %v5182_v16 = vadd.f32 1.1283791, %v5181_v25  ;;  %v5220_v6 = vadd.f32 0.18741608, %v5219_v40  ;;  %v5295_v59 = vmul.f32 %v5294_v57, %v14926_v15 }
 0x52d   : > { %v5310_v28 = vmul.f32 %v5309_v55, %v14926_v15  ;;  %v15070_v30 = vmul.f32 %v6428_v20, %v14855_v43  ;;  %v5196_v14 = vsub.f32 1.0, %v5195_v52  ;;  %v15073_v2 = vmul.f32 0.5, %v14758_v7  ;;  %v851_v43 = vpop.f32.mrf.mxu2  ;;  %v940_v52 = vpop.f32.mrf.mxu3 }
 0x52e   : > { %v15076_v48 = vmul.f32 0.5, %v14762_v4  ;;  %v15078_v58 = vpop.eup %8927  ;;  %v6429_v23 = vadd.f32 1.0, %v8409_v51  ;;  %v5203_v9 = vand.u32 2147483647, %v14994_v44  ;;  %v15082_v49 = vmul.f32 0.5, %v14864_v33 }
 0x52f   : > { %17698 = vst [vmem:[#allocation53_spill] sm:$0xff] %v15070_v30  ;;  %v15085_v41 = vmul.f32 0.5, %v14917_v45  ;;  %v5260_v8 = vadd.f32 0.18741608, %v5259_v12  ;;  %v5348_v7 = vmul.f32 %v5347_v53, %v14990_v63  ;;  %v5387_v25 = vadd.f32 0.014752088, %v5386_v50 }
 0x530   : > { %v15087_v39 = vpop.eup %8929  ;;  %v15090_v4 = vmin.f32 %v5411_v24, 16.0  ;;  %v15093_v1 = vmul.f32 %v5182_v16, %v14733_v27  ;;  %v5221_v11 = vmul.f32 %v5220_v6, %v14832_v46  ;;  %v5296_v31 = vadd.f32 0.0036580483, %v5295_v59 }
 0x531   : > { %v5311_v33 = vadd.f32 0.4994258, %v5310_v28  ;;  %v5197_v40 = vmul.f32 %v15041_v26, %v5196_v14  ;;  %vm5199_vm12 = vweird.f32 %v14994_v44  ;;  %v5235_v45 = vmul.f32 %v15078_v58, %v15027_v62 }
 0x532   : > { %v15101_v57 = vadd.f32 %v851_v43, %v9503_v29  ;;  %v15103_v55 = vmul.f32 %v6429_v23, %v1053_v3  ;;  %v5205_v20 = vand.u32 2147483648, %v14994_v44  ;;  %v5275_v27 = vmul.f32 %v15087_v39, %v15039_v17 }
 0x533   : > { %v5333_v46 = vmul.f32 2.1237322e-06, %v14990_v63  ;;  %vm15109_vm13 = vcmp.eq.f32.partialorder %v5203_v9, 8.507059e+37  ;;  %v5261_v12 = vmul.f32 %v5260_v8, %v14836_v47  ;;  %v5349_v53 = vadd.f32 0.112945676, %v5348_v7 }
 0x534   : > { %17699 = vst [vmem:[#allocation56_spill] sm:$0xff] %v15103_v55  ;;  %v5388_v50 = vmul.f32 %v5387_v25, %v15013_v54  ;;  %v5424_v3 = vmul.f32 3.8918573e-05, %v15090_v4  ;;  %vm5200_vm14 = vweird.f32 %v15041_v26  ;;  %v5222_v24 = vadd.f32 1.1283791, %v5221_v11 }
 0x535   : > { %v5297_v16 = vmul.f32 %v5296_v31, %v14926_v15  ;;  %v5312_v6 = vmul.f32 %v5311_v33, %v14926_v15  ;;  %v5198_v59 = vadd.f32 %v15041_v26, %v5197_v40  ;;  %v5236_v28 = vsub.f32 1.0, %v5235_v45  ;;  %vm15136_vm15 = vmor %vm5199_vm12, %vm5200_vm14 }
 0x536   : > { %v15121_v14 = vmul.f32 0.70710677, %v15101_v57  ;;  %v15124_v47 = vadd.f32 %v940_v52, %v9512_v34  ;;  %v5206_v23 = vor.u32 1.1754944e-38, %v5205_v20  ;;  %v5276_v9 = vsub.f32 1.0, %v5275_v27 }
 0x537   : > { %v5334_v43 = vadd.f32 0.00028619796, %v5333_v46  ;;  %v15127_v8 = vmul.f32 0.5, %v14941_v32  ;;  %v15129_v7 = vadd.f32 1.1283791, %v5261_v12  ;;  %v5350_v25 = vmul.f32 %v5349_v53, %v14990_v63 }
 0x538   : > { %v5389_v11 = vadd.f32 0.112945676, %v5388_v50  ;;  %v5425_v31 = vadd.f32 0.001143296, %v5424_v3  ;;  %v15141_v40 = vmul.f32 %v5222_v24, %v14779_v5  ;;  %vm5239_vm0 = vweird.f32 %v15027_v62 }
 0x539   : > { %v5298_v32 = vadd.f32 0.05243302, %v5297_v16  ;;  %v15144_v45 = vadd.f32 1.0, %v5312_v6  ;;  %v5202_v20 = vsel %vm15136_vm15, %v15041_v26, %v5198_v59  ;;  %v5237_v27 = vmul.f32 %v15078_v58, %v5236_v28 }
 0x53a   : > { %v5451_v44 = vmul.f32 %v15121_v14, %v15121_v14  ;;  %v15153_v46 = vmul.f32 0.70710677, %v15124_v47  ;;  %v5243_v5 = vand.u32 2147483647, %v15027_v62  ;;  %v5277_v52 = vmul.f32 %v15087_v39, %v5276_v9 }
 0x53b   : > { %v5335_v12 = vmul.f32 %v5334_v43, %v14990_v63  ;;  %v5373_v53 = vmul.f32 2.1237322e-06, %v15013_v54  ;;  %v5245_v50 = vand.u32 2147483648, %v15027_v62  ;;  %v5351_v3 = vadd.f32 0.4994258, %v5350_v25 }
 0x53c   : > { %v5390_v26 = vmul.f32 %v5389_v11, %v15013_v54  ;;  %v5426_v24 = vmul.f32 %v5425_v31, %v15090_v4  ;;  %v5207_v16 = vsel %vm15109_vm13, %v5206_v23, %v5202_v20  ;;  %v5283_v6 = vand.u32 2147483647, %v15039_v17 }
 0x53d   : > { %v5299_v59 = vmul.f32 %v5298_v32, %v14926_v15  ;;  %8931 = vrcp.f32 %v15144_v45  ;;  %v5238_v28 = vadd.f32 %v15078_v58, %v5237_v27  ;;  %vm5240_vm1 = vweird.f32 %v15078_v58 }
 0x53e   : > { %v15169_v9 = vmin.f32 %v5451_v44, 16.0  ;;  %v5491_v43 = vmul.f32 %v15153_v46, %v15153_v46  ;;  %v5278_v25 = vadd.f32 %v15087_v39, %v5277_v52  ;;  %vm5280_vm2 = vweird.f32 %v15087_v39  ;;  %vm15183_vm4 = vmor %vm5239_vm0, %vm5240_vm1 }
 0x53f   : > { %v5336_v51 = vadd.f32 0.0036580483, %v5335_v12  ;;  %v5374_v23 = vadd.f32 0.00028619796, %v5373_v53  ;;  %vm15175_vm3 = vcmp.eq.f32.partialorder %v5243_v5, 8.507059e+37  ;;  %v5352_v31 = vmul.f32 %v5351_v3, %v14990_v63 }
 0x540   : > { %v5391_v33 = vadd.f32 0.4994258, %v5390_v26  ;;  %v5427_v32 = vadd.f32 0.014752088, %v5426_v24  ;;  %v5208_v20 = vmul.f32 %v5207_v16, %v15093_v1  ;;  %vm5279_vm5 = vweird.f32 %v15039_v17  ;;  %v675_v24 = vpop.f32.mrf.mxu0 }
 0x541   : > { %v5285_v44 = vand.u32 2147483648, %v15039_v17  ;;  %v5300_v5 = vadd.f32 0.18741608, %v5299_v59  ;;  %v5242_v52 = vsel %vm15183_vm4, %v15078_v58, %v5238_v28  ;;  %v5246_v12 = vor.u32 1.1754944e-38, %v5245_v50  ;;  %vm15192_vm6 = vmor %vm5279_vm5, %vm5280_vm2 }
 0x542   : > { %v5464_v62 = vmul.f32 3.8918573e-05, %v15169_v9  ;;  %v15197_v1 = vmin.f32 %v5491_v43, 16.0  ;;  %v5282_v17 = vsel %vm15192_vm6, %v15087_v39, %v5278_v25  ;;  %vm15204_vm7 = vcmp.eq.f32.partialorder %v5283_v6, 8.507059e+37  ;;  %v17712_v43 = vld [vmem:[#allocation19_spill] sm:$0xff] }
 0x543   : > { %v15199_v3 = vpop.eup %8931  ;;  %v5337_v58 = vmul.f32 %v5336_v51, %v14990_v63  ;;  %v5375_v50 = vmul.f32 %v5374_v23, %v15013_v54  ;;  %v15210_v16 = vadd.f32 1.0, %v5352_v31  ;;  %v5392_v59 = vmul.f32 %v5391_v33, %v15013_v54 }
 0x544   : > { %v5428_v28 = vmul.f32 %v5427_v32, %v15090_v4  ;;  %v6611_v27 = vpack.c.bf16 %v17712_v43, %v12383_v56  ;;  %v8410_v53 = vclamps-f32 %v5208_v20, 1.0  ;;  %v5247_v39 = vsel %vm15175_vm3, %v5246_v12, %v5242_v52  ;;  %v17713_v20 = vld [vmem:[#allocation15_spill] sm:$0xff] }
 0x545   : > { %v5286_v6 = vor.u32 1.1754944e-38, %v5285_v44  ;;  %v5301_v25 = vmul.f32 %v5300_v5, %v14926_v15  ;;  %v5315_v51 = vmul.f32 %v15199_v3, %v15144_v45  ;;  %v5465_v23 = vadd.f32 0.001143296, %v5464_v62  ;;  %v17714_v44 = vld [vmem:[#allocation17_spill] sm:$0xff] }
 0x546   : > { %v5504_v31 = vmul.f32 3.8918573e-05, %v15197_v1  ;;  %v15223_v33 = vadd.f32 %v675_v24, %v9483_v19  ;;  %6949 = vmatmul.bf16.gmra.mxu0 %v6611_v27  ;;  %v5338_v32 = vadd.f32 0.05243302, %v5337_v58  ;;  %v5413_v11 = vmul.f32 2.1237322e-06, %v15090_v4 }
 0x547   : > { %v5287_v56 = vsel %vm15204_vm7, %v5286_v6, %v5282_v17  ;;  %v6612_v52 = vpack.c.bf16 %v17714_v44, %v17713_v20  ;;  %8933 = vrcp.f32 %v15210_v16  ;;  %v5376_v15 = vadd.f32 0.0036580483, %v5375_v50 }
 0x548   : > { %v15231_v5 = vadd.f32 1.0, %v5392_v59  ;;  %v5429_v12 = vadd.f32 0.112945676, %v5428_v28  ;;  %v6430_v62 = vadd.f32 1.0, %v8410_v53  ;;  %v5248_v24 = vmul.f32 %v5247_v39, %v15141_v40  ;;  %v17715_v28 = vld [vmem:[#allocation18_spill] sm:$0xff]  ;;  %v17716_v53 = vld [vmem:[#allocation20_spill] sm:$0xff] }
 0x549   : > { %v5263_v43 = vmul.f32 %v15129_v7, %v14784_v22  ;;  %v5302_v26 = vadd.f32 1.1283791, %v5301_v25  ;;  %7038 = vmatmul.bf16.gmra.mxu1 %v6612_v52  ;;  %v5316_v17 = vsub.f32 1.0, %v5315_v51  ;;  %v5466_v58 = vmul.f32 %v5465_v23, %v15169_v9  ;;  %v17717_v23 = vld [vmem:[#allocation16_spill] sm:$0xff] }
 0x54a   : > { %v5505_v27 = vadd.f32 0.001143296, %v5504_v31  ;;  %v15238_v6 = vmul.f32 0.70710677, %v15223_v33  ;;  %v5339_v50 = vmul.f32 %v5338_v32, %v14990_v63  ;;  %v5414_v59 = vadd.f32 0.00028619796, %v5413_v11 }
 0x54b   : > { %v5288_v20 = vmul.f32 %v5287_v56, %v5263_v43  ;;  %v6613_v44 = vpack.c.bf16 %v17716_v53, %v17715_v28  ;;  %v5377_v40 = vmul.f32 %v5376_v15, %v15013_v54  ;;  %8935 = vrcp.f32 %v15231_v5  ;;  %v17718_v31 = vld [vmem:[#allocation21_spill] sm:$0xff] }
 0x54c   : > { %v15246_v22 = vmul.f32 0.5, %v15025_v13  ;;  %v5430_v7 = vmul.f32 %v5429_v12, %v15090_v4  ;;  %v8411_v39 = vclamps-f32 %v5248_v24, 1.0  ;;  %v15250_v25 = vmul.f32 %v5302_v26, %v14887_v42 }
 0x54d   : > { %v5323_v51 = vand.u32 2147483647, %v15144_v45  ;;  %7127 = vmatmul.bf16.gmra.mxu2 %v6613_v44  ;;  %v6614_v56 = vpack.c.bf16 %v17718_v31, %v17717_v23  ;;  %v15255_v32 = vpop.eup %8933  ;;  %v5317_v11 = vmul.f32 %v15199_v3, %v5316_v17  ;;  %v5467_v52 = vadd.f32 0.014752088, %v5466_v58 }
 0x54e   : > { %v5506_v13 = vmul.f32 %v5505_v27, %v15197_v1  ;;  %v5531_v15 = vmul.f32 %v15238_v6, %v15238_v6  ;;  %v15262_v12 = vmul.f32 %v6430_v62, %v15061_v35  ;;  %v8412_v42 = vclamps-f32 %v5288_v20, 1.0  ;;  %v764_v62 = vpop.f32.mrf.mxu1  ;;  %v17730_v27 = vld [vmem:[#allocation25_spill] sm:$0xff] }
 0x54f   : > { %v5340_v24 = vadd.f32 0.18741608, %v5339_v50  ;;  %v5415_v43 = vmul.f32 %v5414_v59, %v15090_v4  ;;  %7216 = vmatmul.bf16.gmra.mxu3 %v6614_v56  ;;  %vm5319_vm8 = vweird.f32 %v15144_v45  ;;  %v5325_v26 = vand.u32 2147483648, %v15144_v45 }
 0x550   : > { %17719 = vst [vmem:[#allocation54_spill] sm:$0xff] %v15262_v12  ;;  %v5378_v28 = vadd.f32 0.05243302, %v5377_v40  ;;  %v5431_v17 = vadd.f32 0.4994258, %v5430_v7  ;;  %v6431_v58 = vadd.f32 1.0, %v8411_v39  ;;  %vm5320_vm9 = vweird.f32 %v15199_v3 }
 0x551   : > { %vm15268_vm10 = vcmp.eq.f32.partialorder %v5323_v51, 8.507059e+37  ;;  %v5355_v35 = vmul.f32 %v15255_v32, %v15210_v16  ;;  %v15274_v20 = vpop.eup %8935  ;;  %v5318_v50 = vadd.f32 %v15199_v3, %v5317_v11  ;;  %v5468_v59 = vmul.f32 %v5467_v52, %v15169_v9  ;;  %v17722_v12 = vld [vmem:[#allocation22_spill] sm:$0xff]  ;;  %vm15296_vm11 = vmor %vm5319_vm8, %vm5320_vm9 }
 0x552   : > { %v5507_v53 = vadd.f32 0.014752088, %v5506_v13  ;;  %v15278_v44 = vmin.f32 %v5531_v15, 16.0  ;;  %v6432_v40 = vadd.f32 1.0, %v8412_v42  ;;  %v5341_v7 = vmul.f32 %v5340_v24, %v14990_v63  ;;  %v17723_v11 = vld [vmem:[#allocation26_spill] sm:$0xff] }
 0x553   : > { %v5416_v39 = vadd.f32 0.0036580483, %v5415_v43  ;;  %v5453_v51 = vmul.f32 2.1237322e-06, %v15169_v9  ;;  %v5379_v23 = vmul.f32 %v5378_v28, %v15013_v54  ;;  %v5432_v31 = vmul.f32 %v5431_v17, %v15090_v4 }
 0x554   : > { %v15285_v56 = vadd.f32 %v764_v62, %v9485_v21  ;;  %v6615_v55 = vpack.c.bf16 %v17723_v11, %v17722_v12  ;;  %v15290_v52 = vmul.f32 %v6431_v58, %v15073_v2  ;;  %v5326_v13 = vor.u32 1.1754944e-38, %v5325_v26  ;;  %v853_v58 = vpop.f32.mrf.mxu2  ;;  %v17727_v26 = vld [vmem:[#allocation23_spill] sm:$0xff] }
 0x555   : > { %v5356_v15 = vsub.f32 1.0, %v5355_v35  ;;  %v5395_v42 = vmul.f32 %v15274_v20, %v15231_v5  ;;  %v5322_v12 = vsel %vm15296_vm11, %v15199_v3, %v5318_v50  ;;  %v5469_v24 = vadd.f32 0.112945676, %v5468_v59  ;;  %v17728_v35 = vld [vmem:[#allocation58_spill] sm:$0xff] }
 0x556   : > { %17724 = vst [vmem:[#allocation57_spill] sm:$0xff] %v15290_v52  ;;  %v5508_v2 = vmul.f32 %v5507_v53, %v15197_v1  ;;  %v5544_v43 = vmul.f32 3.8918573e-05, %v15278_v44  ;;  %6954 = vmatmul.bf16.gmra.mxu0 %v6615_v55  ;;  %v5342_v45 = vadd.f32 1.1283791, %v5341_v7  ;;  %v5417_v28 = vmul.f32 %v5416_v39, %v15090_v4 }
 0x557   : > { %v5454_v17 = vadd.f32 0.00028619796, %v5453_v51  ;;  %v6616_v62 = vpack.c.bf16 %v17728_v35, %v17727_v26  ;;  %v15311_v11 = vmul.f32 %v6432_v40, %v15076_v48  ;;  %v5380_v30 = vadd.f32 0.18741608, %v5379_v23 }
 0x558   : > { %v15313_v63 = vadd.f32 1.0, %v5432_v31  ;;  %v15316_v3 = vmul.f32 0.70710677, %v15285_v56  ;;  %v5327_v55 = vsel %vm15268_vm10, %v5326_v13, %v5322_v12  ;;  %v5357_v50 = vmul.f32 %v15255_v32, %v5356_v15  ;;  %v17731_v13 = vld [vmem:[#allocation59_spill] sm:$0xff] }
 0x559   : > { %17729 = vst [vmem:[#allocation19_spill] sm:$0xff] %v15311_v11  ;;  %v5363_v59 = vand.u32 2147483647, %v15210_v16  ;;  %v5396_v53 = vsub.f32 1.0, %v5395_v42  ;;  %7043 = vmatmul.bf16.gmra.mxu1 %v6616_v62  ;;  %v5470_v7 = vmul.f32 %v5469_v24, %v15169_v9  ;;  %v5509_v39 = vadd.f32 0.112945676, %v5508_v2 }
 0x55a   : > { %v5545_v48 = vadd.f32 0.001143296, %v5544_v43  ;;  %v15324_v40 = vadd.f32 %v853_v58, %v9503_v29  ;;  %v5365_v51 = vand.u32 2147483648, %v15210_v16  ;;  %v5418_v23 = vadd.f32 0.05243302, %v5417_v28  ;;  %v17732_v28 = vld [vmem:[#allocation24_spill] sm:$0xff] }
 0x55b   : > { %v5455_v31 = vmul.f32 %v5454_v17, %v15169_v9  ;;  %v6617_v12 = vpack.c.bf16 %v17731_v13, %v17730_v27  ;;  %v5328_v15 = vmul.f32 %v5327_v55, %v15250_v25  ;;  %vm5360_vm12 = vweird.f32 %v15255_v32  ;;  %v17733_v17 = vld [vmem:[#allocation60_spill] sm:$0xff] }
 0x55c   : > { %8937 = vrcp.f32 %v15313_v63  ;;  %v5571_v42 = vmul.f32 %v15316_v3, %v15316_v3  ;;  %v5358_v24 = vadd.f32 %v15255_v32, %v5357_v50  ;;  %v5397_v2 = vmul.f32 %v15274_v20, %v5396_v53 }
 0x55d   : > { %v5493_v43 = vmul.f32 2.1237322e-06, %v15197_v1  ;;  %7132 = vmatmul.bf16.gmra.mxu2 %v6617_v12  ;;  %v6618_v58 = vpack.c.bf16 %v17733_v17, %v17732_v28  ;;  %v5471_v26 = vadd.f32 0.4994258, %v5470_v7  ;;  %v5510_v25 = vmul.f32 %v5509_v39, %v15197_v1 }
 0x55e   : > { %v5546_v35 = vmul.f32 %v5545_v48, %v15278_v44  ;;  %v15343_v62 = vmul.f32 0.70710677, %v15324_v40  ;;  %vm5359_vm13 = vweird.f32 %v15210_v16  ;;  %v5381_v55 = vmul.f32 %v5380_v30, %v15013_v54 }
 0x55f   : > { %v5419_v50 = vmul.f32 %v5418_v23, %v15090_v4  ;;  %v5456_v53 = vadd.f32 0.0036580483, %v5455_v31  ;;  %7221 = vmatmul.bf16.gmra.mxu3 %v6618_v58  ;;  %v8413_v27 = vclamps-f32 %v5328_v15, 1.0  ;;  %vm15350_vm14 = vmor %vm5359_vm13, %vm5360_vm12  ;;  %vm15354_vm15 = vcmp.eq.f32.partialorder %v5363_v59, 8.507059e+37 }
 0x560   : > { %v5366_v48 = vor.u32 1.1754944e-38, %v5365_v51  ;;  %v15358_v13 = vmin.f32 %v5571_v42, 16.0  ;;  %v5362_v54 = vsel %vm15350_vm14, %v15255_v32, %v5358_v24  ;;  %v5398_v30 = vadd.f32 %v15274_v20, %v5397_v2 }
 0x561   : > { %vm5400_vm0 = vweird.f32 %v15274_v20  ;;  %v5494_v16 = vadd.f32 0.00028619796, %v5493_v43  ;;  %v5472_v31 = vmul.f32 %v5471_v26, %v15169_v9  ;;  %v5511_v59 = vadd.f32 0.4994258, %v5510_v25 }
 0x562   : > { %v15365_v23 = vpop.eup %8937  ;;  %v5547_v12 = vadd.f32 0.014752088, %v5546_v35  ;;  %v5611_v51 = vmul.f32 %v15343_v62, %v15343_v62  ;;  %vm5399_vm1 = vweird.f32 %v15231_v5  ;;  %v5405_v15 = vand.u32 2147483648, %v15231_v5 }
 0x563   : > { %v5420_v42 = vadd.f32 0.18741608, %v5419_v50  ;;  %v5457_v32 = vmul.f32 %v5456_v53, %v15169_v9  ;;  %v5343_v24 = vmul.f32 %v5342_v45, %v14938_v37  ;;  %v5382_v2 = vadd.f32 1.1283791, %v5381_v55  ;;  %vm15374_vm2 = vmor %vm5399_vm1, %vm5400_vm0  ;;  %v942_v50 = vpop.f32.mrf.mxu3 }
 0x564   : > { %v5403_v28 = vand.u32 2147483647, %v15231_v5  ;;  %v5584_v17 = vmul.f32 3.8918573e-05, %v15358_v13  ;;  %v5367_v58 = vsel %vm15354_vm15, %v5366_v48, %v5362_v54  ;;  %v5402_v26 = vsel %vm15374_vm2, %v15274_v20, %v5398_v30 }
 0x565   : > { %v5435_v25 = vmul.f32 %v15365_v23, %v15313_v63  ;;  %v5495_v37 = vmul.f32 %v5494_v16, %v15197_v1  ;;  %v15388_v45 = vadd.f32 1.0, %v5472_v31  ;;  %v5512_v35 = vmul.f32 %v5511_v59, %v15197_v1 }
 0x566   : > { %v5548_v5 = vmul.f32 %v5547_v12, %v15278_v44  ;;  %v15392_v55 = vmin.f32 %v5611_v51, 16.0  ;;  %v6433_v53 = vadd.f32 1.0, %v8413_v27  ;;  %v5406_v7 = vor.u32 1.1754944e-38, %v5405_v15 }
 0x567   : > { %v5421_v39 = vmul.f32 %v5420_v42, %v15090_v4  ;;  %v5458_v48 = vadd.f32 0.05243302, %v5457_v32  ;;  %v5368_v20 = vmul.f32 %v5367_v58, %v5343_v24  ;;  %vm5404_vm3 = vcmp.eq.f32.partialorder %v5403_v28, 8.507059e+37 }
 0x568   : > { %v5533_v54 = vmul.f32 2.1237322e-06, %v15278_v44  ;;  %v5585_v30 = vadd.f32 0.001143296, %v5584_v17  ;;  %v5407_v16 = vsel %vm5404_vm3, %v5406_v7, %v5402_v26  ;;  %v5436_v31 = vsub.f32 1.0, %v5435_v25  ;;  %v678_v26 = vpop.f32.mrf.mxu0 }
 0x569   : > { %v5496_v43 = vadd.f32 0.0036580483, %v5495_v37  ;;  %v15397_v59 = vadd.f32 %v942_v50, %v9512_v34  ;;  %8939 = vrcp.f32 %v15388_v45  ;;  %v15400_v12 = vadd.f32 1.0, %v5512_v35 }
 0x56a   : > { %v5549_v27 = vadd.f32 0.112945676, %v5548_v5  ;;  %v5624_v51 = vmul.f32 3.8918573e-05, %v15392_v55  ;;  %v5383_v4 = vmul.f32 %v5382_v2, %v14968_v10  ;;  %v5422_v15 = vadd.f32 1.1283791, %v5421_v39 }
 0x56b   : > { %v15405_v42 = vmul.f32 0.5, %v15101_v57  ;;  %v5459_v32 = vmul.f32 %v5458_v48, %v15169_v9  ;;  %v15409_v24 = vmul.f32 %v6433_v53, %v15082_v49  ;;  %v15412_v28 = vmul.f32 0.5, %v15124_v47 }
 0x56c   : > { %v5534_v17 = vadd.f32 0.00028619796, %v5533_v54  ;;  %v5586_v58 = vmul.f32 %v5585_v30, %v15358_v13  ;;  %v8414_v25 = vclamps-f32 %v5368_v20, 1.0  ;;  %v5408_v37 = vmul.f32 %v5407_v16, %v5383_v4 }
 0x56d   : > { %17740 = vst [vmem:[#allocation15_spill] sm:$0xff] %v15409_v24  ;;  %v5497_v10 = vmul.f32 %v5496_v43, %v15197_v1  ;;  %v15417_v2 = vmul.f32 0.70710677, %v15397_v59  ;;  %v5437_v57 = vmul.f32 %v15365_v23, %v5436_v31  ;;  %8941 = vrcp.f32 %v15400_v12 }
 0x56e   : > { %v5550_v49 = vmul.f32 %v5549_v27, %v15278_v44  ;;  %v5625_v35 = vadd.f32 0.001143296, %v5624_v51  ;;  %v5423_v47 = vmul.f32 %v5422_v15, %v15046_v18  ;;  %v5460_v5 = vadd.f32 0.18741608, %v5459_v32 }
 0x56f   : > { %v15424_v50 = vmul.f32 0.5, %v15223_v33  ;;  %v15427_v53 = vadd.f32 %v678_v26, %v9483_v19  ;;  %v15429_v7 = vpop.eup %8939  ;;  %v5443_v39 = vand.u32 2147483647, %v15313_v63  ;;  %v5445_v48 = vand.u32 2147483648, %v15313_v63 }
 0x570   : > { %v5535_v20 = vmul.f32 %v5534_v17, %v15278_v44  ;;  %v5587_v54 = vadd.f32 0.014752088, %v5586_v58  ;;  %v6434_v30 = vadd.f32 1.0, %v8414_v25  ;;  %v8415_v16 = vclamps-f32 %v5408_v37, 1.0 }
 0x571   : > { %v5498_v31 = vadd.f32 0.05243302, %v5497_v10  ;;  %v5651_v18 = vmul.f32 %v15417_v2, %v15417_v2  ;;  %v5438_v33 = vadd.f32 %v15365_v23, %v5437_v57  ;;  %vm5440_vm4 = vweird.f32 %v15365_v23 }
 0x572   : > { %v5551_v43 = vadd.f32 0.4994258, %v5550_v49  ;;  %v5626_v27 = vmul.f32 %v5625_v35, %v15392_v55  ;;  %vm5439_vm5 = vweird.f32 %v15313_v63  ;;  %v5461_v51 = vmul.f32 %v5460_v5, %v15169_v9  ;;  %v767_v49 = vpop.f32.mrf.mxu1 }
 0x573   : > { %v5475_v4 = vmul.f32 %v15429_v7, %v15388_v45  ;;  %v15444_v15 = vmul.f32 0.70710677, %v15427_v53  ;;  %v15446_v32 = vpop.eup %8941  ;;  %vm15448_vm6 = vcmp.eq.f32.partialorder %v5443_v39, 8.507059e+37  ;;  %v5446_v58 = vor.u32 1.1754944e-38, %v5445_v48  ;;  %vm15456_vm7 = vmor %vm5439_vm5, %vm5440_vm4 }
 0x574   : > { %v5536_v26 = vadd.f32 0.0036580483, %v5535_v20  ;;  %v5588_v25 = vmul.f32 %v5587_v54, %v15358_v13  ;;  %v15454_v63 = vmul.f32 %v6434_v30, %v15085_v41  ;;  %v6435_v9 = vadd.f32 1.0, %v8415_v16 }
 0x575   : > { %v5499_v10 = vmul.f32 %v5498_v31, %v15197_v1  ;;  %v15461_v57 = vmin.f32 %v5651_v18, 16.0  ;;  %v5442_v35 = vsel %vm15456_vm7, %v15365_v23, %v5438_v33  ;;  %v5552_v5 = vmul.f32 %v5551_v43, %v15278_v44 }
 0x576   : > { %17743 = vst [vmem:[#allocation17_spill] sm:$0xff] %v15454_v63  ;;  %v5573_v39 = vmul.f32 2.1237322e-06, %v15358_v13  ;;  %v5627_v41 = vadd.f32 0.014752088, %v5626_v27  ;;  %v5476_v20 = vsub.f32 1.0, %v5475_v4  ;;  %v5515_v54 = vmul.f32 %v15446_v32, %v15400_v12 }
 0x577   : > { %v5462_v48 = vadd.f32 1.1283791, %v5461_v51  ;;  %v5691_v30 = vmul.f32 %v15444_v15, %v15444_v15  ;;  %v5537_v16 = vmul.f32 %v5536_v26, %v15278_v44  ;;  %v15474_v31 = vmul.f32 0.5, %v15285_v56 }
 0x578   : > { %v5589_v18 = vadd.f32 0.112945676, %v5588_v25  ;;  %v15477_v23 = vadd.f32 %v767_v49, %v9485_v21  ;;  %v15480_v33 = vmul.f32 %v6435_v9, %v15127_v8  ;;  %v5447_v43 = vsel %vm15448_vm6, %v5446_v58, %v5442_v35 }
 0x579   : > { %v5500_v27 = vadd.f32 0.18741608, %v5499_v10  ;;  %v5664_v51 = vmul.f32 3.8918573e-05, %v15461_v57  ;;  %v15485_v4 = vadd.f32 1.0, %v5552_v5  ;;  %v5628_v56 = vmul.f32 %v5627_v41, %v15392_v55 }
 0x57a   : > { %17746 = vst [vmem:[#allocation18_spill] sm:$0xff] %v15480_v33  ;;  %v5574_v37 = vadd.f32 0.00028619796, %v5573_v39  ;;  %v5613_v26 = vmul.f32 2.1237322e-06, %v15392_v55  ;;  %v5463_v25 = vmul.f32 %v5462_v48, %v15121_v14  ;;  %v5477_v49 = vmul.f32 %v15429_v7, %v5476_v20 }
 0x57b   : > { %v5516_v63 = vsub.f32 1.0, %v5515_v54  ;;  %v15491_v8 = vmin.f32 %v5691_v30, 16.0  ;;  %v5483_v17 = vand.u32 2147483647, %v15388_v45  ;;  %v5538_v58 = vadd.f32 0.05243302, %v5537_v16 }
 0x57c   : > { %v5590_v9 = vmul.f32 %v5589_v18, %v15358_v13  ;;  %v15496_v10 = vmul.f32 0.70710677, %v15477_v23  ;;  %v5448_v35 = vmul.f32 %v5447_v43, %v5423_v47  ;;  %v5485_v5 = vand.u32 2147483648, %v15388_v45 }
 0x57d   : > { %v5501_v39 = vmul.f32 %v5500_v27, %v15197_v1  ;;  %v5665_v41 = vadd.f32 0.001143296, %v5664_v51  ;;  %8943 = vrcp.f32 %v15485_v4  ;;  %v5575_v14 = vmul.f32 %v5574_v37, %v15358_v13 }
 0x57e   : > { %v5614_v48 = vadd.f32 0.00028619796, %v5613_v26  ;;  %v5629_v20 = vadd.f32 0.112945676, %v5628_v56  ;;  %v5478_v54 = vadd.f32 %v15429_v7, %v5477_v49  ;;  %vm5480_vm8 = vweird.f32 %v15429_v7 }
 0x57f   : > { %v5517_v30 = vmul.f32 %v15446_v32, %v5516_v63  ;;  %v5704_v16 = vmul.f32 3.8918573e-05, %v15491_v8  ;;  %vm5479_vm9 = vweird.f32 %v15388_v45  ;;  %v5539_v47 = vmul.f32 %v5538_v58, %v15278_v44 }
 0x580   : > { %v5591_v1 = vadd.f32 0.4994258, %v5590_v9  ;;  %v5731_v18 = vmul.f32 %v15496_v10, %v15496_v10  ;;  %v8416_v43 = vclamps-f32 %v5448_v35, 1.0  ;;  %vm15510_vm10 = vcmp.eq.f32.partialorder %v5483_v17, 8.507059e+37  ;;  %vm15515_vm11 = vmor %vm5479_vm9, %vm5480_vm8 }
 0x581   : > { %v5486_v51 = vor.u32 1.1754944e-38, %v5485_v5  ;;  %v5666_v37 = vmul.f32 %v5665_v41, %v15461_v57  ;;  %v5502_v26 = vadd.f32 1.1283791, %v5501_v39  ;;  %v5576_v45 = vadd.f32 0.0036580483, %v5575_v14 }
 0x582   : > { %v5615_v56 = vmul.f32 %v5614_v48, %v15392_v55  ;;  %v5630_v49 = vmul.f32 %v5629_v20, %v15392_v55  ;;  %v5482_v17 = vsel %vm15515_vm11, %v15429_v7, %v5478_v54  ;;  %v5518_v58 = vadd.f32 %v15446_v32, %v5517_v30 }
 0x583   : > { %vm5520_vm12 = vweird.f32 %v15446_v32  ;;  %v5705_v9 = vadd.f32 0.001143296, %v5704_v16  ;;  %v15526_v35 = vpop.eup %8943  ;;  %v5525_v5 = vand.u32 2147483648, %v15400_v12  ;;  %v5540_v41 = vadd.f32 0.18741608, %v5539_v47 }
 0x584   : > { %v5592_v39 = vmul.f32 %v5591_v1, %v15358_v13  ;;  %v15530_v14 = vmin.f32 %v5731_v18, 16.0  ;;  %vm5519_vm13 = vweird.f32 %v15400_v12  ;;  %v5523_v48 = vand.u32 2147483647, %v15400_v12 }
 0x585   : > { %v15535_v7 = vmul.f32 0.5, %v15324_v40  ;;  %v5667_v20 = vadd.f32 0.014752088, %v5666_v37  ;;  %v5487_v54 = vsel %vm15510_vm10, %v5486_v51, %v5482_v17  ;;  %vm15539_vm14 = vmor %vm5519_vm13, %vm5520_vm12  ;;  %v5577_v16 = vmul.f32 %v5576_v45, %v15358_v13 }
 0x586   : > { %v5616_v47 = vadd.f32 0.0036580483, %v5615_v56  ;;  %v5631_v1 = vadd.f32 0.4994258, %v5630_v49  ;;  %v5522_v18 = vsel %vm15539_vm14, %v15446_v32, %v5518_v58  ;;  %v5555_v40 = vmul.f32 %v15526_v35, %v15485_v4  ;;  %v856_v56 = vpop.f32.mrf.mxu2 }
 0x587   : > { %v5653_v12 = vmul.f32 2.1237322e-06, %v15461_v57  ;;  %v5706_v27 = vmul.f32 %v5705_v9, %v15491_v8  ;;  %v5526_v51 = vor.u32 1.1754944e-38, %v5525_v5  ;;  %v5541_v37 = vmul.f32 %v5540_v41, %v15278_v44 }
 0x588   : > { %v15552_v63 = vadd.f32 1.0, %v5592_v39  ;;  %v5744_v45 = vmul.f32 3.8918573e-05, %v15530_v14  ;;  %v6436_v49 = vadd.f32 1.0, %v8416_v43  ;;  %v5488_v17 = vmul.f32 %v5487_v54, %v5463_v25 }
 0x589   : > { %vm5524_vm15 = vcmp.eq.f32.partialorder %v5523_v48, 8.507059e+37  ;;  %v5668_v32 = vmul.f32 %v5667_v20, %v15461_v57  ;;  %v5578_v30 = vadd.f32 0.05243302, %v5577_v16  ;;  %v5617_v33 = vmul.f32 %v5616_v47, %v15392_v55  ;;  %v945_v16 = vpop.f32.mrf.mxu3 }
 0x58a   : > { %v5527_v58 = vsel %vm5524_vm15, %v5526_v51, %v5522_v18  ;;  %v5632_v24 = vmul.f32 %v5631_v1, %v15392_v55  ;;  %v5556_v9 = vsub.f32 1.0, %v5555_v40  ;;  %v5654_v5 = vadd.f32 0.00028619796, %v5653_v12 }
 0x58b   : > { %v5707_v11 = vadd.f32 0.014752088, %v5706_v27  ;;  %v15559_v44 = vadd.f32 %v856_v56, %v9503_v29  ;;  %v5503_v41 = vmul.f32 %v5502_v26, %v15153_v46  ;;  %v5542_v39 = vadd.f32 1.1283791, %v5541_v37 }
 0x58c   : > { %8945 = vrcp.f32 %v15552_v63  ;;  %v5745_v25 = vadd.f32 0.001143296, %v5744_v45  ;;  %v15564_v43 = vmul.f32 %v6436_v49, %v15246_v22  ;;  %v8417_v48 = vclamps-f32 %v5488_v17, 1.0  ;;  %v680_v17 = vpop.f32.mrf.mxu0 }
 0x58d   : > { %v15567_v20 = vmul.f32 0.5, %v15397_v59  ;;  %v5669_v54 = vadd.f32 0.112945676, %v5668_v32  ;;  %v5528_v47 = vmul.f32 %v5527_v58, %v5503_v41  ;;  %v5579_v1 = vmul.f32 %v5578_v30, %v15358_v13 }
 0x58e   : > { %17753 = vst [vmem:[#allocation20_spill] sm:$0xff] %v15564_v43  ;;  %v5618_v18 = vadd.f32 0.05243302, %v5617_v33  ;;  %v15570_v40 = vadd.f32 1.0, %v5632_v24  ;;  %v5557_v46 = vmul.f32 %v15526_v35, %v5556_v9  ;;  %v5655_v26 = vmul.f32 %v5654_v5, %v15461_v57 }
 0x58f   : > { %v5708_v12 = vmul.f32 %v5707_v11, %v15491_v8  ;;  %v15576_v22 = vmul.f32 0.70710677, %v15559_v44  ;;  %v5543_v59 = vmul.f32 %v5542_v39, %v15238_v6  ;;  %v5563_v27 = vand.u32 2147483647, %v15485_v4 }
 0x590   : > { %v5746_v51 = vmul.f32 %v5745_v25, %v15530_v14  ;;  %v15582_v37 = vadd.f32 %v945_v16, %v9512_v34  ;;  %v6437_v24 = vadd.f32 1.0, %v8417_v48  ;;  %vm5560_vm0 = vweird.f32 %v15526_v35 }
 0x591   : > { %v5565_v33 = vand.u32 2147483648, %v15485_v4  ;;  %v5670_v45 = vmul.f32 %v5669_v54, %v15461_v57  ;;  %v8418_v56 = vclamps-f32 %v5528_v47, 1.0  ;;  %v5580_v49 = vadd.f32 0.18741608, %v5579_v1 }
 0x592   : > { %v15587_v11 = vpop.eup %8945  ;;  %v5619_v6 = vmul.f32 %v5618_v18, %v15392_v55  ;;  %8947 = vrcp.f32 %v15570_v40  ;;  %v5558_v32 = vadd.f32 %v15526_v35, %v5557_v46  ;;  %v5656_v58 = vadd.f32 0.0036580483, %v5655_v26  ;;  %v769_v26 = vpop.f32.mrf.mxu1 }
 0x593   : > { %v5709_v30 = vadd.f32 0.112945676, %v5708_v12  ;;  %v5771_v9 = vmul.f32 %v15576_v22, %v15576_v22  ;;  %vm5559_vm1 = vweird.f32 %v15485_v4  ;;  %v5693_v5 = vmul.f32 2.1237322e-06, %v15491_v8 }
 0x594   : > { %v5747_v41 = vadd.f32 0.014752088, %v5746_v51  ;;  %v15597_v39 = vmul.f32 0.70710677, %v15582_v37  ;;  %vm15599_vm2 = vcmp.eq.f32.partialorder %v5563_v27, 8.507059e+37  ;;  %v5595_v48 = vmul.f32 %v15587_v11, %v15552_v63  ;;  %vm15613_vm3 = vmor %vm5559_vm1, %vm5560_vm0 }
 0x595   : > { %v5671_v54 = vadd.f32 0.4994258, %v5670_v45  ;;  %v15606_v16 = vadd.f32 %v680_v17, %v9483_v19  ;;  %v15609_v47 = vmul.f32 %v6437_v24, %v15405_v42  ;;  %v5566_v1 = vor.u32 1.1754944e-38, %v5565_v33 }
 0x596   : > { %v5581_v18 = vmul.f32 %v5580_v49, %v15358_v13  ;;  %v5620_v46 = vadd.f32 0.18741608, %v5619_v6  ;;  %v5562_v12 = vsel %vm15613_vm3, %v15526_v35, %v5558_v32  ;;  %v5657_v27 = vmul.f32 %v5656_v58, %v15461_v57 }
 0x597   : > { %17756 = vst [vmem:[#allocation16_spill] sm:$0xff] %v15609_v47  ;;  %v5710_v42 = vmul.f32 %v5709_v30, %v15491_v8  ;;  %v15623_v51 = vmin.f32 %v5771_v9, 16.0  ;;  %v6438_v45 = vadd.f32 1.0, %v8418_v56  ;;  %v5694_v17 = vadd.f32 0.00028619796, %v5693_v5 }
 0x598   : > { %v15625_v24 = vpop.eup %8947  ;;  %v5748_v33 = vmul.f32 %v5747_v41, %v15530_v14  ;;  %v5811_v13 = vmul.f32 %v15597_v39, %v15597_v39  ;;  %v5596_v49 = vsub.f32 1.0, %v5595_v48  ;;  %v5672_v6 = vmul.f32 %v5671_v54, %v15461_v57 }
 0x599   : > { %v15632_v35 = vmul.f32 0.70710677, %v15606_v16  ;;  %v15635_v32 = vadd.f32 %v769_v26, %v9485_v21  ;;  %v5567_v58 = vsel %vm15599_vm2, %v5566_v1, %v5562_v12  ;;  %v5582_v30 = vadd.f32 1.1283791, %v5581_v18 }
 0x59a   : > { %v5621_v56 = vmul.f32 %v5620_v46, %v15392_v55  ;;  %v15641_v9 = vmul.f32 0.5, %v15427_v53  ;;  %v5635_v5 = vmul.f32 %v15625_v24, %v15570_v40  ;;  %v5658_v41 = vadd.f32 0.05243302, %v5657_v27 }
 0x59b   : > { %v5711_v48 = vadd.f32 0.4994258, %v5710_v42  ;;  %v5784_v54 = vmul.f32 3.8918573e-05, %v15623_v51  ;;  %v15647_v4 = vmul.f32 %v6438_v45, %v15412_v28  ;;  %v5695_v26 = vmul.f32 %v5694_v17, %v15491_v8 }
 0x59c   : > { %v5749_v25 = vadd.f32 0.112945676, %v5748_v33  ;;  %v15650_v1 = vmin.f32 %v5811_v13, 16.0  ;;  %v5597_v55 = vmul.f32 %v15587_v11, %v5596_v49  ;;  %v15653_v18 = vadd.f32 1.0, %v5672_v6 }
 0x59d   : > { %17759 = vst [vmem:[#allocation21_spill] sm:$0xff] %v15647_v4  ;;  %v5851_v53 = vmul.f32 %v15632_v35, %v15632_v35  ;;  %v15658_v46 = vmul.f32 0.70710677, %v15635_v32  ;;  %v5568_v12 = vmul.f32 %v5567_v58, %v5543_v59  ;;  %v5583_v27 = vmul.f32 %v5582_v30, %v15316_v3 }
 0x59e   : > { %v5603_v28 = vand.u32 2147483647, %v15552_v63  ;;  %v5605_v42 = vand.u32 2147483648, %v15552_v63  ;;  %v5636_v45 = vsub.f32 1.0, %v5635_v5  ;;  %v5659_v17 = vmul.f32 %v5658_v41, %v15461_v57 }
 0x59f   : > { %v5712_v33 = vmul.f32 %v5711_v48, %v15491_v8  ;;  %v5785_v13 = vadd.f32 0.001143296, %v5784_v54  ;;  %vm5600_vm4 = vweird.f32 %v15587_v11  ;;  %v5696_v49 = vadd.f32 0.0036580483, %v5695_v26 }
 0x5a0   : > { %v5750_v6 = vmul.f32 %v5749_v25, %v15530_v14  ;;  %v5824_v4 = vmul.f32 3.8918573e-05, %v15650_v1  ;;  %v5598_v59 = vadd.f32 %v15587_v11, %v5597_v55  ;;  %8949 = vrcp.f32 %v15653_v18 }
 0x5a1   : > { %v15670_v3 = vmin.f32 %v5851_v53, 16.0  ;;  %v5891_v58 = vmul.f32 %v15658_v46, %v15658_v46  ;;  %vm5599_vm5 = vweird.f32 %v15552_v63  ;;  %vm15675_vm6 = vcmp.eq.f32.partialorder %v5603_v28, 8.507059e+37 }
 0x5a2   : > { %v5622_v5 = vadd.f32 1.1283791, %v5621_v56  ;;  %v5733_v41 = vmul.f32 2.1237322e-06, %v15530_v14  ;;  %v5637_v48 = vmul.f32 %v15625_v24, %v5636_v45  ;;  %v5660_v54 = vadd.f32 0.18741608, %v5659_v17  ;;  %vm15686_vm7 = vmor %vm5599_vm5, %vm5600_vm4 }
 0x5a3   : > { %v15681_v26 = vadd.f32 1.0, %v5712_v33  ;;  %v5786_v25 = vmul.f32 %v5785_v13, %v15623_v51  ;;  %v8419_v55 = vclamps-f32 %v5568_v12, 1.0  ;;  %v5606_v63 = vor.u32 1.1754944e-38, %v5605_v42 }
 0x5a4   : > { %v5751_v28 = vadd.f32 0.4994258, %v5750_v6  ;;  %v5825_v47 = vadd.f32 0.001143296, %v5824_v4  ;;  %v5602_v56 = vsel %vm15686_vm7, %v15587_v11, %v5598_v59  ;;  %v5697_v45 = vmul.f32 %v5696_v49, %v15491_v8 }
 0x5a5   : > { %v5864_v17 = vmul.f32 3.8918573e-05, %v15670_v3  ;;  %v15695_v33 = vmin.f32 %v5891_v58, 16.0  ;;  %vm5640_vm8 = vweird.f32 %v15625_v24  ;;  %v5643_v12 = vand.u32 2147483647, %v15570_v40 }
 0x5a6   : > { %v5645_v13 = vand.u32 2147483648, %v15570_v40  ;;  %v5734_v43 = vadd.f32 0.00028619796, %v5733_v41  ;;  %v15700_v42 = vpop.eup %8949  ;;  %v5638_v4 = vadd.f32 %v15625_v24, %v5637_v48  ;;  %v5661_v6 = vmul.f32 %v5660_v54, %v15461_v57  ;;  %v858_v48 = vpop.f32.mrf.mxu2 }
 0x5a7   : > { %8951 = vrcp.f32 %v15681_v26  ;;  %v5787_v11 = vadd.f32 0.014752088, %v5786_v25  ;;  %v6439_v49 = vadd.f32 1.0, %v8419_v55  ;;  %v5607_v59 = vsel %vm15675_vm6, %v5606_v63, %v5602_v56 }
 0x5a8   : > { %v5752_v58 = vmul.f32 %v5751_v28, %v15530_v14  ;;  %v5826_v53 = vmul.f32 %v5825_v47, %v15650_v1  ;;  %vm5639_vm9 = vweird.f32 %v15570_v40  ;;  %v5698_v41 = vadd.f32 0.05243302, %v5697_v45 }
 0x5a9   : > { %v5865_v52 = vadd.f32 0.001143296, %v5864_v17  ;;  %v5904_v36 = vmul.f32 3.8918573e-05, %v15695_v33  ;;  %v5623_v57 = vmul.f32 %v5622_v5, %v15343_v62  ;;  %vm15714_vm10 = vmor %vm5639_vm9, %vm5640_vm8  ;;  %vm15718_vm11 = vcmp.eq.f32.partialorder %v5643_v12, 8.507059e+37 }
 0x5aa   : > { %v5675_v40 = vmul.f32 %v15700_v42, %v15653_v18  ;;  %v5735_v47 = vmul.f32 %v5734_v43, %v15530_v14  ;;  %v5608_v25 = vmul.f32 %v5607_v59, %v5583_v27  ;;  %v5642_v62 = vsel %vm15714_vm10, %v15625_v24, %v5638_v4 }
 0x5ab   : > { %v5662_v5 = vadd.f32 1.1283791, %v5661_v6  ;;  %v5788_v55 = vmul.f32 %v5787_v11, %v15623_v51  ;;  %v5646_v63 = vor.u32 1.1754944e-38, %v5645_v13  ;;  %v15729_v28 = vadd.f32 1.0, %v5752_v58 }
 0x5ac   : > { %v5827_v56 = vadd.f32 0.014752088, %v5826_v53  ;;  %v15732_v45 = vadd.f32 %v858_v48, %v9503_v29  ;;  %v15737_v12 = vmul.f32 %v6439_v49, %v15424_v50  ;;  %v5699_v43 = vmul.f32 %v5698_v41, %v15491_v8 }
 0x5ad   : > { %v15734_v17 = vpop.eup %8951  ;;  %v5866_v27 = vmul.f32 %v5865_v52, %v15670_v3  ;;  %v5905_v24 = vadd.f32 0.001143296, %v5904_v36  ;;  %v5647_v4 = vsel %vm15718_vm11, %v5646_v63, %v5642_v62  ;;  %v5676_v13 = vsub.f32 1.0, %v5675_v40 }
 0x5ae   : > { %v5736_v6 = vadd.f32 0.0036580483, %v5735_v47  ;;  %v5773_v11 = vmul.f32 2.1237322e-06, %v15623_v51  ;;  %v8420_v59 = vclamps-f32 %v5608_v25, 1.0  ;;  %v15745_v58 = vmul.f32 %v5662_v5, %v15417_v2 }
 0x5af   : > { %v15748_v53 = vmul.f32 0.5, %v15477_v23  ;;  %v5789_v50 = vadd.f32 0.112945676, %v5788_v55  ;;  %v5715_v49 = vmul.f32 %v15734_v17, %v15681_v26  ;;  %8953 = vrcp.f32 %v15729_v28 }
 0x5b0   : > { %v5828_v36 = vmul.f32 %v5827_v56, %v15650_v1  ;;  %v15755_v52 = vmul.f32 0.70710677, %v15732_v45  ;;  %v5648_v41 = vmul.f32 %v5647_v4, %v5623_v57  ;;  %v5700_v48 = vadd.f32 0.18741608, %v5699_v43 }
 0x5b1   : > { %v5867_v54 = vadd.f32 0.014752088, %v5866_v27  ;;  %v5906_v2 = vmul.f32 %v5905_v24, %v15695_v33  ;;  %v5677_v30 = vmul.f32 %v15700_v42, %v5676_v13  ;;  %vm5679_vm12 = vweird.f32 %v15653_v18 }
 0x5b2   : > { %v5737_v23 = vmul.f32 %v5736_v6, %v15530_v14  ;;  %v5774_v40 = vadd.f32 0.00028619796, %v5773_v11  ;;  %v5683_v47 = vand.u32 2147483647, %v15653_v18  ;;  %v5685_v25 = vand.u32 2147483648, %v15653_v18 }
 0x5b3   : > { %v5790_v62 = vmul.f32 %v5789_v50, %v15623_v51  ;;  %v5813_v5 = vmul.f32 2.1237322e-06, %v15650_v1  ;;  %v6440_v57 = vadd.f32 1.0, %v8420_v59  ;;  %v5716_v55 = vsub.f32 1.0, %v5715_v49 }
 0x5b4   : > { %v5829_v63 = vadd.f32 0.112945676, %v5828_v36  ;;  %v5931_v56 = vmul.f32 %v15755_v52, %v15755_v52  ;;  %v8421_v43 = vclamps-f32 %v5648_v41, 1.0  ;;  %v5701_v27 = vmul.f32 %v5700_v48, %v15491_v8 }
 0x5b5   : > { %v5868_v24 = vmul.f32 %v5867_v54, %v15670_v3  ;;  %v5907_v4 = vadd.f32 0.014752088, %v5906_v2  ;;  %v15769_v13 = vpop.eup %8953  ;;  %v5678_v6 = vadd.f32 %v15700_v42, %v5677_v30  ;;  %vm5680_vm13 = vweird.f32 %v15700_v42 }
 0x5b6   : > { %v5738_v11 = vadd.f32 0.05243302, %v5737_v23  ;;  %v5775_v59 = vmul.f32 %v5774_v40, %v15623_v51  ;;  %vm15774_vm14 = vcmp.eq.f32.partialorder %v5683_v47, 8.507059e+37  ;;  %v5686_v49 = vor.u32 1.1754944e-38, %v5685_v25  ;;  %vm15787_vm15 = vmor %vm5679_vm12, %vm5680_vm13 }
 0x5b7   : > { %v5791_v36 = vadd.f32 0.4994258, %v5790_v62  ;;  %v5814_v41 = vadd.f32 0.00028619796, %v5813_v5  ;;  %v15779_v8 = vmul.f32 %v6440_v57, %v15474_v31  ;;  %v5717_v48 = vmul.f32 %v15734_v17, %v5716_v55 }
 0x5b8   : > { %v5830_v54 = vmul.f32 %v5829_v63, %v15650_v1  ;;  %v15783_v2 = vmin.f32 %v5931_v56, 16.0  ;;  %v5702_v23 = vadd.f32 1.1283791, %v5701_v27  ;;  %v5755_v40 = vmul.f32 %v15769_v13, %v15729_v28 }
 0x5b9   : > { %17770 = vst [vmem:[#allocation22_spill] sm:$0xff] %v15779_v8  ;;  %v5869_v47 = vadd.f32 0.112945676, %v5868_v24  ;;  %v5908_v31 = vmul.f32 %v5907_v4, %v15695_v33  ;;  %v5682_v25 = vsel %vm15787_vm15, %v15700_v42, %v5678_v6  ;;  %v5739_v62 = vmul.f32 %v5738_v11, %v15530_v14 }
 0x5ba   : > { %v5776_v5 = vadd.f32 0.0036580483, %v5775_v59  ;;  %v5853_v18 = vmul.f32 2.1237322e-06, %v15670_v3  ;;  %vm5719_vm0 = vweird.f32 %v15681_v26  ;;  %v5725_v57 = vand.u32 2147483648, %v15681_v26 }
 0x5bb   : > { %v5792_v55 = vmul.f32 %v5791_v36, %v15623_v51  ;;  %v5815_v63 = vmul.f32 %v5814_v41, %v15650_v1  ;;  %v5718_v56 = vadd.f32 %v15734_v17, %v5717_v48  ;;  %vm5720_vm1 = vweird.f32 %v15734_v17 }
 0x5bc   : > { %v5831_v27 = vadd.f32 0.4994258, %v5830_v54  ;;  %v5944_v42 = vmul.f32 3.8918573e-05, %v15783_v2  ;;  %v5687_v24 = vsel %vm15774_vm14, %v5686_v49, %v5682_v25  ;;  %v5756_v4 = vsub.f32 1.0, %v5755_v40  ;;  %vm15814_vm2 = vmor %vm5719_vm0, %vm5720_vm1 }
 0x5bd   : > { %v5870_v6 = vmul.f32 %v5869_v47, %v15670_v3  ;;  %v5909_v11 = vadd.f32 0.112945676, %v5908_v31  ;;  %v5723_v59 = vand.u32 2147483647, %v15681_v26  ;;  %v5740_v30 = vadd.f32 0.18741608, %v5739_v62 }
 0x5be   : > { %v5777_v36 = vmul.f32 %v5776_v5, %v15623_v51  ;;  %v5854_v41 = vadd.f32 0.00028619796, %v5853_v18  ;;  %v6441_v8 = vadd.f32 1.0, %v8421_v43  ;;  %v5703_v48 = vmul.f32 %v5702_v23, %v15444_v15 }
 0x5bf   : > { %v15818_v50 = vadd.f32 1.0, %v5792_v55  ;;  %v5816_v49 = vadd.f32 0.0036580483, %v5815_v63  ;;  %v5688_v40 = vmul.f32 %v5687_v24, %v15745_v58  ;;  %v5722_v47 = vsel %vm15814_vm2, %v15734_v17, %v5718_v56  ;;  %v947_v58 = vpop.f32.mrf.mxu3 }
 0x5c0   : > { %v5832_v31 = vmul.f32 %v5831_v27, %v15650_v1  ;;  %v5945_v43 = vadd.f32 0.001143296, %v5944_v42  ;;  %v5726_v25 = vor.u32 1.1754944e-38, %v5725_v57  ;;  %v5757_v15 = vmul.f32 %v15769_v13, %v5756_v4 }
 0x5c1   : > { %v5871_v26 = vadd.f32 0.4994258, %v5870_v6  ;;  %v5910_v23 = vmul.f32 %v5909_v11, %v15695_v33  ;;  %vm5724_vm3 = vcmp.eq.f32.partialorder %v5723_v59, 8.507059e+37  ;;  %v5741_v62 = vmul.f32 %v5740_v30, %v15530_v14 }
 0x5c2   : > { %v5778_v5 = vadd.f32 0.05243302, %v5777_v36  ;;  %v5855_v18 = vmul.f32 %v5854_v41, %v15670_v3  ;;  %v5727_v55 = vsel %vm5724_vm3, %v5726_v25, %v5722_v47  ;;  %8955 = vrcp.f32 %v15818_v50 }
 0x5c3   : > { %v5817_v17 = vmul.f32 %v5816_v49, %v15650_v1  ;;  %v5893_v63 = vmul.f32 2.1237322e-06, %v15695_v33  ;;  %v8422_v57 = vclamps-f32 %v5688_v40, 1.0  ;;  %vm5760_vm4 = vweird.f32 %v15769_v13 }
 0x5c4   : > { %v15833_v56 = vadd.f32 1.0, %v5832_v31  ;;  %v5946_v27 = vmul.f32 %v5945_v43, %v15783_v2  ;;  %v5758_v14 = vadd.f32 %v15769_v13, %v5757_v15  ;;  %v5872_v42 = vmul.f32 %v5871_v26, %v15670_v3 }
 0x5c5   : > { %v5911_v24 = vadd.f32 0.4994258, %v5910_v23  ;;  %v15839_v4 = vadd.f32 %v947_v58, %v9512_v34  ;;  %v5728_v6 = vmul.f32 %v5727_v55, %v5703_v48  ;;  %v5765_v11 = vand.u32 2147483648, %v15729_v28 }
 0x5c6   : > { %v5779_v59 = vmul.f32 %v5778_v5, %v15623_v51  ;;  %v5856_v30 = vadd.f32 0.0036580483, %v5855_v18  ;;  %vm5759_vm5 = vweird.f32 %v15729_v28  ;;  %v5763_v36 = vand.u32 2147483647, %v15729_v28 }
 0x5c7   : > { %v5818_v41 = vadd.f32 0.05243302, %v5817_v17  ;;  %v5894_v54 = vadd.f32 0.00028619796, %v5893_v63  ;;  %v15846_v49 = vmul.f32 %v6441_v8, %v15535_v7  ;;  %v5742_v40 = vadd.f32 1.1283791, %v5741_v62  ;;  %vm15850_vm6 = vmor %vm5759_vm5, %vm5760_vm4 }
 0x5c8   : > { %8957 = vrcp.f32 %v15833_v56  ;;  %v5947_v48 = vadd.f32 0.014752088, %v5946_v27  ;;  %v15855_v31 = vpop.eup %8955  ;;  %v5762_v28 = vsel %vm15850_vm6, %v15769_v13, %v5758_v14  ;;  %v15860_v43 = vadd.f32 1.0, %v5872_v42 }
 0x5c9   : > { %v5912_v7 = vmul.f32 %v5911_v24, %v15695_v33  ;;  %v15864_v8 = vmul.f32 0.70710677, %v15839_v4  ;;  %v8423_v25 = vclamps-f32 %v5728_v6, 1.0  ;;  %v5766_v15 = vor.u32 1.1754944e-38, %v5765_v11 }
 0x5ca   : > { %v5780_v26 = vadd.f32 0.18741608, %v5779_v59  ;;  %v5857_v23 = vmul.f32 %v5856_v30, %v15670_v3  ;;  %v6442_v62 = vadd.f32 1.0, %v8422_v57  ;;  %vm5764_vm7 = vcmp.eq.f32.partialorder %v5763_v36, 8.507059e+37 }
 0x5cb   : > { %v5819_v5 = vmul.f32 %v5818_v41, %v15650_v1  ;;  %v5895_v18 = vmul.f32 %v5894_v54, %v15695_v33  ;;  %v5767_v58 = vsel %vm5764_vm7, %v5766_v15, %v5762_v28  ;;  %v5795_v13 = vmul.f32 %v15855_v31, %v15818_v50 }
 0x5cc   : > { %v5933_v55 = vmul.f32 2.1237322e-06, %v15783_v2  ;;  %v5948_v17 = vmul.f32 %v5947_v48, %v15783_v2  ;;  %v5743_v63 = vmul.f32 %v5742_v40, %v15496_v10  ;;  %8959 = vrcp.f32 %v15860_v43  ;;  %v683_v48 = vpop.f32.mrf.mxu0 }
 0x5cd   : > { %v15875_v27 = vadd.f32 1.0, %v5912_v7  ;;  %v5971_v57 = vmul.f32 %v15864_v8, %v15864_v8  ;;  %v6443_v42 = vadd.f32 1.0, %v8423_v25  ;;  %v15882_v24 = vmul.f32 0.5, %v15559_v44 }
 0x5ce   : > { %v15879_v14 = vpop.eup %8957  ;;  %v5781_v6 = vmul.f32 %v5780_v26, %v15623_v51  ;;  %v5858_v11 = vadd.f32 0.05243302, %v5857_v23  ;;  %v15886_v59 = vmul.f32 %v6442_v62, %v15567_v20  ;;  %v15888_v10 = vmul.f32 %v5767_v58, %v5743_v63 }
 0x5cf   : > { %v5820_v30 = vadd.f32 0.18741608, %v5819_v5  ;;  %v5896_v36 = vadd.f32 0.0036580483, %v5895_v18  ;;  %v5796_v41 = vsub.f32 1.0, %v5795_v13  ;;  %v15891_v54 = vmul.f32 0.5, %v15582_v37 }
 0x5d0   : > { %v5934_v40 = vadd.f32 0.00028619796, %v5933_v55  ;;  %v5949_v47 = vadd.f32 0.112945676, %v5948_v17  ;;  %v5835_v44 = vmul.f32 %v15879_v14, %v15833_v56  ;;  %v15896_v51 = vmul.f32 0.5, %v15606_v16 }
 0x5d1   : > { %8961 = vrcp.f32 %v15875_v27  ;;  %v15899_v20 = vmin.f32 %v5971_v57, 16.0  ;;  %v15902_v28 = vmul.f32 %v6443_v42, %v15641_v9  ;;  %v5782_v7 = vadd.f32 1.1283791, %v5781_v6 }
 0x5d2   : > { %v5859_v37 = vmul.f32 %v5858_v11, %v15670_v3  ;;  %v15906_v25 = vmul.f32 0.5, %v15635_v32  ;;  %v15908_v15 = vpop.eup %8959  ;;  %v5821_v16 = vmul.f32 %v5820_v30, %v15650_v1  ;;  %v15913_v23 = vmul.f32 0.5, %v15732_v45 }
 0x5d3   : > { %v15916_v62 = vadd.f32 %v683_v48, %v9483_v19  ;;  %v5797_v9 = vmul.f32 %v15855_v31, %v5796_v41  ;;  %v5897_v5 = vmul.f32 %v5896_v36, %v15695_v33  ;;  %v5935_v18 = vmul.f32 %v5934_v40, %v15783_v2 }
 0x5d4   : > { %v5950_v32 = vmul.f32 %v5949_v47, %v15783_v2  ;;  %v5803_v58 = vand.u32 2147483647, %v15818_v50  ;;  %v5805_v13 = vand.u32 2147483648, %v15818_v50  ;;  %v5836_v55 = vsub.f32 1.0, %v5835_v44 }
 0x5d5   : > { %17777 = vst [vmem:[#allocation26_spill] sm:$0xff] %v15916_v62  ;;  %v5984_v1 = vmul.f32 3.8918573e-05, %v15899_v20  ;;  %v5783_v45 = vmul.f32 %v5782_v7, %v15576_v22  ;;  %v5860_v17 = vadd.f32 0.18741608, %v5859_v37  ;;  %v5875_v63 = vmul.f32 %v15908_v15, %v15860_v43 }
 0x5d6   : > { %v5973_v57 = vmul.f32 2.1237322e-06, %v15899_v20  ;;  %vm5799_vm8 = vweird.f32 %v15818_v50  ;;  %vm5800_vm9 = vweird.f32 %v15855_v31  ;;  %v5822_v6 = vadd.f32 1.1283791, %v5821_v16 }
 0x5d7   : > { %v15929_v42 = vpop.eup %8961  ;;  %v15934_v11 = vmul.f32 0.70710677, %v15916_v62  ;;  %v5798_v30 = vadd.f32 %v15855_v31, %v5797_v9  ;;  %v5898_v36 = vadd.f32 0.05243302, %v5897_v5  ;;  %v5936_v22 = vadd.f32 0.0036580483, %v5935_v18  ;;  %vm15949_vm11 = vmor %vm5799_vm8, %vm5800_vm9 }
 0x5d8   : > { %v5951_v41 = vadd.f32 0.4994258, %v5950_v32  ;;  %vm15937_vm10 = vcmp.eq.f32.partialorder %v5803_v58, 8.507059e+37  ;;  %v5806_v47 = vor.u32 1.1754944e-38, %v5805_v13  ;;  %v5837_v48 = vmul.f32 %v15879_v14, %v5836_v55 }
 0x5d9   : > { %v5985_v44 = vadd.f32 0.001143296, %v5984_v1  ;;  %v5861_v7 = vmul.f32 %v5860_v17, %v15670_v3  ;;  %v5876_v37 = vsub.f32 1.0, %v5875_v63  ;;  %v5915_v16 = vmul.f32 %v15929_v42, %v15875_v27  ;;  %v772_v17 = vpop.f32.mrf.mxu1 }
 0x5da   : > { %v5974_v26 = vadd.f32 0.00028619796, %v5973_v57  ;;  %v5823_v5 = vmul.f32 %v5822_v6, %v15597_v39  ;;  %v5843_v18 = vand.u32 2147483647, %v15833_v56  ;;  %v5845_v32 = vand.u32 2147483648, %v15833_v56 }
 0x5db   : > { %v6011_v3 = vmul.f32 %v15934_v11, %v15934_v11  ;;  %v5802_v58 = vsel %vm15949_vm11, %v15855_v31, %v5798_v30  ;;  %v5899_v13 = vmul.f32 %v5898_v36, %v15695_v33  ;;  %v5937_v50 = vmul.f32 %v5936_v22, %v15783_v2 }
 0x5dc   : > { %v5952_v55 = vmul.f32 %v5951_v41, %v15783_v2  ;;  %v5838_v1 = vadd.f32 %v15879_v14, %v5837_v48  ;;  %vm5839_vm12 = vweird.f32 %v15833_v56  ;;  %vm5840_vm13 = vweird.f32 %v15879_v14 }
 0x5dd   : > { %v5986_v39 = vmul.f32 %v5985_v44, %v15899_v20  ;;  %v5862_v63 = vadd.f32 1.1283791, %v5861_v7  ;;  %v5877_v57 = vmul.f32 %v15908_v15, %v5876_v37  ;;  %v5916_v6 = vsub.f32 1.0, %v5915_v16  ;;  %vm15978_vm15 = vmor %vm5839_vm12, %vm5840_vm13 }
 0x5de   : > { %v5975_v31 = vmul.f32 %v5974_v26, %v15899_v20  ;;  %v5807_v30 = vsel %vm15937_vm10, %v5806_v47, %v5802_v58  ;;  %vm15972_vm14 = vcmp.eq.f32.partialorder %v5843_v18, 8.507059e+37  ;;  %v5846_v22 = vor.u32 1.1754944e-38, %v5845_v32 }
 0x5df   : > { %v15976_v56 = vmin.f32 %v6011_v3, 16.0  ;;  %v5900_v48 = vadd.f32 0.18741608, %v5899_v13  ;;  %v5938_v44 = vadd.f32 0.05243302, %v5937_v50  ;;  %v15982_v7 = vadd.f32 1.0, %v5952_v55 }
 0x5e0   : > { %v15985_v26 = vadd.f32 %v772_v17, %v9485_v21  ;;  %v5842_v40 = vsel %vm15978_vm15, %v15879_v14, %v5838_v1  ;;  %v5883_v47 = vand.u32 2147483647, %v15860_v43  ;;  %v5885_v37 = vand.u32 2147483648, %v15860_v43 }
 0x5e1   : > { %v5987_v16 = vadd.f32 0.014752088, %v5986_v39  ;;  %v5878_v9 = vadd.f32 %v15908_v15, %v5877_v57  ;;  %vm5880_vm0 = vweird.f32 %v15908_v15  ;;  %v5917_v18 = vmul.f32 %v15929_v42, %v5916_v6 }
 0x5e2   : > { %17786 = vst [vmem:[#allocation23_spill] sm:$0xff] %v15985_v26  ;;  %v5976_v32 = vadd.f32 0.0036580483, %v5975_v31  ;;  %v5808_v3 = vmul.f32 %v5807_v30, %v5783_v45  ;;  %vm5879_vm1 = vweird.f32 %v15860_v43  ;;  %v6013_v58 = vmul.f32 2.1237322e-06, %v15976_v56 }
 0x5e3   : > { %v6024_v13 = vmul.f32 3.8918573e-05, %v15976_v56  ;;  %v5847_v14 = vsel %vm15972_vm14, %v5846_v22, %v5842_v40  ;;  %v5939_v50 = vmul.f32 %v5938_v44, %v15783_v2  ;;  %8963 = vrcp.f32 %v15982_v7  ;;  %vm16005_vm2 = vmor %vm5879_vm1, %vm5880_vm0 }
 0x5e4   : > { %v16003_v55 = vmul.f32 0.70710677, %v15985_v26  ;;  %vm16009_vm3 = vcmp.eq.f32.partialorder %v5883_v47, 8.507059e+37  ;;  %v5886_v45 = vor.u32 1.1754944e-38, %v5885_v37  ;;  %v5901_v39 = vmul.f32 %v5900_v48, %v15695_v33 }
 0x5e5   : > { %v5988_v17 = vmul.f32 %v5987_v16, %v15899_v20  ;;  %v5882_v57 = vsel %vm16005_vm2, %v15908_v15, %v5878_v9  ;;  %v5918_v6 = vadd.f32 %v15929_v42, %v5917_v18  ;;  %vm5920_vm4 = vweird.f32 %v15929_v42  ;;  %v861_v9 = vpop.f32.mrf.mxu2  ;;  %v950_v18 = vpop.f32.mrf.mxu3 }
 0x5e6   : > { %v5977_v31 = vmul.f32 %v5976_v32, %v15899_v20  ;;  %v5848_v30 = vmul.f32 %v5847_v14, %v5823_v5  ;;  %v5925_v36 = vand.u32 2147483648, %v15875_v27  ;;  %v6014_v22 = vadd.f32 0.00028619796, %v6013_v58 }
 0x5e7   : > { %v6025_v41 = vadd.f32 0.001143296, %v6024_v13  ;;  %vm5919_vm5 = vweird.f32 %v15875_v27  ;;  %v5923_v33 = vand.u32 2147483647, %v15875_v27  ;;  %v5940_v48 = vadd.f32 0.18741608, %v5939_v50 }
 0x5e8   : > { %v6051_v44 = vmul.f32 %v16003_v55, %v16003_v55  ;;  %v17791_v15 = vclamps-f32 %v15888_v10, 1.0  ;;  %v5863_v47 = vmul.f32 %v5862_v63, %v15632_v35  ;;  %v5887_v5 = vsel %vm16009_vm3, %v5886_v45, %v5882_v57  ;;  %vm16031_vm6 = vmor %vm5919_vm5, %vm5920_vm4  ;;  %v16040_v35 = vpop.f32.mrf.mxu0  ;;  %v16042_v63 = vpop.f32.mrf.mxu1 }
 0x5e9   : > { %v5989_v16 = vadd.f32 0.112945676, %v5988_v17  ;;  %v16035_v27 = vpop.eup %8963  ;;  %v8425_v32 = vclamps-f32 %v5808_v3, 1.0  ;;  %v5902_v58 = vadd.f32 1.1283791, %v5901_v39  ;;  %v5922_v10 = vsel %vm16031_vm6, %v15929_v42, %v5918_v6 }
 0x5ea   : > { %v6444_v40 = vadd.f32 1.0, %v17791_v15  ;;  %v5978_v13 = vadd.f32 0.05243302, %v5977_v31  ;;  %v8426_v14 = vclamps-f32 %v5848_v30, 1.0  ;;  %v5926_v50 = vor.u32 1.1754944e-38, %v5925_v36 }
 0x5eb   : > { %v6015_v1 = vmul.f32 %v6014_v22, %v15976_v56  ;;  %v6026_v43 = vmul.f32 %v6025_v41, %v15976_v56  ;;  %v5888_v45 = vmul.f32 %v5887_v5, %v5863_v47  ;;  %vm5924_vm7 = vcmp.eq.f32.partialorder %v5923_v33, 8.507059e+37 }
 0x5ec   : > { %v5941_v3 = vmul.f32 %v5940_v48, %v15783_v2  ;;  %v16047_v39 = vmin.f32 %v6051_v44, 16.0  ;;  %v5927_v17 = vsel %vm5924_vm7, %v5926_v50, %v5922_v10  ;;  %v5955_v42 = vmul.f32 %v16035_v27, %v15982_v7 }
 0x5ed   : > { %v5990_v57 = vmul.f32 %v5989_v16, %v15899_v20  ;;  %v16053_v6 = vadd.f32 %v861_v9, %v9503_v29  ;;  %v6445_v31 = vadd.f32 1.0, %v8425_v32  ;;  %v5903_v30 = vmul.f32 %v5902_v58, %v15658_v46  ;;  %v16085_v50 = vpop.f32.mrf.mxu3 }
 0x5ee   : > { %v5979_v36 = vmul.f32 %v5978_v13, %v15899_v20  ;;  %v16058_v22 = vadd.f32 %v950_v18, %v9512_v34  ;;  %v16061_v2 = vmul.f32 %v6444_v40, %v15748_v53  ;;  %v6446_v41 = vadd.f32 1.0, %v8426_v14  ;;  %v16083_v14 = vpop.f32.mrf.mxu2 }
 0x5ef   : > { %17794 = vst [vmem:[#allocation58_spill] sm:$0xff] %v16053_v6  ;;  %v6016_v33 = vadd.f32 0.0036580483, %v6015_v1  ;;  %v6027_v48 = vadd.f32 0.014752088, %v6026_v43  ;;  %v8427_v44 = vclamps-f32 %v5888_v45, 1.0  ;;  %v5928_v15 = vmul.f32 %v5927_v17, %v5903_v30 }
 0x5f0   : > { %17795 = vst [vmem:[#allocation25_spill] sm:$0xff] %v16058_v22  ;;  %v5942_v47 = vadd.f32 1.1283791, %v5941_v3  ;;  %v6053_v5 = vmul.f32 2.1237322e-06, %v16047_v39  ;;  %v5956_v37 = vsub.f32 1.0, %v5955_v42  ;;  %v16071_v18 = vmul.f32 %v6445_v31, %v15882_v24  ;;  %v6920_v3 = vpop.f32.mrf.mxu0  ;;  %v7009_v17 = vpop.f32.mrf.mxu1 }
 0x5f1   : > { %17796 = vst [vmem:[#allocation59_spill] sm:$0xff] %v16061_v2  ;;  %v16065_v16 = vmul.f32 0.5, %v15839_v4  ;;  %v5991_v46 = vadd.f32 0.4994258, %v5990_v57  ;;  %v16068_v9 = vmul.f32 0.70710677, %v16053_v6  ;;  %v16078_v58 = vmul.f32 %v6446_v41, %v15891_v54 }
 0x5f2   : > { %17797 = vst [vmem:[#allocation24_spill] sm:$0xff] %v16071_v18  ;;  %v5980_v53 = vadd.f32 0.18741608, %v5979_v36  ;;  %v6064_v40 = vmul.f32 3.8918573e-05, %v16047_v39  ;;  %v6017_v4 = vmul.f32 %v6016_v33, %v15976_v56  ;;  %v6028_v13 = vmul.f32 %v6027_v48, %v15976_v56  ;;  %v17799_v30 = vld [vmem:[#allocation61_spill] sm:$0xff] }
 0x5f3   : > { %v16075_v32 = vmul.f32 0.70710677, %v16058_v22  ;;  %17798 = vst [vmem:[#allocation60_spill] sm:$0xff] %v16078_v58  ;;  %v5963_v10 = vand.u32 2147483647, %v15982_v7  ;;  %v6447_v24 = vadd.f32 1.0, %v8427_v44  ;;  %v16088_v43 = vmul.f32 %v5942_v47, %v15755_v52 }
 0x5f4   : > { %v8428_v1 = vclamps-f32 %v5928_v15, 1.0  ;;  %v6054_v45 = vadd.f32 0.00028619796, %v6053_v5  ;;  %v16093_v54 = vld [vmem:[%s17218_s4] ss:$0 sm:$0xff]  ;;  %v5957_v42 = vmul.f32 %v16035_v27, %v5956_v37  ;;  %v5992_v57 = vmul.f32 %v5991_v46, %v15899_v20  ;;  %v17800_v36 = vld [vmem:[#allocation28_spill] sm:$0xff] }
 0x5f5   : > { %v6091_v31 = vmul.f32 %v16068_v9, %v16068_v9  ;;  %v6619_v41 = vpack.c.bf16 %v17800_v36, %v17799_v30  ;;  %v5965_v52 = vand.u32 2147483648, %v15982_v7  ;;  %v5981_v33 = vmul.f32 %v5980_v53, %v15899_v20  ;;  %v17801_v5 = vld [vmem:[#allocation62_spill] sm:$0xff]  ;;  %v17802_v37 = vld [vmem:[#allocation32_spill] sm:$0xff]  ;;  %v17803_v22 = vld [vmem:[#allocation27_spill] sm:$0xff] }
 0x5f6   : > { %v6065_v48 = vadd.f32 0.001143296, %v6064_v40  ;;  %v6131_v44 = vmul.f32 %v16075_v32, %v16075_v32  ;;  %v6018_v15 = vadd.f32 0.05243302, %v6017_v4  ;;  %v6029_v47 = vadd.f32 0.112945676, %v6028_v13 }
 0x5f7   : > { %6959 = vmatmul.bf16.gmra.mxu0 %v6619_v41  ;;  %v6620_v46 = vpack.c.bf16 %v17802_v37, %v17801_v5  ;;  %v17804_v6 = vld [vmem:[#allocation29_spill] sm:$0xff]  ;;  %v6448_v62 = vadd.f32 1.0, %v8428_v1  ;;  %v6055_v30 = vmul.f32 %v6054_v45, %v16047_v39  ;;  %v6921_v36 = vadd.f32 %v16093_v54, %v6920_v3  ;;  %v17805_v58 = vld [vmem:[#allocation31_spill] sm:$0xff]  ;;  %v7187_v41 = vpop.f32.mrf.mxu3  ;;  %v17834_v2 = vld [vmem:[#allocation48_spill] sm:$0xff] }
 0x5f8   : > { %v6621_v26 = vpack.c.bf16 %v17804_v6, %v17803_v22  ;;  %v17806_v20 = vld [vmem:[#allocation33_spill] sm:$0xff]  ;;  %v5958_v40 = vadd.f32 %v16035_v27, %v5957_v42  ;;  %vm5960_vm8 = vweird.f32 %v16035_v27  ;;  %v16115_v4 = vadd.f32 1.0, %v5992_v57  ;;  %v17830_v18 = vld [vmem:[#allocation47_spill] sm:$0xff] }
 0x5f9   : > { %v6622_v53 = vpack.c.bf16 %v17806_v20, %v17805_v58  ;;  %v16117_v13 = vmin.f32 %v6091_v31, 16.0  ;;  %7048 = vmatmul.bf16.gmra.mxu1 %v6620_v46  ;;  %vm5959_vm9 = vweird.f32 %v15982_v7  ;;  %v6066_v6 = vmul.f32 %v6065_v48, %v16047_v39 }
 0x5fa   : > { %7137 = vmatmul.bf16.gmra.mxu2 %v6621_v26  ;;  %v16121_v22 = vmin.f32 %v6131_v44, 16.0  ;;  %v16125_v1 = vadd.f32 %v16040_v35, %v9483_v19  ;;  %v16128_v58 = vmul.f32 %v6447_v24, %v15896_v51  ;;  %vm16130_vm10 = vcmp.eq.f32.partialorder %v5963_v10, 8.507059e+37  ;;  %vm16136_vm11 = vmor %vm5959_vm9, %vm5960_vm8  ;;  %v7098_v24 = vpop.f32.mrf.mxu2 }
 0x5fb   : > { %7226 = vmatmul.bf16.gmra.mxu3 %v6622_v53  ;;  %v6019_v26 = vmul.f32 %v6018_v15, %v15976_v56  ;;  %v6030_v7 = vmul.f32 %v6029_v47, %v15976_v56  ;;  %v5966_v42 = vor.u32 1.1754944e-38, %v5965_v52  ;;  %v5982_v57 = vadd.f32 1.1283791, %v5981_v33  ;;  %v6922_v33 = vpop.f32.mrf.mxu0 }
 0x5fc   : > { %17807 = vst [vmem:[#allocation61_spill] sm:$0xff] %v16125_v1  ;;  %v6056_v19 = vadd.f32 0.0036580483, %v6055_v30  ;;  %v7010_v35 = vadd.f32 %v7009_v17, %v6921_v36  ;;  %v16141_v31 = vmul.f32 %v6448_v62, %v15906_v25  ;;  %v5962_v51 = vsel %vm16136_vm11, %v16035_v27, %v5958_v40  ;;  %v7011_v25 = vpop.f32.mrf.mxu1 }
 0x5fd   : > { %8965 = vrcp.f32 %v16115_v4  ;;  %v6104_v10 = vmul.f32 3.8918573e-05, %v16117_v13  ;;  %v6067_v48 = vadd.f32 0.014752088, %v6066_v6  ;;  %v6144_v44 = vmul.f32 3.8918573e-05, %v16121_v22 }
 0x5fe   : > { %17812 = vst [vmem:[#allocation28_spill] sm:$0xff] %v16141_v31  ;;  %v16150_v52 = vmul.f32 0.70710677, %v16125_v1  ;;  %v7099_v17 = vadd.f32 %v7098_v24, %v7010_v35  ;;  %v6005_v62 = vand.u32 2147483648, %v16115_v4  ;;  %v6020_v15 = vadd.f32 0.18741608, %v6019_v26 }
 0x5ff   : > { %v6031_v47 = vadd.f32 0.4994258, %v6030_v7  ;;  %v16155_v27 = vadd.f32 %v16042_v63, %v9485_v21  ;;  %v5967_v5 = vsel %vm16130_vm10, %v5966_v42, %v5962_v51  ;;  %v6057_v37 = vmul.f32 %v6056_v19, %v16047_v39  ;;  %v9049_v42 = vld [vmem:[%s9449_s22] sm:$0xff]  ;;  %v17829_v1 = vld [vmem:[#allocation41_spill] sm:$0xff] }
 0x600   : > { %v16162_v46 = vadd.f32 %v16083_v14, %v9503_v29  ;;  %v7188_v30 = vadd.f32 %v7187_v41, %v7099_v17  ;;  %v16165_v36 = vmul.f32 %v5982_v57, %v15864_v8  ;;  %v6105_v20 = vadd.f32 0.001143296, %v6104_v10  ;;  %v7189_v10 = vpop.f32.mrf.mxu3  ;;  %v17817_v24 = vld [vmem:[#allocation39_spill] sm:$0xff] }
 0x601   : > { %17813 = vst [vmem:[#allocation62_spill] sm:$0xff] %v16155_v27  ;;  %v16169_v53 = vadd.f32 %v16085_v50, %v9512_v34  ;;  %v6923_v21 = vadd.f32 %v16093_v54, %v6922_v33  ;;  %v6068_v40 = vmul.f32 %v6067_v48, %v16047_v39  ;;  %v6145_v6 = vadd.f32 0.001143296, %v6144_v44 }
 0x602   : > { %17814 = vst [vmem:[#allocation32_spill] sm:$0xff] %v16162_v46  ;;  %v6171_v29 = vmul.f32 %v16150_v52, %v16150_v52  ;;  %v5968_v8 = vmul.f32 %v5967_v5, %v16088_v43  ;;  %v16179_v45 = vor.u32 1.1754944e-38, %v6005_v62  ;;  %v6021_v26 = vmul.f32 %v6020_v15, %v15976_v56  ;;  %v7100_v51 = vpop.f32.mrf.mxu2  ;;  %v17819_v5 = vld [vmem:[#allocation36_spill] sm:$0xff] }
 0x603   : > { %17815 = vst [vmem:[#allocation27_spill] sm:$0xff] %v16169_v53  ;;  %v16176_v14 = vpop.eup %8965  ;;  %v16183_v34 = vmul.f32 0.70710677, %v16155_v27  ;;  %v6032_v50 = vmul.f32 %v6031_v47, %v15976_v56  ;;  %v6058_v7 = vadd.f32 0.05243302, %v6057_v37  ;;  %v16190_v57 = vadd.f32 %v9049_v42, %v7188_v30  ;;  %v6925_v33 = vpop.f32.mrf.mxu0  ;;  %v17818_v47 = vld [vmem:[#allocation30_spill] sm:$0xff] }
 0x604   : > { %v16187_v3 = vmul.f32 0.70710677, %v16162_v46  ;;  %v6106_v19 = vmul.f32 %v6105_v20, %v16117_v13  ;;  %v16194_v43 = vmul.f32 0.70710677, %v16169_v53  ;;  %v7012_v35 = vadd.f32 %v7011_v25, %v6923_v21  ;;  %v7014_v62 = vpop.f32.mrf.mxu1  ;;  %v17820_v37 = vld [vmem:[#allocation34_spill] sm:$0xff]  ;;  %v17821_v30 = vld [vmem:[#allocation40_spill] sm:$0xff] }
 0x605   : > { %17816 = vst [vmem:[#allocation29_spill] sm:$0xff] %v16190_v57  ;;  %v6623_v41 = vpack.c.bf16 %v17817_v24, %v13786_v38  ;;  %v5995_v56 = vmul.f32 %v16176_v14, %v16115_v4  ;;  %v6069_v48 = vadd.f32 0.112945676, %v6068_v40  ;;  %v6146_v44 = vmul.f32 %v6145_v6, %v16121_v22  ;;  %7299 = vadd.xlane.f32.xlu0 %v16190_v57  ;;  %v17823_v42 = vld [vmem:[#allocation37_spill] sm:$0xff] }
 0x606   : > { %v16201_v17 = vmin.f32 %v6171_v29, 16.0  ;;  %v6211_v25 = vmul.f32 %v16183_v34, %v16183_v34  ;;  %v7101_v15 = vadd.f32 %v7100_v51, %v7012_v35  ;;  %v6624_v38 = vpack.c.bf16 %v17819_v5, %v17818_v47  ;;  %v17822_v29 = vld [vmem:[#allocation35_spill] sm:$0xff] }
 0x607   : > { %6964 = vmatmul.bf16.gmra.mxu0 %v6623_v41  ;;  %v6625_v20 = vpack.c.bf16 %v17821_v30, %v17820_v37  ;;  %v6093_v21 = vmul.f32 2.1237322e-06, %v16117_v13  ;;  %v6251_v40 = vmul.f32 %v16187_v3, %v16187_v3  ;;  %v6926_v6 = vadd.f32 %v16093_v54, %v6925_v33 }
 0x608   : > { %v6626_v24 = vpack.c.bf16 %v17823_v42, %v17822_v29  ;;  %v16216_v63 = vadd.f32 1.0, %v6032_v50  ;;  %v6107_v35 = vadd.f32 0.014752088, %v6106_v19  ;;  %v6291_v51 = vmul.f32 %v16194_v43, %v16194_v43  ;;  %v9050_v50 = vld [vmem:[%s9449_s22 + $0x8] sm:$0xff] }
 0x609   : > { %v7190_v41 = vadd.f32 %v7189_v10, %v7101_v15  ;;  %7053 = vmatmul.bf16.gmra.mxu1 %v6624_v38  ;;  %v8429_v47 = vclamps-f32 %v5968_v8, 1.0  ;;  %v6059_v5 = vmul.f32 %v6058_v7, %v16047_v39  ;;  %v6070_v37 = vmul.f32 %v6069_v48, %v16047_v39  ;;  %v7192_v48 = vpop.f32.mrf.mxu3 }
 0x60a   : > { %7142 = vmatmul.bf16.gmra.mxu2 %v6625_v20  ;;  %v6184_v33 = vmul.f32 3.8918573e-05, %v16201_v17  ;;  %v5996_v30 = vsub.f32 1.0, %v5995_v56  ;;  %v6147_v57 = vadd.f32 0.014752088, %v6146_v44  ;;  %v16223_v29 = vmin.f32 %v6211_v25, 16.0  ;;  %v7103_v56 = vpop.f32.mrf.mxu2 }
 0x60b   : > { %7231 = vmatmul.bf16.gmra.mxu3 %v6626_v24  ;;  %v16226_v19 = vadd.f32 %v9050_v50, %v7190_v41  ;;  %v6022_v42 = vadd.f32 1.1283791, %v6021_v26  ;;  %v6094_v53 = vadd.f32 0.00028619796, %v6093_v21  ;;  %v16228_v10 = vmin.f32 %v6251_v40, 16.0  ;;  %v6927_v20 = vpop.f32.mrf.mxu0 }
 0x60c   : > { %v7015_v15 = vadd.f32 %v7014_v62, %v6926_v6  ;;  %vm6000_vm12 = vweird.f32 %v16176_v14  ;;  %8967 = vrcp.f32 %v16216_v63  ;;  %v6108_v8 = vmul.f32 %v6107_v35, %v16117_v13  ;;  %v7016_v21 = vpop.f32.mrf.mxu1 }
 0x60d   : > { %17824 = vst [vmem:[#allocation31_spill] sm:$0xff] %v16226_v19  ;;  %v16233_v7 = vmin.f32 %v6291_v51, 16.0  ;;  %v16235_v44 = vadd.f32 1.0, %v8429_v47  ;;  %v6071_v25 = vadd.f32 0.4994258, %v6070_v37  ;;  %7301 = vadd.xlane.f32.xlu0 %v16226_v19  ;;  %v5997_v62 = vmul.f32 %v16176_v14, %v5996_v30 }
 0x60e   : > { %v6185_v38 = vadd.f32 0.001143296, %v6184_v33  ;;  %v7104_v26 = vadd.f32 %v7103_v56, %v7015_v15  ;;  %vm5999_vm13 = vweird.f32 %v16115_v4  ;;  %v6060_v40 = vadd.f32 0.18741608, %v6059_v5 }
 0x60f   : > { %v6148_v6 = vmul.f32 %v6147_v57, %v16121_v22  ;;  %v6224_v24 = vmul.f32 3.8918573e-05, %v16223_v29  ;;  %v6095_v35 = vmul.f32 %v6094_v53, %v16117_v13  ;;  %v6264_v51 = vmul.f32 3.8918573e-05, %v16228_v10  ;;  %v9051_v53 = vld [vmem:[%s9449_s22 + $0x10] sm:$0xff]  ;;  %vm16285_vm15 = vmor %vm5999_vm13, %vm6000_vm12 }
 0x610   : > { %v7193_v41 = vadd.f32 %v7192_v48, %v7104_v26  ;;  %v6928_v47 = vadd.f32 %v16093_v54, %v6927_v20  ;;  %v16246_v37 = vmul.f32 %v6022_v42, %v15934_v11  ;;  %v6109_v33 = vadd.f32 0.112945676, %v6108_v8 }
 0x611   : > { %v6133_v30 = vmul.f32 2.1237322e-06, %v16121_v22  ;;  %v6304_v50 = vmul.f32 3.8918573e-05, %v16233_v7  ;;  %v6072_v57 = vmul.f32 %v6071_v25, %v16047_v39  ;;  %v6186_v15 = vmul.f32 %v6185_v38, %v16201_v17 }
 0x612   : > { %v16254_v56 = vadd.f32 %v9051_v53, %v7193_v41  ;;  %v16256_v48 = vpop.eup %8967  ;;  %v5998_v26 = vadd.f32 %v16176_v14, %v5997_v62  ;;  %v17826_v11 = vand.u32 2147483647, %v16115_v4  ;;  %v6045_v8 = vand.u32 2147483648, %v16216_v63  ;;  %v7105_v27 = vpop.f32.mrf.mxu2 }
 0x613   : > { %v6149_v20 = vadd.f32 0.112945676, %v6148_v6  ;;  %v6225_v5 = vadd.f32 0.001143296, %v6224_v24  ;;  %v6061_v25 = vmul.f32 %v6060_v40, %v16047_v39  ;;  %v6096_v38 = vadd.f32 0.0036580483, %v6095_v35  ;;  %v6930_v35 = vpop.f32.mrf.mxu0 }
 0x614   : > { %17825 = vst [vmem:[#allocation33_spill] sm:$0xff] %v16254_v56  ;;  %vm16261_vm14 = vcmp.eq.f32.partialorder %v17826_v11, 8.507059e+37  ;;  %v6265_v19 = vadd.f32 0.001143296, %v6264_v51  ;;  %v7017_v41 = vadd.f32 %v7016_v21, %v6928_v47  ;;  %7303 = vadd.xlane.f32.xlu1 %v16254_v56  ;;  %v6110_v53 = vmul.f32 %v6109_v33, %v16117_v13  ;;  %v7194_v11 = vpop.f32.mrf.mxu3  ;;  %v7019_v21 = vpop.f32.mrf.mxu1  ;;  %v17831_v33 = vld [vmem:[#allocation38_spill] sm:$0xff] }
 0x615   : > { %v6134_v62 = vadd.f32 0.00028619796, %v6133_v30  ;;  %v6305_v46 = vadd.f32 0.001143296, %v6304_v50  ;;  %v6627_v31 = vpack.c.bf16 %v17830_v18, %v17829_v1  ;;  %v6035_v6 = vmul.f32 %v16256_v48, %v16216_v63  ;;  %v17832_v30 = vld [vmem:[#allocation44_spill] sm:$0xff]  ;;  %v17833_v56 = vld [vmem:[#allocation42_spill] sm:$0xff] }
 0x616   : > { %v16273_v24 = vadd.f32 1.0, %v6072_v57  ;;  %v6187_v39 = vadd.f32 0.014752088, %v6186_v15  ;;  %v7106_v40 = vadd.f32 %v7105_v27, %v7017_v41  ;;  %v6150_v51 = vmul.f32 %v6149_v20, %v16121_v22  ;;  %v17838_v15 = vld [vmem:[#allocation45_spill] sm:$0xff] }
 0x617   : > { %v6226_v47 = vmul.f32 %v6225_v5, %v16223_v29  ;;  %6969 = vmatmul.bf16.gmra.mxu0 %v6627_v31  ;;  %v6628_v50 = vpack.c.bf16 %v17832_v30, %v17831_v33  ;;  %v6629_v18 = vpack.c.bf16 %v17834_v2, %v17833_v56  ;;  %v6266_v27 = vmul.f32 %v6265_v19, %v16228_v10  ;;  %v17837_v5 = vld [vmem:[#allocation43_spill] sm:$0xff] }
 0x618   : > { %v7195_v57 = vadd.f32 %v7194_v11, %v7106_v40  ;;  %v6931_v31 = vadd.f32 %v16093_v54, %v6930_v35  ;;  %v6630_v20 = vpack.c.bf16 %v17838_v15, %v17837_v5  ;;  %v6002_v2 = vsel %vm16285_vm15, %v16176_v14, %v5998_v26  ;;  %v9052_v35 = vld [vmem:[%s9449_s22 + $0x18] sm:$0xff] }
 0x619   : > { %v6111_v56 = vadd.f32 0.4994258, %v6110_v53  ;;  %v6135_v4 = vmul.f32 %v6134_v62, %v16121_v22  ;;  %v6306_v41 = vmul.f32 %v6305_v46, %v16233_v7  ;;  %7058 = vmatmul.bf16.gmra.mxu1 %v6628_v50  ;;  %v16300_v19 = vmul.f32 %v16235_v44, %v15913_v23 }
 0x61a   : > { %7147 = vmatmul.bf16.gmra.mxu2 %v6629_v18  ;;  %v6173_v11 = vmul.f32 2.1237322e-06, %v16201_v17  ;;  %v6188_v40 = vmul.f32 %v6187_v39, %v16201_v17  ;;  %v16305_v33 = vadd.f32 %v9052_v35, %v7195_v57  ;;  %8969 = vrcp.f32 %v16273_v24  ;;  %v7108_v1 = vpop.f32.mrf.mxu2 }
 0x61b   : > { %7236 = vmatmul.bf16.gmra.mxu3 %v6630_v20  ;;  %v6097_v14 = vmul.f32 %v6096_v38, %v16117_v13  ;;  %v6151_v26 = vadd.f32 0.4994258, %v6150_v51  ;;  %v6227_v46 = vadd.f32 0.014752088, %v6226_v47  ;;  %v6007_v53 = vsel %vm16261_vm14, %v16179_v45, %v6002_v2  ;;  %v6932_v15 = vpop.f32.mrf.mxu0 }
 0x61c   : > { %v6036_v23 = vsub.f32 1.0, %v6035_v6  ;;  %v6267_v44 = vadd.f32 0.014752088, %v6266_v27  ;;  %v7020_v62 = vadd.f32 %v7019_v21, %v6931_v31  ;;  %7305 = vadd.xlane.f32.xlu1 %v16305_v33  ;;  %v6062_v39 = vadd.f32 1.1283791, %v6061_v25  ;;  %v7197_v57 = vpop.f32.mrf.mxu3  ;;  %v7021_v42 = vpop.f32.mrf.mxu1 }
 0x61d   : > { %v6112_v30 = vmul.f32 %v6111_v56, %v16117_v13  ;;  %v6136_v50 = vadd.f32 0.0036580483, %v6135_v4  ;;  %v6307_v18 = vadd.f32 0.014752088, %v6306_v41  ;;  %v16314_v5 = vor.u32 1.1754944e-38, %v6045_v8 }
 0x61e   : > { %v6174_v38 = vadd.f32 0.00028619796, %v6173_v11  ;;  %v6189_v51 = vadd.f32 0.112945676, %v6188_v40  ;;  %v7109_v47 = vadd.f32 %v7108_v1, %v7020_v62  ;;  %v6008_v45 = vmul.f32 %v6007_v53, %v16165_v36 }
 0x61f   : > { %v6098_v6 = vadd.f32 0.05243302, %v6097_v14  ;;  %v6152_v21 = vmul.f32 %v6151_v26, %v16121_v22  ;;  %v6228_v25 = vmul.f32 %v6227_v46, %v16223_v29  ;;  %v6037_v27 = vmul.f32 %v16256_v48, %v6036_v23  ;;  %v9053_v14 = vld [vmem:[%s9449_s22 + $0x20] sm:$0xff] }
 0x620   : > { %vm6040_vm0 = vweird.f32 %v16256_v48  ;;  %v6268_v8 = vmul.f32 %v6267_v44, %v16228_v10  ;;  %v7198_v31 = vadd.f32 %v7197_v57, %v7109_v47  ;;  %v6933_v20 = vadd.f32 %v16093_v54, %v6932_v15  ;;  %v16323_v2 = vpop.eup %8969 }
 0x621   : > { %v16326_v56 = vmul.f32 %v6062_v39, %v16003_v55  ;;  %v16328_v36 = vadd.f32 1.0, %v6112_v30  ;;  %v6137_v4 = vmul.f32 %v6136_v50, %v16121_v22  ;;  %v6308_v41 = vmul.f32 %v6307_v18, %v16233_v7 }
 0x622   : > { %vm6039_vm1 = vweird.f32 %v16216_v63  ;;  %v6085_v11 = vand.u32 2147483648, %v16273_v24  ;;  %v6175_v40 = vmul.f32 %v6174_v38, %v16201_v17  ;;  %v6190_v35 = vmul.f32 %v6189_v51, %v16201_v17  ;;  %v7110_v1 = vpop.f32.mrf.mxu2  ;;  %v17840_v38 = vld [vmem:[#allocation49_spill] sm:$0xff]  ;;  %v17841_v51 = vld [vmem:[#allocation52_spill] sm:$0xff] }
 0x623   : > { %v16337_v26 = vadd.f32 %v9053_v14, %v7198_v31  ;;  %v8430_v46 = vclamps-f32 %v6008_v45, 1.0  ;;  %v6099_v55 = vmul.f32 %v6098_v6, %v16117_v13  ;;  %v16340_v53 = vadd.f32 1.0, %v6152_v21  ;;  %vm16383_vm3 = vmor %vm6039_vm1, %vm6040_vm0 }
 0x624   : > { %v6229_v23 = vadd.f32 0.112945676, %v6228_v25  ;;  %v16343_v44 = vadd.f32 %v16256_v48, %v6037_v27  ;;  %v16347_v62 = vmul.f32 %v16323_v2, %v16273_v24  ;;  %v6269_v39 = vadd.f32 0.112945676, %v6268_v8  ;;  %v7199_v57 = vpop.f32.mrf.mxu3  ;;  %v6935_v27 = vpop.f32.mrf.mxu0 }
 0x625   : > { %17839 = vst [vmem:[#allocation39_spill] sm:$0xff] %v16337_v26  ;;  %v7022_v30 = vadd.f32 %v7021_v42, %v6933_v20  ;;  %7307 = vadd.xlane.f32.xlu2 %v16337_v26  ;;  %8971 = vrcp.f32 %v16328_v36  ;;  %v6138_v50 = vadd.f32 0.05243302, %v6137_v4  ;;  %v6309_v18 = vadd.f32 0.112945676, %v6308_v41  ;;  %v7024_v8 = vpop.f32.mrf.mxu1  ;;  %v17845_v20 = vld [vmem:[#allocation46_spill] sm:$0xff] }
 0x626   : > { %v6631_v47 = vpack.c.bf16 %v17841_v51, %v17840_v38  ;;  %v17842_v15 = vand.u32 2147483647, %v16216_v63  ;;  %v6176_v6 = vadd.f32 0.0036580483, %v6175_v40  ;;  %v6191_v21 = vadd.f32 0.4994258, %v6190_v35 }
 0x627   : > { %v6213_v42 = vmul.f32 2.1237322e-06, %v16223_v29  ;;  %v7111_v25 = vadd.f32 %v7110_v1, %v7022_v30  ;;  %8973 = vrcp.f32 %v16340_v53  ;;  %v6230_v31 = vmul.f32 %v6229_v23, %v16223_v29  ;;  %v17846_v41 = vld [vmem:[#allocation50_spill] sm:$0xff]  ;;  %v17847_v30 = vld [vmem:[#allocation51_spill] sm:$0xff] }
 0x628   : > { %vm16355_vm2 = vcmp.eq.f32.partialorder %v17842_v15, 8.507059e+37  ;;  %6974 = vmatmul.bf16.gmra.mxu0 %v6631_v47  ;;  %v6632_v4 = vpack.c.bf16 %v15033_v0, %v17845_v20  ;;  %v6633_v14 = vpack.c.bf16 %v15037_v61, %v17846_v41  ;;  %v6270_v40 = vmul.f32 %v6269_v39, %v16228_v10  ;;  %v9054_v39 = vld [vmem:[%s9449_s22 + $0x28] sm:$0xff] }
 0x629   : > { %v7200_v35 = vadd.f32 %v7199_v57, %v7111_v25  ;;  %v6936_v38 = vadd.f32 %v16093_v54, %v6935_v27  ;;  %v6634_v1 = vpack.c.bf16 %v15055_v60, %v17847_v30  ;;  %v6450_v51 = vadd.f32 1.0, %v8430_v46 }
 0x62a   : > { %v6083_v15 = vand.u32 2147483647, %v16273_v24  ;;  %v6100_v23 = vadd.f32 0.18741608, %v6099_v55  ;;  %v6310_v47 = vmul.f32 %v6309_v18, %v16233_v7  ;;  %7063 = vmatmul.bf16.gmra.mxu1 %v6632_v4  ;;  %7152 = vmatmul.bf16.gmra.mxu2 %v6633_v14  ;;  %v6177_v0 = vmul.f32 %v6176_v6, %v16201_v17  ;;  %v7113_v14 = vpop.f32.mrf.mxu2 }
 0x62b   : > { %v6192_v61 = vmul.f32 %v6191_v21, %v16201_v17  ;;  %v6214_v20 = vadd.f32 0.00028619796, %v6213_v42  ;;  %7241 = vmatmul.bf16.gmra.mxu3 %v6634_v1  ;;  %v16375_v57 = vadd.f32 %v9054_v39, %v7200_v35  ;;  %v16377_v25 = vpop.eup %8971  ;;  %v6076_v46 = vsub.f32 1.0, %v16347_v62 }
 0x62c   : > { %v16388_v55 = vor.u32 1.1754944e-38, %v6085_v11  ;;  %v6231_v18 = vadd.f32 0.4994258, %v6230_v31  ;;  %v6253_v6 = vmul.f32 2.1237322e-06, %v16228_v10  ;;  %v6042_v21 = vsel %vm16383_vm3, %v16256_v48, %v16343_v44  ;;  %v7202_v35 = vpop.f32.mrf.mxu3 }
 0x62d   : > { %17848 = vst [vmem:[#allocation30_spill] sm:$0xff] %v16375_v57  ;;  %v6139_v42 = vmul.f32 %v6138_v50, %v16121_v22  ;;  %v6271_v27 = vadd.f32 0.4994258, %v6270_v40  ;;  %v7025_v63 = vadd.f32 %v7024_v8, %v6936_v38  ;;  %7309 = vadd.xlane.f32.xlu2 %v16375_v57  ;;  %v16397_v4 = vpop.eup %8973  ;;  %v16400_v62 = vmul.f32 %v6450_v51, %v16065_v16  ;;  %v6937_v40 = vpop.f32.mrf.mxu0 }
 0x62e   : > { %v6101_v11 = vmul.f32 %v6100_v23, %v16117_v13  ;;  %v6293_v31 = vmul.f32 2.1237322e-06, %v16233_v7  ;;  %v6311_v41 = vadd.f32 0.4994258, %v6310_v47  ;;  %vm6080_vm4 = vweird.f32 %v16323_v2  ;;  %v7026_v38 = vpop.f32.mrf.mxu1 }
 0x62f   : > { %v6178_v48 = vadd.f32 0.05243302, %v6177_v0  ;;  %v16405_v44 = vadd.f32 1.0, %v6192_v61  ;;  %v6215_v50 = vmul.f32 %v6214_v20, %v16223_v29  ;;  %v7114_v8 = vadd.f32 %v7113_v14, %v7025_v63 }
 0x630   : > { %v6047_v16 = vsel %vm16355_vm2, %v16314_v5, %v6042_v21  ;;  %v6077_v13 = vmul.f32 %v16323_v2, %v6076_v46  ;;  %v6232_v30 = vmul.f32 %v6231_v18, %v16223_v29  ;;  %v6254_v1 = vadd.f32 0.00028619796, %v6253_v6  ;;  %v9055_v46 = vld [vmem:[%s9449_s22 + $0x30] sm:$0xff] }
 0x631   : > { %vm6079_vm5 = vweird.f32 %v16273_v24  ;;  %v6140_v51 = vadd.f32 0.18741608, %v6139_v42  ;;  %v6272_v23 = vmul.f32 %v6271_v27, %v16228_v10  ;;  %v7203_v47 = vadd.f32 %v7202_v35, %v7114_v8 }
 0x632   : > { %v6938_v0 = vadd.f32 %v16093_v54, %v6937_v40  ;;  %v6115_v61 = vmul.f32 %v16377_v25, %v16328_v36  ;;  %v6155_v5 = vmul.f32 %v16397_v4, %v16340_v53  ;;  %v6294_v45 = vadd.f32 0.00028619796, %v6293_v31  ;;  %v17854_v40 = vld [vmem:[#allocation55_spill] sm:$0xff]  ;;  %vm16462_vm7 = vmor %vm6079_vm5, %vm6080_vm4 }
 0x633   : > { %v6312_v20 = vmul.f32 %v6311_v41, %v16233_v7  ;;  %v6179_v39 = vmul.f32 %v6178_v48, %v16201_v17  ;;  %8975 = vrcp.f32 %v16405_v44  ;;  %v6216_v60 = vadd.f32 0.0036580483, %v6215_v50  ;;  %v7115_v50 = vpop.f32.mrf.mxu2 }
 0x634   : > { %v16424_v18 = vadd.f32 %v9055_v46, %v7203_v47  ;;  %v16427_v6 = vmul.f32 %v6047_v16, %v16246_v37  ;;  %v6102_v21 = vadd.f32 1.1283791, %v6101_v11  ;;  %v16429_v42 = vadd.f32 1.0, %v6232_v30  ;;  %v7204_v8 = vpop.f32.mrf.mxu3  ;;  %v17855_v16 = vld [vmem:[#allocation57_spill] sm:$0xff] }
 0x635   : > { %v6255_v27 = vmul.f32 %v6254_v1, %v16228_v10  ;;  %v6078_v63 = vadd.f32 %v16323_v2, %v6077_v13  ;;  %vm16433_vm6 = vcmp.eq.f32.partialorder %v6083_v15, 8.507059e+37  ;;  %v6141_v41 = vmul.f32 %v6140_v51, %v16121_v22  ;;  %v6940_v51 = vpop.f32.mrf.mxu0  ;;  %v17856_v47 = vld [vmem:[#allocation53_spill] sm:$0xff] }
 0x636   : > { %17851 = vst [vmem:[#allocation36_spill] sm:$0xff] %v16424_v18  ;;  %v16438_v14 = vadd.f32 1.0, %v6272_v23  ;;  %v7027_v35 = vadd.f32 %v7026_v38, %v6938_v0  ;;  %7311 = vadd.xlane.f32.xlu0 %v16424_v18  ;;  %v6116_v37 = vsub.f32 1.0, %v6115_v61  ;;  %v6295_v11 = vmul.f32 %v6294_v45, %v16233_v7  ;;  %v7029_v23 = vpop.f32.mrf.mxu1  ;;  %v17857_v0 = vld [vmem:[#allocation19_spill] sm:$0xff]  ;;  %v17858_v45 = vld [vmem:[#allocation56_spill] sm:$0xff] }
 0x637   : > { %v16442_v48 = vadd.f32 1.0, %v6312_v20  ;;  %v6635_v15 = vpack.c.bf16 %v17855_v16, %v17854_v40  ;;  %v6156_v13 = vsub.f32 1.0, %v6155_v5  ;;  %v6180_v30 = vadd.f32 0.18741608, %v6179_v39  ;;  %v17859_v20 = vld [vmem:[#allocation15_spill] sm:$0xff] }
 0x638   : > { %v6217_v1 = vmul.f32 %v6216_v60, %v16223_v29  ;;  %v7116_v22 = vadd.f32 %v7115_v50, %v7027_v35  ;;  %8977 = vrcp.f32 %v16429_v42  ;;  %v6256_v38 = vadd.f32 0.0036580483, %v6255_v27  ;;  %v17860_v60 = vld [vmem:[#allocation54_spill] sm:$0xff]  ;;  %v17861_v35 = vld [vmem:[#allocation17_spill] sm:$0xff] }
 0x639   : > { %6979 = vmatmul.bf16.gmra.mxu0 %v6635_v15  ;;  %v6636_v61 = vpack.c.bf16 %v17857_v0, %v17856_v47  ;;  %v6637_v46 = vpack.c.bf16 %v17859_v20, %v17858_v45  ;;  %v16452_v18 = vpop.eup %8975  ;;  %8979 = vrcp.f32 %v16438_v14  ;;  %v6941_v39 = vadd.f32 %v16093_v54, %v6940_v51  ;;  %v9056_v51 = vld [vmem:[%s9449_s22 + $0x38] sm:$0xff] }
 0x63a   : > { %v7205_v5 = vadd.f32 %v7204_v8, %v7116_v22  ;;  %v6638_v50 = vpack.c.bf16 %v17861_v35, %v17860_v60  ;;  %v16467_v40 = vmul.f32 %v6102_v21, %v16068_v9  ;;  %v6125_v16 = vand.u32 2147483648, %v16328_v36 }
 0x63b   : > { %v6296_v15 = vadd.f32 0.0036580483, %v6295_v11  ;;  %8981 = vrcp.f32 %v16442_v48  ;;  %7068 = vmatmul.bf16.gmra.mxu1 %v6636_v61  ;;  %7157 = vmatmul.bf16.gmra.mxu2 %v6637_v46  ;;  %v6082_v8 = vsel %vm16462_vm7, %v16323_v2, %v6078_v63  ;;  %v6142_v22 = vadd.f32 1.1283791, %v6141_v41  ;;  %v7118_v45 = vpop.f32.mrf.mxu2 }
 0x63c   : > { %v6218_v24 = vadd.f32 0.05243302, %v6217_v1  ;;  %7246 = vmatmul.bf16.gmra.mxu3 %v6638_v50  ;;  %v16475_v47 = vadd.f32 %v9056_v51, %v7205_v5  ;;  %v6117_v9 = vmul.f32 %v16377_v25, %v6116_v37  ;;  %vm6119_vm8 = vweird.f32 %v16328_v36  ;;  %v17894_v51 = vld [vmem:[#allocation24_spill] sm:$0xff] }
 0x63d   : > { %v6157_v21 = vmul.f32 %v16397_v4, %v6156_v13  ;;  %v6195_v11 = vmul.f32 %v16452_v18, %v16405_v44  ;;  %v6181_v61 = vmul.f32 %v6180_v30, %v16201_v17  ;;  %v6257_v2 = vmul.f32 %v6256_v38, %v16228_v10  ;;  %v7207_v17 = vpop.f32.mrf.mxu3 }
 0x63e   : > { %17864 = vst [vmem:[#allocation34_spill] sm:$0xff] %v16475_v47  ;;  %v7030_v63 = vadd.f32 %v7029_v23, %v6941_v39  ;;  %7313 = vadd.xlane.f32.xlu1 %v16475_v47  ;;  %v16486_v41 = vpop.eup %8977  ;;  %v16491_v37 = vsel %vm16433_vm6, %v16388_v55, %v6082_v8  ;;  %vm6120_vm9 = vweird.f32 %v16377_v25  ;;  %v16494_v13 = vor.u32 1.1754944e-38, %v6125_v16  ;;  %v6942_v55 = vpop.f32.mrf.mxu0 }
 0x63f   : > { %v6297_v1 = vmul.f32 %v6296_v15, %v16233_v7  ;;  %v16497_v30 = vpop.eup %8979  ;;  %v16500_v23 = vmul.f32 %v6142_v22, %v16075_v32  ;;  %v6165_v38 = vand.u32 2147483648, %v16340_v53  ;;  %v6219_v20 = vmul.f32 %v6218_v24, %v16223_v29  ;;  %v7031_v46 = vpop.f32.mrf.mxu1  ;;  %vm16518_vm11 = vmor %vm6119_vm8, %vm6120_vm9 }
 0x640   : > { %v7119_v31 = vadd.f32 %v7118_v45, %v7030_v63  ;;  %v16507_v39 = vadd.f32 %v16377_v25, %v6117_v9  ;;  %v16510_v60 = vadd.f32 %v16397_v4, %v6157_v21  ;;  %vm6160_vm10 = vweird.f32 %v16397_v4 }
 0x641   : > { %v16504_v5 = vpop.eup %8981  ;;  %v6196_v32 = vsub.f32 1.0, %v6195_v11  ;;  %v6182_v35 = vadd.f32 1.1283791, %v6181_v61  ;;  %v6258_v50 = vadd.f32 0.05243302, %v6257_v2  ;;  %v6943_v16 = vadd.f32 %v16093_v54, %v6942_v55  ;;  %v9057_v61 = vld [vmem:[%s9449_s22 + $0x40] sm:$0xff] }
 0x642   : > { %v7208_v27 = vadd.f32 %v7207_v17, %v7119_v31  ;;  %vm6159_vm12 = vweird.f32 %v16340_v53  ;;  %v6235_v8 = vmul.f32 %v16486_v41, %v16429_v42  ;;  %v6275_v22 = vmul.f32 %v16497_v30, %v16438_v14 }
 0x643   : > { %v6298_v24 = vadd.f32 0.05243302, %v6297_v1  ;;  %vm16527_vm13 = vmor %vm6159_vm12, %vm6160_vm10  ;;  %v6163_v9 = vand.u32 2147483647, %v16340_v53  ;;  %v6220_v21 = vadd.f32 0.18741608, %v6219_v20  ;;  %v6315_v11 = vmul.f32 %v16504_v5, %v16442_v48  ;;  %v7120_v0 = vpop.f32.mrf.mxu2 }
 0x644   : > { %v16535_v2 = vadd.f32 %v9057_v61, %v7208_v27  ;;  %v16545_v45 = vor.u32 1.1754944e-38, %v6165_v38  ;;  %v6197_v53 = vmul.f32 %v16452_v18, %v6196_v32  ;;  %v16549_v17 = vmul.f32 %v6182_v35, %v16150_v52  ;;  %v17870_v38 = vld [vmem:[#allocation18_spill] sm:$0xff] }
 0x645   : > { %v6203_v20 = vand.u32 2147483647, %v16405_v44  ;;  %v6259_v31 = vmul.f32 %v6258_v50, %v16228_v10  ;;  %v7032_v55 = vadd.f32 %v7031_v46, %v6943_v16  ;;  %v6236_v27 = vsub.f32 1.0, %v6235_v8  ;;  %v7209_v1 = vpop.f32.mrf.mxu3  ;;  %v17871_v16 = vld [vmem:[#allocation20_spill] sm:$0xff]  ;;  %v17872_v8 = vld [vmem:[#allocation22_spill] sm:$0xff] }
 0x646   : > { %17869 = vst [vmem:[#allocation40_spill] sm:$0xff] %v16535_v2  ;;  %7315 = vadd.xlane.f32.xlu2 %v16535_v2  ;;  %v6276_v61 = vsub.f32 1.0, %v6275_v22  ;;  %v6299_v63 = vmul.f32 %v6298_v24, %v16233_v7  ;;  %v6639_v47 = vpack.c.bf16 %v15737_v12, %v17870_v38  ;;  %v6205_v32 = vand.u32 2147483648, %v16405_v44  ;;  %v6945_v26 = vpop.f32.mrf.mxu0  ;;  %v17873_v24 = vld [vmem:[#allocation16_spill] sm:$0xff] }
 0x647   : > { %v6221_v52 = vmul.f32 %v6220_v21, %v16223_v29  ;;  %v6316_v35 = vsub.f32 1.0, %v6315_v11  ;;  %v7121_v57 = vadd.f32 %v7120_v0, %v7032_v55  ;;  %v7034_v50 = vpop.f32.mrf.mxu1  ;;  %v6198_v46 = vadd.f32 %v16452_v18, %v6197_v53  ;;  %v17874_v21 = vld [vmem:[#allocation21_spill] sm:$0xff] }
 0x648   : > { %vm6200_vm14 = vweird.f32 %v16452_v18  ;;  %v6640_v22 = vpack.c.bf16 %v17872_v8, %v17871_v16  ;;  %v6641_v12 = vpack.c.bf16 %v15846_v49, %v17873_v24  ;;  %v6260_v38 = vadd.f32 0.18741608, %v6259_v31 }
 0x649   : > { %6984 = vmatmul.bf16.gmra.mxu0 %v6639_v47  ;;  %v7210_v2 = vadd.f32 %v7209_v1, %v7121_v57  ;;  %v6946_v29 = vadd.f32 %v16093_v54, %v6945_v26  ;;  %v6642_v0 = vpack.c.bf16 %v15886_v59, %v17874_v21  ;;  %vm6199_vm15 = vweird.f32 %v16405_v44  ;;  %v9058_v26 = vld [vmem:[%s9449_s22 + $0x48] sm:$0xff] }
 0x64a   : > { %v6237_v11 = vmul.f32 %v16486_v41, %v6236_v27  ;;  %v6277_v47 = vmul.f32 %v16497_v30, %v6276_v61  ;;  %v6300_v53 = vadd.f32 0.18741608, %v6299_v63  ;;  %vm16571_vm0 = vcmp.eq.f32.partialorder %v6203_v20, 8.507059e+37  ;;  %vm16581_vm1 = vmor %vm6199_vm15, %vm6200_vm14 }
 0x64b   : > { %7073 = vmatmul.bf16.gmra.mxu1 %v6640_v22  ;;  %7162 = vmatmul.bf16.gmra.mxu2 %v6641_v12  ;;  %v6206_v49 = vor.u32 1.1754944e-38, %v6205_v32  ;;  %v6317_v57 = vmul.f32 %v16504_v5, %v6316_v35  ;;  %v16577_v1 = vadd.f32 %v9058_v26, %v7210_v2  ;;  %v6222_v44 = vadd.f32 1.1283791, %v6221_v52  ;;  %v17895_v52 = vld [vmem:[#allocation60_spill] sm:$0xff] }
 0x64c   : > { %7251 = vmatmul.bf16.gmra.mxu3 %v6642_v0  ;;  %vm6239_vm2 = vweird.f32 %v16429_v42  ;;  %v6243_v63 = vand.u32 2147483647, %v16429_v42  ;;  %v6245_v20 = vand.u32 2147483648, %v16429_v42  ;;  %v6202_v31 = vsel %vm16581_vm1, %v16452_v18, %v6198_v46 }
 0x64d   : > { %vm6240_vm3 = vweird.f32 %v16486_v41  ;;  %v6261_v2 = vmul.f32 %v6260_v38, %v16228_v10  ;;  %v7035_v27 = vadd.f32 %v7034_v50, %v6946_v29  ;;  %7317 = vadd.xlane.f32.xlu0 %v16577_v1  ;;  %v17879_v61 = vand.u32 2147483647, %v16328_v36  ;;  %v7123_v50 = vpop.f32.mrf.mxu2  ;;  %v7212_v46 = vpop.f32.mrf.mxu3 }
 0x64e   : > { %vm16600_vm5 = vcmp.eq.f32.partialorder %v6163_v9, 8.507059e+37  ;;  %v6238_v35 = vadd.f32 %v16486_v41, %v6237_v11  ;;  %v6278_v18 = vadd.f32 %v16497_v30, %v6277_v47  ;;  %vm6280_vm6 = vweird.f32 %v16497_v30  ;;  %v6947_v8 = vpop.f32.mrf.mxu0  ;;  %vm16615_vm8 = vmor %vm6239_vm2, %vm6240_vm3 }
 0x64f   : > { %vm16596_vm4 = vcmp.eq.f32.partialorder %v17879_v61, 8.507059e+37  ;;  %v6301_v10 = vmul.f32 %v6300_v53, %v16233_v7  ;;  %v6285_v36 = vand.u32 2147483648, %v16438_v14  ;;  %v6318_v16 = vadd.f32 %v16504_v5, %v6317_v57  ;;  %v7036_v22 = vpop.f32.mrf.mxu1  ;;  %v17897_v57 = vld [vmem:[#allocation61_spill] sm:$0xff] }
 0x650   : > { %vm6320_vm7 = vweird.f32 %v16504_v5  ;;  %v7124_v9 = vadd.f32 %v7123_v50, %v7035_v27  ;;  %v6246_v7 = vor.u32 1.1754944e-38, %v6245_v20  ;;  %vm6279_vm9 = vweird.f32 %v16438_v14 }
 0x651   : > { %v6283_v12 = vand.u32 2147483647, %v16438_v14  ;;  %v6325_v38 = vand.u32 2147483648, %v16442_v48  ;;  %vm16624_vm10 = vmor %vm6279_vm9, %vm6280_vm6  ;;  %vm6319_vm12 = vweird.f32 %v16442_v48  ;;  %v6323_v42 = vand.u32 2147483647, %v16442_v48 }
 0x652   : > { %v7213_v21 = vadd.f32 %v7212_v46, %v7124_v9  ;;  %v6948_v0 = vadd.f32 %v16093_v54, %v6947_v8  ;;  %v6207_v11 = vsel %vm16571_vm0, %v6206_v49, %v6202_v31  ;;  %v6242_v14 = vsel %vm16615_vm8, %v16486_v41, %v6238_v35  ;;  %vm16641_vm14 = vmor %vm6319_vm12, %vm6320_vm7  ;;  %v9059_v49 = vld [vmem:[%s9449_s22 + $0x50] sm:$0xff]  ;;  %v9061_v8 = vld [vmem:[%s9449_s22 + $0x58] sm:$0xff] }
 0x653   : > { %v6262_v47 = vadd.f32 1.1283791, %v6261_v2  ;;  %v6282_v53 = vsel %vm16624_vm10, %v16497_v30, %v6278_v18  ;;  %v6286_v48 = vor.u32 1.1754944e-38, %v6285_v36  ;;  %v6302_v54 = vadd.f32 1.1283791, %v6301_v10 }
 0x654   : > { %v6322_v55 = vsel %vm16641_vm14, %v16504_v5, %v6318_v16  ;;  %v16649_v26 = vadd.f32 %v9059_v49, %v7213_v21  ;;  %v6223_v41 = vmul.f32 %v6222_v44, %v16183_v34  ;;  %vm6244_vm15 = vcmp.eq.f32.partialorder %v6243_v63, 8.507059e+37  ;;  %v17896_v21 = vld [vmem:[#allocation26_spill] sm:$0xff] }
 0x655   : > { %vm6284_vm0 = vcmp.eq.f32.partialorder %v6283_v12, 8.507059e+37  ;;  %v6326_v30 = vor.u32 1.1754944e-38, %v6325_v38  ;;  %v6247_v59 = vsel %vm6244_vm15, %v6246_v7, %v6242_v14  ;;  %vm6324_vm1 = vcmp.eq.f32.partialorder %v6323_v42, 8.507059e+37  ;;  %v7125_v5 = vpop.f32.mrf.mxu2  ;;  %v7214_v35 = vpop.f32.mrf.mxu3  ;;  %v17898_v49 = vld [vmem:[#allocation62_spill] sm:$0xff] }
 0x656   : > { %v6287_v20 = vsel %vm6284_vm0, %v6286_v48, %v6282_v53  ;;  %v7037_v31 = vadd.f32 %v7036_v22, %v6948_v0  ;;  %7319 = vadd.xlane.f32.xlu1 %v16649_v26  ;;  %v6208_v2 = vmul.f32 %v6207_v11, %v16549_v17  ;;  %v6263_v27 = vmul.f32 %v6262_v47, %v16187_v3  ;;  %v6950_v15 = vpop.f32.mrf.mxu0 }
 0x657   : > { %v6327_v61 = vsel %vm6324_vm1, %v6326_v30, %v6322_v55  ;;  %v6643_v18 = vpack.c.bf16 %v16128_v58, %v15902_v28  ;;  %v17890_v34 = vsel %vm16518_vm11, %v16377_v25, %v16507_v39  ;;  %v17891_v3 = vsel %vm16527_vm13, %v16397_v4, %v16510_v60  ;;  %v7039_v63 = vpop.f32.mrf.mxu1  ;;  %v17892_v39 = vld [vmem:[#allocation59_spill] sm:$0xff] }
 0x658   : > { %v6127_v44 = vsel %vm16596_vm4, %v16494_v13, %v17890_v34  ;;  %v6167_v17 = vsel %vm16600_vm5, %v16545_v45, %v17891_v3  ;;  %v6303_v28 = vmul.f32 %v6302_v54, %v16194_v43  ;;  %v7126_v58 = vadd.f32 %v7125_v5, %v7037_v31  ;;  %v17893_v13 = vld [vmem:[#allocation28_spill] sm:$0xff]  ;;  %v16681_v45 = vld [vmem:[%s17218_s4] ss:$0 sm:$0xff] }
 0x659   : > { %v6248_v10 = vmul.f32 %v6247_v59, %v6223_v41  ;;  %v6288_v25 = vmul.f32 %v6287_v20, %v6263_v27  ;;  %6989 = vmatmul.bf16.gmra.mxu0 %v6643_v18  ;;  %v6644_v32 = vpack.c.bf16 %v17893_v13, %v17892_v39  ;;  %v6645_v50 = vpack.c.bf16 %v16300_v19, %v17894_v51  ;;  %v17903_v13 = vld [vmem:[#allocation25_spill] sm:$0xff] }
 0x65a   : > { %v6328_v4 = vmul.f32 %v6327_v61, %v6303_v28  ;;  %v7215_v60 = vadd.f32 %v7214_v35, %v7126_v58  ;;  %v6951_v43 = vadd.f32 %v16681_v45, %v6950_v15  ;;  %v6646_v46 = vpack.c.bf16 %v16400_v62, %v17895_v52  ;;  %v17899_v61 = vld [vmem:[#allocation32_spill] sm:$0xff]  ;;  %v17900_v35 = vld [vmem:[#allocation23_spill] sm:$0xff]  ;;  %v17902_v15 = vld [vmem:[#allocation58_spill] sm:$0xff] }
 0x65b   : > { %v6088_v36 = vmul.f32 %v16491_v37, %v16326_v56  ;;  %v6128_v16 = vmul.f32 %v6127_v44, %v16467_v40  ;;  %v8435_v9 = vclamps-f32 %v6208_v2, 1.0  ;;  %7078 = vmatmul.bf16.gmra.mxu1 %v6644_v32  ;;  %7167 = vmatmul.bf16.gmra.mxu2 %v6645_v50  ;;  %v6168_v19 = vmul.f32 %v6167_v17, %v16500_v23  ;;  %v17901_v44 = vld [vmem:[#allocation27_spill] sm:$0xff] }
 0x65c   : > { %7256 = vmatmul.bf16.gmra.mxu3 %v6646_v46  ;;  %v16691_v22 = vadd.f32 %v9061_v8, %v7215_v60  ;;  %v8431_v24 = vclamps-f32 %v16427_v6, 1.0  ;;  %v8436_v7 = vclamps-f32 %v6248_v10, 1.0  ;;  %v8437_v12 = vclamps-f32 %v6288_v25, 1.0  ;;  %v9062_v17 = vld [vmem:[%s9449_s22 + $0x60] sm:$0xff] }
 0x65d   : > { %v8438_v38 = vclamps-f32 %v6328_v4, 1.0  ;;  %v7040_v62 = vadd.f32 %v7039_v63, %v6951_v43  ;;  %v8432_v56 = vclamps-f32 %v6088_v36, 1.0  ;;  %v8433_v37 = vclamps-f32 %v6128_v16, 1.0  ;;  %v7128_v29 = vpop.f32.mrf.mxu2  ;;  %v7217_v42 = vpop.f32.mrf.mxu3 }
 0x65e   : > { %7321 = vadd.xlane.f32.xlu2 %v16691_v22  ;;  %v6455_v40 = vadd.f32 1.0, %v8435_v9  ;;  %v1075_v0 = vmul.f32 0.5, %v17896_v21  ;;  %v8434_v23 = vclamps-f32 %v6168_v19, 1.0  ;;  %v6952_v14 = vpop.f32.mrf.mxu0  ;;  %v9289_v53 = vmov 128.0  }
 0x65f   : > { %v7129_v11 = vadd.f32 %v7128_v29, %v7040_v62  ;;  %v7041_v47 = vpop.f32.mrf.mxu1  ;;  %8983 = vrcp.f32 %v9289_v53  ;;  %v6451_v6 = vadd.f32 1.0, %v8431_v24  ;;  %v1079_v48 = vmul.f32 0.5, %v17897_v57 }
 0x660   : > { %v6456_v54 = vadd.f32 1.0, %v8436_v7  ;;  %v6457_v55 = vadd.f32 1.0, %v8437_v12  ;;  %v1080_v41 = vmul.f32 0.5, %v17898_v49  ;;  %v6458_v30 = vadd.f32 1.0, %v8438_v38 }
 0x661   : > { %v7218_v59 = vadd.f32 %v7217_v42, %v7129_v11  ;;  %v6953_v20 = vadd.f32 %v16681_v45, %v6952_v14  ;;  %v6452_v31 = vadd.f32 1.0, %v8432_v56  ;;  %v6453_v2 = vadd.f32 1.0, %v8433_v37  ;;  %v9063_v56 = vld [vmem:[%s9449_s22 + $0x68] sm:$0xff] }
 0x662   : > { %v6583_v27 = vmul.f32 %v6455_v40, %v1079_v48  ;;  %v1081_v5 = vmul.f32 0.5, %v17899_v61  ;;  %v1076_v18 = vmul.f32 0.5, %v17900_v35  ;;  %v6454_v34 = vadd.f32 1.0, %v8434_v23 }
 0x663   : > { %v1082_v3 = vmul.f32 0.5, %v17901_v44  ;;  %v16703_v28 = vadd.f32 %v9062_v17, %v7218_v59  ;;  %v6579_v58 = vmul.f32 %v6451_v6, %v1075_v0  ;;  %v1077_v63 = vmul.f32 0.5, %v17902_v15  ;;  %v9064_v6 = vld [vmem:[%s9449_s22 + $0x70] sm:$0xff] }
 0x664   : > { %v6584_v10 = vmul.f32 %v6456_v54, %v1080_v41  ;;  %v6585_v25 = vmul.f32 %v6457_v55, %v1081_v5  ;;  %v1078_v32 = vmul.f32 0.5, %v17903_v13  ;;  %v7042_v50 = vadd.f32 %v7041_v47, %v6953_v20  ;;  %v9065_v5 = vld [vmem:[%s9449_s22 + $0x78] sm:$0xff] }
 0x665   : > { %v8984_v39 = vpop.eup %8983  ;;  %v6586_v51 = vmul.f32 %v6458_v30, %v1082_v3  ;;  %7323 = vadd.xlane.f32.xlu0 %v16703_v28  ;;  %v6580_v4 = vmul.f32 %v6452_v31, %v1076_v18  ;;  %v6581_v60 = vmul.f32 %v6453_v2, %v1077_v63  ;;  %v7130_v43 = vpop.f32.mrf.mxu2  ;;  %v6647_v46 = vpack.c.bf16 %v6583_v27, %v6579_v58 }
 0x666   : > { %v7219_v52 = vpop.f32.mrf.mxu3  ;;  %v6582_v36 = vmul.f32 %v6454_v34, %v1078_v32  ;;  %v7131_v16 = vadd.f32 %v7130_v43, %v7042_v50  ;;  %v6955_v9 = vpop.f32.mrf.mxu0  ;;  %v7364_v7 = vmul.f32 128.0, %v8984_v39  ;;  %vm7368_vm11 = vweird.f32 %v8984_v39  ;;  %v17904_v34 = vld [vmem:[#allocation29_spill] sm:$0xff] }
 0x667   : > { %v7044_v19 = vpop.f32.mrf.mxu1  ;;  %v6648_v8 = vpack.c.bf16 %v6584_v10, %v6580_v4  ;;  %v6649_v24 = vpack.c.bf16 %v6585_v25, %v6581_v60  ;;  %v6956_v38 = vadd.f32 %v16681_v45, %v6955_v9  ;;  %v17905_v60 = vld [vmem:[#allocation31_spill] sm:$0xff] }
 0x668   : > { %v7220_v12 = vadd.f32 %v7219_v52, %v7131_v16  ;;  %v6650_v62 = vpack.c.bf16 %v6586_v51, %v6582_v36  ;;  %v7365_v40 = vsub.f32 1.0, %v7364_v7  ;;  %v9066_v51 = vld [vmem:[%s9449_s22 + $0x80] sm:$0xff] }
 0x669   : > { %6994 = vmatmul.bf16.gmra.mxu0 %v6647_v46  ;;  %v7045_v29 = vadd.f32 %v7044_v19, %v6956_v38  ;;  %v17906_v38 = vld [vmem:[#allocation33_spill] sm:$0xff] }
 0x66a   : > { %v16710_v37 = vadd.f32 %v9063_v56, %v7220_v12  ;;  %v7366_v14 = vmul.f32 %v8984_v39, %v7365_v40  ;;  %v9067_v56 = vld [vmem:[%s9449_s22 + $0x88] sm:$0xff] }
 0x66b   : > { %7083 = vmatmul.bf16.gmra.mxu1 %v6648_v8  ;;  %7172 = vmatmul.bf16.gmra.mxu2 %v6649_v24 }
 0x66c   : > { %7261 = vmatmul.bf16.gmra.mxu3 %v6650_v62  ;;  %7325 = vadd.xlane.f32.xlu1 %v16710_v37  ;;  %v7367_v48 = vadd.f32 %v8984_v39, %v7366_v14 }
 0x66d   : > { %v7133_v42 = vpop.f32.mrf.mxu2 }
 0x66e   : > { %v7222_v21 = vpop.f32.mrf.mxu3  ;;  %v7134_v0 = vadd.f32 %v7133_v42, %v7045_v29  ;;  %v6957_v23 = vpop.f32.mrf.mxu0  ;;  %v16718_v20 = vsel %vm7368_vm11, %v8984_v39, %v7367_v48 }
 0x66f   : > { %v7046_v11 = vpop.f32.mrf.mxu1  ;;  %v6958_v53 = vadd.f32 %v16681_v45, %v6957_v23 }
 0x670   : > { %v7223_v47 = vadd.f32 %v7222_v21, %v7134_v0 }
 0x671   : > { %v7047_v54 = vadd.f32 %v7046_v11, %v6958_v53 }
 0x672   : > { %v16715_v57 = vadd.f32 %v9064_v6, %v7223_v47 }
 0x674   : > { %7327 = vadd.xlane.f32.xlu2 %v16715_v57 }
 0x675   : > { %v7135_v55 = vpop.f32.mrf.mxu2 }
 0x676   : > { %v7224_v49 = vpop.f32.mrf.mxu3  ;;  %v7136_v41 = vadd.f32 %v7135_v55, %v7047_v54  ;;  %v6960_v30 = vpop.f32.mrf.mxu0  ;;  %v9068_v55 = vld [vmem:[%s9449_s22 + $0x90] sm:$0xff] }
 0x677   : > { %v7049_v59 = vpop.f32.mrf.mxu1  ;;  %v6961_v2 = vadd.f32 %v16681_v45, %v6960_v30 }
 0x678   : > { %v7225_v31 = vadd.f32 %v7224_v49, %v7136_v41  ;;  %v7300_v27 = vpop.xlane.xlu0 %7299 }
 0x679   : > { %v7370_v61 = vmul.f32 %v16718_v20, %v7300_v27  ;;  %v7050_v18 = vadd.f32 %v7049_v59, %v6961_v2 }
 0x67a   : > { %v16723_v35 = vadd.f32 %v9065_v5, %v7225_v31 }
 0x67b   : > { %v16726_v44 = vsub.f32 %v17904_v34, %v7370_v61 }
 0x67c   : > { %7329 = vadd.xlane.f32.xlu0 %v16723_v35 }
 0x67d   : > { %v7138_v3 = vpop.f32.mrf.mxu2  ;;  %v7434_v15 = vmul.f32 %v16726_v44, %v16726_v44 }
 0x67e   : > { %v7227_v17 = vpop.f32.mrf.mxu3  ;;  %v7139_v58 = vadd.f32 %v7138_v3, %v7050_v18  ;;  %v6962_v63 = vpop.f32.mrf.mxu0  ;;  %v17907_v3 = vld [vmem:[#allocation39_spill] sm:$0xff] }
 0x67f   : > { %v7051_v10 = vpop.f32.mrf.mxu1  ;;  %7466 = vadd.xlane.f32.xlu2 %v7434_v15  ;;  %v6963_v39 = vadd.f32 %v16681_v45, %v6962_v63 }
 0x680   : > { %v7228_v25 = vadd.f32 %v7227_v17, %v7139_v58  ;;  %v7302_v13 = vpop.xlane.xlu0 %7301  ;;  %v9069_v58 = vld [vmem:[%s9449_s22 + $0x98] sm:$0xff] }
 0x681   : > { %v7371_v32 = vmul.f32 %v16718_v20, %v7302_v13  ;;  %v7052_v4 = vadd.f32 %v7051_v10, %v6963_v39 }
 0x682   : > { %v16734_v50 = vadd.f32 %v9066_v51, %v7228_v25 }
 0x683   : > { %v16737_v43 = vsub.f32 %v17905_v60, %v7371_v32 }
 0x684   : > { %7331 = vadd.xlane.f32.xlu1 %v16734_v50 }
 0x685   : > { %v7140_v52 = vpop.f32.mrf.mxu2  ;;  %v7435_v16 = vmul.f32 %v16737_v43, %v16737_v43 }
 0x686   : > { %v7229_v46 = vpop.f32.mrf.mxu3  ;;  %v7141_v36 = vadd.f32 %v7140_v52, %v7052_v4  ;;  %v6965_v9 = vpop.f32.mrf.mxu0 }
 0x687   : > { %v7054_v19 = vpop.f32.mrf.mxu1  ;;  %v7304_v8 = vpop.xlane.xlu1 %7303  ;;  %7468 = vadd.xlane.f32.xlu0 %v7435_v16  ;;  %v6966_v7 = vadd.f32 %v16681_v45, %v6965_v9  ;;  %v9070_v9 = vld [vmem:[%s9449_s22 + $0xa0] sm:$0xff] }
 0x688   : > { %v7230_v24 = vadd.f32 %v7229_v46, %v7141_v36  ;;  %v7372_v12 = vmul.f32 %v16718_v20, %v7304_v8  ;;  %v17908_v36 = vld [vmem:[#allocation30_spill] sm:$0xff] }
 0x689   : > { %v7055_v29 = vadd.f32 %v7054_v19, %v6966_v7 }
 0x68a   : > { %v16745_v62 = vsub.f32 %v17906_v38, %v7372_v12  ;;  %v16748_v40 = vadd.f32 %v9067_v56, %v7230_v24 }
 0x68c   : > { %7333 = vadd.xlane.f32.xlu2 %v16748_v40  ;;  %v7436_v42 = vmul.f32 %v16745_v62, %v16745_v62 }
 0x68d   : > { %v7143_v21 = vpop.f32.mrf.mxu2 }
 0x68e   : > { %v7232_v0 = vpop.f32.mrf.mxu3  ;;  %v7144_v23 = vadd.f32 %v7143_v21, %v7055_v29  ;;  %7470 = vadd.xlane.f32.xlu1 %v7436_v42  ;;  %v6967_v11 = vpop.f32.mrf.mxu0 }
 0x68f   : > { %v7056_v14 = vpop.f32.mrf.mxu1  ;;  %v7306_v47 = vpop.xlane.xlu1 %7305  ;;  %v6968_v6 = vadd.f32 %v16681_v45, %v6967_v11  ;;  %v17909_v11 = vld [vmem:[#allocation36_spill] sm:$0xff] }
 0x690   : > { %v7233_v53 = vadd.f32 %v7232_v0, %v7144_v23  ;;  %v7373_v48 = vmul.f32 %v16718_v20, %v7306_v47  ;;  %v9071_v47 = vld [vmem:[%s9449_s22 + $0xa8] sm:$0xff] }
 0x691   : > { %v7057_v41 = vadd.f32 %v7056_v14, %v6968_v6 }
 0x692   : > { %v16756_v54 = vsub.f32 %v16305_v33, %v7373_v48  ;;  %v16759_v49 = vadd.f32 %v9068_v55, %v7233_v53 }
 0x694   : > { %7335 = vadd.xlane.f32.xlu0 %v16759_v49  ;;  %v7437_v30 = vmul.f32 %v16756_v54, %v16756_v54 }
 0x695   : > { %v7145_v59 = vpop.f32.mrf.mxu2 }
 0x696   : > { %v7234_v31 = vpop.f32.mrf.mxu3  ;;  %v7146_v2 = vadd.f32 %v7145_v59, %v7057_v41  ;;  %7472 = vadd.xlane.f32.xlu2 %v7437_v30  ;;  %v6970_v27 = vpop.f32.mrf.mxu0 }
 0x697   : > { %v7059_v61 = vpop.f32.mrf.mxu1  ;;  %v6971_v33 = vadd.f32 %v16681_v45, %v6970_v27 }
 0x698   : > { %v7308_v5 = vpop.xlane.xlu2 %7307  ;;  %v7235_v18 = vadd.f32 %v7234_v31, %v7146_v2 }
 0x699   : > { %v7374_v34 = vmul.f32 %v16718_v20, %v7308_v5  ;;  %v7060_v63 = vadd.f32 %v7059_v61, %v6971_v33 }
 0x69a   : > { %v16770_v15 = vadd.f32 %v9069_v58, %v7235_v18  ;;  %v17910_v18 = vld [vmem:[#allocation34_spill] sm:$0xff] }
 0x69b   : > { %v16767_v17 = vsub.f32 %v17907_v3, %v7374_v34  ;;  %v9072_v34 = vld [vmem:[%s9449_s22 + $0xb0] sm:$0xff] }
 0x69c   : > { %7337 = vadd.xlane.f32.xlu1 %v16770_v15 }
 0x69d   : > { %v7438_v10 = vmul.f32 %v16767_v17, %v16767_v17  ;;  %v7148_v25 = vpop.f32.mrf.mxu2 }
 0x69e   : > { %v7237_v39 = vpop.f32.mrf.mxu3  ;;  %v7149_v13 = vadd.f32 %v7148_v25, %v7060_v63  ;;  %v6972_v32 = vpop.f32.mrf.mxu0 }
 0x69f   : > { %7474 = vadd.xlane.f32.xlu0 %v7438_v10  ;;  %v7061_v51 = vpop.f32.mrf.mxu1  ;;  %v6973_v52 = vadd.f32 %v16681_v45, %v6972_v32 }
 0x6a0   : > { %v7310_v4 = vpop.xlane.xlu2 %7309  ;;  %v7238_v60 = vadd.f32 %v7237_v39, %v7149_v13 }
 0x6a1   : > { %v7375_v46 = vmul.f32 %v16718_v20, %v7310_v4  ;;  %v7062_v8 = vadd.f32 %v7061_v51, %v6973_v52 }
 0x6a2   : > { %v16781_v19 = vadd.f32 %v9070_v9, %v7238_v60  ;;  %v9073_v9 = vld [vmem:[%s9449_s22 + $0xb8] sm:$0xff] }
 0x6a3   : > { %v16778_v16 = vsub.f32 %v17908_v36, %v7375_v46  ;;  %v17911_v46 = vld [vmem:[#allocation40_spill] sm:$0xff] }
 0x6a4   : > { %7339 = vadd.xlane.f32.xlu2 %v16781_v19 }
 0x6a5   : > { %v7439_v24 = vmul.f32 %v16778_v16, %v16778_v16  ;;  %v7150_v7 = vpop.f32.mrf.mxu2 }
 0x6a6   : > { %v7239_v12 = vpop.f32.mrf.mxu3  ;;  %v7151_v38 = vadd.f32 %v7150_v7, %v7062_v8  ;;  %v6975_v56 = vpop.f32.mrf.mxu0 }
 0x6a7   : > { %7476 = vadd.xlane.f32.xlu1 %v7439_v24  ;;  %v7064_v29 = vpop.f32.mrf.mxu1  ;;  %v6976_v0 = vadd.f32 %v16681_v45, %v6975_v56 }
 0x6a8   : > { %v7240_v21 = vadd.f32 %v7239_v12, %v7151_v38 }
 0x6a9   : > { %v7312_v42 = vpop.xlane.xlu0 %7311  ;;  %v7065_v6 = vadd.f32 %v7064_v29, %v6976_v0 }
 0x6aa   : > { %v7376_v23 = vmul.f32 %v16718_v20, %v7312_v42  ;;  %v16792_v53 = vadd.f32 %v9071_v47, %v7240_v21 }
 0x6ac   : > { %v16789_v14 = vsub.f32 %v17909_v11, %v7376_v23  ;;  %7341 = vadd.xlane.f32.xlu0 %v16792_v53 }
 0x6ad   : > { %v7153_v55 = vpop.f32.mrf.mxu2 }
 0x6ae   : > { %v7440_v48 = vmul.f32 %v16789_v14, %v16789_v14  ;;  %v7242_v41 = vpop.f32.mrf.mxu3  ;;  %v7154_v30 = vadd.f32 %v7153_v55, %v7065_v6  ;;  %v6977_v59 = vpop.f32.mrf.mxu0  ;;  %v9074_v6 = vld [vmem:[%s9449_s22 + $0xc0] sm:$0xff] }
 0x6af   : > { %v7066_v31 = vpop.f32.mrf.mxu1  ;;  %v6978_v61 = vadd.f32 %v16681_v45, %v6977_v59 }
 0x6b0   : > { %7478 = vadd.xlane.f32.xlu2 %v7440_v48  ;;  %v7243_v27 = vadd.f32 %v7242_v41, %v7154_v30 }
 0x6b1   : > { %v7314_v2 = vpop.xlane.xlu1 %7313  ;;  %v7067_v58 = vadd.f32 %v7066_v31, %v6978_v61 }
 0x6b2   : > { %v7377_v5 = vmul.f32 %v16718_v20, %v7314_v2  ;;  %v16803_v3 = vadd.f32 %v9072_v34, %v7243_v27 }
 0x6b4   : > { %v16800_v33 = vsub.f32 %v17910_v18, %v7377_v5  ;;  %7343 = vadd.xlane.f32.xlu1 %v16803_v3 }
 0x6b5   : > { %v7155_v10 = vpop.f32.mrf.mxu2 }
 0x6b6   : > { %v7441_v63 = vmul.f32 %v16800_v33, %v16800_v33  ;;  %v7244_v25 = vpop.f32.mrf.mxu3  ;;  %v7156_v39 = vadd.f32 %v7155_v10, %v7067_v58  ;;  %v6980_v13 = vpop.f32.mrf.mxu0  ;;  %v9075_v58 = vld [vmem:[%s9449_s22 + $0xc8] sm:$0xff] }
 0x6b7   : > { %v6981_v60 = vadd.f32 %v16681_v45, %v6980_v13 }
 0x6b8   : > { %7480 = vadd.xlane.f32.xlu0 %v7441_v63  ;;  %v7069_v32 = vpop.f32.mrf.mxu1  ;;  %v7245_v4 = vadd.f32 %v7244_v25, %v7156_v39 }
 0x6b9   : > { %v7316_v51 = vpop.xlane.xlu2 %7315  ;;  %v7070_v24 = vadd.f32 %v7069_v32, %v6981_v60 }
 0x6ba   : > { %v7378_v52 = vmul.f32 %v16718_v20, %v7316_v51  ;;  %v16814_v8 = vadd.f32 %v9073_v9, %v7245_v4 }
 0x6bc   : > { %v16811_v36 = vsub.f32 %v17911_v46, %v7378_v52  ;;  %7345 = vadd.xlane.f32.xlu2 %v16814_v8 }
 0x6be   : > { %v7442_v7 = vmul.f32 %v16811_v36, %v16811_v36  ;;  %v7158_v12 = vpop.f32.mrf.mxu2  ;;  %v6982_v29 = vpop.f32.mrf.mxu0 }
 0x6bf   : > { %v7247_v38 = vpop.f32.mrf.mxu3  ;;  %v7159_v56 = vadd.f32 %v7158_v12, %v7070_v24  ;;  %v6983_v23 = vadd.f32 %v16681_v45, %v6982_v29  ;;  %v9076_v24 = vld [vmem:[%s9449_s22 + $0xd0] sm:$0xff] }
 0x6c0   : > { %7482 = vadd.xlane.f32.xlu1 %v7442_v7  ;;  %v7071_v42 = vpop.f32.mrf.mxu1  ;;  %v7318_v21 = vpop.xlane.xlu0 %7317 }
 0x6c1   : > { %v7248_v0 = vadd.f32 %v7247_v38, %v7159_v56  ;;  %v7379_v11 = vmul.f32 %v16718_v20, %v7318_v21  ;;  %v7072_v55 = vadd.f32 %v7071_v42, %v6983_v23 }
 0x6c3   : > { %v16822_v47 = vsub.f32 %v16577_v1, %v7379_v11  ;;  %v16825_v48 = vadd.f32 %v9074_v6, %v7248_v0 }
 0x6c5   : > { %7347 = vadd.xlane.f32.xlu0 %v16825_v48  ;;  %v7443_v41 = vmul.f32 %v16822_v47, %v16822_v47 }
 0x6c6   : > { %v7160_v30 = vpop.f32.mrf.mxu2  ;;  %v6985_v2 = vpop.f32.mrf.mxu0 }
 0x6c7   : > { %v7249_v59 = vpop.f32.mrf.mxu3  ;;  %v7161_v31 = vadd.f32 %v7160_v30, %v7072_v55  ;;  %7484 = vadd.xlane.f32.xlu2 %v7443_v41  ;;  %v6986_v1 = vadd.f32 %v16681_v45, %v6985_v2  ;;  %v9077_v41 = vld [vmem:[%s9449_s22 + $0xd8] sm:$0xff] }
 0x6c8   : > { %v7074_v27 = vpop.f32.mrf.mxu1 }
 0x6c9   : > { %v7320_v61 = vpop.xlane.xlu1 %7319  ;;  %v7250_v5 = vadd.f32 %v7249_v59, %v7161_v31  ;;  %v7075_v10 = vadd.f32 %v7074_v27, %v6986_v1 }
 0x6ca   : > { %v7380_v18 = vmul.f32 %v16718_v20, %v7320_v61 }
 0x6cb   : > { %v16836_v63 = vadd.f32 %v9075_v58, %v7250_v5 }
 0x6cc   : > { %v16833_v34 = vsub.f32 %v16649_v26, %v7380_v18 }
 0x6cd   : > { %7349 = vadd.xlane.f32.xlu1 %v16836_v63 }
 0x6ce   : > { %v7444_v25 = vmul.f32 %v16833_v34, %v16833_v34  ;;  %v7163_v39 = vpop.f32.mrf.mxu2  ;;  %v6987_v51 = vpop.f32.mrf.mxu0 }
 0x6cf   : > { %v7252_v13 = vpop.f32.mrf.mxu3  ;;  %v7164_v32 = vadd.f32 %v7163_v39, %v7075_v10  ;;  %v6988_v26 = vadd.f32 %v16681_v45, %v6987_v51  ;;  %v9078_v39 = vld [vmem:[%s9449_s22 + $0xe0] sm:$0xff] }
 0x6d0   : > { %7486 = vadd.xlane.f32.xlu0 %v7444_v25  ;;  %v7076_v4 = vpop.f32.mrf.mxu1 }
 0x6d1   : > { %v7322_v60 = vpop.xlane.xlu2 %7321  ;;  %v7253_v52 = vadd.f32 %v7252_v13, %v7164_v32  ;;  %v7077_v12 = vadd.f32 %v7076_v4, %v6988_v26 }
 0x6d2   : > { %v7381_v46 = vmul.f32 %v16718_v20, %v7322_v60 }
 0x6d3   : > { %v16847_v7 = vadd.f32 %v9076_v24, %v7253_v52 }
 0x6d4   : > { %v16844_v9 = vsub.f32 %v16691_v22, %v7381_v46 }
 0x6d5   : > { %7351 = vadd.xlane.f32.xlu2 %v16847_v7 }
 0x6d6   : > { %v7445_v38 = vmul.f32 %v16844_v9, %v16844_v9  ;;  %v7165_v56 = vpop.f32.mrf.mxu2  ;;  %v6990_v21 = vpop.f32.mrf.mxu0 }
 0x6d7   : > { %v7254_v29 = vpop.f32.mrf.mxu3  ;;  %v7166_v42 = vadd.f32 %v7165_v56, %v7077_v12  ;;  %v6991_v22 = vadd.f32 %v16681_v45, %v6990_v21  ;;  %v9079_v12 = vld [vmem:[%s9449_s22 + $0xe8] sm:$0xff] }
 0x6d8   : > { %7488 = vadd.xlane.f32.xlu1 %v7445_v38  ;;  %v7079_v0 = vpop.f32.mrf.mxu1  ;;  %v7324_v23 = vpop.xlane.xlu0 %7323 }
 0x6d9   : > { %v7255_v11 = vadd.f32 %v7254_v29, %v7166_v42  ;;  %v7382_v6 = vmul.f32 %v16718_v20, %v7324_v23  ;;  %v7080_v59 = vadd.f32 %v7079_v0, %v6991_v22 }
 0x6db   : > { %v16855_v55 = vsub.f32 %v16703_v28, %v7382_v6  ;;  %v16858_v30 = vadd.f32 %v9077_v41, %v7255_v11 }
 0x6dd   : > { %7353 = vadd.xlane.f32.xlu0 %v16858_v30  ;;  %v7446_v31 = vmul.f32 %v16855_v55, %v16855_v55 }
 0x6de   : > { %v7168_v2 = vpop.f32.mrf.mxu2  ;;  %v6992_v5 = vpop.f32.mrf.mxu0 }
 0x6df   : > { %v7257_v27 = vpop.f32.mrf.mxu3  ;;  %v7169_v61 = vadd.f32 %v7168_v2, %v7080_v59  ;;  %7490 = vadd.xlane.f32.xlu2 %v7446_v31  ;;  %v7326_v18 = vpop.xlane.xlu1 %7325  ;;  %v6993_v28 = vadd.f32 %v16681_v45, %v6992_v5  ;;  %v9080_v31 = vld [vmem:[%s9449_s22 + $0xf0] sm:$0xff] }
 0x6e0   : > { %v7081_v1 = vpop.f32.mrf.mxu1  ;;  %v7383_v10 = vmul.f32 %v16718_v20, %v7326_v18 }
 0x6e1   : > { %v7258_v58 = vadd.f32 %v7257_v27, %v7169_v61  ;;  %v7082_v32 = vadd.f32 %v7081_v1, %v6993_v28 }
 0x6e2   : > { %v16866_v25 = vsub.f32 %v16710_v37, %v7383_v10 }
 0x6e3   : > { %v16869_v13 = vadd.f32 %v9078_v39, %v7258_v58 }
 0x6e4   : > { %v7447_v51 = vmul.f32 %v16866_v25, %v16866_v25 }
 0x6e5   : > { %7355 = vadd.xlane.f32.xlu1 %v16869_v13 }
 0x6e6   : > { %v7170_v4 = vpop.f32.mrf.mxu2  ;;  %7492 = vadd.xlane.f32.xlu0 %v7447_v51  ;;  %v6995_v26 = vpop.f32.mrf.mxu0 }
 0x6e7   : > { %v7259_v60 = vpop.f32.mrf.mxu3  ;;  %v7171_v52 = vadd.f32 %v7170_v4, %v7082_v32  ;;  %v6996_v24 = vadd.f32 %v16681_v45, %v6995_v26  ;;  %v7328_v56 = vpop.xlane.xlu2 %7327 }
 0x6e8   : > { %v7084_v37 = vpop.f32.mrf.mxu1  ;;  %v7384_v51 = vmul.f32 %v16718_v20, %v7328_v56 }
 0x6e9   : > { %v7260_v46 = vadd.f32 %v7259_v60, %v7171_v52  ;;  %v7085_v29 = vadd.f32 %v7084_v37, %v6996_v24  ;;  %v9081_v60 = vld [vmem:[%s9449_s22 + $0xf8] sm:$0xff]  ;;  %s8637_s22 = sshll.u32 %s9353_s28, 8 }
 0x6ea   : > { %s8062_s10 = scalar_lea.hbm %s17221_s7, %s8637_s22 }
 0x6eb   : > { %v16876_v38 = vadd.f32 %v9079_v12, %v7260_v46  ;;  %v16904_v12 = vsub.f32 %v16715_v57, %v7384_v51  ;;  %s8065_s28 = sshll.u32 %s8062_s10, 4  ;;  %s8066_s28 = int_to_ptr.hbm [resolvable:$true] %s8065_s28 }
 0x6ec   : > { %s9218_s17 = sshra.s32 %s8066_s28, 4  ;;  %s9219_s17 = int_to_ptr.hbm [resolvable:$true] %s9218_s17 }
 0x6ed   : > { %7357 = vadd.xlane.f32.xlu2 %v16876_v38  ;;  %s9220_s23 = scalar_lea.hbm %s9219_s17, 256  ;;  %p9225_p11 = scmp.lt.s32.totalorder %s9219_s17, %s17221_s7 }
 0x6ee   : > { %v7173_v42 = vpop.f32.mrf.mxu2  ;;  %v6997_v23 = vpop.f32.mrf.mxu0  ;;  %p9221_p1 = scmp.ne.s32.totalorder %s9219_s17, %s9220_s23  ;;  %p9226_p9 = scmp.lt.s32.totalorder %s9224_s13, %s9220_s23 }
 0x6ef   : > { %v7262_v21 = vpop.f32.mrf.mxu3  ;;  %v7174_v0 = vadd.f32 %v7173_v42, %v7085_v29  ;;  %v7330_v11 = vpop.xlane.xlu0 %7329  ;;  %v6998_v6 = vadd.f32 %v16681_v45, %v6997_v23 }
 0x6f0   : > { %v7385_v41 = vmul.f32 %v16718_v20, %v7330_v11  ;;  %v7086_v27 = vpop.f32.mrf.mxu1  ;;  %v7448_v11 = vmul.f32 %v16904_v12, %v16904_v12  ;;  %p9222_p4 = pnand %p9221_p1, %p9415_p7  ;;  %p9227_p2 = por %p9226_p9, %p9225_p11 }
 0x6f1   : > { %v7263_v22 = vadd.f32 %v7262_v21, %v7174_v0  ;;  %v7087_v5 = vadd.f32 %v7086_v27, %v6998_v6 }
 0x6f2   : > { %v16882_v59 = vsub.f32 %v16723_v35, %v7385_v41  ;;  %v7467_v61 = vpop.xlane.xlu2 %7466  ;;  %p9223_p8 = pneg %p9222_p4 }
 0x6f3   : > { %v16885_v2 = vadd.f32 %v9080_v31, %v7263_v22  ;;  %v7530_v1 = vmul.f32 %v7467_v61, %v16718_v20 }
 0x6f4   : > { %v7449_v18 = vmul.f32 %v16882_v59, %v16882_v59  ;;  %p9228_p10 = pnand %p9227_p2, %p9223_p8 }
 0x6f5   : > { %7359 = vadd.xlane.f32.xlu0 %v16885_v2  ;;  %v7562_v58 = vadd.f32 1e-12, %v7530_v1  ;;  %v16916_v1 = vld [vmem:[%s17219_s5] ss:$0 sm:$0xff] }
 0x6f6   : > { %v7175_v45 = vpop.f32.mrf.mxu2  ;;  %7496 = vadd.xlane.f32.xlu2 %v7449_v18 }
 0x6f7   : > { %v7176_v28 = vadd.f32 %v7175_v45, %v7087_v5  ;;  %v7264_v35 = vpop.f32.mrf.mxu3  ;;  %v7332_v10 = vpop.xlane.xlu1 %7331  ;;  %8985 = vrsqrt.f32 %v7562_v58  ;;  %vm7600_vm2 = vweird.f32 %v7562_v58 }
 0x6f8   : > { %v7386_v32 = vmul.f32 %v16718_v20, %v7332_v10 }
 0x6f9   : > { %v7265_v39 = vadd.f32 %v7264_v35, %v7176_v28 }
 0x6fa   : > { %v16894_v4 = vsub.f32 %v16734_v50, %v7386_v32  ;;  %v7469_v26 = vpop.xlane.xlu0 %7468 }
 0x6fb   : > { %v16897_v52 = vadd.f32 %v9081_v60, %v7265_v39  ;;  %v7531_v46 = vmul.f32 %v7469_v26, %v16718_v20 }
 0x6fc   : > { %v7450_v24 = vmul.f32 %v16894_v4, %v16894_v4 }
 0x6fd   : > { %7361 = vadd.xlane.f32.xlu1 %v16897_v52  ;;  %v8986_v37 = vpop.eup %8985  ;;  %v7563_v29 = vadd.f32 1e-12, %v7531_v46 }
 0x6fe   : > { %7498 = vadd.xlane.f32.xlu0 %v7450_v24  ;;  %v7595_v56 = vmul.f32 %v8986_v37, %v7562_v58  ;;  %vm7601_vm13 = vweird.f32 %v8986_v37 }
 0x6ff   : > { %v7334_v50 = vpop.xlane.xlu2 %7333  ;;  %8987 = vrsqrt.f32 %v7563_v29  ;;  %vm7602_vm3 = vmor %vm7600_vm2, %vm7601_vm13  ;;  %vm7610_vm5 = vweird.f32 %v7563_v29 }
 0x700   : > { %v7596_v42 = vmul.f32 %v8986_v37, %v7595_v56  ;;  %v7387_v0 = vmul.f32 %v16718_v20, %v7334_v50 }
 0x701   : > { %v7471_v21 = vpop.xlane.xlu1 %7470 }
 0x702   : > { %v7532_v23 = vmul.f32 %v7471_v21, %v16718_v20  ;;  %v7597_v22 = vmul.f32 0.5, %v7596_v42  ;;  %v16911_v31 = vsub.f32 %v16748_v40, %v7387_v0  ;;  %v16922_v40 = vld [vmem:[%s17220_s6] ss:$0 sm:$0xff] }
 0x704   : > { %v7564_v6 = vadd.f32 1e-12, %v7532_v23  ;;  %v7598_v41 = vsub.f32 1.5, %v7597_v22  ;;  %v7451_v32 = vmul.f32 %v16911_v31, %v16911_v31 }
 0x705   : > { %7494 = vadd.xlane.f32.xlu1 %v7448_v11  ;;  %v8988_v57 = vpop.eup %8987 }
 0x706   : > { %8989 = vrsqrt.f32 %v7564_v6  ;;  %v7599_v27 = vmul.f32 %v8986_v37, %v7598_v41  ;;  %v7605_v61 = vmul.f32 %v8988_v57, %v7563_v29  ;;  %vm7611_vm4 = vweird.f32 %v8988_v57 }
 0x707   : > { %v7336_v5 = vpop.xlane.xlu0 %7335  ;;  %vm7612_vm6 = vmor %vm7610_vm5, %vm7611_vm4  ;;  %vm7620_vm8 = vweird.f32 %v7564_v6 }
 0x708   : > { %v7388_v18 = vmul.f32 %v16718_v20, %v7336_v5  ;;  %v7603_v45 = vsel %vm7602_vm3, %v8986_v37, %v7599_v27  ;;  %v7606_v28 = vmul.f32 %v8988_v57, %v7605_v61 }
 0x709   : > { %v7473_v35 = vpop.xlane.xlu2 %7472  ;;  %v7914_v58 = vmul.f32 %v7603_v45, %v16726_v44 }
 0x70a   : > { %v16926_v10 = vsub.f32 %v16759_v49, %v7388_v18  ;;  %v7533_v39 = vmul.f32 %v7473_v35, %v16718_v20  ;;  %v7607_v51 = vmul.f32 0.5, %v7606_v28 }
 0x70b   : > { %v7950_v26 = vmul.f32 %v16916_v1, %v7914_v58 }
 0x70c   : > { %v8990_v60 = vpop.eup %8989  ;;  %v7565_v46 = vadd.f32 1e-12, %v7533_v39  ;;  %v7452_v24 = vmul.f32 %v16926_v10, %v16926_v10  ;;  %v7608_v37 = vsub.f32 1.5, %v7607_v51 }
 0x70d   : > { %7500 = vadd.xlane.f32.xlu1 %v7451_v32  ;;  %v7615_v44 = vmul.f32 %v8990_v60, %v7564_v6  ;;  %v7986_v49 = vadd.f32 %v16922_v40, %v7950_v26  ;;  %vm7621_vm7 = vweird.f32 %v8990_v60 }
 0x70e   : > { %8991 = vrsqrt.f32 %v7565_v46  ;;  %7502 = vadd.xlane.f32.xlu2 %v7452_v24  ;;  %v7609_v56 = vmul.f32 %v8988_v57, %v7608_v37  ;;  %vm7622_vm9 = vmor %vm7620_vm8, %vm7621_vm7  ;;  %vm7630_vm12 = vweird.f32 %v7565_v46 }
 0x70f   : > { %v7616_v50 = vmul.f32 %v8990_v60, %v7615_v44  ;;  %v7338_v42 = vpop.xlane.xlu1 %7337  ;;  %8018 = vst [vmem:[%s16937_s9] sm:$0xff] %v7986_v49 }
 0x710   : > { %v7389_v21 = vmul.f32 %v16718_v20, %v7338_v42  ;;  %v7613_v0 = vsel %vm7612_vm6, %v8988_v57, %v7609_v56 }
 0x711   : > { %v7617_v23 = vmul.f32 0.5, %v7616_v50  ;;  %v7915_v22 = vmul.f32 %v7613_v0, %v16737_v43 }
 0x712   : > { %v7475_v11 = vpop.xlane.xlu0 %7474  ;;  %v16943_v41 = vsub.f32 %v16770_v15, %v7389_v21 }
 0x713   : > { %v7534_v29 = vmul.f32 %v7475_v11, %v16718_v20  ;;  %v7618_v27 = vsub.f32 1.5, %v7617_v23  ;;  %v7951_v5 = vmul.f32 %v16916_v1, %v7915_v22 }
 0x714   : > { %v8992_v61 = vpop.eup %8991  ;;  %v7453_v45 = vmul.f32 %v16943_v41, %v16943_v41 }
 0x715   : > { %v7566_v18 = vadd.f32 1e-12, %v7534_v29  ;;  %v7619_v57 = vmul.f32 %v8990_v60, %v7618_v27  ;;  %v7625_v28 = vmul.f32 %v8992_v61, %v7565_v46  ;;  %v7987_v43 = vadd.f32 %v16922_v40, %v7951_v5 }
 0x716   : > { %7504 = vadd.xlane.f32.xlu0 %v7453_v45  ;;  %vm7631_vm10 = vweird.f32 %v8992_v61 }
 0x717   : > { %8993 = vrsqrt.f32 %v7566_v18  ;;  %v7623_v15 = vsel %vm7622_vm9, %v8990_v60, %v7619_v57  ;;  %v7626_v35 = vmul.f32 %v8992_v61, %v7625_v28  ;;  %v7340_v58 = vpop.xlane.xlu2 %7339  ;;  %8019 = vst [vmem:[%s16937_s9 + $0x8] sm:$0xff] %v7987_v43  ;;  %vm7632_vm14 = vmor %vm7630_vm12, %vm7631_vm10  ;;  %vm7640_vm0 = vweird.f32 %v7566_v18 }
 0x718   : > { %v7916_v39 = vmul.f32 %v7623_v15, %v16745_v62  ;;  %v7390_v32 = vmul.f32 %v16718_v20, %v7340_v58 }
 0x719   : > { %v7627_v51 = vmul.f32 0.5, %v7626_v35 }
 0x71a   : > { %v7477_v26 = vpop.xlane.xlu1 %7476  ;;  %v7952_v24 = vmul.f32 %v16916_v1, %v7916_v39  ;;  %v16955_v6 = vsub.f32 %v16781_v19, %v7390_v32 }
 0x71b   : > { %v7535_v37 = vmul.f32 %v7477_v26, %v16718_v20  ;;  %v7628_v44 = vsub.f32 1.5, %v7627_v51 }
 0x71c   : > { %v7988_v49 = vadd.f32 %v16922_v40, %v7952_v24  ;;  %v7454_v62 = vmul.f32 %v16955_v6, %v16955_v6 }
 0x71d   : > { %v8994_v60 = vpop.eup %8993  ;;  %v7567_v56 = vadd.f32 1e-12, %v7535_v37  ;;  %v7629_v50 = vmul.f32 %v8992_v61, %v7628_v44 }
 0x71e   : > { %v7635_v42 = vmul.f32 %v8994_v60, %v7566_v18  ;;  %8020 = vst [vmem:[%s16937_s9 + $0x10] sm:$0xff] %v7988_v49  ;;  %7506 = vadd.xlane.f32.xlu1 %v7454_v62  ;;  %vm7641_vm15 = vweird.f32 %v8994_v60 }
 0x71f   : > { %8995 = vrsqrt.f32 %v7567_v56  ;;  %v7633_v19 = vsel %vm7632_vm14, %v8992_v61, %v7629_v50  ;;  %v7342_v0 = vpop.xlane.xlu0 %7341  ;;  %vm7642_vm1 = vmor %vm7640_vm0, %vm7641_vm15  ;;  %vm7650_vm13 = vweird.f32 %v7567_v56 }
 0x720   : > { %v7636_v21 = vmul.f32 %v8994_v60, %v7635_v42  ;;  %v7917_v23 = vmul.f32 %v7633_v19, %v16756_v54  ;;  %v7391_v11 = vmul.f32 %v16718_v20, %v7342_v0 }
 0x722   : > { %v7637_v22 = vmul.f32 0.5, %v7636_v21  ;;  %v7953_v27 = vmul.f32 %v16916_v1, %v7917_v23  ;;  %v16966_v5 = vsub.f32 %v16792_v53, %v7391_v11 }
 0x723   : > { %v7479_v29 = vpop.xlane.xlu2 %7478 }
 0x724   : > { %v7536_v46 = vmul.f32 %v7479_v29, %v16718_v20  ;;  %v7638_v45 = vsub.f32 1.5, %v7637_v22  ;;  %v7989_v61 = vadd.f32 %v16922_v40, %v7953_v27  ;;  %v7455_v54 = vmul.f32 %v16966_v5, %v16966_v5 }
 0x725   : > { %v8996_v57 = vpop.eup %8995 }
 0x726   : > { %v7568_v28 = vadd.f32 1e-12, %v7536_v46  ;;  %v7639_v43 = vmul.f32 %v8994_v60, %v7638_v45  ;;  %v7645_v15 = vmul.f32 %v8996_v57, %v7567_v56  ;;  %8021 = vst [vmem:[%s16937_s9 + $0x18] sm:$0xff] %v7989_v61  ;;  %7508 = vadd.xlane.f32.xlu2 %v7455_v54  ;;  %vm7651_vm11 = vweird.f32 %v8996_v57 }
 0x727   : > { %v7344_v58 = vpop.xlane.xlu1 %7343  ;;  %vm7652_vm2 = vmor %vm7650_vm13, %vm7651_vm11 }
 0x728   : > { %8997 = vrsqrt.f32 %v7568_v28  ;;  %v7643_v53 = vsel %vm7642_vm1, %v8994_v60, %v7639_v43  ;;  %v7646_v35 = vmul.f32 %v8996_v57, %v7645_v15  ;;  %v7392_v32 = vmul.f32 %v16718_v20, %v7344_v58 }
 0x729   : > { %v7918_v39 = vmul.f32 %v7643_v53, %v16767_v17  ;;  %vm7660_vm4 = vweird.f32 %v7568_v28 }
 0x72a   : > { %v7647_v51 = vmul.f32 0.5, %v7646_v35  ;;  %v16977_v37 = vsub.f32 %v16803_v3, %v7392_v32 }
 0x72b   : > { %v7481_v26 = vpop.xlane.xlu0 %7480  ;;  %v7954_v24 = vmul.f32 %v16916_v1, %v7918_v39 }
 0x72c   : > { %v7537_v18 = vmul.f32 %v7481_v26, %v16718_v20  ;;  %v7648_v44 = vsub.f32 1.5, %v7647_v51  ;;  %v7456_v17 = vmul.f32 %v16977_v37, %v16977_v37 }
 0x72d   : > { %v7990_v60 = vadd.f32 %v16922_v40, %v7954_v24 }
 0x72e   : > { %v8998_v49 = vpop.eup %8997  ;;  %v7569_v62 = vadd.f32 1e-12, %v7537_v18  ;;  %v7649_v50 = vmul.f32 %v8996_v57, %v7648_v44  ;;  %7510 = vadd.xlane.f32.xlu0 %v7456_v17 }
 0x72f   : > { %v7655_v42 = vmul.f32 %v8998_v49, %v7568_v28  ;;  %8022 = vst [vmem:[%s16937_s9 + $0x20] sm:$0xff] %v7990_v60  ;;  %v7346_v21 = vpop.xlane.xlu2 %7345  ;;  %vm7661_vm3 = vweird.f32 %v8998_v49 }
 0x730   : > { %8999 = vrsqrt.f32 %v7569_v62  ;;  %v7653_v3 = vsel %vm7652_vm2, %v8996_v57, %v7649_v50  ;;  %v7393_v23 = vmul.f32 %v16718_v20, %v7346_v21  ;;  %vm7662_vm5 = vmor %vm7660_vm4, %vm7661_vm3  ;;  %vm7670_vm7 = vweird.f32 %v7569_v62 }
 0x731   : > { %v7656_v19 = vmul.f32 %v8998_v49, %v7655_v42  ;;  %v7919_v0 = vmul.f32 %v7653_v3, %v16778_v16 }
 0x732   : > { %v16988_v27 = vsub.f32 %v16814_v8, %v7393_v23 }
 0x733   : > { %v7657_v11 = vmul.f32 0.5, %v7656_v19  ;;  %v7483_v22 = vpop.xlane.xlu1 %7482  ;;  %v7955_v29 = vmul.f32 %v16916_v1, %v7919_v0 }
 0x734   : > { %v7538_v56 = vmul.f32 %v7483_v22, %v16718_v20  ;;  %v7457_v16 = vmul.f32 %v16988_v27, %v16988_v27 }
 0x735   : > { %v7658_v46 = vsub.f32 1.5, %v7657_v11  ;;  %v7991_v57 = vadd.f32 %v16922_v40, %v7955_v29 }
 0x736   : > { %v9000_v45 = vpop.eup %8999  ;;  %v7570_v61 = vadd.f32 1e-12, %v7538_v56  ;;  %7512 = vadd.xlane.f32.xlu1 %v7457_v16 }
 0x737   : > { %v7659_v54 = vmul.f32 %v8998_v49, %v7658_v46  ;;  %v7665_v43 = vmul.f32 %v9000_v45, %v7569_v62  ;;  %8023 = vst [vmem:[%s16937_s9 + $0x28] sm:$0xff] %v7991_v57  ;;  %vm7671_vm6 = vweird.f32 %v9000_v45 }
 0x738   : > { %9001 = vrsqrt.f32 %v7570_v61  ;;  %v7348_v53 = vpop.xlane.xlu0 %7347  ;;  %vm7672_vm8 = vmor %vm7670_vm7, %vm7671_vm6  ;;  %vm7680_vm10 = vweird.f32 %v7570_v61 }
 0x739   : > { %v7663_v8 = vsel %vm7662_vm5, %v8998_v49, %v7659_v54  ;;  %v7666_v15 = vmul.f32 %v9000_v45, %v7665_v43  ;;  %v7394_v58 = vmul.f32 %v16718_v20, %v7348_v53 }
 0x73a   : > { %v7920_v35 = vmul.f32 %v7663_v8, %v16789_v14  ;;  %v7485_v32 = vpop.xlane.xlu2 %7484 }
 0x73b   : > { %v7667_v39 = vmul.f32 0.5, %v7666_v15  ;;  %v16999_v26 = vsub.f32 %v16825_v48, %v7394_v58  ;;  %v7539_v28 = vmul.f32 %v7485_v32, %v16718_v20 }
 0x73c   : > { %v7956_v51 = vmul.f32 %v16916_v1, %v7920_v35 }
 0x73d   : > { %v7668_v24 = vsub.f32 1.5, %v7667_v39  ;;  %v7571_v49 = vadd.f32 1e-12, %v7539_v28  ;;  %v7458_v14 = vmul.f32 %v16999_v26, %v16999_v26 }
 0x73e   : > { %v9002_v18 = vpop.eup %9001  ;;  %v7992_v44 = vadd.f32 %v16922_v40, %v7956_v51 }
 0x73f   : > { %v7669_v60 = vmul.f32 %v9000_v45, %v7668_v24  ;;  %v7675_v17 = vmul.f32 %v9002_v18, %v7570_v61  ;;  %9003 = vrsqrt.f32 %v7571_v49  ;;  %7514 = vadd.xlane.f32.xlu2 %v7458_v14  ;;  %vm7681_vm9 = vweird.f32 %v9002_v18 }
 0x740   : > { %8024 = vst [vmem:[%s16937_s9 + $0x30] sm:$0xff] %v7992_v44  ;;  %v7350_v42 = vpop.xlane.xlu1 %7349  ;;  %vm7682_vm12 = vmor %vm7680_vm10, %vm7681_vm9  ;;  %vm7690_vm15 = vweird.f32 %v7571_v49 }
 0x741   : > { %v7673_v48 = vsel %vm7672_vm8, %v9000_v45, %v7669_v60  ;;  %v7676_v50 = vmul.f32 %v9002_v18, %v7675_v17  ;;  %v7395_v19 = vmul.f32 %v16718_v20, %v7350_v42 }
 0x742   : > { %v7921_v3 = vmul.f32 %v7673_v48, %v16800_v33 }
 0x743   : > { %v7677_v21 = vmul.f32 0.5, %v7676_v50  ;;  %v7487_v0 = vpop.xlane.xlu0 %7486  ;;  %v17010_v11 = vsub.f32 %v16836_v63, %v7395_v19 }
 0x744   : > { %v7957_v23 = vmul.f32 %v16916_v1, %v7921_v3  ;;  %v7540_v62 = vmul.f32 %v7487_v0, %v16718_v20 }
 0x745   : > { %v7678_v22 = vsub.f32 1.5, %v7677_v21  ;;  %v9004_v29 = vpop.eup %9003  ;;  %v7459_v33 = vmul.f32 %v17010_v11, %v17010_v11 }
 0x746   : > { %v7993_v56 = vadd.f32 %v16922_v40, %v7957_v23  ;;  %v7572_v46 = vadd.f32 1e-12, %v7540_v62  ;;  %v7685_v57 = vmul.f32 %v9004_v29, %v7571_v49  ;;  %vm7691_vm14 = vweird.f32 %v9004_v29 }
 0x747   : > { %v7679_v45 = vmul.f32 %v9002_v18, %v7678_v22  ;;  %7516 = vadd.xlane.f32.xlu0 %v7459_v33  ;;  %vm7692_vm0 = vmor %vm7690_vm15, %vm7691_vm14 }
 0x748   : > { %8025 = vst [vmem:[%s16937_s9 + $0x38] sm:$0xff] %v7993_v56  ;;  %9005 = vrsqrt.f32 %v7572_v46  ;;  %v7686_v16 = vmul.f32 %v9004_v29, %v7685_v57  ;;  %v7352_v54 = vpop.xlane.xlu2 %7351  ;;  %vm7700_vm11 = vweird.f32 %v7572_v46 }
 0x749   : > { %v7683_v63 = vsel %vm7682_vm12, %v9002_v18, %v7679_v45  ;;  %v7396_v8 = vmul.f32 %v16718_v20, %v7352_v54 }
 0x74a   : > { %v7922_v43 = vmul.f32 %v7683_v63, %v16811_v36  ;;  %v7687_v15 = vmul.f32 0.5, %v7686_v16 }
 0x74b   : > { %v7489_v53 = vpop.xlane.xlu1 %7488  ;;  %v17021_v58 = vsub.f32 %v16847_v7, %v7396_v8 }
 0x74c   : > { %v7958_v35 = vmul.f32 %v16916_v1, %v7922_v43  ;;  %v7541_v61 = vmul.f32 %v7489_v53, %v16718_v20  ;;  %v7688_v39 = vsub.f32 1.5, %v7687_v15 }
 0x74d   : > { %v7460_v36 = vmul.f32 %v17021_v58, %v17021_v58 }
 0x74e   : > { %v9006_v32 = vpop.eup %9005  ;;  %v7994_v51 = vadd.f32 %v16922_v40, %v7958_v35  ;;  %v7573_v28 = vadd.f32 1e-12, %v7541_v61  ;;  %v7689_v24 = vmul.f32 %v9004_v29, %v7688_v39 }
 0x74f   : > { %v7695_v18 = vmul.f32 %v9006_v32, %v7572_v46  ;;  %7518 = vadd.xlane.f32.xlu1 %v7460_v36  ;;  %vm7701_vm1 = vweird.f32 %v9006_v32 }
 0x750   : > { %8026 = vst [vmem:[%s16937_s9 + $0x40] sm:$0xff] %v7994_v51  ;;  %9007 = vrsqrt.f32 %v7573_v28  ;;  %v7693_v7 = vsel %vm7692_vm0, %v9004_v29, %v7689_v24  ;;  %v7354_v14 = vpop.xlane.xlu0 %7353  ;;  %vm7702_vm13 = vmor %vm7700_vm11, %vm7701_vm1  ;;  %vm7710_vm3 = vweird.f32 %v7573_v28 }
 0x751   : > { %v7696_v44 = vmul.f32 %v9006_v32, %v7695_v18  ;;  %v7923_v60 = vmul.f32 %v7693_v7, %v16822_v47  ;;  %v7397_v17 = vmul.f32 %v16718_v20, %v7354_v14 }
 0x752   : > { %v7491_v50 = vpop.xlane.xlu2 %7490 }
 0x753   : > { %v7697_v48 = vmul.f32 0.5, %v7696_v44  ;;  %v7959_v42 = vmul.f32 %v16916_v1, %v7923_v60  ;;  %v17032_v3 = vsub.f32 %v16858_v30, %v7397_v17  ;;  %v7542_v49 = vmul.f32 %v7491_v50, %v16718_v20 }
 0x755   : > { %v7698_v19 = vsub.f32 1.5, %v7697_v48  ;;  %v7995_v0 = vadd.f32 %v16922_v40, %v7959_v42  ;;  %v7574_v23 = vadd.f32 1e-12, %v7542_v49  ;;  %v7461_v47 = vmul.f32 %v17032_v3, %v17032_v3 }
 0x756   : > { %v9008_v21 = vpop.eup %9007 }
 0x757   : > { %v7699_v62 = vmul.f32 %v9006_v32, %v7698_v19  ;;  %v7705_v22 = vmul.f32 %v9008_v21, %v7573_v28  ;;  %8027 = vst [vmem:[%s16937_s9 + $0x48] sm:$0xff] %v7995_v0  ;;  %9009 = vrsqrt.f32 %v7574_v23  ;;  %7520 = vadd.xlane.f32.xlu2 %v7461_v47  ;;  %vm7711_vm2 = vweird.f32 %v9008_v21 }
 0x758   : > { %v7356_v56 = vpop.xlane.xlu1 %7355  ;;  %vm7712_vm4 = vmor %vm7710_vm3, %vm7711_vm2  ;;  %vm7720_vm6 = vweird.f32 %v7574_v23 }
 0x759   : > { %v7703_v30 = vsel %vm7702_vm13, %v9006_v32, %v7699_v62  ;;  %v7706_v29 = vmul.f32 %v9008_v21, %v7705_v22  ;;  %v7398_v45 = vmul.f32 %v16718_v20, %v7356_v56  ;;  %v7493_v63 = vpop.xlane.xlu0 %7492 }
 0x75a   : > { %v7924_v33 = vmul.f32 %v7703_v30, %v16833_v34  ;;  %v7543_v46 = vmul.f32 %v7493_v63, %v16718_v20 }
 0x75b   : > { %v7707_v57 = vmul.f32 0.5, %v7706_v29  ;;  %v17043_v54 = vsub.f32 %v16869_v13, %v7398_v45 }
 0x75c   : > { %v7960_v16 = vmul.f32 %v16916_v1, %v7924_v33  ;;  %v7575_v53 = vadd.f32 1e-12, %v7543_v46 }
 0x75d   : > { %v7708_v43 = vsub.f32 1.5, %v7707_v57  ;;  %v9010_v8 = vpop.eup %9009  ;;  %v7462_v34 = vmul.f32 %v17043_v54, %v17043_v54 }
 0x75e   : > { %v7996_v15 = vadd.f32 %v16922_v40, %v7960_v16  ;;  %v7715_v61 = vmul.f32 %v9010_v8, %v7574_v23  ;;  %9011 = vrsqrt.f32 %v7575_v53  ;;  %vm7721_vm5 = vweird.f32 %v9010_v8 }
 0x75f   : > { %v7709_v35 = vmul.f32 %v9008_v21, %v7708_v43  ;;  %7522 = vadd.xlane.f32.xlu0 %v7462_v34  ;;  %vm7722_vm7 = vmor %vm7720_vm6, %vm7721_vm5  ;;  %vm7730_vm9 = vweird.f32 %v7575_v53 }
 0x760   : > { %8028 = vst [vmem:[%s16937_s9 + $0x50] sm:$0xff] %v7996_v15  ;;  %v7716_v39 = vmul.f32 %v9010_v8, %v7715_v61  ;;  %v7358_v32 = vpop.xlane.xlu2 %7357 }
 0x761   : > { %v7713_v13 = vsel %vm7712_vm4, %v9008_v21, %v7709_v35  ;;  %v7399_v36 = vmul.f32 %v16718_v20, %v7358_v32 }
 0x762   : > { %v7925_v51 = vmul.f32 %v7713_v13, %v16844_v9  ;;  %v7717_v24 = vmul.f32 0.5, %v7716_v39 }
 0x763   : > { %v17054_v7 = vsub.f32 %v16876_v38, %v7399_v36 }
 0x764   : > { %v7961_v18 = vmul.f32 %v16916_v1, %v7925_v51  ;;  %v7718_v28 = vsub.f32 1.5, %v7717_v24  ;;  %v9012_v44 = vpop.eup %9011 }
 0x765   : > { %v7463_v60 = vmul.f32 %v17054_v7, %v17054_v7  ;;  %v7725_v48 = vmul.f32 %v9012_v44, %v7575_v53  ;;  %vm7731_vm8 = vweird.f32 %v9012_v44 }
 0x766   : > { %v7997_v14 = vadd.f32 %v16922_v40, %v7961_v18  ;;  %v7719_v17 = vmul.f32 %v9010_v8, %v7718_v28  ;;  %vm7732_vm10 = vmor %vm7730_vm9, %vm7731_vm8 }
 0x767   : > { %7524 = vadd.xlane.f32.xlu1 %v7463_v60  ;;  %v7726_v50 = vmul.f32 %v9012_v44, %v7725_v48 }
 0x768   : > { %8029 = vst [vmem:[%s16937_s9 + $0x58] sm:$0xff] %v7997_v14  ;;  %v7723_v9 = vsel %vm7722_vm7, %v9010_v8, %v7719_v17  ;;  %v7360_v42 = vpop.xlane.xlu0 %7359 }
 0x769   : > { %v7926_v38 = vmul.f32 %v7723_v9, %v16855_v55  ;;  %v7400_v49 = vmul.f32 %v16718_v20, %v7360_v42  ;;  %v7727_v19 = vmul.f32 0.5, %v7726_v50  ;;  %v7497_v21 = vpop.xlane.xlu2 %7496 }
 0x76a   : > { %v7545_v23 = vmul.f32 %v7497_v21, %v16718_v20 }
 0x76b   : > { %v7962_v0 = vmul.f32 %v16916_v1, %v7926_v38  ;;  %v17064_v47 = vsub.f32 %v16885_v2, %v7400_v49  ;;  %v7728_v62 = vsub.f32 1.5, %v7727_v19 }
 0x76c   : > { %v7577_v30 = vadd.f32 1e-12, %v7545_v23 }
 0x76d   : > { %v7998_v22 = vadd.f32 %v16922_v40, %v7962_v0  ;;  %v7464_v29 = vmul.f32 %v17064_v47, %v17064_v47  ;;  %v7729_v55 = vmul.f32 %v9012_v44, %v7728_v62 }
 0x76e   : > { %9013 = vrsqrt.f32 %v7577_v30  ;;  %vm7750_vm14 = vweird.f32 %v7577_v30 }
 0x76f   : > { %8030 = vst [vmem:[%s16937_s9 + $0x60] sm:$0xff] %v7998_v22  ;;  %7526 = vadd.xlane.f32.xlu2 %v7464_v29  ;;  %v7733_v56 = vsel %vm7732_vm10, %v9012_v44, %v7729_v55 }
 0x770   : > { %v7362_v2 = vpop.xlane.xlu1 %7361  ;;  %v7927_v33 = vmul.f32 %v7733_v56, %v16866_v25 }
 0x771   : > { %v7401_v45 = vmul.f32 %v16718_v20, %v7362_v2  ;;  %v7499_v57 = vpop.xlane.xlu0 %7498 }
 0x772   : > { %v7963_v63 = vmul.f32 %v16916_v1, %v7927_v33  ;;  %v7546_v46 = vmul.f32 %v7499_v57, %v16718_v20 }
 0x773   : > { %v17075_v16 = vsub.f32 %v16897_v52, %v7401_v45 }
 0x774   : > { %v9014_v43 = vpop.eup %9013  ;;  %v7999_v8 = vadd.f32 %v16922_v40, %v7963_v63  ;;  %v7578_v15 = vadd.f32 1e-12, %v7546_v46 }
 0x775   : > { %v7465_v53 = vmul.f32 %v17075_v16, %v17075_v16  ;;  %v7745_v34 = vmul.f32 %v9014_v43, %v7577_v30  ;;  %vm7751_vm12 = vweird.f32 %v9014_v43 }
 0x776   : > { %8031 = vst [vmem:[%s16937_s9 + $0x68] sm:$0xff] %v7999_v8  ;;  %9015 = vrsqrt.f32 %v7578_v15  ;;  %vm7752_vm15 = vmor %vm7750_vm14, %vm7751_vm12  ;;  %vm7760_vm1 = vweird.f32 %v7578_v15 }
 0x777   : > { %7528 = vadd.xlane.f32.xlu0 %v7465_v53  ;;  %v7746_v25 = vmul.f32 %v9014_v43, %v7745_v34 }
 0x778   : > { %v7495_v35 = vpop.xlane.xlu1 %7494 }
 0x779   : > { %v7544_v61 = vmul.f32 %v7495_v35, %v16718_v20  ;;  %v7747_v13 = vmul.f32 0.5, %v7746_v25 }
 0x77b   : > { %v7576_v52 = vadd.f32 1e-12, %v7544_v61  ;;  %v7748_v39 = vsub.f32 1.5, %v7747_v13 }
 0x77c   : > { %v9016_v32 = vpop.eup %9015 }
 0x77d   : > { %9017 = vrsqrt.f32 %v7576_v52  ;;  %v7749_v51 = vmul.f32 %v9014_v43, %v7748_v39  ;;  %v7755_v36 = vmul.f32 %v9016_v32, %v7578_v15  ;;  %vm7761_vm0 = vweird.f32 %v9016_v32 }
 0x77e   : > { %vm7762_vm11 = vmor %vm7760_vm1, %vm7761_vm0  ;;  %vm7740_vm2 = vweird.f32 %v7576_v52 }
 0x77f   : > { %v7753_v24 = vsel %vm7752_vm15, %v9014_v43, %v7749_v51  ;;  %v7756_v18 = vmul.f32 %v9016_v32, %v7755_v36 }
 0x780   : > { %v7501_v28 = vpop.xlane.xlu1 %7500  ;;  %v7929_v44 = vmul.f32 %v7753_v24, %v16882_v59 }
 0x781   : > { %v7547_v14 = vmul.f32 %v7501_v28, %v16718_v20  ;;  %v7757_v60 = vmul.f32 0.5, %v7756_v18  ;;  %v7503_v17 = vpop.xlane.xlu2 %7502 }
 0x782   : > { %v7965_v9 = vmul.f32 %v16916_v1, %v7929_v44  ;;  %v7548_v42 = vmul.f32 %v7503_v17, %v16718_v20 }
 0x783   : > { %v9018_v48 = vpop.eup %9017  ;;  %v7579_v50 = vadd.f32 1e-12, %v7547_v14  ;;  %v7758_v38 = vsub.f32 1.5, %v7757_v60 }
 0x784   : > { %v7735_v49 = vmul.f32 %v9018_v48, %v7576_v52  ;;  %v8001_v19 = vadd.f32 %v16922_v40, %v7965_v9  ;;  %v7580_v21 = vadd.f32 1e-12, %v7548_v42  ;;  %vm7741_vm13 = vweird.f32 %v9018_v48 }
 0x785   : > { %9019 = vrsqrt.f32 %v7579_v50  ;;  %v7759_v0 = vmul.f32 %v9016_v32, %v7758_v38  ;;  %vm7742_vm3 = vmor %vm7740_vm2, %vm7741_vm13  ;;  %vm7770_vm5 = vweird.f32 %v7579_v50 }
 0x786   : > { %v7736_v59 = vmul.f32 %v9018_v48, %v7735_v49  ;;  %8033 = vst [vmem:[%s16937_s9 + $0x78] sm:$0xff] %v8001_v19  ;;  %9021 = vrsqrt.f32 %v7580_v21  ;;  %vm7780_vm8 = vweird.f32 %v7580_v21 }
 0x787   : > { %v7763_v23 = vsel %vm7762_vm11, %v9016_v32, %v7759_v0 }
 0x788   : > { %v7737_v62 = vmul.f32 0.5, %v7736_v59  ;;  %v7930_v22 = vmul.f32 %v7763_v23, %v16894_v4 }
 0x789   : > { %v7505_v29 = vpop.xlane.xlu0 %7504 }
 0x78a   : > { %v7738_v30 = vsub.f32 1.5, %v7737_v62  ;;  %v7966_v56 = vmul.f32 %v16916_v1, %v7930_v22  ;;  %v7549_v2 = vmul.f32 %v7505_v29, %v16718_v20 }
 0x78b   : > { %v9020_v55 = vpop.eup %9019 }
 0x78c   : > { %v7739_v33 = vmul.f32 %v9018_v48, %v7738_v30  ;;  %v7765_v45 = vmul.f32 %v9020_v55, %v7579_v50  ;;  %v9022_v57 = vpop.eup %9021  ;;  %v8002_v63 = vadd.f32 %v16922_v40, %v7966_v56  ;;  %v7581_v46 = vadd.f32 1e-12, %v7549_v2 }
 0x78d   : > { %v7775_v4 = vmul.f32 %v9022_v57, %v7580_v21  ;;  %vm7771_vm4 = vweird.f32 %v9020_v55  ;;  %vm7781_vm6 = vweird.f32 %v9022_v57 }
 0x78e   : > { %v7743_v43 = vsel %vm7742_vm3, %v9018_v48, %v7739_v33  ;;  %v7766_v8 = vmul.f32 %v9020_v55, %v7765_v45  ;;  %8034 = vst [vmem:[%s16937_s9 + $0x80] sm:$0xff] %v8002_v63  ;;  %9023 = vrsqrt.f32 %v7581_v46  ;;  %vm7772_vm7 = vmor %vm7770_vm5, %vm7771_vm4  ;;  %vm7790_vm12 = vweird.f32 %v7581_v46 }
 0x78f   : > { %v7928_v15 = vmul.f32 %v7743_v43, %v16904_v12  ;;  %v7776_v34 = vmul.f32 %v9022_v57, %v7775_v4  ;;  %vm7782_vm9 = vmor %vm7780_vm8, %vm7781_vm6 }
 0x790   : > { %v7767_v53 = vmul.f32 0.5, %v7766_v8 }
 0x791   : > { %v7964_v25 = vmul.f32 %v16916_v1, %v7928_v15  ;;  %v7777_v61 = vmul.f32 0.5, %v7776_v34  ;;  %v7507_v13 = vpop.xlane.xlu1 %7506 }
 0x792   : > { %v7768_v35 = vsub.f32 1.5, %v7767_v53  ;;  %v7550_v39 = vmul.f32 %v7507_v13, %v16718_v20 }
 0x793   : > { %v8000_v52 = vadd.f32 %v16922_v40, %v7964_v25  ;;  %v7778_v51 = vsub.f32 1.5, %v7777_v61 }
 0x794   : > { %v7769_v32 = vmul.f32 %v9020_v55, %v7768_v35  ;;  %v9024_v36 = vpop.eup %9023  ;;  %v7582_v12 = vadd.f32 1e-12, %v7550_v39 }
 0x795   : > { %8032 = vst [vmem:[%s16937_s9 + $0x70] sm:$0xff] %v8000_v52  ;;  %v7779_v18 = vmul.f32 %v9022_v57, %v7778_v51  ;;  %v7785_v28 = vmul.f32 %v9024_v36, %v7581_v46  ;;  %vm7791_vm10 = vweird.f32 %v9024_v36 }
 0x796   : > { %v7773_v24 = vsel %vm7772_vm7, %v9020_v55, %v7769_v32  ;;  %9025 = vrsqrt.f32 %v7582_v12  ;;  %vm7792_vm14 = vmor %vm7790_vm12, %vm7791_vm10  ;;  %vm7800_vm0 = vweird.f32 %v7582_v12 }
 0x797   : > { %v7931_v44 = vmul.f32 %v7773_v24, %v16911_v31  ;;  %v7783_v14 = vsel %vm7782_vm9, %v9022_v57, %v7779_v18  ;;  %v7786_v60 = vmul.f32 %v9024_v36, %v7785_v28 }
 0x798   : > { %v7932_v48 = vmul.f32 %v7783_v14, %v16926_v10 }
 0x799   : > { %v7967_v17 = vmul.f32 %v16916_v1, %v7931_v44  ;;  %v7787_v9 = vmul.f32 0.5, %v7786_v60  ;;  %v7509_v50 = vpop.xlane.xlu2 %7508 }
 0x79a   : > { %v7968_v38 = vmul.f32 %v16916_v1, %v7932_v48  ;;  %v7551_v49 = vmul.f32 %v7509_v50, %v16718_v20 }
 0x79b   : > { %v8003_v42 = vadd.f32 %v16922_v40, %v7967_v17  ;;  %v7788_v19 = vsub.f32 1.5, %v7787_v9 }
 0x79c   : > { %v9026_v31 = vpop.eup %9025  ;;  %v8004_v21 = vadd.f32 %v16922_v40, %v7968_v38  ;;  %v7583_v0 = vadd.f32 1e-12, %v7551_v49 }
 0x79d   : > { %8035 = vst [vmem:[%s16937_s9 + $0x88] sm:$0xff] %v8003_v42  ;;  %v7789_v59 = vmul.f32 %v9024_v36, %v7788_v19  ;;  %v7795_v23 = vmul.f32 %v9026_v31, %v7582_v12  ;;  %vm7801_vm15 = vweird.f32 %v9026_v31 }
 0x79e   : > { %8036 = vst [vmem:[%s16937_s9 + $0x90] sm:$0xff] %v8004_v21  ;;  %9027 = vrsqrt.f32 %v7583_v0  ;;  %vm7802_vm1 = vmor %vm7800_vm0, %vm7801_vm15  ;;  %vm7810_vm13 = vweird.f32 %v7583_v0 }
 0x79f   : > { %v7793_v10 = vsel %vm7792_vm14, %v9024_v36, %v7789_v59  ;;  %v7796_v62 = vmul.f32 %v9026_v31, %v7795_v23 }
 0x7a0   : > { %v7933_v22 = vmul.f32 %v7793_v10, %v16943_v41 }
 0x7a1   : > { %v7797_v30 = vmul.f32 0.5, %v7796_v62  ;;  %v7511_v29 = vpop.xlane.xlu0 %7510 }
 0x7a2   : > { %v7969_v55 = vmul.f32 %v16916_v1, %v7933_v22  ;;  %v7552_v56 = vmul.f32 %v7511_v29, %v16718_v20 }
 0x7a3   : > { %v7798_v2 = vsub.f32 1.5, %v7797_v30 }
 0x7a4   : > { %v9028_v33 = vpop.eup %9027  ;;  %v8005_v45 = vadd.f32 %v16922_v40, %v7969_v55  ;;  %v7584_v57 = vadd.f32 1e-12, %v7552_v56 }
 0x7a5   : > { %v7799_v63 = vmul.f32 %v9026_v31, %v7798_v2  ;;  %v7805_v46 = vmul.f32 %v9028_v33, %v7583_v0  ;;  %vm7811_vm11 = vweird.f32 %v9028_v33 }
 0x7a6   : > { %8037 = vst [vmem:[%s16937_s9 + $0x98] sm:$0xff] %v8005_v45  ;;  %9029 = vrsqrt.f32 %v7584_v57  ;;  %vm7812_vm2 = vmor %vm7810_vm13, %vm7811_vm11  ;;  %vm7820_vm4 = vweird.f32 %v7584_v57 }
 0x7a7   : > { %v7803_v41 = vsel %vm7802_vm1, %v9026_v31, %v7799_v63  ;;  %v7806_v43 = vmul.f32 %v9028_v33, %v7805_v46 }
 0x7a8   : > { %v7934_v8 = vmul.f32 %v7803_v41, %v16955_v6 }
 0x7a9   : > { %v7807_v4 = vmul.f32 0.5, %v7806_v43  ;;  %v7513_v15 = vpop.xlane.xlu1 %7512 }
 0x7aa   : > { %v7970_v53 = vmul.f32 %v16916_v1, %v7934_v8  ;;  %v7553_v34 = vmul.f32 %v7513_v15, %v16718_v20 }
 0x7ab   : > { %v7808_v25 = vsub.f32 1.5, %v7807_v4  ;;  %v17137_v4 = vld [vmem:[%s17219_s5] ss:$0 sm:$0xff] }
 0x7ac   : > { %v9030_v35 = vpop.eup %9029  ;;  %v8006_v61 = vadd.f32 %v16922_v40, %v7970_v53  ;;  %v7585_v13 = vadd.f32 1e-12, %v7553_v34 }
 0x7ad   : > { %v7809_v52 = vmul.f32 %v9028_v33, %v7808_v25  ;;  %v7815_v39 = vmul.f32 %v9030_v35, %v7584_v57  ;;  %vm7821_vm3 = vweird.f32 %v9030_v35 }
 0x7ae   : > { %8038 = vst [vmem:[%s16937_s9 + $0xa0] sm:$0xff] %v8006_v61  ;;  %9031 = vrsqrt.f32 %v7585_v13  ;;  %vm7822_vm5 = vmor %vm7820_vm4, %vm7821_vm3  ;;  %vm7830_vm7 = vweird.f32 %v7585_v13 }
 0x7af   : > { %v7813_v6 = vsel %vm7812_vm2, %v9028_v33, %v7809_v52  ;;  %v7816_v32 = vmul.f32 %v9030_v35, %v7815_v39 }
 0x7b0   : > { %v7935_v51 = vmul.f32 %v7813_v6, %v16966_v5 }
 0x7b1   : > { %v7817_v36 = vmul.f32 0.5, %v7816_v32 }
 0x7b2   : > { %v7515_v12 = vpop.xlane.xlu2 %7514  ;;  %v7971_v24 = vmul.f32 %v16916_v1, %v7935_v51 }
 0x7b3   : > { %v7554_v18 = vmul.f32 %v7515_v12, %v16718_v20  ;;  %v7818_v28 = vsub.f32 1.5, %v7817_v36 }
 0x7b4   : > { %v9032_v44 = vpop.eup %9031  ;;  %v8007_v14 = vadd.f32 %v16922_v40, %v7971_v24 }
 0x7b5   : > { %v7586_v60 = vadd.f32 1e-12, %v7554_v18  ;;  %v7819_v17 = vmul.f32 %v9030_v35, %v7818_v28  ;;  %v7825_v48 = vmul.f32 %v9032_v44, %v7585_v13  ;;  %vm7831_vm6 = vweird.f32 %v9032_v44  ;;  %v17149_v18 = vld [vmem:[%s17220_s6] ss:$0 sm:$0xff] }
 0x7b6   : > { %8039 = vst [vmem:[%s16937_s9 + $0xa8] sm:$0xff] %v8007_v14  ;;  %vm7832_vm8 = vmor %vm7830_vm7, %vm7831_vm6 }
 0x7b7   : > { %9033 = vrsqrt.f32 %v7586_v60  ;;  %v7823_v5 = vsel %vm7822_vm5, %v9030_v35, %v7819_v17  ;;  %v7826_v9 = vmul.f32 %v9032_v44, %v7825_v48  ;;  %vm7840_vm10 = vweird.f32 %v7586_v60 }
 0x7b8   : > { %v7936_v50 = vmul.f32 %v7823_v5, %v16977_v37 }
 0x7b9   : > { %v7827_v42 = vmul.f32 0.5, %v7826_v9 }
 0x7ba   : > { %v7517_v38 = vpop.xlane.xlu0 %7516  ;;  %v7972_v49 = vmul.f32 %v16916_v1, %v7936_v50 }
 0x7bb   : > { %v7555_v19 = vmul.f32 %v7517_v38, %v16718_v20  ;;  %v7828_v31 = vsub.f32 1.5, %v7827_v42 }
 0x7bc   : > { %v8008_v0 = vadd.f32 %v16922_v40, %v7972_v49 }
 0x7bd   : > { %v9034_v21 = vpop.eup %9033  ;;  %v7587_v59 = vadd.f32 1e-12, %v7555_v19  ;;  %v7829_v23 = vmul.f32 %v9032_v44, %v7828_v31 }
 0x7be   : > { %v7835_v10 = vmul.f32 %v9034_v21, %v7586_v60  ;;  %8040 = vst [vmem:[%s16937_s9 + $0xb0] sm:$0xff] %v8008_v0  ;;  %vm7841_vm9 = vweird.f32 %v9034_v21 }
 0x7bf   : > { %9035 = vrsqrt.f32 %v7587_v59  ;;  %v7833_v37 = vsel %vm7832_vm8, %v9032_v44, %v7829_v23  ;;  %vm7842_vm12 = vmor %vm7840_vm10, %vm7841_vm9  ;;  %vm7850_vm15 = vweird.f32 %v7587_v59 }
 0x7c0   : > { %v7836_v62 = vmul.f32 %v9034_v21, %v7835_v10  ;;  %v7937_v22 = vmul.f32 %v7833_v37, %v16988_v27 }
 0x7c2   : > { %v7837_v30 = vmul.f32 0.5, %v7836_v62  ;;  %v7519_v29 = vpop.xlane.xlu1 %7518  ;;  %v7973_v55 = vmul.f32 %v16916_v1, %v7937_v22 }
 0x7c3   : > { %v7556_v56 = vmul.f32 %v7519_v29, %v16718_v20 }
 0x7c4   : > { %v7838_v2 = vsub.f32 1.5, %v7837_v30  ;;  %v8009_v45 = vadd.f32 %v16922_v40, %v7973_v55 }
 0x7c5   : > { %v9036_v33 = vpop.eup %9035  ;;  %v7588_v57 = vadd.f32 1e-12, %v7556_v56 }
 0x7c6   : > { %v7839_v63 = vmul.f32 %v9034_v21, %v7838_v2  ;;  %v7845_v46 = vmul.f32 %v9036_v33, %v7587_v59  ;;  %8041 = vst [vmem:[%s16937_s9 + $0xb8] sm:$0xff] %v8009_v45  ;;  %vm7851_vm14 = vweird.f32 %v9036_v33 }
 0x7c7   : > { %9037 = vrsqrt.f32 %v7588_v57  ;;  %vm7852_vm0 = vmor %vm7850_vm15, %vm7851_vm14  ;;  %vm7860_vm11 = vweird.f32 %v7588_v57 }
 0x7c8   : > { %v7843_v41 = vsel %vm7842_vm12, %v9034_v21, %v7839_v63  ;;  %v7846_v27 = vmul.f32 %v9036_v33, %v7845_v46 }
 0x7c9   : > { %v7938_v43 = vmul.f32 %v7843_v41, %v16999_v26 }
 0x7ca   : > { %v7847_v1 = vmul.f32 0.5, %v7846_v27  ;;  %v7521_v8 = vpop.xlane.xlu2 %7520 }
 0x7cb   : > { %v7974_v15 = vmul.f32 %v17137_v4, %v7938_v43  ;;  %v7557_v53 = vmul.f32 %v7521_v8, %v16718_v20 }
 0x7cc   : > { %v7848_v34 = vsub.f32 1.5, %v7847_v1 }
 0x7cd   : > { %v9038_v25 = vpop.eup %9037  ;;  %v8010_v35 = vadd.f32 %v16922_v40, %v7974_v15  ;;  %v7589_v61 = vadd.f32 1e-12, %v7557_v53 }
 0x7ce   : > { %v7849_v13 = vmul.f32 %v9036_v33, %v7848_v34  ;;  %v7855_v26 = vmul.f32 %v9038_v25, %v7588_v57  ;;  %vm7861_vm1 = vweird.f32 %v9038_v25 }
 0x7cf   : > { %8042 = vst [vmem:[%s16937_s9 + $0xc0] sm:$0xff] %v8010_v35  ;;  %9039 = vrsqrt.f32 %v7589_v61  ;;  %vm7862_vm13 = vmor %vm7860_vm11, %vm7861_vm1  ;;  %vm7870_vm3 = vweird.f32 %v7589_v61 }
 0x7d0   : > { %v7853_v52 = vsel %vm7852_vm0, %v9036_v33, %v7849_v13  ;;  %v7856_v39 = vmul.f32 %v9038_v25, %v7855_v26 }
 0x7d1   : > { %v7939_v6 = vmul.f32 %v7853_v52, %v17010_v11 }
 0x7d2   : > { %v7857_v32 = vmul.f32 0.5, %v7856_v39  ;;  %v7523_v51 = vpop.xlane.xlu0 %7522 }
 0x7d3   : > { %v7975_v36 = vmul.f32 %v17137_v4, %v7939_v6  ;;  %v7558_v12 = vmul.f32 %v7523_v51, %v16718_v20 }
 0x7d4   : > { %v7858_v24 = vsub.f32 1.5, %v7857_v32 }
 0x7d5   : > { %v9040_v40 = vpop.eup %9039  ;;  %v8011_v28 = vadd.f32 %v17149_v18, %v7975_v36  ;;  %v7590_v44 = vadd.f32 1e-12, %v7558_v12 }
 0x7d6   : > { %v7859_v14 = vmul.f32 %v9038_v25, %v7858_v24  ;;  %v7865_v11 = vmul.f32 %v9040_v40, %v7589_v61  ;;  %vm7871_vm2 = vweird.f32 %v9040_v40 }
 0x7d7   : > { %8043 = vst [vmem:[%s16937_s9 + $0xc8] sm:$0xff] %v8011_v28  ;;  %9041 = vrsqrt.f32 %v7590_v44  ;;  %vm7872_vm4 = vmor %vm7870_vm3, %vm7871_vm2  ;;  %vm7880_vm6 = vweird.f32 %v7590_v44 }
 0x7d8   : > { %v7863_v60 = vsel %vm7862_vm13, %v9038_v25, %v7859_v14  ;;  %v7866_v17 = vmul.f32 %v9040_v40, %v7865_v11 }
 0x7d9   : > { %v7940_v48 = vmul.f32 %v7863_v60, %v17021_v58 }
 0x7da   : > { %v7867_v5 = vmul.f32 0.5, %v7866_v17  ;;  %v7525_v9 = vpop.xlane.xlu1 %7524 }
 0x7db   : > { %v7976_v50 = vmul.f32 %v17137_v4, %v7940_v48  ;;  %v7559_v42 = vmul.f32 %v7525_v9, %v16718_v20 }
 0x7dc   : > { %v7868_v38 = vsub.f32 1.5, %v7867_v5 }
 0x7dd   : > { %v9042_v49 = vpop.eup %9041  ;;  %v8012_v19 = vadd.f32 %v17149_v18, %v7976_v50  ;;  %v7591_v31 = vadd.f32 1e-12, %v7559_v42 }
 0x7de   : > { %v7869_v21 = vmul.f32 %v9040_v40, %v7868_v38  ;;  %v7875_v0 = vmul.f32 %v9042_v49, %v7590_v44  ;;  %vm7881_vm5 = vweird.f32 %v9042_v49 }
 0x7df   : > { %8044 = vst [vmem:[%s16937_s9 + $0xd0] sm:$0xff] %v8012_v19  ;;  %9043 = vrsqrt.f32 %v7591_v31  ;;  %vm7882_vm7 = vmor %vm7880_vm6, %vm7881_vm5  ;;  %vm7890_vm9 = vweird.f32 %v7591_v31 }
 0x7e0   : > { %v7873_v58 = vsel %vm7872_vm4, %v9040_v40, %v7869_v21  ;;  %v7876_v59 = vmul.f32 %v9042_v49, %v7875_v0 }
 0x7e1   : > { %v7941_v23 = vmul.f32 %v7873_v58, %v17032_v3 }
 0x7e2   : > { %v7877_v10 = vmul.f32 0.5, %v7876_v59  ;;  %v7527_v37 = vpop.xlane.xlu2 %7526 }
 0x7e3   : > { %v7977_v62 = vmul.f32 %v17137_v4, %v7941_v23  ;;  %v7560_v22 = vmul.f32 %v7527_v37, %v16718_v20 }
 0x7e4   : > { %v7878_v30 = vsub.f32 1.5, %v7877_v10 }
 0x7e5   : > { %v9044_v29 = vpop.eup %9043  ;;  %v8013_v55 = vadd.f32 %v17149_v18, %v7977_v62  ;;  %v7592_v56 = vadd.f32 1e-12, %v7560_v22 }
 0x7e6   : > { %v7879_v2 = vmul.f32 %v9042_v49, %v7878_v30  ;;  %v7885_v33 = vmul.f32 %v9044_v29, %v7591_v31  ;;  %vm7891_vm8 = vweird.f32 %v9044_v29 }
 0x7e7   : > { %8045 = vst [vmem:[%s16937_s9 + $0xd8] sm:$0xff] %v8013_v55  ;;  %9045 = vrsqrt.f32 %v7592_v56  ;;  %vm7892_vm10 = vmor %vm7890_vm9, %vm7891_vm8  ;;  %vm7900_vm14 = vweird.f32 %v7592_v56 }
 0x7e8   : > { %v7883_v3 = vsel %vm7882_vm7, %v9042_v49, %v7879_v2  ;;  %v7886_v45 = vmul.f32 %v9044_v29, %v7885_v33 }
 0x7e9   : > { %v7942_v57 = vmul.f32 %v7883_v3, %v17043_v54 }
 0x7ea   : > { %v7887_v63 = vmul.f32 0.5, %v7886_v45  ;;  %v7529_v46 = vpop.xlane.xlu0 %7528 }
 0x7eb   : > { %v7978_v41 = vmul.f32 %v17137_v4, %v7942_v57  ;;  %v7561_v27 = vmul.f32 %v7529_v46, %v16718_v20 }
 0x7ec   : > { %v7888_v43 = vsub.f32 1.5, %v7887_v63 }
 0x7ed   : > { %v9046_v1 = vpop.eup %9045  ;;  %v8014_v8 = vadd.f32 %v17149_v18, %v7978_v41  ;;  %v7593_v15 = vadd.f32 1e-12, %v7561_v27 }
 0x7ee   : > { %v7889_v53 = vmul.f32 %v9044_v29, %v7888_v43  ;;  %v7895_v34 = vmul.f32 %v9046_v1, %v7592_v56  ;;  %vm7901_vm12 = vweird.f32 %v9046_v1 }
 0x7ef   : > { %8046 = vst [vmem:[%s16937_s9 + $0xe0] sm:$0xff] %v8014_v8  ;;  %9047 = vrsqrt.f32 %v7593_v15  ;;  %vm7902_vm15 = vmor %vm7900_vm14, %vm7901_vm12  ;;  %vm7910_vm1 = vweird.f32 %v7593_v15 }
 0x7f0   : > { %v7893_v54 = vsel %vm7892_vm10, %v9044_v29, %v7889_v53  ;;  %v7896_v25 = vmul.f32 %v9046_v1, %v7895_v34 }
 0x7f1   : > { %v7943_v35 = vmul.f32 %v7893_v54, %v17054_v7 }
 0x7f2   : > { %v7897_v61 = vmul.f32 0.5, %v7896_v25 }
 0x7f3   : > { %v7979_v20 = vmul.f32 %v17137_v4, %v7943_v35 }
 0x7f4   : > { %v7898_v13 = vsub.f32 1.5, %v7897_v61 }
 0x7f5   : > { %v9048_v26 = vpop.eup %9047  ;;  %v8015_v52 = vadd.f32 %v17149_v18, %v7979_v20 }
 0x7f6   : > { %v7899_v39 = vmul.f32 %v9046_v1, %v7898_v13  ;;  %v7905_v6 = vmul.f32 %v9048_v26, %v7593_v15  ;;  %vm7911_vm0 = vweird.f32 %v9048_v26 }
 0x7f7   : > { %8047 = vst [vmem:[%s16937_s9 + $0xe8] sm:$0xff] %v8015_v52  ;;  %vm7912_vm11 = vmor %vm7910_vm1, %vm7911_vm0 }
 0x7f8   : > { %v7903_v32 = vsel %vm7902_vm15, %v9046_v1, %v7899_v39  ;;  %v7906_v51 = vmul.f32 %v9048_v26, %v7905_v6 }
 0x7f9   : > { %v7944_v7 = vmul.f32 %v7903_v32, %v17064_v47 }
 0x7fa   : > { %v7907_v36 = vmul.f32 0.5, %v7906_v51 }
 0x7fb   : > { %v7980_v12 = vmul.f32 %v17137_v4, %v7944_v7 }
 0x7fc   : > { %v7908_v24 = vsub.f32 1.5, %v7907_v36 }
 0x7fd   : > { %v8016_v40 = vadd.f32 %v17149_v18, %v7980_v12 }
 0x7fe   : > { %v7909_v28 = vmul.f32 %v9048_v26, %v7908_v24 }
 0x7ff   : > { %8048 = vst [vmem:[%s16937_s9 + $0xf0] sm:$0xff] %v8016_v40 }
 0x800   : > { %v7913_v47 = vsel %vm7912_vm11, %v9048_v26, %v7909_v28 }
 0x801   : > { %v7945_v44 = vmul.f32 %v7913_v47, %v17075_v16 }
 0x803   : > { %v7981_v14 = vmul.f32 %v17137_v4, %v7945_v44 }
 0x805   : > { %v8017_v11 = vadd.f32 %v17149_v18, %v7981_v14 }
 0x807   : > { %8049 = vst [vmem:[%s16937_s9 + $0xf8] sm:$0xff] %v8017_v11 }
 0x808   : > { %9231 = shalt.err (!%p9228_p10)
}
 0x809   : > { %s9290_s21 = smov 128   ;;  %s9291_s9 = smov 8  }
 0x80a   : > { %8652 = dma.vmem_to_hbm [thread:$0]  (%p9415_p7), %s8064_s11, 4096, %s8066_s28, %s8051_s14, %s9290_s21, %s9290_s21, %s9291_s9  }
 0x80b PF: > { %s8080_s22 = sand.u32 1, %s9266_s24   ;;  %p17912_p12 = scmp.ge.s32.totalorder %s9278_s27, 2 }
 0x80c   : > { %s8081_s30 = scalar_lea.sflag [#allocation4], %s8080_s22 }
 0x80d   : > { %p8669_p13 = pnand %p17912_p12, %p9367_p6 }
 0x80f   : > { %p8670_p0 = pneg %p8669_p13 }
 0x811   : > { %9261 = dma.done.wait (%p8670_p0), %s8081_s30, 4096  }
 0x812   : > { %9263 = vsyncadd (%p8670_p0), %s8081_s30, 4294963200  ;;  %p22_p3 = scmp.ge.s32.totalorder %s9401_s16, 4   ;;  %s17913_s24 = smov %s9270_s25 }
 0x813   : > { %s17914_s25 = smov %s9274_s26  ;;  %s17915_s26 = smov %s9411_s18 }
 0x814   : > { %s17916_s27 = smov %s9401_s16  ;;  %24 = sbr.rel (!%p22_p3) target bundleno = 9 (0x9), region = 105 }
 0x819   :  { %8087 = vsyncpa [#allocation3], 1 }
 0x81a   :  { %8089 = vsyncpa [#allocation3 + $0x1], 1 }
 0x81b   :  { %8090 = vsyncpa [#allocation6], 1 }
 0x81c   :  { %8091 = vsyncpa [#allocation9], 1 }
 0x81d   :  { %8092 = vsyncpa [#allocation4], 1 }
 0x81e   :  { %8094 = vsyncpa [#allocation4 + $0x1], 1 }

</bundles_post_ra>
